<compile_context>
chip_gen: v7x
topology: tpu7x:2x2x1
jax: 0.10.0
libtpu: 0.0.40
codegen_flags: <defaults>
</compile_context>

<pallas_src>
import functools
import math

import jax
import jax.numpy as jnp
from jax.experimental import pallas as pl
from jax.experimental.pallas import tpu as pltpu

_SQRT2_INV = 0.7071067811865476
_VMEM_LIMIT_BYTES = 48 * 1024 * 1024          # safe on v5e/v6e (128 MiB) and v7x (64 MiB)
_POINTWISE_TARGET_BYTES = 2 * 1024 * 1024     # per streamed buffer
_HEAD_TARGET_BYTES = 3 * 1024 * 1024


def _gelu_exact(x):
    # matches torch.nn.functional.gelu default (erf-based)
    return 0.5 * x * (1.0 + jax.lax.erf(x * _SQRT2_INV))


def _compiler_params(dims):
    return pltpu.CompilerParams(dimension_semantics=dims,
                                vmem_limit_bytes=_VMEM_LIMIT_BYTES)


def _pick_lane_tile(n_lanes, bytes_per_lane, target_bytes, min_tiles=1):
    """Lane-axis tile: largest multiple-of-128 divisor of n_lanes under a byte
    budget.  If n_lanes is not a multiple of 128 and too big for one block,
    fall back to a pl.cdiv grid with a masked ragged tail (never a whole-array
    block).  Returns (tile, num_tiles)."""
    cap = max(128, (target_bytes // max(bytes_per_lane, 1)) // 128 * 128)
    if n_lanes % 128 != 0:
        if n_lanes <= cap:
            return n_lanes, 1
        return cap, pl.cdiv(n_lanes, cap)
    limit = min(cap, max(128, (n_lanes // max(min_tiles, 1)) // 128 * 128))
    best, t = 128, 128
    while t <= limit:
        if n_lanes % t == 0:
            best = t
        t += 128
    return best, pl.cdiv(n_lanes, best)


def _pick_mode_block(mp, cin, cout, batch,
                     weight_budget=3 * 1024 * 1024, acc_elems=24 * 1024):
    """Mode-axis block for the spectral mix: bounded by the 3 streamed weight
    tensors (v7x VMEM) and by 3 live f32 accumulators (vreg pressure)."""
    cap_w = max(128, (weight_budget // (cin * cout * 4 * 3)) // 128 * 128)
    cap_a = max(128, (acc_elems // (3 * cout)) // 128 * 128)
    cap = min(cap_w, cap_a, mp)
    if batch == 1 and mp >= 256:       # keep >=2 grid steps for v7x megacore
        cap = min(cap, max(128, (mp // 2) // 128 * 128))
    best, t = 128, 128
    while t <= cap:
        if mp % t == 0:
            best = t
        t += 128
    return best


# ---------------------------------------------------------------------------
# Channels-first pointwise channel mix helpers.
#   out[o, s] = sum_i w[i, o] * x[i, s]
# Small contractions use an unrolled VPU broadcast-FMA (weights pre-packed as
# (Cin, Cout, 1) columns); larger ones use the MXU.
# ---------------------------------------------------------------------------
def _channel_mix(x_ref, w_ref, cin, use_fma):
    if use_fma:
        cout = w_ref.shape[1]
        st = x_ref.shape[-1]
        acc = jnp.zeros((cout, st), jnp.float32)
        for i in range(cin):
            acc = acc + w_ref[i] * x_ref[i][None, :]     # (Cout,1)*(1,St)
        return acc
    # dot path: w_ref is (Cout, Cin)
    return jnp.dot(w_ref[...], x_ref[...], preferred_element_type=jnp.float32)


def _cf_linear_kernel(x_ref, w_ref, b_ref, o_ref, *, cin, use_fma, act):
    acc = _channel_mix(x_ref, w_ref, cin, use_fma) + b_ref[...]
    if act == "gelu":
        acc = _gelu_exact(acc)
    o_ref[...] = acc.astype(o_ref.dtype)


def _cf_residual_kernel(h_ref, s_ref, w_ref, b_ref, o_ref, *, cin, use_fma, act):
    acc = _channel_mix(h_ref, w_ref, cin, use_fma) + b_ref[...] + s_ref[...]
    if act == "gelu":
        acc = _gelu_exact(acc)
    o_ref[...] = acc.astype(o_ref.dtype)


def pallas_cf_pointwise(h, w, b, spec=None, act="none", alias_h=False,
                        target_bytes=_POINTWISE_TARGET_BYTES):
    """Channels-first pointwise layer: out[b,o,s] = act(sum_i w[i,o]*h[b,i,s]
    + b[o] (+ spec[b,o,s])).  h, spec: (B, Cin/Cout, S); out: (B, Cout, S)."""
    B, Cin, S = h.shape
    Cout = w.shape[1]
    use_fma = Cin <= 16
    if use_fma:
        w_k = w.reshape(Cin, Cout, 1)                    # per-channel columns
        w_spec = pl.BlockSpec((Cin, Cout, 1), lambda bb, ss: (0, 0, 0))
    else:
        w_k = jnp.transpose(w)                           # (Cout, Cin) for MXU
        w_spec = pl.BlockSpec((Cout, Cin), lambda bb, ss: (0, 0))
    b_col = b.reshape(Cout, 1)

    n_streams = 2 + (1 if spec is not None else 0)
    bytes_per_lane = 4 * (Cin + (n_streams - 1) * Cout)
    tile, n_s = _pick_lane_tile(S, bytes_per_lane, target_bytes,
                                min_tiles=2 if B == 1 else 1)

    x_spec = pl.BlockSpec((None, Cin, tile), lambda bb, ss: (bb, 0, ss))
    o_spec = pl.BlockSpec((None, Cout, tile), lambda bb, ss: (bb, 0, ss))
    b_spec = pl.BlockSpec((Cout, 1), lambda bb, ss: (0, 0))

    if spec is None:
        kernel = functools.partial(_cf_linear_kernel, cin=Cin,
                                   use_fma=use_fma, act=act)
        in_specs = [x_spec, w_spec, b_spec]
        args = (h, w_k, b_col)
        io_alias = {}
    else:
        kernel = functools.partial(_cf_residual_kernel, cin=Cin,
                                   use_fma=use_fma, act=act)
        in_specs = [x_spec, o_spec, w_spec, b_spec]
        args = (h, spec, w_k, b_col)
        io_alias = {0: 0} if (alias_h and Cin == Cout) else {}

    return pl.pallas_call(
        kernel,
        out_shape=jax.ShapeDtypeStruct((B, Cout, S), jnp.float32),
        grid_spec=pltpu.PrefetchScalarGridSpec(
            num_scalar_prefetch=0,
            grid=(B, n_s),
            in_specs=in_specs,
            out_specs=o_spec),
        input_output_aliases=io_alias,
        compiler_params=_compiler_params(("parallel", "parallel")),
    )(*args)


# ---------------------------------------------------------------------------
# Fused projection head (channels-first): out = W2cf @ gelu(W1cf @ x + b1) + b2
# The (128, tile) intermediate never leaves VMEM.
# ---------------------------------------------------------------------------
def _head_kernel(x_ref, w1_ref, b1_ref, w2_ref, b2_ref, o_ref):
    mid = jnp.dot(w1_ref[...], x_ref[...], preferred_element_type=jnp.float32)
    mid = _gelu_exact(mid + b1_ref[...])
    out = jnp.dot(w2_ref[...], mid, preferred_element_type=jnp.float32) + b2_ref[...]
    o_ref[...] = out.astype(o_ref.dtype)


def pallas_cf_head(h, w1, b1, w2, b2, target_bytes=_HEAD_TARGET_BYTES):
    B, Cin, S = h.shape
    Hid = w1.shape[1]
    Cout = w2.shape[1]
    w1cf = jnp.transpose(w1)           # (Hid, Cin)
    w2cf = jnp.transpose(w2)           # (Cout, Hid)
    b1c = b1.reshape(Hid, 1)
    b2c = b2.reshape(Cout, 1)
    # tile bounded by input block + VMEM-resident intermediate + output block
    bytes_per_lane = 4 * (Cin + Hid + Cout)
    tile, n_s = _pick_lane_tile(S, bytes_per_lane, target_bytes,
                                min_tiles=2 if B == 1 else 1)
    return pl.pallas_call(
        _head_kernel,
        out_shape=jax.ShapeDtypeStruct((B, Cout, S), jnp.float32),
        grid_spec=pltpu.PrefetchScalarGridSpec(
            num_scalar_prefetch=0,
            grid=(B, n_s),
            in_specs=[
                pl.BlockSpec((None, Cin, tile), lambda bb, ss: (bb, 0, ss)),
                pl.BlockSpec((Hid, Cin), lambda bb, ss: (0, 0)),
                pl.BlockSpec((Hid, 1), lambda bb, ss: (0, 0)),
                pl.BlockSpec((Cout, Hid), lambda bb, ss: (0, 0)),
                pl.BlockSpec((Cout, 1), lambda bb, ss: (0, 0)),
            ],
            out_specs=pl.BlockSpec((None, Cout, tile), lambda bb, ss: (bb, 0, ss))),
        compiler_params=_compiler_params(("parallel", "parallel")),
    )(h, w1cf, b1c, w2cf, b2c)


# ---------------------------------------------------------------------------
# Spectral per-mode complex channel mixing, modes on the lane axis.
#   out[b, o, m] = sum_i x[b, i, m] * w[i, o, m]   (complex, Gauss 3-multiply)
# All 4 corners for a layer are stacked on the (lane-padded) mode axis; one
# pallas_call per layer; batch is a (squeezed) grid axis so the three f32
# accumulators are only (Cout, mblk) each.
# ---------------------------------------------------------------------------
def _spectral_mix_kernel(xr_ref, xi_ref, wr_ref, wi_ref, ws_ref, or_ref, oi_ref,
                         *, cin):
    cout = wr_ref.shape[1]
    mblk = wr_ref.shape[2]
    rr = jnp.zeros((cout, mblk), jnp.float32)
    ii = jnp.zeros((cout, mblk), jnp.float32)
    kk = jnp.zeros((cout, mblk), jnp.float32)
    # Static unrolled VPU FMA over input channels (channel counts are far too
    # small for the MXU); per-channel slices are loaded straight from the refs.
    for i in range(cin):
        xr_i = xr_ref[i][None, :]          # (1, mblk)
        xi_i = xi_ref[i][None, :]
        xs_i = xr_i + xi_i
        rr = rr + xr_i * wr_ref[i]         # (Cout, mblk)
        ii = ii + xi_i * wi_ref[i]
        kk = kk + xs_i * ws_ref[i]         # ws = wr + wi, pre-packed
    or_ref[...] = rr - ii
    oi_ref[...] = kk - rr - ii


def pallas_spectral_mix(xr, xi, wr, wi, ws):
    # xr, xi: (B, Cin, Mp); wr, wi, ws: (Cin, Cout, Mp)
    B, Cin, Mp = xr.shape
    Cout = wr.shape[1]
    mblk = _pick_mode_block(Mp, Cin, Cout, B)
    x_spec = pl.BlockSpec((None, Cin, mblk), lambda m, b: (b, 0, m))
    w_spec = pl.BlockSpec((Cin, Cout, mblk), lambda m, b: (0, 0, m))
    o_spec = pl.BlockSpec((None, Cout, mblk), lambda m, b: (b, 0, m))
    oshape = jax.ShapeDtypeStruct((B, Cout, Mp), jnp.float32)
    return pl.pallas_call(
        functools.partial(_spectral_mix_kernel, cin=Cin),
        out_shape=(oshape, oshape),
        grid_spec=pltpu.PrefetchScalarGridSpec(
            num_scalar_prefetch=0,
            grid=(Mp // mblk, B),          # batch innermost: weights fetched once per mode block
            in_specs=[x_spec, x_spec, w_spec, w_spec, w_spec],
            out_specs=(o_spec, o_spec)),
        compiler_params=_compiler_params(("parallel", "parallel")),
    )(xr, xi, wr, wi, ws)


# ---------------------------------------------------------------------------
# SpectralConv3d: rFFT (glue) -> single Pallas complex-mix -> irFFT (glue).
# Operates directly on the channels-first activation: no transposes.
# ---------------------------------------------------------------------------
def spectral_conv3d(h_cf, wr, wi, ws, modes1, modes2, modes3):
    B, C, X, Y, Tp = h_cf.shape
    m1, m2, m3 = modes1, modes2, modes3
    assert X >= 2 * m1 and Y >= 2 * m2, "corner modes overlap"
    M = m1 * m2 * m3
    Mp = wr.shape[-1]
    Kz = Tp // 2 + 1
    assert m3 <= Kz

    # TODO(synk): 3-D real FFT has no Pallas primitive; rfftn/irfftn stay as XLA glue.
    x_ft = jnp.fft.rfftn(h_cf, axes=(-3, -2, -1))        # (B, C, X, Y, Kz) c64

    lo1, hi1 = slice(0, m1), slice(X - m1, X)
    lo2, hi2 = slice(0, m2), slice(Y - m2, Y)
    corners = (
        x_ft[:, :, lo1, lo2, :m3],   # weights1
        x_ft[:, :, hi1, lo2, :m3],   # weights2
        x_ft[:, :, lo1, hi2, :m3],   # weights3
        x_ft[:, :, hi1, hi2, :m3],   # weights4
    )
    xm = jnp.concatenate([c.reshape(B, C, M) for c in corners], axis=-1)  # (B,C,4M)
    xm = jnp.pad(xm, ((0, 0), (0, 0), (0, Mp - 4 * M)))

    o_r, o_i = pallas_spectral_mix(jnp.real(xm), jnp.imag(xm), wr, wi, ws)
    om = (o_r[:, :, :4 * M] + 1j * o_i[:, :, :4 * M]).astype(jnp.complex64)
    om = om.reshape(B, C, 4, m1, m2, m3)
    c1, c2, c3, c4 = om[:, :, 0], om[:, :, 1], om[:, :, 2], om[:, :, 3]

    # Single concat/pad assembly of out_ft (no dynamic-update-slices).
    zy = jnp.zeros((B, C, m1, Y - 2 * m2, m3), jnp.complex64)
    top = jnp.concatenate([c1, zy, c3], axis=3)           # x-low rows
    bot = jnp.concatenate([c2, zy, c4], axis=3)           # x-high rows
    zx = jnp.zeros((B, C, X - 2 * m1, Y, m3), jnp.complex64)
    full = jnp.concatenate([top, zx, bot], axis=2)        # (B, C, X, Y, m3)
    out_ft = jnp.pad(full, ((0, 0), (0, 0), (0, 0), (0, 0), (0, Kz - m3)))

    y = jnp.fft.irfftn(out_ft, s=(X, Y, Tp), axes=(-3, -2, -1))   # (B,C,X,Y,Tp)
    return y


# ---------------------------------------------------------------------------
# Full FNO3d_binseg_norepdim forward (channels-first throughout).
# ---------------------------------------------------------------------------
def fno3d_forward(x, params, modes, width, padding=6):
    m1, m2, m3 = modes
    B, X, Y, T = x.shape

    # get_grid + concat, built channels-first: channels = [u, gx, gy, gt]
    lin = lambda n: jnp.linspace(0.0, 1.0, n, dtype=jnp.float32)
    gx = jnp.broadcast_to(lin(X).reshape(1, 1, X, 1, 1), (B, 1, X, Y, T))
    gy = jnp.broadcast_to(lin(Y).reshape(1, 1, 1, Y, 1), (B, 1, X, Y, T))
    gz = jnp.broadcast_to(lin(T).reshape(1, 1, 1, 1, T), (B, 1, X, Y, T))
    xc = jnp.concatenate([x[:, None].astype(jnp.float32), gx, gy, gz], axis=1)

    S0 = X * Y * T
    h = pallas_cf_pointwise(xc.reshape(B, 4, S0), params["fc0_w"], params["fc0_b"])
    h = h.reshape(B, width, X, Y, T)
    # F.pad(x, [0, padding]) pads the time (last) axis on the right with zeros
    h = jnp.pad(h, ((0, 0), (0, 0), (0, 0), (0, 0), (0, padding)))
    Tp = T + padding
    Sp = X * Y * Tp

    for l in range(4):
        x1 = spectral_conv3d(h, params[f"spec{l}_wr"], params[f"spec{l}_wi"],
                             params[f"spec{l}_ws"], m1, m2, m3)
        act = "gelu" if l < 3 else "none"   # last block: plain add, no gelu
        h = pallas_cf_pointwise(h.reshape(B, width, Sp),
                                params[f"w{l}_w"], params[f"w{l}_b"],
                                spec=x1.reshape(B, width, Sp), act=act,
                                alias_h=True)
        h = h.reshape(B, width, X, Y, Tp)

    # Head on the still-padded activation; crop the tiny 2-channel output
    # instead of copying the width-channel input.
    out_cf = pallas_cf_head(h.reshape(B, width, Sp),
                            params["fc1_w"], params["fc1_b"],
                            params["fc2_w"], params["fc2_b"])
    out_cf = out_cf.reshape(B, 2, X, Y, Tp)[:, :, :, :, :T]
    return jnp.transpose(out_cf, (0, 2, 3, 4, 1))         # (B, X, Y, T, 2)


# ---------------------------------------------------------------------------
# Deterministic parameter init (shapes follow the PyTorch module).
# Spectral weights are pre-packed as (Cin, Cout, Mp) real/imag/sum with the
# four corner weight tensors stacked (zero-padded) along a lane-friendly mode
# axis, so no per-forward weight reshapes/transposes or wr+wi adds remain.
# ---------------------------------------------------------------------------
def make_params(key, width, m1, m2, m3):
    keys = iter(jax.random.split(key, 64))
    p = {}
    M = m1 * m2 * m3
    Mp = ((4 * M + 127) // 128) * 128

    def u(shape, scale=1.0):
        return (scale * jax.random.uniform(next(keys), shape)).astype(jnp.float32)

    def n(shape, scale=1.0):
        return (scale * jax.random.normal(next(keys), shape)).astype(jnp.float32)

    p["fc0_w"] = n((4, width), 0.5)
    p["fc0_b"] = n((width,), 0.02)
    sscale = 1.0 / (width * width)
    for l in range(4):
        wr = jnp.zeros((width, width, Mp), jnp.float32)
        wi = jnp.zeros((width, width, Mp), jnp.float32)
        for c in range(4):
            wr = wr.at[:, :, c * M:(c + 1) * M].set(
                u((width, width, m1, m2, m3), sscale).reshape(width, width, M))
            wi = wi.at[:, :, c * M:(c + 1) * M].set(
                u((width, width, m1, m2, m3), sscale).reshape(width, width, M))
        p[f"spec{l}_wr"] = wr
        p[f"spec{l}_wi"] = wi
        p[f"spec{l}_ws"] = wr + wi          # Gauss 3-multiply helper, pre-packed
        p[f"w{l}_w"] = n((width, width), 1.0 / math.sqrt(width))
        p[f"w{l}_b"] = n((width,), 0.02)
    p["fc1_w"] = n((width, 128), 1.0 / math.sqrt(width))
    p["fc1_b"] = n((128,), 0.02)
    p["fc2_w"] = n((128, 2), 1.0 / math.sqrt(128))
    p["fc2_b"] = n((2,), 0.02)
    return p


if __name__ == "__main__":
    key = jax.random.PRNGKey(0)
    kx, kp = jax.random.split(key)

    # Small shapes consistent with the module: input is a scalar field (B,X,Y,T).
    B, X, Y, T = 2, 8, 8, 8
    width = 16
    modes = (4, 4, 3)

    x = jax.random.normal(kx, (B, X, Y, T), jnp.float32)
    params = make_params(kp, width, *modes)

    fwd = jax.jit(lambda inp: fno3d_forward(inp, params, modes, width))
    out = fwd(x)
    jax.block_until_ready(out)

    assert out.shape == (B, X, Y, T, 2), out.shape
    assert bool(jnp.all(jnp.isfinite(out)))
    print("KERNEL_OK")
</pallas_src>

<mosaic_0001>
module attributes {stable_mosaic.version = 11 : i64} {
  func.func @_cf_linear_kernel(%arg0: i32, %arg1: i32, %arg2: memref<1x4x512xf32, #tpu.memory_space<vmem>>, %arg3: memref<4x16x1xf32, #tpu.memory_space<vmem>>, %arg4: memref<16x1xf32, #tpu.memory_space<vmem>>, %arg5: memref<1x16x512xf32, #tpu.memory_space<vmem>>) attributes {dimension_semantics = [#tpu.dimension_semantics<parallel>, #tpu.dimension_semantics<parallel>], iteration_bounds = array<i64: 2, 1>, scalar_prefetch = 0 : i64, scratch_operands = 0 : i64, tpu.core_type = #tpu.core_type<tc>, window_params = [{transform_indices = @transform_0, window_bounds = array<i64: 1, 4, 512>}, {pipeline_mode = #tpu.pipeline_mode<synchronous>, transform_indices = @transform_1, window_bounds = array<i64: 4, 16, 1>}, {pipeline_mode = #tpu.pipeline_mode<synchronous>, transform_indices = @transform_2, window_bounds = array<i64: 16, 1>}, {transform_indices = @transform_3, window_bounds = array<i64: 1, 16, 512>}]} {
    %cst = arith.constant 0.000000e+00 : f32
    %0 = vector.broadcast %cst : f32 to vector<16x512xf32>
    %c0 = arith.constant 0 : index
    %c0_0 = arith.constant 0 : index
    %c0_1 = arith.constant 0 : index
    %1 = vector.load %arg3[%c0, %c0_0, %c0_1] : memref<4x16x1xf32, #tpu.memory_space<vmem>>, vector<1x16x1xf32>
    %2 = vector.shape_cast %1 : vector<1x16x1xf32> to vector<16x1xf32>
    %c0_2 = arith.constant 0 : index
    %c0_3 = arith.constant 0 : index
    %c0_4 = arith.constant 0 : index
    %3 = vector.load %arg2[%c0_2, %c0_3, %c0_4] : memref<1x4x512xf32, #tpu.memory_space<vmem>>, vector<1x1x512xf32>
    %4 = vector.shape_cast %3 : vector<1x1x512xf32> to vector<512xf32>
    %5 = vector.shape_cast %4 : vector<512xf32> to vector<1x512xf32>
    %6 = vector.broadcast %2 : vector<16x1xf32> to vector<16x512xf32>
    %7 = vector.broadcast %5 : vector<1x512xf32> to vector<16x512xf32>
    %8 = arith.mulf %6, %7 : vector<16x512xf32>
    %9 = arith.addf %0, %8 : vector<16x512xf32>
    %c1 = arith.constant 1 : index
    %c0_5 = arith.constant 0 : index
    %c0_6 = arith.constant 0 : index
    %10 = vector.load %arg3[%c1, %c0_5, %c0_6] : memref<4x16x1xf32, #tpu.memory_space<vmem>>, vector<1x16x1xf32>
    %11 = vector.shape_cast %10 : vector<1x16x1xf32> to vector<16x1xf32>
    %c0_7 = arith.constant 0 : index
    %c1_8 = arith.constant 1 : index
    %c0_9 = arith.constant 0 : index
    %12 = vector.load %arg2[%c0_7, %c1_8, %c0_9] : memref<1x4x512xf32, #tpu.memory_space<vmem>>, vector<1x1x512xf32>
    %13 = vector.shape_cast %12 : vector<1x1x512xf32> to vector<512xf32>
    %14 = vector.shape_cast %13 : vector<512xf32> to vector<1x512xf32>
    %15 = vector.broadcast %11 : vector<16x1xf32> to vector<16x512xf32>
    %16 = vector.broadcast %14 : vector<1x512xf32> to vector<16x512xf32>
    %17 = arith.mulf %15, %16 : vector<16x512xf32>
    %18 = arith.addf %9, %17 : vector<16x512xf32>
    %c2 = arith.constant 2 : index
    %c0_10 = arith.constant 0 : index
    %c0_11 = arith.constant 0 : index
    %19 = vector.load %arg3[%c2, %c0_10, %c0_11] : memref<4x16x1xf32, #tpu.memory_space<vmem>>, vector<1x16x1xf32>
    %20 = vector.shape_cast %19 : vector<1x16x1xf32> to vector<16x1xf32>
    %c0_12 = arith.constant 0 : index
    %c2_13 = arith.constant 2 : index
    %c0_14 = arith.constant 0 : index
    %21 = vector.load %arg2[%c0_12, %c2_13, %c0_14] : memref<1x4x512xf32, #tpu.memory_space<vmem>>, vector<1x1x512xf32>
    %22 = vector.shape_cast %21 : vector<1x1x512xf32> to vector<512xf32>
    %23 = vector.shape_cast %22 : vector<512xf32> to vector<1x512xf32>
    %24 = vector.broadcast %20 : vector<16x1xf32> to vector<16x512xf32>
    %25 = vector.broadcast %23 : vector<1x512xf32> to vector<16x512xf32>
    %26 = arith.mulf %24, %25 : vector<16x512xf32>
    %27 = arith.addf %18, %26 : vector<16x512xf32>
    %c3 = arith.constant 3 : index
    %c0_15 = arith.constant 0 : index
    %c0_16 = arith.constant 0 : index
    %28 = vector.load %arg3[%c3, %c0_15, %c0_16] : memref<4x16x1xf32, #tpu.memory_space<vmem>>, vector<1x16x1xf32>
    %29 = vector.shape_cast %28 : vector<1x16x1xf32> to vector<16x1xf32>
    %c0_17 = arith.constant 0 : index
    %c3_18 = arith.constant 3 : index
    %c0_19 = arith.constant 0 : index
    %30 = vector.load %arg2[%c0_17, %c3_18, %c0_19] : memref<1x4x512xf32, #tpu.memory_space<vmem>>, vector<1x1x512xf32>
    %31 = vector.shape_cast %30 : vector<1x1x512xf32> to vector<512xf32>
    %32 = vector.shape_cast %31 : vector<512xf32> to vector<1x512xf32>
    %33 = vector.broadcast %29 : vector<16x1xf32> to vector<16x512xf32>
    %34 = vector.broadcast %32 : vector<1x512xf32> to vector<16x512xf32>
    %35 = arith.mulf %33, %34 : vector<16x512xf32>
    %36 = arith.addf %27, %35 : vector<16x512xf32>
    %c0_20 = arith.constant 0 : index
    %c0_21 = arith.constant 0 : index
    %37 = vector.load %arg4[%c0_20, %c0_21] : memref<16x1xf32, #tpu.memory_space<vmem>>, vector<16x1xf32>
    %38 = vector.broadcast %37 : vector<16x1xf32> to vector<16x512xf32>
    %39 = arith.addf %36, %38 : vector<16x512xf32>
    %c0_22 = arith.constant 0 : index
    %c0_23 = arith.constant 0 : index
    %c0_24 = arith.constant 0 : index
    %40 = vector.load %arg5[%c0_22, %c0_23, %c0_24] : memref<1x16x512xf32, #tpu.memory_space<vmem>>, vector<1x16x512xf32>
    %41 = vector.shape_cast %40 : vector<1x16x512xf32> to vector<16x512xf32>
    %42 = vector.shape_cast %39 : vector<16x512xf32> to vector<1x16x512xf32>
    tpu.vector_store %arg5[%c0_22, %c0_23, %c0_24], %42 {strides = array<i32>} : memref<1x16x512xf32, #tpu.memory_space<vmem>>, vector<1x16x512xf32>,
    return
  }
  func.func @transform_0(%arg0: i32, %arg1: i32) -> (i32, i32, i32) {
    %c0_i32 = arith.constant 0 : i32
    %c0_i32_0 = arith.constant 0 : i32
    return %arg0, %c0_i32, %arg1 : i32, i32, i32
  }
  func.func @transform_1(%arg0: i32, %arg1: i32) -> (i32, i32, i32) {
    %c0_i32 = arith.constant 0 : i32
    %c0_i32_0 = arith.constant 0 : i32
    %c0_i32_1 = arith.constant 0 : i32
    %c0_i32_2 = arith.constant 0 : i32
    return %c0_i32, %c0_i32_0, %c0_i32_1 : i32, i32, i32
  }
  func.func @transform_2(%arg0: i32, %arg1: i32) -> (i32, i32) {
    %c0_i32 = arith.constant 0 : i32
    %c0_i32_0 = arith.constant 0 : i32
    %c0_i32_1 = arith.constant 0 : i32
    return %c0_i32, %c0_i32_0 : i32, i32
  }
  func.func @transform_3(%arg0: i32, %arg1: i32) -> (i32, i32, i32) {
    %c0_i32 = arith.constant 0 : i32
    %c0_i32_0 = arith.constant 0 : i32
    return %arg0, %c0_i32, %arg1 : i32, i32, i32
  }
}

module attributes {stable_mosaic.version = 11 : i64} {
  func.func @_spectral_mix_kernel(%arg0: i32, %arg1: i32, %arg2: memref<1x16x256xf32, #tpu.memory_space<vmem>>, %arg3: memref<1x16x256xf32, #tpu.memory_space<vmem>>, %arg4: memref<16x16x256xf32, #tpu.memory_space<vmem>>, %arg5: memref<16x16x256xf32, #tpu.memory_space<vmem>>, %arg6: memref<16x16x256xf32, #tpu.memory_space<vmem>>, %arg7: memref<1x16x256xf32, #tpu.memory_space<vmem>>, %arg8: memref<1x16x256xf32, #tpu.memory_space<vmem>>) attributes {dimension_semantics = [#tpu.dimension_semantics<parallel>, #tpu.dimension_semantics<parallel>], iteration_bounds = array<i64: 1, 2>, scalar_prefetch = 0 : i64, scratch_operands = 0 : i64, tpu.core_type = #tpu.core_type<tc>, window_params = [{transform_indices = @transform_0, window_bounds = array<i64: 1, 16, 256>}, {transform_indices = @transform_1, window_bounds = array<i64: 1, 16, 256>}, {transform_indices = @transform_2, window_bounds = array<i64: 16, 16, 256>}, {transform_indices = @transform_3, window_bounds = array<i64: 16, 16, 256>}, {transform_indices = @transform_4, window_bounds = array<i64: 16, 16, 256>}, {transform_indices = @transform_5, window_bounds = array<i64: 1, 16, 256>}, {transform_indices = @transform_6, window_bounds = array<i64: 1, 16, 256>}]} {
    %cst = arith.constant 0.000000e+00 : f32
    %0 = vector.broadcast %cst : f32 to vector<16x256xf32>
    %cst_0 = arith.constant 0.000000e+00 : f32
    %1 = vector.broadcast %cst_0 : f32 to vector<16x256xf32>
    %cst_1 = arith.constant 0.000000e+00 : f32
    %2 = vector.broadcast %cst_1 : f32 to vector<16x256xf32>
    %c0 = arith.constant 0 : index
    %c0_2 = arith.constant 0 : index
    %c0_3 = arith.constant 0 : index
    %3 = vector.load %arg2[%c0, %c0_2, %c0_3] : memref<1x16x256xf32, #tpu.memory_space<vmem>>, vector<1x1x256xf32>
    %4 = vector.shape_cast %3 : vector<1x1x256xf32> to vector<256xf32>
    %5 = vector.shape_cast %4 : vector<256xf32> to vector<1x256xf32>
    %c0_4 = arith.constant 0 : index
    %c0_5 = arith.constant 0 : index
    %c0_6 = arith.constant 0 : index
    %6 = vector.load %arg3[%c0_4, %c0_5, %c0_6] : memref<1x16x256xf32, #tpu.memory_space<vmem>>, vector<1x1x256xf32>
    %7 = vector.shape_cast %6 : vector<1x1x256xf32> to vector<256xf32>
    %8 = vector.shape_cast %7 : vector<256xf32> to vector<1x256xf32>
    %9 = arith.addf %5, %8 : vector<1x256xf32>
    %c0_7 = arith.constant 0 : index
    %c0_8 = arith.constant 0 : index
    %c0_9 = arith.constant 0 : index
    %10 = vector.load %arg4[%c0_7, %c0_8, %c0_9] : memref<16x16x256xf32, #tpu.memory_space<vmem>>, vector<1x16x256xf32>
    %11 = vector.shape_cast %10 : vector<1x16x256xf32> to vector<16x256xf32>
    %12 = vector.broadcast %5 : vector<1x256xf32> to vector<16x256xf32>
    %13 = arith.mulf %12, %11 : vector<16x256xf32>
    %14 = arith.addf %0, %13 : vector<16x256xf32>
    %c0_10 = arith.constant 0 : index
    %c0_11 = arith.constant 0 : index
    %c0_12 = arith.constant 0 : index
    %15 = vector.load %arg5[%c0_10, %c0_11, %c0_12] : memref<16x16x256xf32, #tpu.memory_space<vmem>>, vector<1x16x256xf32>
    %16 = vector.shape_cast %15 : vector<1x16x256xf32> to vector<16x256xf32>
    %17 = vector.broadcast %8 : vector<1x256xf32> to vector<16x256xf32>
    %18 = arith.mulf %17, %16 : vector<16x256xf32>
    %19 = arith.addf %1, %18 : vector<16x256xf32>
    %c0_13 = arith.constant 0 : index
    %c0_14 = arith.constant 0 : index
    %c0_15 = arith.constant 0 : index
    %20 = vector.load %arg6[%c0_13, %c0_14, %c0_15] : memref<16x16x256xf32, #tpu.memory_space<vmem>>, vector<1x16x256xf32>
    %21 = vector.shape_cast %20 : vector<1x16x256xf32> to vector<16x256xf32>
    %22 = vector.broadcast %9 : vector<1x256xf32> to vector<16x256xf32>
    %23 = arith.mulf %22, %21 : vector<16x256xf32>
    %24 = arith.addf %2, %23 : vector<16x256xf32>
    %c0_16 = arith.constant 0 : index
    %c1 = arith.constant 1 : index
    %c0_17 = arith.constant 0 : index
    %25 = vector.load %arg2[%c0_16, %c1, %c0_17] : memref<1x16x256xf32, #tpu.memory_space<vmem>>, vector<1x1x256xf32>
    %26 = vector.shape_cast %25 : vector<1x1x256xf32> to vector<256xf32>
    %27 = vector.shape_cast %26 : vector<256xf32> to vector<1x256xf32>
    %c0_18 = arith.constant 0 : index
    %c1_19 = arith.constant 1 : index
    %c0_20 = arith.constant 0 : index
    %28 = vector.load %arg3[%c0_18, %c1_19, %c0_20] : memref<1x16x256xf32, #tpu.memory_space<vmem>>, vector<1x1x256xf32>
    %29 = vector.shape_cast %28 : vector<1x1x256xf32> to vector<256xf32>
    %30 = vector.shape_cast %29 : vector<256xf32> to vector<1x256xf32>
    %31 = arith.addf %27, %30 : vector<1x256xf32>
    %c1_21 = arith.constant 1 : index
    %c0_22 = arith.constant 0 : index
    %c0_23 = arith.constant 0 : index
    %32 = vector.load %arg4[%c1_21, %c0_22, %c0_23] : memref<16x16x256xf32, #tpu.memory_space<vmem>>, vector<1x16x256xf32>
    %33 = vector.shape_cast %32 : vector<1x16x256xf32> to vector<16x256xf32>
    %34 = vector.broadcast %27 : vector<1x256xf32> to vector<16x256xf32>
    %35 = arith.mulf %34, %33 : vector<16x256xf32>
    %36 = arith.addf %14, %35 : vector<16x256xf32>
    %c1_24 = arith.constant 1 : index
    %c0_25 = arith.constant 0 : index
    %c0_26 = arith.constant 0 : index
    %37 = vector.load %arg5[%c1_24, %c0_25, %c0_26] : memref<16x16x256xf32, #tpu.memory_space<vmem>>, vector<1x16x256xf32>
    %38 = vector.shape_cast %37 : vector<1x16x256xf32> to vector<16x256xf32>
    %39 = vector.broadcast %30 : vector<1x256xf32> to vector<16x256xf32>
    %40 = arith.mulf %39, %38 : vector<16x256xf32>
    %41 = arith.addf %19, %40 : vector<16x256xf32>
    %c1_27 = arith.constant 1 : index
    %c0_28 = arith.constant 0 : index
    %c0_29 = arith.constant 0 : index
    %42 = vector.load %arg6[%c1_27, %c0_28, %c0_29] : memref<16x16x256xf32, #tpu.memory_space<vmem>>, vector<1x16x256xf32>
    %43 = vector.shape_cast %42 : vector<1x16x256xf32> to vector<16x256xf32>
    %44 = vector.broadcast %31 : vector<1x256xf32> to vector<16x256xf32>
    %45 = arith.mulf %44, %43 : vector<16x256xf32>
    %46 = arith.addf %24, %45 : vector<16x256xf32>
    %c0_30 = arith.constant 0 : index
    %c2 = arith.constant 2 : index
    %c0_31 = arith.constant 0 : index
    %47 = vector.load %arg2[%c0_30, %c2, %c0_31] : memref<1x16x256xf32, #tpu.memory_space<vmem>>, vector<1x1x256xf32>
    %48 = vector.shape_cast %47 : vector<1x1x256xf32> to vector<256xf32>
    %49 = vector.shape_cast %48 : vector<256xf32> to vector<1x256xf32>
    %c0_32 = arith.constant 0 : index
    %c2_33 = arith.constant 2 : index
    %c0_34 = arith.constant 0 : index
    %50 = vector.load %arg3[%c0_32, %c2_33, %c0_34] : memref<1x16x256xf32, #tpu.memory_space<vmem>>, vector<1x1x256xf32>
    %51 = vector.shape_cast %50 : vector<1x1x256xf32> to vector<256xf32>
    %52 = vector.shape_cast %51 : vector<256xf32> to vector<1x256xf32>
    %53 = arith.addf %49, %52 : vector<1x256xf32>
    %c2_35 = arith.constant 2 : index
    %c0_36 = arith.constant 0 : index
    %c0_37 = arith.constant 0 : index
    %54 = vector.load %arg4[%c2_35, %c0_36, %c0_37] : memref<16x16x256xf32, #tpu.memory_space<vmem>>, vector<1x16x256xf32>
    %55 = vector.shape_cast %54 : vector<1x16x256xf32> to vector<16x256xf32>
    %56 = vector.broadcast %49 : vector<1x256xf32> to vector<16x256xf32>
    %57 = arith.mulf %56, %55 : vector<16x256xf32>
    %58 = arith.addf %36, %57 : vector<16x256xf32>
    %c2_38 = arith.constant 2 : index
    %c0_39 = arith.constant 0 : index
    %c0_40 = arith.constant 0 : index
    %59 = vector.load %arg5[%c2_38, %c0_39, %c0_40] : memref<16x16x256xf32, #tpu.memory_space<vmem>>, vector<1x16x256xf32>
    %60 = vector.shape_cast %59 : vector<1x16x256xf32> to vector<16x256xf32>
    %61 = vector.broadcast %52 : vector<1x256xf32> to vector<16x256xf32>
    %62 = arith.mulf %61, %60 : vector<16x256xf32>
    %63 = arith.addf %41, %62 : vector<16x256xf32>
    %c2_41 = arith.constant 2 : index
    %c0_42 = arith.constant 0 : index
    %c0_43 = arith.constant 0 : index
    %64 = vector.load %arg6[%c2_41, %c0_42, %c0_43] : memref<16x16x256xf32, #tpu.memory_space<vmem>>, vector<1x16x256xf32>
    %65 = vector.shape_cast %64 : vector<1x16x256xf32> to vector<16x256xf32>
    %66 = vector.broadcast %53 : vector<1x256xf32> to vector<16x256xf32>
    %67 = arith.mulf %66, %65 : vector<16x256xf32>
    %68 = arith.addf %46, %67 : vector<16x256xf32>
    %c0_44 = arith.constant 0 : index
    %c3 = arith.constant 3 : index
    %c0_45 = arith.constant 0 : index
    %69 = vector.load %arg2[%c0_44, %c3, %c0_45] : memref<1x16x256xf32, #tpu.memory_space<vmem>>, vector<1x1x256xf32>
    %70 = vector.shape_cast %69 : vector<1x1x256xf32> to vector<256xf32>
    %71 = vector.shape_cast %70 : vector<256xf32> to vector<1x256xf32>
    %c0_46 = arith.constant 0 : index
    %c3_47 = arith.constant 3 : index
    %c0_48 = arith.constant 0 : index
    %72 = vector.load %arg3[%c0_46, %c3_47, %c0_48] : memref<1x16x256xf32, #tpu.memory_space<vmem>>, vector<1x1x256xf32>
    %73 = vector.shape_cast %72 : vector<1x1x256xf32> to vector<256xf32>
    %74 = vector.shape_cast %73 : vector<256xf32> to vector<1x256xf32>
    %75 = arith.addf %71, %74 : vector<1x256xf32>
    %c3_49 = arith.constant 3 : index
    %c0_50 = arith.constant 0 : index
    %c0_51 = arith.constant 0 : index
    %76 = vector.load %arg4[%c3_49, %c0_50, %c0_51] : memref<16x16x256xf32, #tpu.memory_space<vmem>>, vector<1x16x256xf32>
    %77 = vector.shape_cast %76 : vector<1x16x256xf32> to vector<16x256xf32>
    %78 = vector.broadcast %71 : vector<1x256xf32> to vector<16x256xf32>
    %79 = arith.mulf %78, %77 : vector<16x256xf32>
    %80 = arith.addf %58, %79 : vector<16x256xf32>
    %c3_52 = arith.constant 3 : index
    %c0_53 = arith.constant 0 : index
    %c0_54 = arith.constant 0 : index
    %81 = vector.load %arg5[%c3_52, %c0_53, %c0_54] : memref<16x16x256xf32, #tpu.memory_space<vmem>>, vector<1x16x256xf32>
    %82 = vector.shape_cast %81 : vector<1x16x256xf32> to vector<16x256xf32>
    %83 = vector.broadcast %74 : vector<1x256xf32> to vector<16x256xf32>
    %84 = arith.mulf %83, %82 : vector<16x256xf32>
    %85 = arith.addf %63, %84 : vector<16x256xf32>
    %c3_55 = arith.constant 3 : index
    %c0_56 = arith.constant 0 : index
    %c0_57 = arith.constant 0 : index
    %86 = vector.load %arg6[%c3_55, %c0_56, %c0_57] : memref<16x16x256xf32, #tpu.memory_space<vmem>>, vector<1x16x256xf32>
    %87 = vector.shape_cast %86 : vector<1x16x256xf32> to vector<16x256xf32>
    %88 = vector.broadcast %75 : vector<1x256xf32> to vector<16x256xf32>
    %89 = arith.mulf %88, %87 : vector<16x256xf32>
    %90 = arith.addf %68, %89 : vector<16x256xf32>
    %c0_58 = arith.constant 0 : index
    %c4 = arith.constant 4 : index
    %c0_59 = arith.constant 0 : index
    %91 = vector.load %arg2[%c0_58, %c4, %c0_59] : memref<1x16x256xf32, #tpu.memory_space<vmem>>, vector<1x1x256xf32>
    %92 = vector.shape_cast %91 : vector<1x1x256xf32> to vector<256xf32>
    %93 = vector.shape_cast %92 : vector<256xf32> to vector<1x256xf32>
    %c0_60 = arith.constant 0 : index
    %c4_61 = arith.constant 4 : index
    %c0_62 = arith.constant 0 : index
    %94 = vector.load %arg3[%c0_60, %c4_61, %c0_62] : memref<1x16x256xf32, #tpu.memory_space<vmem>>, vector<1x1x256xf32>
    %95 = vector.shape_cast %94 : vector<1x1x256xf32> to vector<256xf32>
    %96 = vector.shape_cast %95 : vector<256xf32> to vector<1x256xf32>
    %97 = arith.addf %93, %96 : vector<1x256xf32>
    %c4_63 = arith.constant 4 : index
    %c0_64 = arith.constant 0 : index
    %c0_65 = arith.constant 0 : index
    %98 = vector.load %arg4[%c4_63, %c0_64, %c0_65] : memref<16x16x256xf32, #tpu.memory_space<vmem>>, vector<1x16x256xf32>
    %99 = vector.shape_cast %98 : vector<1x16x256xf32> to vector<16x256xf32>
    %100 = vector.broadcast %93 : vector<1x256xf32> to vector<16x256xf32>
    %101 = arith.mulf %100, %99 : vector<16x256xf32>
    %102 = arith.addf %80, %101 : vector<16x256xf32>
    %c4_66 = arith.constant 4 : index
    %c0_67 = arith.constant 0 : index
    %c0_68 = arith.constant 0 : index
    %103 = vector.load %arg5[%c4_66, %c0_67, %c0_68] : memref<16x16x256xf32, #tpu.memory_space<vmem>>, vector<1x16x256xf32>
    %104 = vector.shape_cast %103 : vector<1x16x256xf32> to vector<16x256xf32>
    %105 = vector.broadcast %96 : vector<1x256xf32> to vector<16x256xf32>
    %106 = arith.mulf %105, %104 : vector<16x256xf32>
    %107 = arith.addf %85, %106 : vector<16x256xf32>
    %c4_69 = arith.constant 4 : index
    %c0_70 = arith.constant 0 : index
    %c0_71 = arith.constant 0 : index
    %108 = vector.load %arg6[%c4_69, %c0_70, %c0_71] : memref<16x16x256xf32, #tpu.memory_space<vmem>>, vector<1x16x256xf32>
    %109 = vector.shape_cast %108 : vector<1x16x256xf32> to vector<16x256xf32>
    %110 = vector.broadcast %97 : vector<1x256xf32> to vector<16x256xf32>
    %111 = arith.mulf %110, %109 : vector<16x256xf32>
    %112 = arith.addf %90, %111 : vector<16x256xf32>
    %c0_72 = arith.constant 0 : index
    %c5 = arith.constant 5 : index
    %c0_73 = arith.constant 0 : index
    %113 = vector.load %arg2[%c0_72, %c5, %c0_73] : memref<1x16x256xf32, #tpu.memory_space<vmem>>, vector<1x1x256xf32>
    %114 = vector.shape_cast %113 : vector<1x1x256xf32> to vector<256xf32>
    %115 = vector.shape_cast %114 : vector<256xf32> to vector<1x256xf32>
    %c0_74 = arith.constant 0 : index
    %c5_75 = arith.constant 5 : index
    %c0_76 = arith.constant 0 : index
    %116 = vector.load %arg3[%c0_74, %c5_75, %c0_76] : memref<1x16x256xf32, #tpu.memory_space<vmem>>, vector<1x1x256xf32>
    %117 = vector.shape_cast %116 : vector<1x1x256xf32> to vector<256xf32>
    %118 = vector.shape_cast %117 : vector<256xf32> to vector<1x256xf32>
    %119 = arith.addf %115, %118 : vector<1x256xf32>
    %c5_77 = arith.constant 5 : index
    %c0_78 = arith.constant 0 : index
    %c0_79 = arith.constant 0 : index
    %120 = vector.load %arg4[%c5_77, %c0_78, %c0_79] : memref<16x16x256xf32, #tpu.memory_space<vmem>>, vector<1x16x256xf32>
    %121 = vector.shape_cast %120 : vector<1x16x256xf32> to vector<16x256xf32>
    %122 = vector.broadcast %115 : vector<1x256xf32> to vector<16x256xf32>
    %123 = arith.mulf %122, %121 : vector<16x256xf32>
    %124 = arith.addf %102, %123 : vector<16x256xf32>
    %c5_80 = arith.constant 5 : index
    %c0_81 = arith.constant 0 : index
    %c0_82 = arith.constant 0 : index
    %125 = vector.load %arg5[%c5_80, %c0_81, %c0_82] : memref<16x16x256xf32, #tpu.memory_space<vmem>>, vector<1x16x256xf32>
    %126 = vector.shape_cast %125 : vector<1x16x256xf32> to vector<16x256xf32>
    %127 = vector.broadcast %118 : vector<1x256xf32> to vector<16x256xf32>
    %128 = arith.mulf %127, %126 : vector<16x256xf32>
    %129 = arith.addf %107, %128 : vector<16x256xf32>
    %c5_83 = arith.constant 5 : index
    %c0_84 = arith.constant 0 : index
    %c0_85 = arith.constant 0 : index
    %130 = vector.load %arg6[%c5_83, %c0_84, %c0_85] : memref<16x16x256xf32, #tpu.memory_space<vmem>>, vector<1x16x256xf32>
    %131 = vector.shape_cast %130 : vector<1x16x256xf32> to vector<16x256xf32>
    %132 = vector.broadcast %119 : vector<1x256xf32> to vector<16x256xf32>
    %133 = arith.mulf %132, %131 : vector<16x256xf32>
    %134 = arith.addf %112, %133 : vector<16x256xf32>
    %c0_86 = arith.constant 0 : index
    %c6 = arith.constant 6 : index
    %c0_87 = arith.constant 0 : index
    %135 = vector.load %arg2[%c0_86, %c6, %c0_87] : memref<1x16x256xf32, #tpu.memory_space<vmem>>, vector<1x1x256xf32>
    %136 = vector.shape_cast %135 : vector<1x1x256xf32> to vector<256xf32>
    %137 = vector.shape_cast %136 : vector<256xf32> to vector<1x256xf32>
    %c0_88 = arith.constant 0 : index
    %c6_89 = arith.constant 6 : index
    %c0_90 = arith.constant 0 : index
    %138 = vector.load %arg3[%c0_88, %c6_89, %c0_90] : memref<1x16x256xf32, #tpu.memory_space<vmem>>, vector<1x1x256xf32>
    %139 = vector.shape_cast %138 : vector<1x1x256xf32> to vector<256xf32>
    %140 = vector.shape_cast %139 : vector<256xf32> to vector<1x256xf32>
    %141 = arith.addf %137, %140 : vector<1x256xf32>
    %c6_91 = arith.constant 6 : index
    %c0_92 = arith.constant 0 : index
    %c0_93 = arith.constant 0 : index
    %142 = vector.load %arg4[%c6_91, %c0_92, %c0_93] : memref<16x16x256xf32, #tpu.memory_space<vmem>>, vector<1x16x256xf32>
    %143 = vector.shape_cast %142 : vector<1x16x256xf32> to vector<16x256xf32>
    %144 = vector.broadcast %137 : vector<1x256xf32> to vector<16x256xf32>
    %145 = arith.mulf %144, %143 : vector<16x256xf32>
    %146 = arith.addf %124, %145 : vector<16x256xf32>
    %c6_94 = arith.constant 6 : index
    %c0_95 = arith.constant 0 : index
    %c0_96 = arith.constant 0 : index
    %147 = vector.load %arg5[%c6_94, %c0_95, %c0_96] : memref<16x16x256xf32, #tpu.memory_space<vmem>>, vector<1x16x256xf32>
    %148 = vector.shape_cast %147 : vector<1x16x256xf32> to vector<16x256xf32>
    %149 = vector.broadcast %140 : vector<1x256xf32> to vector<16x256xf32>
    %150 = arith.mulf %149, %148 : vector<16x256xf32>
    %151 = arith.addf %129, %150 : vector<16x256xf32>
    %c6_97 = arith.constant 6 : index
    %c0_98 = arith.constant 0 : index
    %c0_99 = arith.constant 0 : index
    %152 = vector.load %arg6[%c6_97, %c0_98, %c0_99] : memref<16x16x256xf32, #tpu.memory_space<vmem>>, vector<1x16x256xf32>
    %153 = vector.shape_cast %152 : vector<1x16x256xf32> to vector<16x256xf32>
    %154 = vector.broadcast %141 : vector<1x256xf32> to vector<16x256xf32>
    %155 = arith.mulf %154, %153 : vector<16x256xf32>
    %156 = arith.addf %134, %155 : vector<16x256xf32>
    %c0_100 = arith.constant 0 : index
    %c7 = arith.constant 7 : index
    %c0_101 = arith.constant 0 : index
    %157 = vector.load %arg2[%c0_100, %c7, %c0_101] : memref<1x16x256xf32, #tpu.memory_space<vmem>>, vector<1x1x256xf32>
    %158 = vector.shape_cast %157 : vector<1x1x256xf32> to vector<256xf32>
    %159 = vector.shape_cast %158 : vector<256xf32> to vector<1x256xf32>
    %c0_102 = arith.constant 0 : index
    %c7_103 = arith.constant 7 : index
    %c0_104 = arith.constant 0 : index
    %160 = vector.load %arg3[%c0_102, %c7_103, %c0_104] : memref<1x16x256xf32, #tpu.memory_space<vmem>>, vector<1x1x256xf32>
    %161 = vector.shape_cast %160 : vector<1x1x256xf32> to vector<256xf32>
    %162 = vector.shape_cast %161 : vector<256xf32> to vector<1x256xf32>
    %163 = arith.addf %159, %162 : vector<1x256xf32>
    %c7_105 = arith.constant 7 : index
    %c0_106 = arith.constant 0 : index
    %c0_107 = arith.constant 0 : index
    %164 = vector.load %arg4[%c7_105, %c0_106, %c0_107] : memref<16x16x256xf32, #tpu.memory_space<vmem>>, vector<1x16x256xf32>
    %165 = vector.shape_cast %164 : vector<1x16x256xf32> to vector<16x256xf32>
    %166 = vector.broadcast %159 : vector<1x256xf32> to vector<16x256xf32>
    %167 = arith.mulf %166, %165 : vector<16x256xf32>
    %168 = arith.addf %146, %167 : vector<16x256xf32>
    %c7_108 = arith.constant 7 : index
    %c0_109 = arith.constant 0 : index
    %c0_110 = arith.constant 0 : index
    %169 = vector.load %arg5[%c7_108, %c0_109, %c0_110] : memref<16x16x256xf32, #tpu.memory_space<vmem>>, vector<1x16x256xf32>
    %170 = vector.shape_cast %169 : vector<1x16x256xf32> to vector<16x256xf32>
    %171 = vector.broadcast %162 : vector<1x256xf32> to vector<16x256xf32>
    %172 = arith.mulf %171, %170 : vector<16x256xf32>
    %173 = arith.addf %151, %172 : vector<16x256xf32>
    %c7_111 = arith.constant 7 : index
    %c0_112 = arith.constant 0 : index
    %c0_113 = arith.constant 0 : index
    %174 = vector.load %arg6[%c7_111, %c0_112, %c0_113] : memref<16x16x256xf32, #tpu.memory_space<vmem>>, vector<1x16x256xf32>
    %175 = vector.shape_cast %174 : vector<1x16x256xf32> to vector<16x256xf32>
    %176 = vector.broadcast %163 : vector<1x256xf32> to vector<16x256xf32>
    %177 = arith.mulf %176, %175 : vector<16x256xf32>
    %178 = arith.addf %156, %177 : vector<16x256xf32>
    %c0_114 = arith.constant 0 : index
    %c8 = arith.constant 8 : index
    %c0_115 = arith.constant 0 : index
    %179 = vector.load %arg2[%c0_114, %c8, %c0_115] : memref<1x16x256xf32, #tpu.memory_space<vmem>>, vector<1x1x256xf32>
    %180 = vector.shape_cast %179 : vector<1x1x256xf32> to vector<256xf32>
    %181 = vector.shape_cast %180 : vector<256xf32> to vector<1x256xf32>
    %c0_116 = arith.constant 0 : index
    %c8_117 = arith.constant 8 : index
    %c0_118 = arith.constant 0 : index
    %182 = vector.load %arg3[%c0_116, %c8_117, %c0_118] : memref<1x16x256xf32, #tpu.memory_space<vmem>>, vector<1x1x256xf32>
    %183 = vector.shape_cast %182 : vector<1x1x256xf32> to vector<256xf32>
    %184 = vector.shape_cast %183 : vector<256xf32> to vector<1x256xf32>
    %185 = arith.addf %181, %184 : vector<1x256xf32>
    %c8_119 = arith.constant 8 : index
    %c0_120 = arith.constant 0 : index
    %c0_121 = arith.constant 0 : index
    %186 = vector.load %arg4[%c8_119, %c0_120, %c0_121] : memref<16x16x256xf32, #tpu.memory_space<vmem>>, vector<1x16x256xf32>
    %187 = vector.shape_cast %186 : vector<1x16x256xf32> to vector<16x256xf32>
    %188 = vector.broadcast %181 : vector<1x256xf32> to vector<16x256xf32>
    %189 = arith.mulf %188, %187 : vector<16x256xf32>
    %190 = arith.addf %168, %189 : vector<16x256xf32>
    %c8_122 = arith.constant 8 : index
    %c0_123 = arith.constant 0 : index
    %c0_124 = arith.constant 0 : index
    %191 = vector.load %arg5[%c8_122, %c0_123, %c0_124] : memref<16x16x256xf32, #tpu.memory_space<vmem>>, vector<1x16x256xf32>
    %192 = vector.shape_cast %191 : vector<1x16x256xf32> to vector<16x256xf32>
    %193 = vector.broadcast %184 : vector<1x256xf32> to vector<16x256xf32>
    %194 = arith.mulf %193, %192 : vector<16x256xf32>
    %195 = arith.addf %173, %194 : vector<16x256xf32>
    %c8_125 = arith.constant 8 : index
    %c0_126 = arith.constant 0 : index
    %c0_127 = arith.constant 0 : index
    %196 = vector.load %arg6[%c8_125, %c0_126, %c0_127] : memref<16x16x256xf32, #tpu.memory_space<vmem>>, vector<1x16x256xf32>
    %197 = vector.shape_cast %196 : vector<1x16x256xf32> to vector<16x256xf32>
    %198 = vector.broadcast %185 : vector<1x256xf32> to vector<16x256xf32>
    %199 = arith.mulf %198, %197 : vector<16x256xf32>
    %200 = arith.addf %178, %199 : vector<16x256xf32>
    %c0_128 = arith.constant 0 : index
    %c9 = arith.constant 9 : index
    %c0_129 = arith.constant 0 : index
    %201 = vector.load %arg2[%c0_128, %c9, %c0_129] : memref<1x16x256xf32, #tpu.memory_space<vmem>>, vector<1x1x256xf32>
    %202 = vector.shape_cast %201 : vector<1x1x256xf32> to vector<256xf32>
    %203 = vector.shape_cast %202 : vector<256xf32> to vector<1x256xf32>
    %c0_130 = arith.constant 0 : index
    %c9_131 = arith.constant 9 : index
    %c0_132 = arith.constant 0 : index
    %204 = vector.load %arg3[%c0_130, %c9_131, %c0_132] : memref<1x16x256xf32, #tpu.memory_space<vmem>>, vector<1x1x256xf32>
    %205 = vector.shape_cast %204 : vector<1x1x256xf32> to vector<256xf32>
    %206 = vector.shape_cast %205 : vector<256xf32> to vector<1x256xf32>
    %207 = arith.addf %203, %206 : vector<1x256xf32>
    %c9_133 = arith.constant 9 : index
    %c0_134 = arith.constant 0 : index
    %c0_135 = arith.constant 0 : index
    %208 = vector.load %arg4[%c9_133, %c0_134, %c0_135] : memref<16x16x256xf32, #tpu.memory_space<vmem>>, vector<1x16x256xf32>
    %209 = vector.shape_cast %208 : vector<1x16x256xf32> to vector<16x256xf32>
    %210 = vector.broadcast %203 : vector<1x256xf32> to vector<16x256xf32>
    %211 = arith.mulf %210, %209 : vector<16x256xf32>
    %212 = arith.addf %190, %211 : vector<16x256xf32>
    %c9_136 = arith.constant 9 : index
    %c0_137 = arith.constant 0 : index
    %c0_138 = arith.constant 0 : index
    %213 = vector.load %arg5[%c9_136, %c0_137, %c0_138] : memref<16x16x256xf32, #tpu.memory_space<vmem>>, vector<1x16x256xf32>
    %214 = vector.shape_cast %213 : vector<1x16x256xf32> to vector<16x256xf32>
    %215 = vector.broadcast %206 : vector<1x256xf32> to vector<16x256xf32>
    %216 = arith.mulf %215, %214 : vector<16x256xf32>
    %217 = arith.addf %195, %216 : vector<16x256xf32>
    %c9_139 = arith.constant 9 : index
    %c0_140 = arith.constant 0 : index
    %c0_141 = arith.constant 0 : index
    %218 = vector.load %arg6[%c9_139, %c0_140, %c0_141] : memref<16x16x256xf32, #tpu.memory_space<vmem>>, vector<1x16x256xf32>
    %219 = vector.shape_cast %218 : vector<1x16x256xf32> to vector<16x256xf32>
    %220 = vector.broadcast %207 : vector<1x256xf32> to vector<16x256xf32>
    %221 = arith.mulf %220, %219 : vector<16x256xf32>
    %222 = arith.addf %200, %221 : vector<16x256xf32>
    %c0_142 = arith.constant 0 : index
    %c10 = arith.constant 10 : index
    %c0_143 = arith.constant 0 : index
    %223 = vector.load %arg2[%c0_142, %c10, %c0_143] : memref<1x16x256xf32, #tpu.memory_space<vmem>>, vector<1x1x256xf32>
    %224 = vector.shape_cast %223 : vector<1x1x256xf32> to vector<256xf32>
    %225 = vector.shape_cast %224 : vector<256xf32> to vector<1x256xf32>
    %c0_144 = arith.constant 0 : index
    %c10_145 = arith.constant 10 : index
    %c0_146 = arith.constant 0 : index
    %226 = vector.load %arg3[%c0_144, %c10_145, %c0_146] : memref<1x16x256xf32, #tpu.memory_space<vmem>>, vector<1x1x256xf32>
    %227 = vector.shape_cast %226 : vector<1x1x256xf32> to vector<256xf32>
    %228 = vector.shape_cast %227 : vector<256xf32> to vector<1x256xf32>
    %229 = arith.addf %225, %228 : vector<1x256xf32>
    %c10_147 = arith.constant 10 : index
    %c0_148 = arith.constant 0 : index
    %c0_149 = arith.constant 0 : index
    %230 = vector.load %arg4[%c10_147, %c0_148, %c0_149] : memref<16x16x256xf32, #tpu.memory_space<vmem>>, vector<1x16x256xf32>
    %231 = vector.shape_cast %230 : vector<1x16x256xf32> to vector<16x256xf32>
    %232 = vector.broadcast %225 : vector<1x256xf32> to vector<16x256xf32>
    %233 = arith.mulf %232, %231 : vector<16x256xf32>
    %234 = arith.addf %212, %233 : vector<16x256xf32>
    %c10_150 = arith.constant 10 : index
    %c0_151 = arith.constant 0 : index
    %c0_152 = arith.constant 0 : index
    %235 = vector.load %arg5[%c10_150, %c0_151, %c0_152] : memref<16x16x256xf32, #tpu.memory_space<vmem>>, vector<1x16x256xf32>
    %236 = vector.shape_cast %235 : vector<1x16x256xf32> to vector<16x256xf32>
    %237 = vector.broadcast %228 : vector<1x256xf32> to vector<16x256xf32>
    %238 = arith.mulf %237, %236 : vector<16x256xf32>
    %239 = arith.addf %217, %238 : vector<16x256xf32>
    %c10_153 = arith.constant 10 : index
    %c0_154 = arith.constant 0 : index
    %c0_155 = arith.constant 0 : index
    %240 = vector.load %arg6[%c10_153, %c0_154, %c0_155] : memref<16x16x256xf32, #tpu.memory_space<vmem>>, vector<1x16x256xf32>
    %241 = vector.shape_cast %240 : vector<1x16x256xf32> to vector<16x256xf32>
    %242 = vector.broadcast %229 : vector<1x256xf32> to vector<16x256xf32>
    %243 = arith.mulf %242, %241 : vector<16x256xf32>
    %244 = arith.addf %222, %243 : vector<16x256xf32>
    %c0_156 = arith.constant 0 : index
    %c11 = arith.constant 11 : index
    %c0_157 = arith.constant 0 : index
    %245 = vector.load %arg2[%c0_156, %c11, %c0_157] : memref<1x16x256xf32, #tpu.memory_space<vmem>>, vector<1x1x256xf32>
    %246 = vector.shape_cast %245 : vector<1x1x256xf32> to vector<256xf32>
    %247 = vector.shape_cast %246 : vector<256xf32> to vector<1x256xf32>
    %c0_158 = arith.constant 0 : index
    %c11_159 = arith.constant 11 : index
    %c0_160 = arith.constant 0 : index
    %248 = vector.load %arg3[%c0_158, %c11_159, %c0_160] : memref<1x16x256xf32, #tpu.memory_space<vmem>>, vector<1x1x256xf32>
    %249 = vector.shape_cast %248 : vector<1x1x256xf32> to vector<256xf32>
    %250 = vector.shape_cast %249 : vector<256xf32> to vector<1x256xf32>
    %251 = arith.addf %247, %250 : vector<1x256xf32>
    %c11_161 = arith.constant 11 : index
    %c0_162 = arith.constant 0 : index
    %c0_163 = arith.constant 0 : index
    %252 = vector.load %arg4[%c11_161, %c0_162, %c0_163] : memref<16x16x256xf32, #tpu.memory_space<vmem>>, vector<1x16x256xf32>
    %253 = vector.shape_cast %252 : vector<1x16x256xf32> to vector<16x256xf32>
    %254 = vector.broadcast %247 : vector<1x256xf32> to vector<16x256xf32>
    %255 = arith.mulf %254, %253 : vector<16x256xf32>
    %256 = arith.addf %234, %255 : vector<16x256xf32>
    %c11_164 = arith.constant 11 : index
    %c0_165 = arith.constant 0 : index
    %c0_166 = arith.constant 0 : index
    %257 = vector.load %arg5[%c11_164, %c0_165, %c0_166] : memref<16x16x256xf32, #tpu.memory_space<vmem>>, vector<1x16x256xf32>
    %258 = vector.shape_cast %257 : vector<1x16x256xf32> to vector<16x256xf32>
    %259 = vector.broadcast %250 : vector<1x256xf32> to vector<16x256xf32>
    %260 = arith.mulf %259, %258 : vector<16x256xf32>
    %261 = arith.addf %239, %260 : vector<16x256xf32>
    %c11_167 = arith.constant 11 : index
    %c0_168 = arith.constant 0 : index
    %c0_169 = arith.constant 0 : index
    %262 = vector.load %arg6[%c11_167, %c0_168, %c0_169] : memref<16x16x256xf32, #tpu.memory_space<vmem>>, vector<1x16x256xf32>
    %263 = vector.shape_cast %262 : vector<1x16x256xf32> to vector<16x256xf32>
    %264 = vector.broadcast %251 : vector<1x256xf32> to vector<16x256xf32>
    %265 = arith.mulf %264, %263 : vector<16x256xf32>
    %266 = arith.addf %244, %265 : vector<16x256xf32>
    %c0_170 = arith.constant 0 : index
    %c12 = arith.constant 12 : index
    %c0_171 = arith.constant 0 : index
    %267 = vector.load %arg2[%c0_170, %c12, %c0_171] : memref<1x16x256xf32, #tpu.memory_space<vmem>>, vector<1x1x256xf32>
    %268 = vector.shape_cast %267 : vector<1x1x256xf32> to vector<256xf32>
    %269 = vector.shape_cast %268 : vector<256xf32> to vector<1x256xf32>
    %c0_172 = arith.constant 0 : index
    %c12_173 = arith.constant 12 : index
    %c0_174 = arith.constant 0 : index
    %270 = vector.load %arg3[%c0_172, %c12_173, %c0_174] : memref<1x16x256xf32, #tpu.memory_space<vmem>>, vector<1x1x256xf32>
    %271 = vector.shape_cast %270 : vector<1x1x256xf32> to vector<256xf32>
    %272 = vector.shape_cast %271 : vector<256xf32> to vector<1x256xf32>
    %273 = arith.addf %269, %272 : vector<1x256xf32>
    %c12_175 = arith.constant 12 : index
    %c0_176 = arith.constant 0 : index
    %c0_177 = arith.constant 0 : index
    %274 = vector.load %arg4[%c12_175, %c0_176, %c0_177] : memref<16x16x256xf32, #tpu.memory_space<vmem>>, vector<1x16x256xf32>
    %275 = vector.shape_cast %274 : vector<1x16x256xf32> to vector<16x256xf32>
    %276 = vector.broadcast %269 : vector<1x256xf32> to vector<16x256xf32>
    %277 = arith.mulf %276, %275 : vector<16x256xf32>
    %278 = arith.addf %256, %277 : vector<16x256xf32>
    %c12_178 = arith.constant 12 : index
    %c0_179 = arith.constant 0 : index
    %c0_180 = arith.constant 0 : index
    %279 = vector.load %arg5[%c12_178, %c0_179, %c0_180] : memref<16x16x256xf32, #tpu.memory_space<vmem>>, vector<1x16x256xf32>
    %280 = vector.shape_cast %279 : vector<1x16x256xf32> to vector<16x256xf32>
    %281 = vector.broadcast %272 : vector<1x256xf32> to vector<16x256xf32>
    %282 = arith.mulf %281, %280 : vector<16x256xf32>
    %283 = arith.addf %261, %282 : vector<16x256xf32>
    %c12_181 = arith.constant 12 : index
    %c0_182 = arith.constant 0 : index
    %c0_183 = arith.constant 0 : index
    %284 = vector.load %arg6[%c12_181, %c0_182, %c0_183] : memref<16x16x256xf32, #tpu.memory_space<vmem>>, vector<1x16x256xf32>
    %285 = vector.shape_cast %284 : vector<1x16x256xf32> to vector<16x256xf32>
    %286 = vector.broadcast %273 : vector<1x256xf32> to vector<16x256xf32>
    %287 = arith.mulf %286, %285 : vector<16x256xf32>
    %288 = arith.addf %266, %287 : vector<16x256xf32>
    %c0_184 = arith.constant 0 : index
    %c13 = arith.constant 13 : index
    %c0_185 = arith.constant 0 : index
    %289 = vector.load %arg2[%c0_184, %c13, %c0_185] : memref<1x16x256xf32, #tpu.memory_space<vmem>>, vector<1x1x256xf32>
    %290 = vector.shape_cast %289 : vector<1x1x256xf32> to vector<256xf32>
    %291 = vector.shape_cast %290 : vector<256xf32> to vector<1x256xf32>
    %c0_186 = arith.constant 0 : index
    %c13_187 = arith.constant 13 : index
    %c0_188 = arith.constant 0 : index
    %292 = vector.load %arg3[%c0_186, %c13_187, %c0_188] : memref<1x16x256xf32, #tpu.memory_space<vmem>>, vector<1x1x256xf32>
    %293 = vector.shape_cast %292 : vector<1x1x256xf32> to vector<256xf32>
    %294 = vector.shape_cast %293 : vector<256xf32> to vector<1x256xf32>
    %295 = arith.addf %291, %294 : vector<1x256xf32>
    %c13_189 = arith.constant 13 : index
    %c0_190 = arith.constant 0 : index
    %c0_191 = arith.constant 0 : index
    %296 = vector.load %arg4[%c13_189, %c0_190, %c0_191] : memref<16x16x256xf32, #tpu.memory_space<vmem>>, vector<1x16x256xf32>
    %297 = vector.shape_cast %296 : vector<1x16x256xf32> to vector<16x256xf32>
    %298 = vector.broadcast %291 : vector<1x256xf32> to vector<16x256xf32>
    %299 = arith.mulf %298, %297 : vector<16x256xf32>
    %300 = arith.addf %278, %299 : vector<16x256xf32>
    %c13_192 = arith.constant 13 : index
    %c0_193 = arith.constant 0 : index
    %c0_194 = arith.constant 0 : index
    %301 = vector.load %arg5[%c13_192, %c0_193, %c0_194] : memref<16x16x256xf32, #tpu.memory_space<vmem>>, vector<1x16x256xf32>
    %302 = vector.shape_cast %301 : vector<1x16x256xf32> to vector<16x256xf32>
    %303 = vector.broadcast %294 : vector<1x256xf32> to vector<16x256xf32>
    %304 = arith.mulf %303, %302 : vector<16x256xf32>
    %305 = arith.addf %283, %304 : vector<16x256xf32>
    %c13_195 = arith.constant 13 : index
    %c0_196 = arith.constant 0 : index
    %c0_197 = arith.constant 0 : index
    %306 = vector.load %arg6[%c13_195, %c0_196, %c0_197] : memref<16x16x256xf32, #tpu.memory_space<vmem>>, vector<1x16x256xf32>
    %307 = vector.shape_cast %306 : vector<1x16x256xf32> to vector<16x256xf32>
    %308 = vector.broadcast %295 : vector<1x256xf32> to vector<16x256xf32>
    %309 = arith.mulf %308, %307 : vector<16x256xf32>
    %310 = arith.addf %288, %309 : vector<16x256xf32>
    %c0_198 = arith.constant 0 : index
    %c14 = arith.constant 14 : index
    %c0_199 = arith.constant 0 : index
    %311 = vector.load %arg2[%c0_198, %c14, %c0_199] : memref<1x16x256xf32, #tpu.memory_space<vmem>>, vector<1x1x256xf32>
    %312 = vector.shape_cast %311 : vector<1x1x256xf32> to vector<256xf32>
    %313 = vector.shape_cast %312 : vector<256xf32> to vector<1x256xf32>
    %c0_200 = arith.constant 0 : index
    %c14_201 = arith.constant 14 : index
    %c0_202 = arith.constant 0 : index
    %314 = vector.load %arg3[%c0_200, %c14_201, %c0_202] : memref<1x16x256xf32, #tpu.memory_space<vmem>>, vector<1x1x256xf32>
    %315 = vector.shape_cast %314 : vector<1x1x256xf32> to vector<256xf32>
    %316 = vector.shape_cast %315 : vector<256xf32> to vector<1x256xf32>
    %317 = arith.addf %313, %316 : vector<1x256xf32>
    %c14_203 = arith.constant 14 : index
    %c0_204 = arith.constant 0 : index
    %c0_205 = arith.constant 0 : index
    %318 = vector.load %arg4[%c14_203, %c0_204, %c0_205] : memref<16x16x256xf32, #tpu.memory_space<vmem>>, vector<1x16x256xf32>
    %319 = vector.shape_cast %318 : vector<1x16x256xf32> to vector<16x256xf32>
    %320 = vector.broadcast %313 : vector<1x256xf32> to vector<16x256xf32>
    %321 = arith.mulf %320, %319 : vector<16x256xf32>
    %322 = arith.addf %300, %321 : vector<16x256xf32>
    %c14_206 = arith.constant 14 : index
    %c0_207 = arith.constant 0 : index
    %c0_208 = arith.constant 0 : index
    %323 = vector.load %arg5[%c14_206, %c0_207, %c0_208] : memref<16x16x256xf32, #tpu.memory_space<vmem>>, vector<1x16x256xf32>
    %324 = vector.shape_cast %323 : vector<1x16x256xf32> to vector<16x256xf32>
    %325 = vector.broadcast %316 : vector<1x256xf32> to vector<16x256xf32>
    %326 = arith.mulf %325, %324 : vector<16x256xf32>
    %327 = arith.addf %305, %326 : vector<16x256xf32>
    %c14_209 = arith.constant 14 : index
    %c0_210 = arith.constant 0 : index
    %c0_211 = arith.constant 0 : index
    %328 = vector.load %arg6[%c14_209, %c0_210, %c0_211] : memref<16x16x256xf32, #tpu.memory_space<vmem>>, vector<1x16x256xf32>
    %329 = vector.shape_cast %328 : vector<1x16x256xf32> to vector<16x256xf32>
    %330 = vector.broadcast %317 : vector<1x256xf32> to vector<16x256xf32>
    %331 = arith.mulf %330, %329 : vector<16x256xf32>
    %332 = arith.addf %310, %331 : vector<16x256xf32>
    %c0_212 = arith.constant 0 : index
    %c15 = arith.constant 15 : index
    %c0_213 = arith.constant 0 : index
    %333 = vector.load %arg2[%c0_212, %c15, %c0_213] : memref<1x16x256xf32, #tpu.memory_space<vmem>>, vector<1x1x256xf32>
    %334 = vector.shape_cast %333 : vector<1x1x256xf32> to vector<256xf32>
    %335 = vector.shape_cast %334 : vector<256xf32> to vector<1x256xf32>
    %c0_214 = arith.constant 0 : index
    %c15_215 = arith.constant 15 : index
    %c0_216 = arith.constant 0 : index
    %336 = vector.load %arg3[%c0_214, %c15_215, %c0_216] : memref<1x16x256xf32, #tpu.memory_space<vmem>>, vector<1x1x256xf32>
    %337 = vector.shape_cast %336 : vector<1x1x256xf32> to vector<256xf32>
    %338 = vector.shape_cast %337 : vector<256xf32> to vector<1x256xf32>
    %339 = arith.addf %335, %338 : vector<1x256xf32>
    %c15_217 = arith.constant 15 : index
    %c0_218 = arith.constant 0 : index
    %c0_219 = arith.constant 0 : index
    %340 = vector.load %arg4[%c15_217, %c0_218, %c0_219] : memref<16x16x256xf32, #tpu.memory_space<vmem>>, vector<1x16x256xf32>
    %341 = vector.shape_cast %340 : vector<1x16x256xf32> to vector<16x256xf32>
    %342 = vector.broadcast %335 : vector<1x256xf32> to vector<16x256xf32>
    %343 = arith.mulf %342, %341 : vector<16x256xf32>
    %344 = arith.addf %322, %343 : vector<16x256xf32>
    %c15_220 = arith.constant 15 : index
    %c0_221 = arith.constant 0 : index
    %c0_222 = arith.constant 0 : index
    %345 = vector.load %arg5[%c15_220, %c0_221, %c0_222] : memref<16x16x256xf32, #tpu.memory_space<vmem>>, vector<1x16x256xf32>
    %346 = vector.shape_cast %345 : vector<1x16x256xf32> to vector<16x256xf32>
    %347 = vector.broadcast %338 : vector<1x256xf32> to vector<16x256xf32>
    %348 = arith.mulf %347, %346 : vector<16x256xf32>
    %349 = arith.addf %327, %348 : vector<16x256xf32>
    %c15_223 = arith.constant 15 : index
    %c0_224 = arith.constant 0 : index
    %c0_225 = arith.constant 0 : index
    %350 = vector.load %arg6[%c15_223, %c0_224, %c0_225] : memref<16x16x256xf32, #tpu.memory_space<vmem>>, vector<1x16x256xf32>
    %351 = vector.shape_cast %350 : vector<1x16x256xf32> to vector<16x256xf32>
    %352 = vector.broadcast %339 : vector<1x256xf32> to vector<16x256xf32>
    %353 = arith.mulf %352, %351 : vector<16x256xf32>
    %354 = arith.addf %332, %353 : vector<16x256xf32>
    %355 = arith.subf %344, %349 : vector<16x256xf32>
    %c0_226 = arith.constant 0 : index
    %c0_227 = arith.constant 0 : index
    %c0_228 = arith.constant 0 : index
    %356 = vector.load %arg7[%c0_226, %c0_227, %c0_228] : memref<1x16x256xf32, #tpu.memory_space<vmem>>, vector<1x16x256xf32>
    %357 = vector.shape_cast %356 : vector<1x16x256xf32> to vector<16x256xf32>
    %358 = vector.shape_cast %355 : vector<16x256xf32> to vector<1x16x256xf32>
    tpu.vector_store %arg7[%c0_226, %c0_227, %c0_228], %358 {strides = array<i32>} : memref<1x16x256xf32, #tpu.memory_space<vmem>>, vector<1x16x256xf32>,
    %359 = arith.subf %354, %344 : vector<16x256xf32>
    %360 = arith.subf %359, %349 : vector<16x256xf32>
    %c0_229 = arith.constant 0 : index
    %c0_230 = arith.constant 0 : index
    %c0_231 = arith.constant 0 : index
    %361 = vector.load %arg8[%c0_229, %c0_230, %c0_231] : memref<1x16x256xf32, #tpu.memory_space<vmem>>, vector<1x16x256xf32>
    %362 = vector.shape_cast %361 : vector<1x16x256xf32> to vector<16x256xf32>
    %363 = vector.shape_cast %360 : vector<16x256xf32> to vector<1x16x256xf32>
    tpu.vector_store %arg8[%c0_229, %c0_230, %c0_231], %363 {strides = array<i32>} : memref<1x16x256xf32, #tpu.memory_space<vmem>>, vector<1x16x256xf32>,
    return
  }
  func.func @transform_0(%arg0: i32, %arg1: i32) -> (i32, i32, i32) {
    %c0_i32 = arith.constant 0 : i32
    %c0_i32_0 = arith.constant 0 : i32
    return %arg1, %c0_i32, %arg0 : i32, i32, i32
  }
  func.func @transform_1(%arg0: i32, %arg1: i32) -> (i32, i32, i32) {
    %c0_i32 = arith.constant 0 : i32
    %c0_i32_0 = arith.constant 0 : i32
    return %arg1, %c0_i32, %arg0 : i32, i32, i32
  }
  func.func @transform_2(%arg0: i32, %arg1: i32) -> (i32, i32, i32) {
    %c0_i32 = arith.constant 0 : i32
    %c0_i32_0 = arith.constant 0 : i32
    %c0_i32_1 = arith.constant 0 : i32
    return %c0_i32, %c0_i32_0, %arg0 : i32, i32, i32
  }
  func.func @transform_3(%arg0: i32, %arg1: i32) -> (i32, i32, i32) {
    %c0_i32 = arith.constant 0 : i32
    %c0_i32_0 = arith.constant 0 : i32
    %c0_i32_1 = arith.constant 0 : i32
    return %c0_i32, %c0_i32_0, %arg0 : i32, i32, i32
  }
  func.func @transform_4(%arg0: i32, %arg1: i32) -> (i32, i32, i32) {
    %c0_i32 = arith.constant 0 : i32
    %c0_i32_0 = arith.constant 0 : i32
    %c0_i32_1 = arith.constant 0 : i32
    return %c0_i32, %c0_i32_0, %arg0 : i32, i32, i32
  }
  func.func @transform_5(%arg0: i32, %arg1: i32) -> (i32, i32, i32) {
    %c0_i32 = arith.constant 0 : i32
    %c0_i32_0 = arith.constant 0 : i32
    return %arg1, %c0_i32, %arg0 : i32, i32, i32
  }
  func.func @transform_6(%arg0: i32, %arg1: i32) -> (i32, i32, i32) {
    %c0_i32 = arith.constant 0 : i32
    %c0_i32_0 = arith.constant 0 : i32
    return %arg1, %c0_i32, %arg0 : i32, i32, i32
  }
}

module attributes {stable_mosaic.version = 11 : i64} {
  func.func @_cf_residual_kernel(%arg0: i32, %arg1: i32, %arg2: memref<1x16x896xf32, #tpu.memory_space<vmem>>, %arg3: memref<1x16x896xf32, #tpu.memory_space<vmem>>, %arg4: memref<16x16x1xf32, #tpu.memory_space<vmem>>, %arg5: memref<16x1xf32, #tpu.memory_space<vmem>>, %arg6: memref<1x16x896xf32, #tpu.memory_space<vmem>>) attributes {dimension_semantics = [#tpu.dimension_semantics<parallel>, #tpu.dimension_semantics<parallel>], iteration_bounds = array<i64: 2, 1>, scalar_prefetch = 0 : i64, scratch_operands = 0 : i64, tpu.core_type = #tpu.core_type<tc>, window_params = [{transform_indices = @transform_0, window_bounds = array<i64: 1, 16, 896>}, {transform_indices = @transform_1, window_bounds = array<i64: 1, 16, 896>}, {pipeline_mode = #tpu.pipeline_mode<synchronous>, transform_indices = @transform_2, window_bounds = array<i64: 16, 16, 1>}, {pipeline_mode = #tpu.pipeline_mode<synchronous>, transform_indices = @transform_3, window_bounds = array<i64: 16, 1>}, {transform_indices = @transform_4, window_bounds = array<i64: 1, 16, 896>}]} {
    %cst = arith.constant 0.000000e+00 : f32
    %0 = vector.broadcast %cst : f32 to vector<16x896xf32>
    %c0 = arith.constant 0 : index
    %c0_0 = arith.constant 0 : index
    %c0_1 = arith.constant 0 : index
    %1 = vector.load %arg4[%c0, %c0_0, %c0_1] : memref<16x16x1xf32, #tpu.memory_space<vmem>>, vector<1x16x1xf32>
    %2 = vector.shape_cast %1 : vector<1x16x1xf32> to vector<16x1xf32>
    %c0_2 = arith.constant 0 : index
    %c0_3 = arith.constant 0 : index
    %c0_4 = arith.constant 0 : index
    %3 = vector.load %arg2[%c0_2, %c0_3, %c0_4] : memref<1x16x896xf32, #tpu.memory_space<vmem>>, vector<1x1x896xf32>
    %4 = vector.shape_cast %3 : vector<1x1x896xf32> to vector<896xf32>
    %5 = vector.shape_cast %4 : vector<896xf32> to vector<1x896xf32>
    %6 = vector.broadcast %2 : vector<16x1xf32> to vector<16x896xf32>
    %7 = vector.broadcast %5 : vector<1x896xf32> to vector<16x896xf32>
    %8 = arith.mulf %6, %7 : vector<16x896xf32>
    %9 = arith.addf %0, %8 : vector<16x896xf32>
    %c1 = arith.constant 1 : index
    %c0_5 = arith.constant 0 : index
    %c0_6 = arith.constant 0 : index
    %10 = vector.load %arg4[%c1, %c0_5, %c0_6] : memref<16x16x1xf32, #tpu.memory_space<vmem>>, vector<1x16x1xf32>
    %11 = vector.shape_cast %10 : vector<1x16x1xf32> to vector<16x1xf32>
    %c0_7 = arith.constant 0 : index
    %c1_8 = arith.constant 1 : index
    %c0_9 = arith.constant 0 : index
    %12 = vector.load %arg2[%c0_7, %c1_8, %c0_9] : memref<1x16x896xf32, #tpu.memory_space<vmem>>, vector<1x1x896xf32>
    %13 = vector.shape_cast %12 : vector<1x1x896xf32> to vector<896xf32>
    %14 = vector.shape_cast %13 : vector<896xf32> to vector<1x896xf32>
    %15 = vector.broadcast %11 : vector<16x1xf32> to vector<16x896xf32>
    %16 = vector.broadcast %14 : vector<1x896xf32> to vector<16x896xf32>
    %17 = arith.mulf %15, %16 : vector<16x896xf32>
    %18 = arith.addf %9, %17 : vector<16x896xf32>
    %c2 = arith.constant 2 : index
    %c0_10 = arith.constant 0 : index
    %c0_11 = arith.constant 0 : index
    %19 = vector.load %arg4[%c2, %c0_10, %c0_11] : memref<16x16x1xf32, #tpu.memory_space<vmem>>, vector<1x16x1xf32>
    %20 = vector.shape_cast %19 : vector<1x16x1xf32> to vector<16x1xf32>
    %c0_12 = arith.constant 0 : index
    %c2_13 = arith.constant 2 : index
    %c0_14 = arith.constant 0 : index
    %21 = vector.load %arg2[%c0_12, %c2_13, %c0_14] : memref<1x16x896xf32, #tpu.memory_space<vmem>>, vector<1x1x896xf32>
    %22 = vector.shape_cast %21 : vector<1x1x896xf32> to vector<896xf32>
    %23 = vector.shape_cast %22 : vector<896xf32> to vector<1x896xf32>
    %24 = vector.broadcast %20 : vector<16x1xf32> to vector<16x896xf32>
    %25 = vector.broadcast %23 : vector<1x896xf32> to vector<16x896xf32>
    %26 = arith.mulf %24, %25 : vector<16x896xf32>
    %27 = arith.addf %18, %26 : vector<16x896xf32>
    %c3 = arith.constant 3 : index
    %c0_15 = arith.constant 0 : index
    %c0_16 = arith.constant 0 : index
    %28 = vector.load %arg4[%c3, %c0_15, %c0_16] : memref<16x16x1xf32, #tpu.memory_space<vmem>>, vector<1x16x1xf32>
    %29 = vector.shape_cast %28 : vector<1x16x1xf32> to vector<16x1xf32>
    %c0_17 = arith.constant 0 : index
    %c3_18 = arith.constant 3 : index
    %c0_19 = arith.constant 0 : index
    %30 = vector.load %arg2[%c0_17, %c3_18, %c0_19] : memref<1x16x896xf32, #tpu.memory_space<vmem>>, vector<1x1x896xf32>
    %31 = vector.shape_cast %30 : vector<1x1x896xf32> to vector<896xf32>
    %32 = vector.shape_cast %31 : vector<896xf32> to vector<1x896xf32>
    %33 = vector.broadcast %29 : vector<16x1xf32> to vector<16x896xf32>
    %34 = vector.broadcast %32 : vector<1x896xf32> to vector<16x896xf32>
    %35 = arith.mulf %33, %34 : vector<16x896xf32>
    %36 = arith.addf %27, %35 : vector<16x896xf32>
    %c4 = arith.constant 4 : index
    %c0_20 = arith.constant 0 : index
    %c0_21 = arith.constant 0 : index
    %37 = vector.load %arg4[%c4, %c0_20, %c0_21] : memref<16x16x1xf32, #tpu.memory_space<vmem>>, vector<1x16x1xf32>
    %38 = vector.shape_cast %37 : vector<1x16x1xf32> to vector<16x1xf32>
    %c0_22 = arith.constant 0 : index
    %c4_23 = arith.constant 4 : index
    %c0_24 = arith.constant 0 : index
    %39 = vector.load %arg2[%c0_22, %c4_23, %c0_24] : memref<1x16x896xf32, #tpu.memory_space<vmem>>, vector<1x1x896xf32>
    %40 = vector.shape_cast %39 : vector<1x1x896xf32> to vector<896xf32>
    %41 = vector.shape_cast %40 : vector<896xf32> to vector<1x896xf32>
    %42 = vector.broadcast %38 : vector<16x1xf32> to vector<16x896xf32>
    %43 = vector.broadcast %41 : vector<1x896xf32> to vector<16x896xf32>
    %44 = arith.mulf %42, %43 : vector<16x896xf32>
    %45 = arith.addf %36, %44 : vector<16x896xf32>
    %c5 = arith.constant 5 : index
    %c0_25 = arith.constant 0 : index
    %c0_26 = arith.constant 0 : index
    %46 = vector.load %arg4[%c5, %c0_25, %c0_26] : memref<16x16x1xf32, #tpu.memory_space<vmem>>, vector<1x16x1xf32>
    %47 = vector.shape_cast %46 : vector<1x16x1xf32> to vector<16x1xf32>
    %c0_27 = arith.constant 0 : index
    %c5_28 = arith.constant 5 : index
    %c0_29 = arith.constant 0 : index
    %48 = vector.load %arg2[%c0_27, %c5_28, %c0_29] : memref<1x16x896xf32, #tpu.memory_space<vmem>>, vector<1x1x896xf32>
    %49 = vector.shape_cast %48 : vector<1x1x896xf32> to vector<896xf32>
    %50 = vector.shape_cast %49 : vector<896xf32> to vector<1x896xf32>
    %51 = vector.broadcast %47 : vector<16x1xf32> to vector<16x896xf32>
    %52 = vector.broadcast %50 : vector<1x896xf32> to vector<16x896xf32>
    %53 = arith.mulf %51, %52 : vector<16x896xf32>
    %54 = arith.addf %45, %53 : vector<16x896xf32>
    %c6 = arith.constant 6 : index
    %c0_30 = arith.constant 0 : index
    %c0_31 = arith.constant 0 : index
    %55 = vector.load %arg4[%c6, %c0_30, %c0_31] : memref<16x16x1xf32, #tpu.memory_space<vmem>>, vector<1x16x1xf32>
    %56 = vector.shape_cast %55 : vector<1x16x1xf32> to vector<16x1xf32>
    %c0_32 = arith.constant 0 : index
    %c6_33 = arith.constant 6 : index
    %c0_34 = arith.constant 0 : index
    %57 = vector.load %arg2[%c0_32, %c6_33, %c0_34] : memref<1x16x896xf32, #tpu.memory_space<vmem>>, vector<1x1x896xf32>
    %58 = vector.shape_cast %57 : vector<1x1x896xf32> to vector<896xf32>
    %59 = vector.shape_cast %58 : vector<896xf32> to vector<1x896xf32>
    %60 = vector.broadcast %56 : vector<16x1xf32> to vector<16x896xf32>
    %61 = vector.broadcast %59 : vector<1x896xf32> to vector<16x896xf32>
    %62 = arith.mulf %60, %61 : vector<16x896xf32>
    %63 = arith.addf %54, %62 : vector<16x896xf32>
    %c7 = arith.constant 7 : index
    %c0_35 = arith.constant 0 : index
    %c0_36 = arith.constant 0 : index
    %64 = vector.load %arg4[%c7, %c0_35, %c0_36] : memref<16x16x1xf32, #tpu.memory_space<vmem>>, vector<1x16x1xf32>
    %65 = vector.shape_cast %64 : vector<1x16x1xf32> to vector<16x1xf32>
    %c0_37 = arith.constant 0 : index
    %c7_38 = arith.constant 7 : index
    %c0_39 = arith.constant 0 : index
    %66 = vector.load %arg2[%c0_37, %c7_38, %c0_39] : memref<1x16x896xf32, #tpu.memory_space<vmem>>, vector<1x1x896xf32>
    %67 = vector.shape_cast %66 : vector<1x1x896xf32> to vector<896xf32>
    %68 = vector.shape_cast %67 : vector<896xf32> to vector<1x896xf32>
    %69 = vector.broadcast %65 : vector<16x1xf32> to vector<16x896xf32>
    %70 = vector.broadcast %68 : vector<1x896xf32> to vector<16x896xf32>
    %71 = arith.mulf %69, %70 : vector<16x896xf32>
    %72 = arith.addf %63, %71 : vector<16x896xf32>
    %c8 = arith.constant 8 : index
    %c0_40 = arith.constant 0 : index
    %c0_41 = arith.constant 0 : index
    %73 = vector.load %arg4[%c8, %c0_40, %c0_41] : memref<16x16x1xf32, #tpu.memory_space<vmem>>, vector<1x16x1xf32>
    %74 = vector.shape_cast %73 : vector<1x16x1xf32> to vector<16x1xf32>
    %c0_42 = arith.constant 0 : index
    %c8_43 = arith.constant 8 : index
    %c0_44 = arith.constant 0 : index
    %75 = vector.load %arg2[%c0_42, %c8_43, %c0_44] : memref<1x16x896xf32, #tpu.memory_space<vmem>>, vector<1x1x896xf32>
    %76 = vector.shape_cast %75 : vector<1x1x896xf32> to vector<896xf32>
    %77 = vector.shape_cast %76 : vector<896xf32> to vector<1x896xf32>
    %78 = vector.broadcast %74 : vector<16x1xf32> to vector<16x896xf32>
    %79 = vector.broadcast %77 : vector<1x896xf32> to vector<16x896xf32>
    %80 = arith.mulf %78, %79 : vector<16x896xf32>
    %81 = arith.addf %72, %80 : vector<16x896xf32>
    %c9 = arith.constant 9 : index
    %c0_45 = arith.constant 0 : index
    %c0_46 = arith.constant 0 : index
    %82 = vector.load %arg4[%c9, %c0_45, %c0_46] : memref<16x16x1xf32, #tpu.memory_space<vmem>>, vector<1x16x1xf32>
    %83 = vector.shape_cast %82 : vector<1x16x1xf32> to vector<16x1xf32>
    %c0_47 = arith.constant 0 : index
    %c9_48 = arith.constant 9 : index
    %c0_49 = arith.constant 0 : index
    %84 = vector.load %arg2[%c0_47, %c9_48, %c0_49] : memref<1x16x896xf32, #tpu.memory_space<vmem>>, vector<1x1x896xf32>
    %85 = vector.shape_cast %84 : vector<1x1x896xf32> to vector<896xf32>
    %86 = vector.shape_cast %85 : vector<896xf32> to vector<1x896xf32>
    %87 = vector.broadcast %83 : vector<16x1xf32> to vector<16x896xf32>
    %88 = vector.broadcast %86 : vector<1x896xf32> to vector<16x896xf32>
    %89 = arith.mulf %87, %88 : vector<16x896xf32>
    %90 = arith.addf %81, %89 : vector<16x896xf32>
    %c10 = arith.constant 10 : index
    %c0_50 = arith.constant 0 : index
    %c0_51 = arith.constant 0 : index
    %91 = vector.load %arg4[%c10, %c0_50, %c0_51] : memref<16x16x1xf32, #tpu.memory_space<vmem>>, vector<1x16x1xf32>
    %92 = vector.shape_cast %91 : vector<1x16x1xf32> to vector<16x1xf32>
    %c0_52 = arith.constant 0 : index
    %c10_53 = arith.constant 10 : index
    %c0_54 = arith.constant 0 : index
    %93 = vector.load %arg2[%c0_52, %c10_53, %c0_54] : memref<1x16x896xf32, #tpu.memory_space<vmem>>, vector<1x1x896xf32>
    %94 = vector.shape_cast %93 : vector<1x1x896xf32> to vector<896xf32>
    %95 = vector.shape_cast %94 : vector<896xf32> to vector<1x896xf32>
    %96 = vector.broadcast %92 : vector<16x1xf32> to vector<16x896xf32>
    %97 = vector.broadcast %95 : vector<1x896xf32> to vector<16x896xf32>
    %98 = arith.mulf %96, %97 : vector<16x896xf32>
    %99 = arith.addf %90, %98 : vector<16x896xf32>
    %c11 = arith.constant 11 : index
    %c0_55 = arith.constant 0 : index
    %c0_56 = arith.constant 0 : index
    %100 = vector.load %arg4[%c11, %c0_55, %c0_56] : memref<16x16x1xf32, #tpu.memory_space<vmem>>, vector<1x16x1xf32>
    %101 = vector.shape_cast %100 : vector<1x16x1xf32> to vector<16x1xf32>
    %c0_57 = arith.constant 0 : index
    %c11_58 = arith.constant 11 : index
    %c0_59 = arith.constant 0 : index
    %102 = vector.load %arg2[%c0_57, %c11_58, %c0_59] : memref<1x16x896xf32, #tpu.memory_space<vmem>>, vector<1x1x896xf32>
    %103 = vector.shape_cast %102 : vector<1x1x896xf32> to vector<896xf32>
    %104 = vector.shape_cast %103 : vector<896xf32> to vector<1x896xf32>
    %105 = vector.broadcast %101 : vector<16x1xf32> to vector<16x896xf32>
    %106 = vector.broadcast %104 : vector<1x896xf32> to vector<16x896xf32>
    %107 = arith.mulf %105, %106 : vector<16x896xf32>
    %108 = arith.addf %99, %107 : vector<16x896xf32>
    %c12 = arith.constant 12 : index
    %c0_60 = arith.constant 0 : index
    %c0_61 = arith.constant 0 : index
    %109 = vector.load %arg4[%c12, %c0_60, %c0_61] : memref<16x16x1xf32, #tpu.memory_space<vmem>>, vector<1x16x1xf32>
    %110 = vector.shape_cast %109 : vector<1x16x1xf32> to vector<16x1xf32>
    %c0_62 = arith.constant 0 : index
    %c12_63 = arith.constant 12 : index
    %c0_64 = arith.constant 0 : index
    %111 = vector.load %arg2[%c0_62, %c12_63, %c0_64] : memref<1x16x896xf32, #tpu.memory_space<vmem>>, vector<1x1x896xf32>
    %112 = vector.shape_cast %111 : vector<1x1x896xf32> to vector<896xf32>
    %113 = vector.shape_cast %112 : vector<896xf32> to vector<1x896xf32>
    %114 = vector.broadcast %110 : vector<16x1xf32> to vector<16x896xf32>
    %115 = vector.broadcast %113 : vector<1x896xf32> to vector<16x896xf32>
    %116 = arith.mulf %114, %115 : vector<16x896xf32>
    %117 = arith.addf %108, %116 : vector<16x896xf32>
    %c13 = arith.constant 13 : index
    %c0_65 = arith.constant 0 : index
    %c0_66 = arith.constant 0 : index
    %118 = vector.load %arg4[%c13, %c0_65, %c0_66] : memref<16x16x1xf32, #tpu.memory_space<vmem>>, vector<1x16x1xf32>
    %119 = vector.shape_cast %118 : vector<1x16x1xf32> to vector<16x1xf32>
    %c0_67 = arith.constant 0 : index
    %c13_68 = arith.constant 13 : index
    %c0_69 = arith.constant 0 : index
    %120 = vector.load %arg2[%c0_67, %c13_68, %c0_69] : memref<1x16x896xf32, #tpu.memory_space<vmem>>, vector<1x1x896xf32>
    %121 = vector.shape_cast %120 : vector<1x1x896xf32> to vector<896xf32>
    %122 = vector.shape_cast %121 : vector<896xf32> to vector<1x896xf32>
    %123 = vector.broadcast %119 : vector<16x1xf32> to vector<16x896xf32>
    %124 = vector.broadcast %122 : vector<1x896xf32> to vector<16x896xf32>
    %125 = arith.mulf %123, %124 : vector<16x896xf32>
    %126 = arith.addf %117, %125 : vector<16x896xf32>
    %c14 = arith.constant 14 : index
    %c0_70 = arith.constant 0 : index
    %c0_71 = arith.constant 0 : index
    %127 = vector.load %arg4[%c14, %c0_70, %c0_71] : memref<16x16x1xf32, #tpu.memory_space<vmem>>, vector<1x16x1xf32>
    %128 = vector.shape_cast %127 : vector<1x16x1xf32> to vector<16x1xf32>
    %c0_72 = arith.constant 0 : index
    %c14_73 = arith.constant 14 : index
    %c0_74 = arith.constant 0 : index
    %129 = vector.load %arg2[%c0_72, %c14_73, %c0_74] : memref<1x16x896xf32, #tpu.memory_space<vmem>>, vector<1x1x896xf32>
    %130 = vector.shape_cast %129 : vector<1x1x896xf32> to vector<896xf32>
    %131 = vector.shape_cast %130 : vector<896xf32> to vector<1x896xf32>
    %132 = vector.broadcast %128 : vector<16x1xf32> to vector<16x896xf32>
    %133 = vector.broadcast %131 : vector<1x896xf32> to vector<16x896xf32>
    %134 = arith.mulf %132, %133 : vector<16x896xf32>
    %135 = arith.addf %126, %134 : vector<16x896xf32>
    %c15 = arith.constant 15 : index
    %c0_75 = arith.constant 0 : index
    %c0_76 = arith.constant 0 : index
    %136 = vector.load %arg4[%c15, %c0_75, %c0_76] : memref<16x16x1xf32, #tpu.memory_space<vmem>>, vector<1x16x1xf32>
    %137 = vector.shape_cast %136 : vector<1x16x1xf32> to vector<16x1xf32>
    %c0_77 = arith.constant 0 : index
    %c15_78 = arith.constant 15 : index
    %c0_79 = arith.constant 0 : index
    %138 = vector.load %arg2[%c0_77, %c15_78, %c0_79] : memref<1x16x896xf32, #tpu.memory_space<vmem>>, vector<1x1x896xf32>
    %139 = vector.shape_cast %138 : vector<1x1x896xf32> to vector<896xf32>
    %140 = vector.shape_cast %139 : vector<896xf32> to vector<1x896xf32>
    %141 = vector.broadcast %137 : vector<16x1xf32> to vector<16x896xf32>
    %142 = vector.broadcast %140 : vector<1x896xf32> to vector<16x896xf32>
    %143 = arith.mulf %141, %142 : vector<16x896xf32>
    %144 = arith.addf %135, %143 : vector<16x896xf32>
    %c0_80 = arith.constant 0 : index
    %c0_81 = arith.constant 0 : index
    %145 = vector.load %arg5[%c0_80, %c0_81] : memref<16x1xf32, #tpu.memory_space<vmem>>, vector<16x1xf32>
    %146 = vector.broadcast %145 : vector<16x1xf32> to vector<16x896xf32>
    %147 = arith.addf %144, %146 : vector<16x896xf32>
    %c0_82 = arith.constant 0 : index
    %c0_83 = arith.constant 0 : index
    %c0_84 = arith.constant 0 : index
    %148 = vector.load %arg3[%c0_82, %c0_83, %c0_84] : memref<1x16x896xf32, #tpu.memory_space<vmem>>, vector<1x16x896xf32>
    %149 = vector.shape_cast %148 : vector<1x16x896xf32> to vector<16x896xf32>
    %150 = arith.addf %147, %149 : vector<16x896xf32>
    %cst_85 = arith.constant 5.000000e-01 : f32
    %151 = vector.broadcast %cst_85 : f32 to vector<16x896xf32>
    %152 = arith.mulf %151, %150 : vector<16x896xf32>
    %cst_86 = arith.constant 0.707106769 : f32
    %153 = vector.broadcast %cst_86 : f32 to vector<16x896xf32>
    %154 = arith.mulf %150, %153 : vector<16x896xf32>
    %155 = math.erf %154 : vector<16x896xf32>
    %cst_87 = arith.constant 1.000000e+00 : f32
    %156 = vector.broadcast %cst_87 : f32 to vector<16x896xf32>
    %157 = arith.addf %156, %155 : vector<16x896xf32>
    %158 = arith.mulf %152, %157 : vector<16x896xf32>
    %c0_88 = arith.constant 0 : index
    %c0_89 = arith.constant 0 : index
    %c0_90 = arith.constant 0 : index
    %159 = vector.load %arg6[%c0_88, %c0_89, %c0_90] : memref<1x16x896xf32, #tpu.memory_space<vmem>>, vector<1x16x896xf32>
    %160 = vector.shape_cast %159 : vector<1x16x896xf32> to vector<16x896xf32>
    %161 = vector.shape_cast %158 : vector<16x896xf32> to vector<1x16x896xf32>
    tpu.vector_store %arg6[%c0_88, %c0_89, %c0_90], %161 {strides = array<i32>} : memref<1x16x896xf32, #tpu.memory_space<vmem>>, vector<1x16x896xf32>,
    return
  }
  func.func @transform_0(%arg0: i32, %arg1: i32) -> (i32, i32, i32) {
    %c0_i32 = arith.constant 0 : i32
    %c0_i32_0 = arith.constant 0 : i32
    return %arg0, %c0_i32, %arg1 : i32, i32, i32
  }
  func.func @transform_1(%arg0: i32, %arg1: i32) -> (i32, i32, i32) {
    %c0_i32 = arith.constant 0 : i32
    %c0_i32_0 = arith.constant 0 : i32
    return %arg0, %c0_i32, %arg1 : i32, i32, i32
  }
  func.func @transform_2(%arg0: i32, %arg1: i32) -> (i32, i32, i32) {
    %c0_i32 = arith.constant 0 : i32
    %c0_i32_0 = arith.constant 0 : i32
    %c0_i32_1 = arith.constant 0 : i32
    %c0_i32_2 = arith.constant 0 : i32
    return %c0_i32, %c0_i32_0, %c0_i32_1 : i32, i32, i32
  }
  func.func @transform_3(%arg0: i32, %arg1: i32) -> (i32, i32) {
    %c0_i32 = arith.constant 0 : i32
    %c0_i32_0 = arith.constant 0 : i32
    %c0_i32_1 = arith.constant 0 : i32
    return %c0_i32, %c0_i32_0 : i32, i32
  }
  func.func @transform_4(%arg0: i32, %arg1: i32) -> (i32, i32, i32) {
    %c0_i32 = arith.constant 0 : i32
    %c0_i32_0 = arith.constant 0 : i32
    return %arg0, %c0_i32, %arg1 : i32, i32, i32
  }
}

module attributes {stable_mosaic.version = 11 : i64} {
  func.func @_cf_residual_kernel(%arg0: i32, %arg1: i32, %arg2: memref<1x16x896xf32, #tpu.memory_space<vmem>>, %arg3: memref<1x16x896xf32, #tpu.memory_space<vmem>>, %arg4: memref<16x16x1xf32, #tpu.memory_space<vmem>>, %arg5: memref<16x1xf32, #tpu.memory_space<vmem>>, %arg6: memref<1x16x896xf32, #tpu.memory_space<vmem>>) attributes {dimension_semantics = [#tpu.dimension_semantics<parallel>, #tpu.dimension_semantics<parallel>], iteration_bounds = array<i64: 2, 1>, scalar_prefetch = 0 : i64, scratch_operands = 0 : i64, tpu.core_type = #tpu.core_type<tc>, window_params = [{transform_indices = @transform_0, window_bounds = array<i64: 1, 16, 896>}, {transform_indices = @transform_1, window_bounds = array<i64: 1, 16, 896>}, {pipeline_mode = #tpu.pipeline_mode<synchronous>, transform_indices = @transform_2, window_bounds = array<i64: 16, 16, 1>}, {pipeline_mode = #tpu.pipeline_mode<synchronous>, transform_indices = @transform_3, window_bounds = array<i64: 16, 1>}, {transform_indices = @transform_4, window_bounds = array<i64: 1, 16, 896>}]} {
    %cst = arith.constant 0.000000e+00 : f32
    %0 = vector.broadcast %cst : f32 to vector<16x896xf32>
    %c0 = arith.constant 0 : index
    %c0_0 = arith.constant 0 : index
    %c0_1 = arith.constant 0 : index
    %1 = vector.load %arg4[%c0, %c0_0, %c0_1] : memref<16x16x1xf32, #tpu.memory_space<vmem>>, vector<1x16x1xf32>
    %2 = vector.shape_cast %1 : vector<1x16x1xf32> to vector<16x1xf32>
    %c0_2 = arith.constant 0 : index
    %c0_3 = arith.constant 0 : index
    %c0_4 = arith.constant 0 : index
    %3 = vector.load %arg2[%c0_2, %c0_3, %c0_4] : memref<1x16x896xf32, #tpu.memory_space<vmem>>, vector<1x1x896xf32>
    %4 = vector.shape_cast %3 : vector<1x1x896xf32> to vector<896xf32>
    %5 = vector.shape_cast %4 : vector<896xf32> to vector<1x896xf32>
    %6 = vector.broadcast %2 : vector<16x1xf32> to vector<16x896xf32>
    %7 = vector.broadcast %5 : vector<1x896xf32> to vector<16x896xf32>
    %8 = arith.mulf %6, %7 : vector<16x896xf32>
    %9 = arith.addf %0, %8 : vector<16x896xf32>
    %c1 = arith.constant 1 : index
    %c0_5 = arith.constant 0 : index
    %c0_6 = arith.constant 0 : index
    %10 = vector.load %arg4[%c1, %c0_5, %c0_6] : memref<16x16x1xf32, #tpu.memory_space<vmem>>, vector<1x16x1xf32>
    %11 = vector.shape_cast %10 : vector<1x16x1xf32> to vector<16x1xf32>
    %c0_7 = arith.constant 0 : index
    %c1_8 = arith.constant 1 : index
    %c0_9 = arith.constant 0 : index
    %12 = vector.load %arg2[%c0_7, %c1_8, %c0_9] : memref<1x16x896xf32, #tpu.memory_space<vmem>>, vector<1x1x896xf32>
    %13 = vector.shape_cast %12 : vector<1x1x896xf32> to vector<896xf32>
    %14 = vector.shape_cast %13 : vector<896xf32> to vector<1x896xf32>
    %15 = vector.broadcast %11 : vector<16x1xf32> to vector<16x896xf32>
    %16 = vector.broadcast %14 : vector<1x896xf32> to vector<16x896xf32>
    %17 = arith.mulf %15, %16 : vector<16x896xf32>
    %18 = arith.addf %9, %17 : vector<16x896xf32>
    %c2 = arith.constant 2 : index
    %c0_10 = arith.constant 0 : index
    %c0_11 = arith.constant 0 : index
    %19 = vector.load %arg4[%c2, %c0_10, %c0_11] : memref<16x16x1xf32, #tpu.memory_space<vmem>>, vector<1x16x1xf32>
    %20 = vector.shape_cast %19 : vector<1x16x1xf32> to vector<16x1xf32>
    %c0_12 = arith.constant 0 : index
    %c2_13 = arith.constant 2 : index
    %c0_14 = arith.constant 0 : index
    %21 = vector.load %arg2[%c0_12, %c2_13, %c0_14] : memref<1x16x896xf32, #tpu.memory_space<vmem>>, vector<1x1x896xf32>
    %22 = vector.shape_cast %21 : vector<1x1x896xf32> to vector<896xf32>
    %23 = vector.shape_cast %22 : vector<896xf32> to vector<1x896xf32>
    %24 = vector.broadcast %20 : vector<16x1xf32> to vector<16x896xf32>
    %25 = vector.broadcast %23 : vector<1x896xf32> to vector<16x896xf32>
    %26 = arith.mulf %24, %25 : vector<16x896xf32>
    %27 = arith.addf %18, %26 : vector<16x896xf32>
    %c3 = arith.constant 3 : index
    %c0_15 = arith.constant 0 : index
    %c0_16 = arith.constant 0 : index
    %28 = vector.load %arg4[%c3, %c0_15, %c0_16] : memref<16x16x1xf32, #tpu.memory_space<vmem>>, vector<1x16x1xf32>
    %29 = vector.shape_cast %28 : vector<1x16x1xf32> to vector<16x1xf32>
    %c0_17 = arith.constant 0 : index
    %c3_18 = arith.constant 3 : index
    %c0_19 = arith.constant 0 : index
    %30 = vector.load %arg2[%c0_17, %c3_18, %c0_19] : memref<1x16x896xf32, #tpu.memory_space<vmem>>, vector<1x1x896xf32>
    %31 = vector.shape_cast %30 : vector<1x1x896xf32> to vector<896xf32>
    %32 = vector.shape_cast %31 : vector<896xf32> to vector<1x896xf32>
    %33 = vector.broadcast %29 : vector<16x1xf32> to vector<16x896xf32>
    %34 = vector.broadcast %32 : vector<1x896xf32> to vector<16x896xf32>
    %35 = arith.mulf %33, %34 : vector<16x896xf32>
    %36 = arith.addf %27, %35 : vector<16x896xf32>
    %c4 = arith.constant 4 : index
    %c0_20 = arith.constant 0 : index
    %c0_21 = arith.constant 0 : index
    %37 = vector.load %arg4[%c4, %c0_20, %c0_21] : memref<16x16x1xf32, #tpu.memory_space<vmem>>, vector<1x16x1xf32>
    %38 = vector.shape_cast %37 : vector<1x16x1xf32> to vector<16x1xf32>
    %c0_22 = arith.constant 0 : index
    %c4_23 = arith.constant 4 : index
    %c0_24 = arith.constant 0 : index
    %39 = vector.load %arg2[%c0_22, %c4_23, %c0_24] : memref<1x16x896xf32, #tpu.memory_space<vmem>>, vector<1x1x896xf32>
    %40 = vector.shape_cast %39 : vector<1x1x896xf32> to vector<896xf32>
    %41 = vector.shape_cast %40 : vector<896xf32> to vector<1x896xf32>
    %42 = vector.broadcast %38 : vector<16x1xf32> to vector<16x896xf32>
    %43 = vector.broadcast %41 : vector<1x896xf32> to vector<16x896xf32>
    %44 = arith.mulf %42, %43 : vector<16x896xf32>
    %45 = arith.addf %36, %44 : vector<16x896xf32>
    %c5 = arith.constant 5 : index
    %c0_25 = arith.constant 0 : index
    %c0_26 = arith.constant 0 : index
    %46 = vector.load %arg4[%c5, %c0_25, %c0_26] : memref<16x16x1xf32, #tpu.memory_space<vmem>>, vector<1x16x1xf32>
    %47 = vector.shape_cast %46 : vector<1x16x1xf32> to vector<16x1xf32>
    %c0_27 = arith.constant 0 : index
    %c5_28 = arith.constant 5 : index
    %c0_29 = arith.constant 0 : index
    %48 = vector.load %arg2[%c0_27, %c5_28, %c0_29] : memref<1x16x896xf32, #tpu.memory_space<vmem>>, vector<1x1x896xf32>
    %49 = vector.shape_cast %48 : vector<1x1x896xf32> to vector<896xf32>
    %50 = vector.shape_cast %49 : vector<896xf32> to vector<1x896xf32>
    %51 = vector.broadcast %47 : vector<16x1xf32> to vector<16x896xf32>
    %52 = vector.broadcast %50 : vector<1x896xf32> to vector<16x896xf32>
    %53 = arith.mulf %51, %52 : vector<16x896xf32>
    %54 = arith.addf %45, %53 : vector<16x896xf32>
    %c6 = arith.constant 6 : index
    %c0_30 = arith.constant 0 : index
    %c0_31 = arith.constant 0 : index
    %55 = vector.load %arg4[%c6, %c0_30, %c0_31] : memref<16x16x1xf32, #tpu.memory_space<vmem>>, vector<1x16x1xf32>
    %56 = vector.shape_cast %55 : vector<1x16x1xf32> to vector<16x1xf32>
    %c0_32 = arith.constant 0 : index
    %c6_33 = arith.constant 6 : index
    %c0_34 = arith.constant 0 : index
    %57 = vector.load %arg2[%c0_32, %c6_33, %c0_34] : memref<1x16x896xf32, #tpu.memory_space<vmem>>, vector<1x1x896xf32>
    %58 = vector.shape_cast %57 : vector<1x1x896xf32> to vector<896xf32>
    %59 = vector.shape_cast %58 : vector<896xf32> to vector<1x896xf32>
    %60 = vector.broadcast %56 : vector<16x1xf32> to vector<16x896xf32>
    %61 = vector.broadcast %59 : vector<1x896xf32> to vector<16x896xf32>
    %62 = arith.mulf %60, %61 : vector<16x896xf32>
    %63 = arith.addf %54, %62 : vector<16x896xf32>
    %c7 = arith.constant 7 : index
    %c0_35 = arith.constant 0 : index
    %c0_36 = arith.constant 0 : index
    %64 = vector.load %arg4[%c7, %c0_35, %c0_36] : memref<16x16x1xf32, #tpu.memory_space<vmem>>, vector<1x16x1xf32>
    %65 = vector.shape_cast %64 : vector<1x16x1xf32> to vector<16x1xf32>
    %c0_37 = arith.constant 0 : index
    %c7_38 = arith.constant 7 : index
    %c0_39 = arith.constant 0 : index
    %66 = vector.load %arg2[%c0_37, %c7_38, %c0_39] : memref<1x16x896xf32, #tpu.memory_space<vmem>>, vector<1x1x896xf32>
    %67 = vector.shape_cast %66 : vector<1x1x896xf32> to vector<896xf32>
    %68 = vector.shape_cast %67 : vector<896xf32> to vector<1x896xf32>
    %69 = vector.broadcast %65 : vector<16x1xf32> to vector<16x896xf32>
    %70 = vector.broadcast %68 : vector<1x896xf32> to vector<16x896xf32>
    %71 = arith.mulf %69, %70 : vector<16x896xf32>
    %72 = arith.addf %63, %71 : vector<16x896xf32>
    %c8 = arith.constant 8 : index
    %c0_40 = arith.constant 0 : index
    %c0_41 = arith.constant 0 : index
    %73 = vector.load %arg4[%c8, %c0_40, %c0_41] : memref<16x16x1xf32, #tpu.memory_space<vmem>>, vector<1x16x1xf32>
    %74 = vector.shape_cast %73 : vector<1x16x1xf32> to vector<16x1xf32>
    %c0_42 = arith.constant 0 : index
    %c8_43 = arith.constant 8 : index
    %c0_44 = arith.constant 0 : index
    %75 = vector.load %arg2[%c0_42, %c8_43, %c0_44] : memref<1x16x896xf32, #tpu.memory_space<vmem>>, vector<1x1x896xf32>
    %76 = vector.shape_cast %75 : vector<1x1x896xf32> to vector<896xf32>
    %77 = vector.shape_cast %76 : vector<896xf32> to vector<1x896xf32>
    %78 = vector.broadcast %74 : vector<16x1xf32> to vector<16x896xf32>
    %79 = vector.broadcast %77 : vector<1x896xf32> to vector<16x896xf32>
    %80 = arith.mulf %78, %79 : vector<16x896xf32>
    %81 = arith.addf %72, %80 : vector<16x896xf32>
    %c9 = arith.constant 9 : index
    %c0_45 = arith.constant 0 : index
    %c0_46 = arith.constant 0 : index
    %82 = vector.load %arg4[%c9, %c0_45, %c0_46] : memref<16x16x1xf32, #tpu.memory_space<vmem>>, vector<1x16x1xf32>
    %83 = vector.shape_cast %82 : vector<1x16x1xf32> to vector<16x1xf32>
    %c0_47 = arith.constant 0 : index
    %c9_48 = arith.constant 9 : index
    %c0_49 = arith.constant 0 : index
    %84 = vector.load %arg2[%c0_47, %c9_48, %c0_49] : memref<1x16x896xf32, #tpu.memory_space<vmem>>, vector<1x1x896xf32>
    %85 = vector.shape_cast %84 : vector<1x1x896xf32> to vector<896xf32>
    %86 = vector.shape_cast %85 : vector<896xf32> to vector<1x896xf32>
    %87 = vector.broadcast %83 : vector<16x1xf32> to vector<16x896xf32>
    %88 = vector.broadcast %86 : vector<1x896xf32> to vector<16x896xf32>
    %89 = arith.mulf %87, %88 : vector<16x896xf32>
    %90 = arith.addf %81, %89 : vector<16x896xf32>
    %c10 = arith.constant 10 : index
    %c0_50 = arith.constant 0 : index
    %c0_51 = arith.constant 0 : index
    %91 = vector.load %arg4[%c10, %c0_50, %c0_51] : memref<16x16x1xf32, #tpu.memory_space<vmem>>, vector<1x16x1xf32>
    %92 = vector.shape_cast %91 : vector<1x16x1xf32> to vector<16x1xf32>
    %c0_52 = arith.constant 0 : index
    %c10_53 = arith.constant 10 : index
    %c0_54 = arith.constant 0 : index
    %93 = vector.load %arg2[%c0_52, %c10_53, %c0_54] : memref<1x16x896xf32, #tpu.memory_space<vmem>>, vector<1x1x896xf32>
    %94 = vector.shape_cast %93 : vector<1x1x896xf32> to vector<896xf32>
    %95 = vector.shape_cast %94 : vector<896xf32> to vector<1x896xf32>
    %96 = vector.broadcast %92 : vector<16x1xf32> to vector<16x896xf32>
    %97 = vector.broadcast %95 : vector<1x896xf32> to vector<16x896xf32>
    %98 = arith.mulf %96, %97 : vector<16x896xf32>
    %99 = arith.addf %90, %98 : vector<16x896xf32>
    %c11 = arith.constant 11 : index
    %c0_55 = arith.constant 0 : index
    %c0_56 = arith.constant 0 : index
    %100 = vector.load %arg4[%c11, %c0_55, %c0_56] : memref<16x16x1xf32, #tpu.memory_space<vmem>>, vector<1x16x1xf32>
    %101 = vector.shape_cast %100 : vector<1x16x1xf32> to vector<16x1xf32>
    %c0_57 = arith.constant 0 : index
    %c11_58 = arith.constant 11 : index
    %c0_59 = arith.constant 0 : index
    %102 = vector.load %arg2[%c0_57, %c11_58, %c0_59] : memref<1x16x896xf32, #tpu.memory_space<vmem>>, vector<1x1x896xf32>
    %103 = vector.shape_cast %102 : vector<1x1x896xf32> to vector<896xf32>
    %104 = vector.shape_cast %103 : vector<896xf32> to vector<1x896xf32>
    %105 = vector.broadcast %101 : vector<16x1xf32> to vector<16x896xf32>
    %106 = vector.broadcast %104 : vector<1x896xf32> to vector<16x896xf32>
    %107 = arith.mulf %105, %106 : vector<16x896xf32>
    %108 = arith.addf %99, %107 : vector<16x896xf32>
    %c12 = arith.constant 12 : index
    %c0_60 = arith.constant 0 : index
    %c0_61 = arith.constant 0 : index
    %109 = vector.load %arg4[%c12, %c0_60, %c0_61] : memref<16x16x1xf32, #tpu.memory_space<vmem>>, vector<1x16x1xf32>
    %110 = vector.shape_cast %109 : vector<1x16x1xf32> to vector<16x1xf32>
    %c0_62 = arith.constant 0 : index
    %c12_63 = arith.constant 12 : index
    %c0_64 = arith.constant 0 : index
    %111 = vector.load %arg2[%c0_62, %c12_63, %c0_64] : memref<1x16x896xf32, #tpu.memory_space<vmem>>, vector<1x1x896xf32>
    %112 = vector.shape_cast %111 : vector<1x1x896xf32> to vector<896xf32>
    %113 = vector.shape_cast %112 : vector<896xf32> to vector<1x896xf32>
    %114 = vector.broadcast %110 : vector<16x1xf32> to vector<16x896xf32>
    %115 = vector.broadcast %113 : vector<1x896xf32> to vector<16x896xf32>
    %116 = arith.mulf %114, %115 : vector<16x896xf32>
    %117 = arith.addf %108, %116 : vector<16x896xf32>
    %c13 = arith.constant 13 : index
    %c0_65 = arith.constant 0 : index
    %c0_66 = arith.constant 0 : index
    %118 = vector.load %arg4[%c13, %c0_65, %c0_66] : memref<16x16x1xf32, #tpu.memory_space<vmem>>, vector<1x16x1xf32>
    %119 = vector.shape_cast %118 : vector<1x16x1xf32> to vector<16x1xf32>
    %c0_67 = arith.constant 0 : index
    %c13_68 = arith.constant 13 : index
    %c0_69 = arith.constant 0 : index
    %120 = vector.load %arg2[%c0_67, %c13_68, %c0_69] : memref<1x16x896xf32, #tpu.memory_space<vmem>>, vector<1x1x896xf32>
    %121 = vector.shape_cast %120 : vector<1x1x896xf32> to vector<896xf32>
    %122 = vector.shape_cast %121 : vector<896xf32> to vector<1x896xf32>
    %123 = vector.broadcast %119 : vector<16x1xf32> to vector<16x896xf32>
    %124 = vector.broadcast %122 : vector<1x896xf32> to vector<16x896xf32>
    %125 = arith.mulf %123, %124 : vector<16x896xf32>
    %126 = arith.addf %117, %125 : vector<16x896xf32>
    %c14 = arith.constant 14 : index
    %c0_70 = arith.constant 0 : index
    %c0_71 = arith.constant 0 : index
    %127 = vector.load %arg4[%c14, %c0_70, %c0_71] : memref<16x16x1xf32, #tpu.memory_space<vmem>>, vector<1x16x1xf32>
    %128 = vector.shape_cast %127 : vector<1x16x1xf32> to vector<16x1xf32>
    %c0_72 = arith.constant 0 : index
    %c14_73 = arith.constant 14 : index
    %c0_74 = arith.constant 0 : index
    %129 = vector.load %arg2[%c0_72, %c14_73, %c0_74] : memref<1x16x896xf32, #tpu.memory_space<vmem>>, vector<1x1x896xf32>
    %130 = vector.shape_cast %129 : vector<1x1x896xf32> to vector<896xf32>
    %131 = vector.shape_cast %130 : vector<896xf32> to vector<1x896xf32>
    %132 = vector.broadcast %128 : vector<16x1xf32> to vector<16x896xf32>
    %133 = vector.broadcast %131 : vector<1x896xf32> to vector<16x896xf32>
    %134 = arith.mulf %132, %133 : vector<16x896xf32>
    %135 = arith.addf %126, %134 : vector<16x896xf32>
    %c15 = arith.constant 15 : index
    %c0_75 = arith.constant 0 : index
    %c0_76 = arith.constant 0 : index
    %136 = vector.load %arg4[%c15, %c0_75, %c0_76] : memref<16x16x1xf32, #tpu.memory_space<vmem>>, vector<1x16x1xf32>
    %137 = vector.shape_cast %136 : vector<1x16x1xf32> to vector<16x1xf32>
    %c0_77 = arith.constant 0 : index
    %c15_78 = arith.constant 15 : index
    %c0_79 = arith.constant 0 : index
    %138 = vector.load %arg2[%c0_77, %c15_78, %c0_79] : memref<1x16x896xf32, #tpu.memory_space<vmem>>, vector<1x1x896xf32>
    %139 = vector.shape_cast %138 : vector<1x1x896xf32> to vector<896xf32>
    %140 = vector.shape_cast %139 : vector<896xf32> to vector<1x896xf32>
    %141 = vector.broadcast %137 : vector<16x1xf32> to vector<16x896xf32>
    %142 = vector.broadcast %140 : vector<1x896xf32> to vector<16x896xf32>
    %143 = arith.mulf %141, %142 : vector<16x896xf32>
    %144 = arith.addf %135, %143 : vector<16x896xf32>
    %c0_80 = arith.constant 0 : index
    %c0_81 = arith.constant 0 : index
    %145 = vector.load %arg5[%c0_80, %c0_81] : memref<16x1xf32, #tpu.memory_space<vmem>>, vector<16x1xf32>
    %146 = vector.broadcast %145 : vector<16x1xf32> to vector<16x896xf32>
    %147 = arith.addf %144, %146 : vector<16x896xf32>
    %c0_82 = arith.constant 0 : index
    %c0_83 = arith.constant 0 : index
    %c0_84 = arith.constant 0 : index
    %148 = vector.load %arg3[%c0_82, %c0_83, %c0_84] : memref<1x16x896xf32, #tpu.memory_space<vmem>>, vector<1x16x896xf32>
    %149 = vector.shape_cast %148 : vector<1x16x896xf32> to vector<16x896xf32>
    %150 = arith.addf %147, %149 : vector<16x896xf32>
    %c0_85 = arith.constant 0 : index
    %c0_86 = arith.constant 0 : index
    %c0_87 = arith.constant 0 : index
    %151 = vector.load %arg6[%c0_85, %c0_86, %c0_87] : memref<1x16x896xf32, #tpu.memory_space<vmem>>, vector<1x16x896xf32>
    %152 = vector.shape_cast %151 : vector<1x16x896xf32> to vector<16x896xf32>
    %153 = vector.shape_cast %150 : vector<16x896xf32> to vector<1x16x896xf32>
    tpu.vector_store %arg6[%c0_85, %c0_86, %c0_87], %153 {strides = array<i32>} : memref<1x16x896xf32, #tpu.memory_space<vmem>>, vector<1x16x896xf32>,
    return
  }
  func.func @transform_0(%arg0: i32, %arg1: i32) -> (i32, i32, i32) {
    %c0_i32 = arith.constant 0 : i32
    %c0_i32_0 = arith.constant 0 : i32
    return %arg0, %c0_i32, %arg1 : i32, i32, i32
  }
  func.func @transform_1(%arg0: i32, %arg1: i32) -> (i32, i32, i32) {
    %c0_i32 = arith.constant 0 : i32
    %c0_i32_0 = arith.constant 0 : i32
    return %arg0, %c0_i32, %arg1 : i32, i32, i32
  }
  func.func @transform_2(%arg0: i32, %arg1: i32) -> (i32, i32, i32) {
    %c0_i32 = arith.constant 0 : i32
    %c0_i32_0 = arith.constant 0 : i32
    %c0_i32_1 = arith.constant 0 : i32
    %c0_i32_2 = arith.constant 0 : i32
    return %c0_i32, %c0_i32_0, %c0_i32_1 : i32, i32, i32
  }
  func.func @transform_3(%arg0: i32, %arg1: i32) -> (i32, i32) {
    %c0_i32 = arith.constant 0 : i32
    %c0_i32_0 = arith.constant 0 : i32
    %c0_i32_1 = arith.constant 0 : i32
    return %c0_i32, %c0_i32_0 : i32, i32
  }
  func.func @transform_4(%arg0: i32, %arg1: i32) -> (i32, i32, i32) {
    %c0_i32 = arith.constant 0 : i32
    %c0_i32_0 = arith.constant 0 : i32
    return %arg0, %c0_i32, %arg1 : i32, i32, i32
  }
}

module attributes {stable_mosaic.version = 11 : i64} {
  func.func @_head_kernel(%arg0: i32, %arg1: i32, %arg2: memref<1x16x896xf32, #tpu.memory_space<vmem>>, %arg3: memref<128x16xf32, #tpu.memory_space<vmem>>, %arg4: memref<128x1xf32, #tpu.memory_space<vmem>>, %arg5: memref<2x128xf32, #tpu.memory_space<vmem>>, %arg6: memref<2x1xf32, #tpu.memory_space<vmem>>, %arg7: memref<1x2x896xf32, #tpu.memory_space<vmem>>) attributes {dimension_semantics = [#tpu.dimension_semantics<parallel>, #tpu.dimension_semantics<parallel>], iteration_bounds = array<i64: 2, 1>, scalar_prefetch = 0 : i64, scratch_operands = 0 : i64, tpu.core_type = #tpu.core_type<tc>, window_params = [{transform_indices = @transform_0, window_bounds = array<i64: 1, 16, 896>}, {pipeline_mode = #tpu.pipeline_mode<synchronous>, transform_indices = @transform_1, window_bounds = array<i64: 128, 16>}, {pipeline_mode = #tpu.pipeline_mode<synchronous>, transform_indices = @transform_2, window_bounds = array<i64: 128, 1>}, {pipeline_mode = #tpu.pipeline_mode<synchronous>, transform_indices = @transform_3, window_bounds = array<i64: 2, 128>}, {pipeline_mode = #tpu.pipeline_mode<synchronous>, transform_indices = @transform_4, window_bounds = array<i64: 2, 1>}, {transform_indices = @transform_5, window_bounds = array<i64: 1, 2, 896>}]} {
    %c0 = arith.constant 0 : index
    %c0_0 = arith.constant 0 : index
    %0 = vector.load %arg3[%c0, %c0_0] : memref<128x16xf32, #tpu.memory_space<vmem>>, vector<128x16xf32>
    %c0_1 = arith.constant 0 : index
    %c0_2 = arith.constant 0 : index
    %c0_3 = arith.constant 0 : index
    %1 = vector.load %arg2[%c0_1, %c0_2, %c0_3] : memref<1x16x896xf32, #tpu.memory_space<vmem>>, vector<1x16x896xf32>
    %2 = vector.shape_cast %1 : vector<1x16x896xf32> to vector<16x896xf32>
    %cst = arith.constant dense<0.000000e+00> : vector<128x896xf32>
    %3 = tpu.matmul %0, %2, %cst {dimension_numbers = #tpu.dot_dimension_numbers<[1], [0], [0], [1], [0, 0, 1, 1], [], []>} : vector<128x16xf32>, vector<16x896xf32>, vector<128x896xf32> -> vector<128x896xf32>
    %c0_4 = arith.constant 0 : index
    %c0_5 = arith.constant 0 : index
    %4 = vector.load %arg4[%c0_4, %c0_5] : memref<128x1xf32, #tpu.memory_space<vmem>>, vector<128x1xf32>
    %5 = vector.broadcast %4 : vector<128x1xf32> to vector<128x896xf32>
    %6 = arith.addf %3, %5 : vector<128x896xf32>
    %cst_6 = arith.constant 5.000000e-01 : f32
    %7 = vector.broadcast %cst_6 : f32 to vector<128x896xf32>
    %8 = arith.mulf %7, %6 : vector<128x896xf32>
    %cst_7 = arith.constant 0.707106769 : f32
    %9 = vector.broadcast %cst_7 : f32 to vector<128x896xf32>
    %10 = arith.mulf %6, %9 : vector<128x896xf32>
    %11 = math.erf %10 : vector<128x896xf32>
    %cst_8 = arith.constant 1.000000e+00 : f32
    %12 = vector.broadcast %cst_8 : f32 to vector<128x896xf32>
    %13 = arith.addf %12, %11 : vector<128x896xf32>
    %14 = arith.mulf %8, %13 : vector<128x896xf32>
    %c0_9 = arith.constant 0 : index
    %c0_10 = arith.constant 0 : index
    %15 = vector.load %arg5[%c0_9, %c0_10] : memref<2x128xf32, #tpu.memory_space<vmem>>, vector<2x128xf32>
    %cst_11 = arith.constant dense<0.000000e+00> : vector<2x896xf32>
    %16 = tpu.matmul %15, %14, %cst_11 {dimension_numbers = #tpu.dot_dimension_numbers<[1], [0], [0], [1], [0, 0, 1, 1], [], []>} : vector<2x128xf32>, vector<128x896xf32>, vector<2x896xf32> -> vector<2x896xf32>
    %c0_12 = arith.constant 0 : index
    %c0_13 = arith.constant 0 : index
    %17 = vector.load %arg6[%c0_12, %c0_13] : memref<2x1xf32, #tpu.memory_space<vmem>>, vector<2x1xf32>
    %18 = vector.broadcast %17 : vector<2x1xf32> to vector<2x896xf32>
    %19 = arith.addf %16, %18 : vector<2x896xf32>
    %c0_14 = arith.constant 0 : index
    %c0_15 = arith.constant 0 : index
    %c0_16 = arith.constant 0 : index
    %20 = vector.load %arg7[%c0_14, %c0_15, %c0_16] : memref<1x2x896xf32, #tpu.memory_space<vmem>>, vector<1x2x896xf32>
    %21 = vector.shape_cast %20 : vector<1x2x896xf32> to vector<2x896xf32>
    %22 = vector.shape_cast %19 : vector<2x896xf32> to vector<1x2x896xf32>
    tpu.vector_store %arg7[%c0_14, %c0_15, %c0_16], %22 {strides = array<i32>} : memref<1x2x896xf32, #tpu.memory_space<vmem>>, vector<1x2x896xf32>,
    return
  }
  func.func @transform_0(%arg0: i32, %arg1: i32) -> (i32, i32, i32) {
    %c0_i32 = arith.constant 0 : i32
    %c0_i32_0 = arith.constant 0 : i32
    return %arg0, %c0_i32, %arg1 : i32, i32, i32
  }
  func.func @transform_1(%arg0: i32, %arg1: i32) -> (i32, i32) {
    %c0_i32 = arith.constant 0 : i32
    %c0_i32_0 = arith.constant 0 : i32
    %c0_i32_1 = arith.constant 0 : i32
    return %c0_i32, %c0_i32_0 : i32, i32
  }
  func.func @transform_2(%arg0: i32, %arg1: i32) -> (i32, i32) {
    %c0_i32 = arith.constant 0 : i32
    %c0_i32_0 = arith.constant 0 : i32
    %c0_i32_1 = arith.constant 0 : i32
    return %c0_i32, %c0_i32_0 : i32, i32
  }
  func.func @transform_3(%arg0: i32, %arg1: i32) -> (i32, i32) {
    %c0_i32 = arith.constant 0 : i32
    %c0_i32_0 = arith.constant 0 : i32
    %c0_i32_1 = arith.constant 0 : i32
    return %c0_i32, %c0_i32_0 : i32, i32
  }
  func.func @transform_4(%arg0: i32, %arg1: i32) -> (i32, i32) {
    %c0_i32 = arith.constant 0 : i32
    %c0_i32_0 = arith.constant 0 : i32
    %c0_i32_1 = arith.constant 0 : i32
    return %c0_i32, %c0_i32_0 : i32, i32
  }
  func.func @transform_5(%arg0: i32, %arg1: i32) -> (i32, i32, i32) {
    %c0_i32 = arith.constant 0 : i32
    %c0_i32_0 = arith.constant 0 : i32
    return %arg0, %c0_i32, %arg1 : i32, i32, i32
  }
}

</mosaic_0001>

<bundles_post_ra>
// kernel: _lambda_.10
= control target key start
LH: loop header
LB: loop body
LE: loop exit
PB: predicated region body
PF: predicated region fallthrough
CT: control target
= control target key end

     0   :  { %s625_s12 = smov 0   ;;  %s627_s13 = smov 0   ;;  %s696_s0 = inlined_call_operand.vmem [shape: f32[2,4,512], index: 0, kind: input, shape index: {}]   ;;  %s697_s1 = inlined_call_operand.vmem [shape: f32[4,16,1], index: 1, kind: input, shape index: {}]   ;;  %s698_s2 = inlined_call_operand.vmem [shape: f32[16,1], index: 2, kind: input, shape index: {}]   ;;  %s699_s3 = inlined_call_operand.vmem [shape: f32[2,16,512], index: 3, kind: output, shape index: {}]  }
   0x1   :  { %s629_s14 = smov 0  }
   0x2 LB: > { %s25_s15 = sadd.s32 1, %s598_s13  ;;  %p535_p0 = scmp.ge.s32.totalorder %s602_s14, 1  ;;  %s602_s14 = sphi %s629_s14, %s13_s14   ;;  %s598_s13 = sphi %s627_s13, %s701_s13   ;;  %s594_s12 = sphi %s625_s12, %s700_s12  }
   0x3   : > { %p27_p1 = scmp.ge.s32.totalorder %s25_s15, 2  ;;  %p158_p2 = scmp.lt.s32.totalorder %s602_s14, 3 }
   0x5   : > { %s703_s15 = smov (%p27_p1, %s25_s15), 0  ;;  %p159_p3 = pnand %p535_p0, %p158_p2 }
   0x6   : > { %v540_v0 = vld [vmem:[%s697_s1 + $0x10] sm:$0xff] (!%p159_p3)  ;;  %v210_v1 = vld [vmem:[%s697_s1] sm:$0xff] (!%p159_p3)  ;;  %v604_v2 = vmov (!%p159_p3), 0   ;;  %v541_v3 = vld [vmem:[%s697_s1 + $0x18] sm:$0xff] (!%p159_p3)  ;;  %p191_p4 = scmp.lt.s32.totalorder (!%p159_p3), %s594_s12, 1  ;;  %v224_v11 = vlaneseq (!%p159_p3) }
   0x7   : > { %162 = sbr.rel (%p159_p3) target bundleno = 158 (0x9e), region = 32  ;;  %579 = vset.pattern.permute.xlu1 (!%p159_p3), %v604_v2  ;;  %578 = vset.pattern.permute.xlu0 (!%p159_p3), %v604_v2  ;;  %v211_v4 = vld [vmem:[%s697_s1 + $0x8] sm:$0xff] (!%p159_p3)  ;;  %v543_v6 = vld [vmem:[%s697_s1 + $0x20] sm:$0xff] (!%p159_p3)  ;;  %v547_v7 = vld [vmem:[%s697_s1 + $0x38] sm:$0xff] (!%p159_p3) }
   0x8   : > { %267 = vperm.xlu1 (!%p159_p3), %579, %v540_v0   ;;  %215 = vperm.xlu0 (!%p159_p3), %578, %v210_v1   ;;  %v544_v5 = vld [vmem:[%s697_s1 + $0x28] sm:$0xff] (!%p159_p3)  ;;  %v546_v8 = vld [vmem:[%s697_s1 + $0x30] sm:$0xff] (!%p159_p3)  ;;  %v416_v10 = vld [vmem:[%s698_s2] sm:$0xff] (!%p159_p3)  ;;  %v225_v12 = vshrl.u32 (!%p159_p3), %v224_v11, 7 }
   0x9   : > { %v417_v9 = vld [vmem:[%s698_s2 + $0x8] sm:$0xff] (!%p159_p3) }
   0xa   : > { %v226_v13 = vsub.s32 (!%p159_p3), 0, %v225_v12  ;;  %v230_v14 = vsub.s32 (!%p159_p3), 1, %v225_v12  ;;  %v234_v15 = vsub.s32 (!%p159_p3), 2, %v225_v12  ;;  %v238_v16 = vsub.s32 (!%p159_p3), 3, %v225_v12 }
   0xc   : > { %272 = vperm.xlu1 (!%p159_p3), %579, %v541_v3   ;;  %220 = vperm.xlu0 (!%p159_p3), %578, %v211_v4  }
   0xe   : > { %s705_s12 = smov (!%p191_p4, %s594_s12), 1 }
   0xf   : > { %s551_s9 = sshll.u32 %s705_s12, 4  ;;  %s552_s17 = sshll.u32 %s705_s12, 6 }
  0x10   : > { %324 = vperm.xlu1 %579, %v544_v5   ;;  %319 = vperm.xlu0 %578, %v543_v6   ;;  %s198_s16 = scalar_lea.vmem %s696_s0, %s551_s9  ;;  %s208_s20 = scalar_lea.vmem %s699_s3, %s552_s17 }
  0x11   : > { %v542_v17 = vld [vmem:[%s198_s16 + $0x1] ss:$4 sm:$0xf]  ;;  %v212_v18 = vld [vmem:[%s198_s16] ss:$4 sm:$0xf] }
  0x12   : > { %v279_v19 = vrot.slane %v542_v17, %v226_v13  ;;  %v283_v20 = vrot.slane %v542_v17, %v230_v14  ;;  %v287_v21 = vrot.slane %v542_v17, %v234_v15  ;;  %v291_v22 = vrot.slane %v542_v17, %v238_v16  ;;  %v545_v23 = vld [vmem:[%s198_s16 + $0x2] ss:$4 sm:$0xf]  ;;  %v548_v34 = vld [vmem:[%s198_s16 + $0x3] ss:$4 sm:$0xf] }
  0x13   : > { %v227_v24 = vrot.slane %v212_v18, %v226_v13  ;;  %v231_v25 = vrot.slane %v212_v18, %v230_v14  ;;  %v235_v26 = vrot.slane %v212_v18, %v234_v15  ;;  %v239_v27 = vrot.slane %v212_v18, %v238_v16 }
  0x14   : > { %376 = vperm.xlu1 %579, %v547_v7   ;;  %371 = vperm.xlu0 %578, %v546_v8   ;;  %v331_v30 = vrot.slane %v545_v23, %v226_v13  ;;  %v335_v31 = vrot.slane %v545_v23, %v230_v14  ;;  %v339_v32 = vrot.slane %v545_v23, %v234_v15 }
  0x15   : > { %v343_v33 = vrot.slane %v545_v23, %v238_v16  ;;  %v383_v45 = vrot.slane %v548_v34, %v226_v13  ;;  %v387_v46 = vrot.slane %v548_v34, %v230_v14  ;;  %v391_v47 = vrot.slane %v548_v34, %v234_v15 }
  0x16   : > { %v395_v48 = vrot.slane %v548_v34, %v238_v16 }
  0x18   : > { %425 = vperm.xlu1 %579, %v417_v9   ;;  %420 = vperm.xlu0 %578, %v416_v10  }
  0x87   : > { %v268_v28 = vpop.permute.xlu1 %267  ;;  %v216_v29 = vpop.permute.xlu0 %215 }
  0x88   : > { %v296_v35 = vmul.f32 %v279_v19, %v268_v28  ;;  %v297_v36 = vmul.f32 %v283_v20, %v268_v28  ;;  %v298_v37 = vmul.f32 %v287_v21, %v268_v28  ;;  %v299_v38 = vmul.f32 %v291_v22, %v268_v28 }
  0x89   : > { %v244_v39 = vmul.f32 %v227_v24, %v216_v29  ;;  %v245_v40 = vmul.f32 %v231_v25, %v216_v29  ;;  %v246_v41 = vmul.f32 %v235_v26, %v216_v29  ;;  %v247_v42 = vmul.f32 %v239_v27, %v216_v29 }
  0x8b   : > { %v273_v43 = vpop.permute.xlu1 %272  ;;  %v221_v44 = vpop.permute.xlu0 %220  ;;  %v304_v57 = vadd.f32 %v296_v35, %v244_v39  ;;  %v305_v58 = vadd.f32 %v297_v36, %v245_v40  ;;  %v306_v59 = vadd.f32 %v298_v37, %v246_v41  ;;  %v307_v60 = vadd.f32 %v299_v38, %v247_v42 }
  0x8c   : > { %v300_v49 = vmul.f32 %v279_v19, %v273_v43  ;;  %v301_v50 = vmul.f32 %v283_v20, %v273_v43  ;;  %v302_v51 = vmul.f32 %v287_v21, %v273_v43  ;;  %v303_v52 = vmul.f32 %v291_v22, %v273_v43 }
  0x8d   : > { %v248_v53 = vmul.f32 %v227_v24, %v221_v44  ;;  %v249_v54 = vmul.f32 %v231_v25, %v221_v44  ;;  %v250_v55 = vmul.f32 %v235_v26, %v221_v44  ;;  %v251_v56 = vmul.f32 %v239_v27, %v221_v44 }
  0x8f   : > { %v308_v61 = vadd.f32 %v300_v49, %v248_v53  ;;  %v309_v62 = vadd.f32 %v301_v50, %v249_v54  ;;  %v310_v63 = vadd.f32 %v302_v51, %v250_v55  ;;  %v311_v0 = vadd.f32 %v303_v52, %v251_v56  ;;  %v325_v1 = vpop.permute.xlu1 %324  ;;  %v320_v2 = vpop.permute.xlu0 %319 }
  0x90   : > { %v352_v3 = vmul.f32 %v331_v30, %v325_v1  ;;  %v353_v4 = vmul.f32 %v335_v31, %v325_v1  ;;  %v354_v5 = vmul.f32 %v339_v32, %v325_v1  ;;  %v355_v6 = vmul.f32 %v343_v33, %v325_v1 }
  0x91   : > { %v348_v7 = vmul.f32 %v331_v30, %v320_v2  ;;  %v349_v8 = vmul.f32 %v335_v31, %v320_v2  ;;  %v350_v9 = vmul.f32 %v339_v32, %v320_v2  ;;  %v351_v10 = vmul.f32 %v343_v33, %v320_v2 }
  0x92   : > { %v360_v11 = vadd.f32 %v352_v3, %v308_v61  ;;  %v361_v12 = vadd.f32 %v353_v4, %v309_v62  ;;  %v362_v13 = vadd.f32 %v354_v5, %v310_v63  ;;  %v363_v14 = vadd.f32 %v355_v6, %v311_v0 }
  0x93   : > { %v377_v15 = vpop.permute.xlu1 %376  ;;  %v372_v16 = vpop.permute.xlu0 %371  ;;  %v356_v17 = vadd.f32 %v348_v7, %v304_v57  ;;  %v357_v18 = vadd.f32 %v349_v8, %v305_v58  ;;  %v358_v19 = vadd.f32 %v350_v9, %v306_v59  ;;  %v359_v20 = vadd.f32 %v351_v10, %v307_v60 }
  0x94   : > { %v404_v21 = vmul.f32 %v383_v45, %v377_v15  ;;  %v405_v22 = vmul.f32 %v387_v46, %v377_v15  ;;  %v406_v23 = vmul.f32 %v391_v47, %v377_v15  ;;  %v407_v24 = vmul.f32 %v395_v48, %v377_v15 }
  0x95   : > { %v400_v25 = vmul.f32 %v383_v45, %v372_v16  ;;  %v401_v26 = vmul.f32 %v387_v46, %v372_v16  ;;  %v402_v27 = vmul.f32 %v391_v47, %v372_v16  ;;  %v403_v28 = vmul.f32 %v395_v48, %v372_v16 }
  0x96   : > { %v412_v29 = vadd.f32 %v404_v21, %v360_v11  ;;  %v413_v30 = vadd.f32 %v405_v22, %v361_v12  ;;  %v414_v31 = vadd.f32 %v406_v23, %v362_v13  ;;  %v415_v32 = vadd.f32 %v407_v24, %v363_v14 }
  0x97   : > { %v426_v33 = vpop.permute.xlu1 %425  ;;  %v421_v34 = vpop.permute.xlu0 %420  ;;  %v408_v35 = vadd.f32 %v400_v25, %v356_v17  ;;  %v409_v36 = vadd.f32 %v401_v26, %v357_v18  ;;  %v410_v37 = vadd.f32 %v402_v27, %v358_v19  ;;  %v411_v38 = vadd.f32 %v403_v28, %v359_v20 }
  0x98   : > { %v432_v39 = vadd.f32 %v426_v33, %v412_v29  ;;  %v433_v40 = vadd.f32 %v426_v33, %v413_v30  ;;  %v434_v41 = vadd.f32 %v426_v33, %v414_v31  ;;  %v435_v42 = vadd.f32 %v426_v33, %v415_v32 }
  0x99   : > { %v428_v43 = vadd.f32 %v421_v34, %v408_v35  ;;  %v429_v44 = vadd.f32 %v421_v34, %v409_v36  ;;  %v430_v45 = vadd.f32 %v421_v34, %v410_v37  ;;  %v431_v46 = vadd.f32 %v421_v34, %v411_v38 }
  0x9a   : > { %440 = vst [vmem:[%s208_s20 + $0x20] sm:$0xff] %v432_v39  ;;  %441 = vst [vmem:[%s208_s20 + $0x28] sm:$0xff] %v433_v40 }
  0x9b   : > { %442 = vst [vmem:[%s208_s20 + $0x30] sm:$0xff] %v434_v41  ;;  %443 = vst [vmem:[%s208_s20 + $0x38] sm:$0xff] %v435_v42 }
  0x9c   : > { %436 = vst [vmem:[%s208_s20] sm:$0xff] %v428_v43  ;;  %437 = vst [vmem:[%s208_s20 + $0x8] sm:$0xff] %v429_v44 }
  0x9d   : > { %438 = vst [vmem:[%s208_s20 + $0x10] sm:$0xff] %v430_v45  ;;  %439 = vst [vmem:[%s208_s20 + $0x18] sm:$0xff] %v431_v46 }
  0x9e PF: > { %s13_s14 = sadd.s32 1, %s602_s14   ;;  %s700_s12 = smov %s598_s13 }
  0x9f   : > { %p10_p5 = scmp.ge.s32.totalorder %s13_s14, 4   ;;  %s701_s13 = smov %s703_s15 }
  0xa1   :  { %12 = sbr.rel (!%p10_p5) target bundleno = 2 (0x2), region = 68 }

// kernel: _lambda_.11
= control target key start
LH: loop header
LB: loop body
LE: loop exit
PB: predicated region body
PF: predicated region fallthrough
CT: control target
= control target key end

     0   :  { %s2179_s21 = smov 0   ;;  %s2181_s22 = smov 0   ;;  %s2972_s0 = inlined_call_operand.vmem [shape: f32[2,16,256], index: 0, kind: input, shape index: {}]   ;;  %s2973_s1 = inlined_call_operand.vmem [shape: f32[2,16,256], index: 1, kind: input, shape index: {}]   ;;  %s2974_s2 = inlined_call_operand.vmem [shape: f32[16,16,256], index: 2, kind: input, shape index: {}]   ;;  %s2975_s3 = inlined_call_operand.vmem [shape: f32[16,16,256], index: 3, kind: input, shape index: {}]   ;;  %s2976_s4 = inlined_call_operand.vmem [shape: f32[16,16,256], index: 4, kind: input, shape index: {}]   ;;  %s2977_s5 = inlined_call_operand.vmem [shape: f32[2,16,256], index: 5, kind: output, shape index: {0}]   ;;  %s2978_s6 = inlined_call_operand.vmem [shape: f32[2,16,256], index: 6, kind: output, shape index: {1}]  }
   0x1   :  { %s2183_s23 = smov 0  }
   0x2 LB: > { %s26_s24 = sadd.s32 1, %s2138_s22  ;;  %p1871_p0 = scmp.ge.s32.totalorder %s2142_s23, 1  ;;  %s2142_s23 = sphi %s2183_s23, %s17_s23   ;;  %s2138_s22 = sphi %s2181_s22, %s2980_s22   ;;  %s2134_s21 = sphi %s2179_s21, %s2979_s21  }
   0x3   : > { %p27_p1 = scmp.ge.s32.totalorder %s26_s24, 2  ;;  %p288_p2 = scmp.lt.s32.totalorder %s2142_s23, 3 }
   0x5   : > { %s2982_s24 = smov (%p27_p1, %s26_s24), 0  ;;  %p289_p3 = pnand %p1871_p0, %p288_p2 }
   0x6   : > { %p360_p4 = scmp.lt.s32.totalorder (!%p289_p3), %s2134_s21, 1  ;;  %v425_v0 = vlaneseq (!%p289_p3)  ;;  %v420_v2 = vld [vmem:[%s2974_s2] sm:$0xff] (!%p289_p3)  ;;  %v421_v3 = vld [vmem:[%s2974_s2 + $0x8] sm:$0xff] (!%p289_p3)  ;;  %v422_v4 = vld [vmem:[%s2974_s2 + $0x10] sm:$0xff] (!%p289_p3) }
   0x7   : > { %292 = sbr.rel (%p289_p3) target bundleno = 146 (0x92), region = 40  ;;  %v423_v5 = vld [vmem:[%s2974_s2 + $0x18] sm:$0xff] (!%p289_p3)  ;;  %v443_v8 = vld [vmem:[%s2975_s3] sm:$0xff] (!%p289_p3)  ;;  %v444_v9 = vld [vmem:[%s2975_s3 + $0x8] sm:$0xff] (!%p289_p3) }
   0x8   : > { %v426_v1 = vshrl.u32 (!%p289_p3), %v425_v0, 7  ;;  %v445_v10 = vld [vmem:[%s2975_s3 + $0x10] sm:$0xff] (!%p289_p3)  ;;  %v446_v11 = vld [vmem:[%s2975_s3 + $0x18] sm:$0xff] (!%p289_p3)  ;;  %v1882_v22 = vld [vmem:[%s2974_s2 + $0x20] sm:$0xff] (!%p289_p3) }
   0x9   : > { %v1883_v23 = vld [vmem:[%s2974_s2 + $0x28] sm:$0xff] (!%p289_p3)  ;;  %v466_v30 = vld [vmem:[%s2976_s4] sm:$0xff] (!%p289_p3)  ;;  %v1884_v31 = vld [vmem:[%s2974_s2 + $0x30] sm:$0xff] (!%p289_p3) }
   0xa   : > { %v2211_v6 = vsub.s32 (!%p289_p3), 0, %v426_v1  ;;  %v2213_v7 = vsub.s32 (!%p289_p3), 1, %v426_v1  ;;  %v1885_v32 = vld [vmem:[%s2974_s2 + $0x38] sm:$0xff] (!%p289_p3)  ;;  %v467_v37 = vld [vmem:[%s2976_s4 + $0x8] sm:$0xff] (!%p289_p3)  ;;  %v468_v38 = vld [vmem:[%s2976_s4 + $0x10] sm:$0xff] (!%p289_p3) }
   0xb   : > { %v469_v39 = vld [vmem:[%s2976_s4 + $0x18] sm:$0xff] (!%p289_p3)  ;;  %v1886_v44 = vld [vmem:[%s2975_s3 + $0x20] sm:$0xff] (!%p289_p3)  ;;  %v1887_v47 = vld [vmem:[%s2975_s3 + $0x28] sm:$0xff] (!%p289_p3) }
   0xc   : > { %v1888_v48 = vld [vmem:[%s2975_s3 + $0x30] sm:$0xff] (!%p289_p3)  ;;  %v1889_v49 = vld [vmem:[%s2975_s3 + $0x38] sm:$0xff] (!%p289_p3)  ;;  %v1890_v62 = vld [vmem:[%s2976_s4 + $0x20] sm:$0xff] (!%p289_p3) }
   0xe   : > { %s2984_s21 = smov (!%p360_p4, %s2134_s21), 1 }
   0xf   : > { %s2197_s25 = sshll.u32 %s2984_s21, 5 }
  0x10   : > { %s2219_s12 = scalar_lea.vmem %s2972_s0, %s2197_s25  ;;  %s2225_s15 = scalar_lea.vmem %s2973_s1, %s2197_s25 }
  0x11   : > { %v417_v12 = vld [vmem:[%s2219_s12] ss:$8 sm:$0x3]  ;;  %v1880_v18 = vld [vmem:[%s2219_s12 + $0x1] ss:$8 sm:$0x3]  ;;  %s405_s10 = scalar_lea.vmem %s2977_s5, %s2197_s25  ;;  %s415_s14 = scalar_lea.vmem %s2978_s6, %s2197_s25 }
  0x12   : > { %v418_v13 = vld [vmem:[%s2225_s15] ss:$8 sm:$0x3]  ;;  %v428_v15 = vrot.slane %v417_v12, %v2211_v6  ;;  %v432_v16 = vrot.slane %v417_v12, %v2213_v7  ;;  %v1881_v19 = vld [vmem:[%s2225_s15 + $0x1] ss:$8 sm:$0x3]  ;;  %v503_v24 = vrot.slane %v1880_v18, %v2211_v6  ;;  %v507_v25 = vrot.slane %v1880_v18, %v2213_v7 }
  0x13   : > { %v419_v14 = vadd.f32 %v418_v13, %v417_v12  ;;  %v451_v17 = vrot.slane %v418_v13, %v2211_v6  ;;  %v455_v20 = vrot.slane %v418_v13, %v2213_v7  ;;  %v493_v21 = vadd.f32 %v1881_v19, %v1880_v18  ;;  %v1894_v56 = vld [vmem:[%s2219_s12 + $0x2] ss:$8 sm:$0x3]  ;;  %v1898_v12 = vld [vmem:[%s2974_s2 + $0x50] sm:$0xff] }
  0x14   : > { %v435_v26 = vmul.f32 %v428_v15, %v420_v2  ;;  %v436_v27 = vmul.f32 %v432_v16, %v421_v3  ;;  %v437_v28 = vmul.f32 %v428_v15, %v422_v4  ;;  %v438_v29 = vmul.f32 %v432_v16, %v423_v5  ;;  %v1895_v57 = vld [vmem:[%s2225_s15 + $0x2] ss:$8 sm:$0x3]  ;;  %v1892_v4 = vld [vmem:[%s2976_s4 + $0x30] sm:$0xff]  ;;  %v1893_v5 = vld [vmem:[%s2976_s4 + $0x38] sm:$0xff] }
  0x15   : > { %v458_v33 = vmul.f32 %v451_v17, %v443_v8  ;;  %v459_v34 = vmul.f32 %v455_v20, %v444_v9  ;;  %v460_v35 = vmul.f32 %v451_v17, %v445_v10  ;;  %v461_v36 = vmul.f32 %v455_v20, %v446_v11  ;;  %v1891_v3 = vld [vmem:[%s2976_s4 + $0x28] sm:$0xff]  ;;  %v1896_v11 = vld [vmem:[%s2974_s2 + $0x40] sm:$0xff] }
  0x16   : > { %v474_v40 = vrot.slane %v419_v14, %v2211_v6  ;;  %v478_v41 = vrot.slane %v419_v14, %v2213_v7  ;;  %v510_v42 = vmul.f32 %v1882_v22, %v503_v24  ;;  %v511_v43 = vmul.f32 %v1883_v23, %v507_v25  ;;  %v1897_v22 = vld [vmem:[%s2974_s2 + $0x48] sm:$0xff]  ;;  %v1899_v23 = vld [vmem:[%s2974_s2 + $0x58] sm:$0xff] }
  0x17   : > { %v512_v45 = vmul.f32 %v1884_v31, %v503_v24  ;;  %v513_v46 = vmul.f32 %v1885_v32, %v507_v25  ;;  %v527_v50 = vrot.slane %v1881_v19, %v2211_v6  ;;  %v531_v51 = vrot.slane %v1881_v19, %v2213_v7 }
  0x18   : > { %v481_v52 = vmul.f32 %v474_v40, %v466_v30  ;;  %v482_v53 = vmul.f32 %v478_v41, %v467_v37  ;;  %v483_v54 = vmul.f32 %v474_v40, %v468_v38  ;;  %v484_v55 = vmul.f32 %v478_v41, %v469_v39  ;;  %v1901_v40 = vld [vmem:[%s2975_s3 + $0x48] sm:$0xff]  ;;  %v1903_v41 = vld [vmem:[%s2975_s3 + $0x58] sm:$0xff] }
  0x19   : > { %v514_v58 = vadd.f32 %v510_v42, %v435_v26  ;;  %v515_v59 = vadd.f32 %v511_v43, %v436_v27  ;;  %v516_v60 = vadd.f32 %v512_v45, %v437_v28  ;;  %v517_v61 = vadd.f32 %v513_v46, %v438_v29  ;;  %v1900_v27 = vld [vmem:[%s2975_s3 + $0x40] sm:$0xff]  ;;  %v1902_v28 = vld [vmem:[%s2975_s3 + $0x50] sm:$0xff]  ;;  %v1905_v46 = vld [vmem:[%s2976_s4 + $0x48] sm:$0xff] }
  0x1a   : > { %v534_v63 = vmul.f32 %v1886_v44, %v527_v50  ;;  %v535_v0 = vmul.f32 %v1887_v47, %v531_v51  ;;  %v536_v1 = vmul.f32 %v1888_v48, %v527_v50  ;;  %v537_v2 = vmul.f32 %v1889_v49, %v531_v51  ;;  %v1904_v42 = vld [vmem:[%s2976_s4 + $0x40] sm:$0xff]  ;;  %v1906_v47 = vld [vmem:[%s2976_s4 + $0x50] sm:$0xff]  ;;  %v1907_v48 = vld [vmem:[%s2976_s4 + $0x58] sm:$0xff] }
  0x1b   : > { %v551_v8 = vrot.slane %v493_v21, %v2211_v6  ;;  %v555_v9 = vrot.slane %v493_v21, %v2213_v7  ;;  %v570_v10 = vadd.f32 %v1895_v57, %v1894_v56  ;;  %v580_v13 = vrot.slane %v1894_v56, %v2211_v6 }
  0x1c   : > { %v538_v14 = vadd.f32 %v534_v63, %v458_v33  ;;  %v539_v15 = vadd.f32 %v535_v0, %v459_v34  ;;  %v540_v16 = vadd.f32 %v536_v1, %v460_v35  ;;  %v541_v17 = vadd.f32 %v537_v2, %v461_v36  ;;  %v1908_v34 = vld [vmem:[%s2219_s12 + $0x3] ss:$8 sm:$0x3]  ;;  %v1913_v1 = vld [vmem:[%s2974_s2 + $0x78] sm:$0xff] }
  0x1d   : > { %v558_v18 = vmul.f32 %v1890_v62, %v551_v8  ;;  %v559_v19 = vmul.f32 %v1891_v3, %v555_v9  ;;  %v560_v20 = vmul.f32 %v1892_v4, %v551_v8  ;;  %v561_v21 = vmul.f32 %v1893_v5, %v555_v9  ;;  %v1909_v35 = vld [vmem:[%s2225_s15 + $0x3] ss:$8 sm:$0x3] }
  0x1e   : > { %v584_v24 = vrot.slane %v1894_v56, %v2213_v7  ;;  %v587_v25 = vmul.f32 %v1896_v11, %v580_v13  ;;  %v589_v26 = vmul.f32 %v1898_v12, %v580_v13  ;;  %v604_v29 = vrot.slane %v1895_v57, %v2211_v6  ;;  %v1914_v12 = vld [vmem:[%s2975_s3 + $0x60] sm:$0xff]  ;;  %v1915_v13 = vld [vmem:[%s2975_s3 + $0x68] sm:$0xff] }
  0x1f   : > { %v562_v30 = vadd.f32 %v558_v18, %v481_v52  ;;  %v563_v31 = vadd.f32 %v559_v19, %v482_v53  ;;  %v564_v32 = vadd.f32 %v560_v20, %v483_v54  ;;  %v565_v33 = vadd.f32 %v561_v21, %v484_v55  ;;  %v1916_v18 = vld [vmem:[%s2975_s3 + $0x70] sm:$0xff]  ;;  %v1917_v19 = vld [vmem:[%s2975_s3 + $0x78] sm:$0xff]  ;;  %v1918_v20 = vld [vmem:[%s2976_s4 + $0x60] sm:$0xff] }
  0x20   : > { %v588_v36 = vmul.f32 %v1897_v22, %v584_v24  ;;  %v590_v37 = vmul.f32 %v1899_v23, %v584_v24  ;;  %v591_v38 = vadd.f32 %v587_v25, %v514_v58  ;;  %v593_v39 = vadd.f32 %v589_v26, %v516_v60  ;;  %v1910_v58 = vld [vmem:[%s2974_s2 + $0x60] sm:$0xff]  ;;  %v1919_v23 = vld [vmem:[%s2976_s4 + $0x68] sm:$0xff]  ;;  %v1920_v24 = vld [vmem:[%s2976_s4 + $0x70] sm:$0xff] }
  0x21   : > { %v608_v43 = vrot.slane %v1895_v57, %v2213_v7  ;;  %v611_v44 = vmul.f32 %v1900_v27, %v604_v29  ;;  %v613_v45 = vmul.f32 %v1902_v28, %v604_v29  ;;  %v628_v49 = vrot.slane %v570_v10, %v2211_v6  ;;  %v1921_v25 = vld [vmem:[%s2976_s4 + $0x78] sm:$0xff] }
  0x22   : > { %v592_v50 = vadd.f32 %v588_v36, %v515_v59  ;;  %v594_v51 = vadd.f32 %v590_v37, %v517_v61  ;;  %v632_v52 = vrot.slane %v570_v10, %v2213_v7  ;;  %v647_v53 = vadd.f32 %v1909_v35, %v1908_v34  ;;  %v1911_v59 = vld [vmem:[%s2974_s2 + $0x68] sm:$0xff]  ;;  %v1912_v61 = vld [vmem:[%s2974_s2 + $0x70] sm:$0xff] }
  0x23   : > { %v612_v54 = vmul.f32 %v1901_v40, %v608_v43  ;;  %v614_v55 = vmul.f32 %v1903_v41, %v608_v43  ;;  %v615_v56 = vadd.f32 %v611_v44, %v538_v14  ;;  %v617_v57 = vadd.f32 %v613_v45, %v540_v16  ;;  %v1922_v36 = vld [vmem:[%s2219_s12 + $0x4] ss:$8 sm:$0x3] }
  0x24   : > { %v635_v60 = vmul.f32 %v1904_v42, %v628_v49  ;;  %v636_v62 = vmul.f32 %v1905_v46, %v632_v52  ;;  %v637_v63 = vmul.f32 %v1906_v47, %v628_v49  ;;  %v638_v0 = vmul.f32 %v1907_v48, %v632_v52  ;;  %v1923_v43 = vld [vmem:[%s2225_s15 + $0x4] ss:$8 sm:$0x3]  ;;  %v1936_v48 = vld [vmem:[%s2219_s12 + $0x5] ss:$8 sm:$0x3] }
  0x25   : > { %v616_v2 = vadd.f32 %v612_v54, %v539_v15  ;;  %v618_v3 = vadd.f32 %v614_v55, %v541_v17  ;;  %v657_v4 = vrot.slane %v1908_v34, %v2211_v6  ;;  %v661_v5 = vrot.slane %v1908_v34, %v2213_v7  ;;  %v1924_v44 = vld [vmem:[%s2974_s2 + $0x80] sm:$0xff]  ;;  %v1926_v54 = vld [vmem:[%s2974_s2 + $0x90] sm:$0xff]  ;;  %v1927_v55 = vld [vmem:[%s2974_s2 + $0x98] sm:$0xff] }
  0x26   : > { %v639_v8 = vadd.f32 %v635_v60, %v562_v30  ;;  %v640_v9 = vadd.f32 %v636_v62, %v563_v31  ;;  %v641_v10 = vadd.f32 %v637_v63, %v564_v32  ;;  %v642_v11 = vadd.f32 %v638_v0, %v565_v33  ;;  %v1937_v49 = vld [vmem:[%s2225_s15 + $0x5] ss:$8 sm:$0x3]  ;;  %v1930_v63 = vld [vmem:[%s2975_s3 + $0x90] sm:$0xff]  ;;  %v1931_v0 = vld [vmem:[%s2975_s3 + $0x98] sm:$0xff] }
  0x27   : > { %v664_v14 = vmul.f32 %v1910_v58, %v657_v4  ;;  %v665_v16 = vmul.f32 %v1911_v59, %v661_v5  ;;  %v666_v15 = vmul.f32 %v1912_v61, %v657_v4  ;;  %v667_v17 = vmul.f32 %v1913_v1, %v661_v5  ;;  %v1929_v62 = vld [vmem:[%s2975_s3 + $0x88] sm:$0xff] }
  0x28   : > { %v681_v21 = vrot.slane %v1909_v35, %v2211_v6  ;;  %v685_v22 = vrot.slane %v1909_v35, %v2213_v7  ;;  %v705_v26 = vrot.slane %v647_v53, %v2211_v6  ;;  %v709_v27 = vrot.slane %v647_v53, %v2213_v7 }
  0x29   : > { %v668_v28 = vadd.f32 %v664_v14, %v591_v38  ;;  %v669_v29 = vadd.f32 %v665_v16, %v592_v50  ;;  %v670_v30 = vadd.f32 %v666_v15, %v593_v39  ;;  %v671_v31 = vadd.f32 %v667_v17, %v594_v51  ;;  %v1925_v38 = vld [vmem:[%s2974_s2 + $0x88] sm:$0xff]  ;;  %v1938_v14 = vld [vmem:[%s2974_s2 + $0xa0] sm:$0xff] }
  0x2a   : > { %v688_v32 = vmul.f32 %v1914_v12, %v681_v21  ;;  %v689_v33 = vmul.f32 %v1915_v13, %v685_v22  ;;  %v690_v34 = vmul.f32 %v1916_v18, %v681_v21  ;;  %v691_v35 = vmul.f32 %v1917_v19, %v685_v22  ;;  %v1939_v16 = vld [vmem:[%s2974_s2 + $0xa8] sm:$0xff]  ;;  %v1940_v21 = vld [vmem:[%s2974_s2 + $0xb0] sm:$0xff]  ;;  %v1941_v22 = vld [vmem:[%s2974_s2 + $0xb8] sm:$0xff] }
  0x2b   : > { %v712_v37 = vmul.f32 %v1918_v20, %v705_v26  ;;  %v713_v40 = vmul.f32 %v1919_v23, %v709_v27  ;;  %v714_v41 = vmul.f32 %v1920_v24, %v705_v26  ;;  %v715_v42 = vmul.f32 %v1921_v25, %v709_v27  ;;  %v1932_v20 = vld [vmem:[%s2976_s4 + $0x80] sm:$0xff]  ;;  %v1933_v27 = vld [vmem:[%s2976_s4 + $0x88] sm:$0xff] }
  0x2c   : > { %v692_v39 = vadd.f32 %v688_v32, %v615_v56  ;;  %v693_v45 = vadd.f32 %v689_v33, %v616_v2  ;;  %v694_v46 = vadd.f32 %v690_v34, %v617_v57  ;;  %v695_v47 = vadd.f32 %v691_v35, %v618_v3  ;;  %v1928_v56 = vld [vmem:[%s2975_s3 + $0x80] sm:$0xff] }
  0x2d   : > { %v2401_v50 = vadd.f32 %v712_v37, %v639_v8  ;;  %v2403_v51 = vadd.f32 %v713_v40, %v640_v9  ;;  %v2405_v52 = vadd.f32 %v714_v41, %v641_v10  ;;  %v2407_v53 = vadd.f32 %v715_v42, %v642_v11 }
  0x2e   : > { %v724_v57 = vadd.f32 %v1923_v43, %v1922_v36  ;;  %v734_v58 = vrot.slane %v1922_v36, %v2211_v6  ;;  %v738_v60 = vrot.slane %v1922_v36, %v2213_v7  ;;  %v758_v59 = vrot.slane %v1923_v43, %v2211_v6  ;;  %v1942_v36 = vld [vmem:[%s2975_s3 + $0xa0] sm:$0xff] }
  0x2f   : > { %v762_v61 = vrot.slane %v1923_v43, %v2213_v7  ;;  %v801_v1 = vadd.f32 %v1937_v49, %v1936_v48  ;;  %v811_v2 = vrot.slane %v1936_v48, %v2211_v6  ;;  %v815_v3 = vrot.slane %v1936_v48, %v2213_v7 }
  0x30   : > { %v741_v4 = vmul.f32 %v1924_v44, %v734_v58  ;;  %v742_v5 = vmul.f32 %v1925_v38, %v738_v60  ;;  %v743_v8 = vmul.f32 %v1926_v54, %v734_v58  ;;  %v744_v9 = vmul.f32 %v1927_v55, %v738_v60  ;;  %v1943_v38 = vld [vmem:[%s2975_s3 + $0xa8] sm:$0xff] }
  0x31   : > { %v765_v10 = vmul.f32 %v1928_v56, %v758_v59  ;;  %v766_v11 = vmul.f32 %v1929_v62, %v762_v61  ;;  %v767_v12 = vmul.f32 %v1930_v63, %v758_v59  ;;  %v768_v13 = vmul.f32 %v1931_v0, %v762_v61  ;;  %v1950_v54 = vld [vmem:[%s2219_s12 + $0x6] ss:$8 sm:$0x3] }
  0x32   : > { %v745_v15 = vadd.f32 %v741_v4, %v668_v28  ;;  %v746_v17 = vadd.f32 %v742_v5, %v669_v29  ;;  %v747_v18 = vadd.f32 %v743_v8, %v670_v30  ;;  %v748_v19 = vadd.f32 %v744_v9, %v671_v31  ;;  %v1934_v28 = vld [vmem:[%s2976_s4 + $0x90] sm:$0xff]  ;;  %v1935_v29 = vld [vmem:[%s2976_s4 + $0x98] sm:$0xff]  ;;  %v1951_v55 = vld [vmem:[%s2225_s15 + $0x6] ss:$8 sm:$0x3] }
  0x33   : > { %v769_v23 = vadd.f32 %v765_v10, %v692_v39  ;;  %v770_v24 = vadd.f32 %v766_v11, %v693_v45  ;;  %v771_v25 = vadd.f32 %v767_v12, %v694_v46  ;;  %v772_v26 = vadd.f32 %v768_v13, %v695_v47  ;;  %v1944_v39 = vld [vmem:[%s2975_s3 + $0xb0] sm:$0xff]  ;;  %v1945_v45 = vld [vmem:[%s2975_s3 + $0xb8] sm:$0xff]  ;;  %v1946_v62 = vld [vmem:[%s2976_s4 + $0xa0] sm:$0xff] }
  0x34   : > { %v782_v30 = vrot.slane %v724_v57, %v2211_v6  ;;  %v786_v31 = vrot.slane %v724_v57, %v2213_v7  ;;  %v818_v32 = vmul.f32 %v1938_v14, %v811_v2  ;;  %v819_v33 = vmul.f32 %v1939_v16, %v815_v3  ;;  %v1952_v4 = vld [vmem:[%s2974_s2 + $0xc0] sm:$0xff]  ;;  %v1954_v5 = vld [vmem:[%s2974_s2 + $0xd0] sm:$0xff] }
  0x35   : > { %v820_v34 = vmul.f32 %v1940_v21, %v811_v2  ;;  %v821_v35 = vmul.f32 %v1941_v22, %v815_v3  ;;  %v835_v37 = vrot.slane %v1937_v49, %v2211_v6  ;;  %v839_v40 = vrot.slane %v1937_v49, %v2213_v7  ;;  %v1947_v2 = vld [vmem:[%s2976_s4 + $0xa8] sm:$0xff]  ;;  %v1956_v21 = vld [vmem:[%s2975_s3 + $0xc0] sm:$0xff]  ;;  %v1958_v22 = vld [vmem:[%s2975_s3 + $0xd0] sm:$0xff] }
  0x36   : > { %v789_v41 = vmul.f32 %v1932_v20, %v782_v30  ;;  %v790_v42 = vmul.f32 %v1933_v27, %v786_v31  ;;  %v791_v43 = vmul.f32 %v1934_v28, %v782_v30  ;;  %v792_v44 = vmul.f32 %v1935_v29, %v786_v31  ;;  %v1964_v28 = vld [vmem:[%s2219_s12 + $0x7] ss:$8 sm:$0x3] }
  0x37   : > { %v822_v46 = vadd.f32 %v818_v32, %v745_v15  ;;  %v823_v47 = vadd.f32 %v819_v33, %v746_v17  ;;  %v824_v48 = vadd.f32 %v820_v34, %v747_v18  ;;  %v825_v49 = vadd.f32 %v821_v35, %v748_v19  ;;  %v1953_v15 = vld [vmem:[%s2974_s2 + $0xc8] sm:$0xff]  ;;  %v1955_v17 = vld [vmem:[%s2974_s2 + $0xd8] sm:$0xff] }
  0x38   : > { %v793_v56 = vadd.f32 %v789_v41, %v2401_v50  ;;  %v794_v57 = vadd.f32 %v790_v42, %v2403_v51  ;;  %v795_v58 = vadd.f32 %v791_v43, %v2405_v52  ;;  %v796_v60 = vadd.f32 %v792_v44, %v2407_v53  ;;  %v1948_v50 = vld [vmem:[%s2976_s4 + $0xb0] sm:$0xff]  ;;  %v1949_v51 = vld [vmem:[%s2976_s4 + $0xb8] sm:$0xff]  ;;  %v1965_v29 = vld [vmem:[%s2225_s15 + $0x7] ss:$8 sm:$0x3] }
  0x39   : > { %v842_v63 = vmul.f32 %v1942_v36, %v835_v37  ;;  %v843_v0 = vmul.f32 %v1943_v38, %v839_v40  ;;  %v844_v59 = vmul.f32 %v1944_v39, %v835_v37  ;;  %v845_v61 = vmul.f32 %v1945_v45, %v839_v40  ;;  %v1957_v34 = vld [vmem:[%s2975_s3 + $0xc8] sm:$0xff]  ;;  %v1959_v35 = vld [vmem:[%s2975_s3 + $0xd8] sm:$0xff]  ;;  %v1960_v36 = vld [vmem:[%s2976_s4 + $0xc0] sm:$0xff] }
  0x3a   : > { %v859_v52 = vrot.slane %v801_v1, %v2211_v6  ;;  %v863_v53 = vrot.slane %v801_v1, %v2213_v7  ;;  %v878_v3 = vadd.f32 %v1951_v55, %v1950_v54  ;;  %v888_v8 = vrot.slane %v1950_v54, %v2211_v6  ;;  %v1961_v42 = vld [vmem:[%s2976_s4 + $0xc8] sm:$0xff]  ;;  %v1962_v43 = vld [vmem:[%s2976_s4 + $0xd0] sm:$0xff]  ;;  %v1963_v44 = vld [vmem:[%s2976_s4 + $0xd8] sm:$0xff] }
  0x3b   : > { %v846_v9 = vadd.f32 %v842_v63, %v769_v23  ;;  %v847_v10 = vadd.f32 %v843_v0, %v770_v24  ;;  %v848_v11 = vadd.f32 %v844_v59, %v771_v25  ;;  %v849_v12 = vadd.f32 %v845_v61, %v772_v26  ;;  %v1969_v59 = vld [vmem:[%s2974_s2 + $0xf8] sm:$0xff] }
  0x3c   : > { %v866_v13 = vmul.f32 %v1946_v62, %v859_v52  ;;  %v867_v14 = vmul.f32 %v1947_v2, %v863_v53  ;;  %v868_v1 = vmul.f32 %v1948_v50, %v859_v52  ;;  %v869_v16 = vmul.f32 %v1949_v51, %v863_v53 }
  0x3d   : > { %v892_v18 = vrot.slane %v1950_v54, %v2213_v7  ;;  %v895_v19 = vmul.f32 %v1952_v4, %v888_v8  ;;  %v897_v20 = vmul.f32 %v1954_v5, %v888_v8  ;;  %v912_v23 = vrot.slane %v1951_v55, %v2211_v6  ;;  %v1970_v5 = vld [vmem:[%s2975_s3 + $0xe0] sm:$0xff]  ;;  %v1971_v8 = vld [vmem:[%s2975_s3 + $0xe8] sm:$0xff] }
  0x3e   : > { %v870_v24 = vadd.f32 %v866_v13, %v793_v56  ;;  %v871_v25 = vadd.f32 %v867_v14, %v794_v57  ;;  %v872_v26 = vadd.f32 %v868_v1, %v795_v58  ;;  %v873_v27 = vadd.f32 %v869_v16, %v796_v60  ;;  %v1966_v58 = vld [vmem:[%s2974_s2 + $0xe0] sm:$0xff]  ;;  %v1972_v13 = vld [vmem:[%s2975_s3 + $0xf0] sm:$0xff]  ;;  %v1973_v14 = vld [vmem:[%s2975_s3 + $0xf8] sm:$0xff] }
  0x3f   : > { %v896_v30 = vmul.f32 %v1953_v15, %v892_v18  ;;  %v898_v31 = vmul.f32 %v1955_v17, %v892_v18  ;;  %v899_v32 = vadd.f32 %v895_v19, %v822_v46  ;;  %v901_v33 = vadd.f32 %v897_v20, %v824_v48  ;;  %v1974_v1 = vld [vmem:[%s2976_s4 + $0xe0] sm:$0xff]  ;;  %v1975_v17 = vld [vmem:[%s2976_s4 + $0xe8] sm:$0xff]  ;;  %v1976_v18 = vld [vmem:[%s2976_s4 + $0xf0] sm:$0xff] }
  0x40   : > { %v916_v37 = vrot.slane %v1951_v55, %v2213_v7  ;;  %v919_v40 = vmul.f32 %v1956_v21, %v912_v23  ;;  %v921_v41 = vmul.f32 %v1958_v22, %v912_v23  ;;  %v936_v38 = vrot.slane %v878_v3, %v2211_v6  ;;  %v1977_v19 = vld [vmem:[%s2976_s4 + $0xf8] sm:$0xff] }
  0x41   : > { %v900_v39 = vadd.f32 %v896_v30, %v823_v47  ;;  %v902_v45 = vadd.f32 %v898_v31, %v825_v49  ;;  %v940_v46 = vrot.slane %v878_v3, %v2213_v7  ;;  %v955_v48 = vadd.f32 %v1965_v29, %v1964_v28  ;;  %v1967_v47 = vld [vmem:[%s2974_s2 + $0xe8] sm:$0xff]  ;;  %v1968_v49 = vld [vmem:[%s2974_s2 + $0xf0] sm:$0xff] }
  0x42   : > { %v920_v54 = vmul.f32 %v1957_v34, %v916_v37  ;;  %v922_v55 = vmul.f32 %v1959_v35, %v916_v37  ;;  %v923_v56 = vadd.f32 %v919_v40, %v846_v9  ;;  %v925_v57 = vadd.f32 %v921_v41, %v848_v11  ;;  %v1978_v30 = vld [vmem:[%s2219_s12 + $0x10] ss:$8 sm:$0x3]  ;;  %v1980_v40 = vld [vmem:[%s2974_s2 + $0x100] sm:$0xff] }
  0x43   : > { %v943_v60 = vmul.f32 %v1960_v36, %v936_v38  ;;  %v944_v62 = vmul.f32 %v1961_v42, %v940_v46  ;;  %v945_v63 = vmul.f32 %v1962_v43, %v936_v38  ;;  %v946_v0 = vmul.f32 %v1963_v44, %v940_v46  ;;  %v1979_v37 = vld [vmem:[%s2225_s15 + $0x10] ss:$8 sm:$0x3]  ;;  %v1992_v44 = vld [vmem:[%s2219_s12 + $0x11] ss:$8 sm:$0x3] }
  0x44   : > { %v924_v61 = vadd.f32 %v920_v54, %v847_v10  ;;  %v926_v2 = vadd.f32 %v922_v55, %v849_v12  ;;  %v965_v50 = vrot.slane %v1964_v28, %v2211_v6  ;;  %v969_v51 = vrot.slane %v1964_v28, %v2213_v7  ;;  %v1993_v38 = vld [vmem:[%s2225_s15 + $0x11] ss:$8 sm:$0x3] }
  0x45   : > { %v947_v52 = vadd.f32 %v943_v60, %v870_v24  ;;  %v948_v53 = vadd.f32 %v944_v62, %v871_v25  ;;  %v949_v3 = vadd.f32 %v945_v63, %v872_v26  ;;  %v950_v4 = vadd.f32 %v946_v0, %v873_v27  ;;  %v1982_v54 = vld [vmem:[%s2974_s2 + $0x110] sm:$0xff]  ;;  %v1983_v55 = vld [vmem:[%s2974_s2 + $0x118] sm:$0xff]  ;;  %v1985_v62 = vld [vmem:[%s2975_s3 + $0x108] sm:$0xff] }
  0x46   : > { %v972_v9 = vmul.f32 %v1966_v58, %v965_v50  ;;  %v973_v11 = vmul.f32 %v1967_v47, %v969_v51  ;;  %v974_v10 = vmul.f32 %v1968_v49, %v965_v50  ;;  %v975_v12 = vmul.f32 %v1969_v59, %v969_v51  ;;  %v1986_v63 = vld [vmem:[%s2975_s3 + $0x110] sm:$0xff]  ;;  %v1987_v0 = vld [vmem:[%s2975_s3 + $0x118] sm:$0xff] }
  0x47   : > { %v989_v16 = vrot.slane %v1965_v29, %v2211_v6  ;;  %v993_v15 = vrot.slane %v1965_v29, %v2213_v7  ;;  %v1013_v20 = vrot.slane %v955_v48, %v2211_v6  ;;  %v1017_v21 = vrot.slane %v955_v48, %v2213_v7 }
  0x48   : > { %v976_v22 = vadd.f32 %v972_v9, %v899_v32  ;;  %v977_v23 = vadd.f32 %v973_v11, %v900_v39  ;;  %v978_v24 = vadd.f32 %v974_v10, %v901_v33  ;;  %v979_v25 = vadd.f32 %v975_v12, %v902_v45  ;;  %v1981_v32 = vld [vmem:[%s2974_s2 + $0x108] sm:$0xff]  ;;  %v1994_v9 = vld [vmem:[%s2974_s2 + $0x120] sm:$0xff] }
  0x49   : > { %v996_v26 = vmul.f32 %v1970_v5, %v989_v16  ;;  %v997_v27 = vmul.f32 %v1971_v8, %v993_v15  ;;  %v998_v28 = vmul.f32 %v1972_v13, %v989_v16  ;;  %v999_v29 = vmul.f32 %v1973_v14, %v993_v15  ;;  %v1995_v11 = vld [vmem:[%s2974_s2 + $0x128] sm:$0xff]  ;;  %v1996_v16 = vld [vmem:[%s2974_s2 + $0x130] sm:$0xff]  ;;  %v1997_v15 = vld [vmem:[%s2974_s2 + $0x138] sm:$0xff] }
  0x4a   : > { %v1020_v31 = vmul.f32 %v1974_v1, %v1013_v20  ;;  %v1021_v34 = vmul.f32 %v1975_v17, %v1017_v21  ;;  %v1022_v35 = vmul.f32 %v1976_v18, %v1013_v20  ;;  %v1023_v36 = vmul.f32 %v1977_v19, %v1017_v21  ;;  %v1988_v1 = vld [vmem:[%s2976_s4 + $0x100] sm:$0xff]  ;;  %v1989_v21 = vld [vmem:[%s2976_s4 + $0x108] sm:$0xff] }
  0x4b   : > { %v1000_v33 = vadd.f32 %v996_v26, %v923_v56  ;;  %v1001_v41 = vadd.f32 %v997_v27, %v924_v61  ;;  %v1002_v42 = vadd.f32 %v998_v28, %v925_v57  ;;  %v1003_v43 = vadd.f32 %v999_v29, %v926_v2  ;;  %v1984_v56 = vld [vmem:[%s2975_s3 + $0x100] sm:$0xff] }
  0x4c   : > { %v2589_v39 = vadd.f32 %v1020_v31, %v947_v52  ;;  %v2591_v45 = vadd.f32 %v1021_v34, %v948_v53  ;;  %v2593_v46 = vadd.f32 %v1022_v35, %v949_v3  ;;  %v2595_v48 = vadd.f32 %v1023_v36, %v950_v4 }
  0x4d   : > { %v1032_v57 = vadd.f32 %v1979_v37, %v1978_v30  ;;  %v1042_v58 = vrot.slane %v1978_v30, %v2211_v6  ;;  %v1046_v60 = vrot.slane %v1978_v30, %v2213_v7  ;;  %v1066_v47 = vrot.slane %v1979_v37, %v2211_v6  ;;  %v1998_v30 = vld [vmem:[%s2975_s3 + $0x120] sm:$0xff] }
  0x4e   : > { %v1070_v49 = vrot.slane %v1979_v37, %v2213_v7  ;;  %v1109_v59 = vadd.f32 %v1993_v38, %v1992_v44  ;;  %v1119_v61 = vrot.slane %v1992_v44, %v2211_v6  ;;  %v1123_v2 = vrot.slane %v1992_v44, %v2213_v7 }
  0x4f   : > { %v1049_v50 = vmul.f32 %v1980_v40, %v1042_v58  ;;  %v1050_v51 = vmul.f32 %v1981_v32, %v1046_v60  ;;  %v1051_v52 = vmul.f32 %v1982_v54, %v1042_v58  ;;  %v1052_v53 = vmul.f32 %v1983_v55, %v1046_v60  ;;  %v1999_v32 = vld [vmem:[%s2975_s3 + $0x128] sm:$0xff]  ;;  %v2006_v54 = vld [vmem:[%s2219_s12 + $0x12] ss:$8 sm:$0x3] }
  0x50   : > { %v1073_v3 = vmul.f32 %v1984_v56, %v1066_v47  ;;  %v1074_v4 = vmul.f32 %v1985_v62, %v1070_v49  ;;  %v1075_v5 = vmul.f32 %v1986_v63, %v1066_v47  ;;  %v1076_v8 = vmul.f32 %v1987_v0, %v1070_v49  ;;  %v2007_v55 = vld [vmem:[%s2225_s15 + $0x12] ss:$8 sm:$0x3]  ;;  %v2002_v62 = vld [vmem:[%s2976_s4 + $0x120] sm:$0xff] }
  0x51   : > { %v1053_v10 = vadd.f32 %v1049_v50, %v976_v22  ;;  %v1054_v12 = vadd.f32 %v1050_v51, %v977_v23  ;;  %v1055_v13 = vadd.f32 %v1051_v52, %v978_v24  ;;  %v1056_v14 = vadd.f32 %v1052_v53, %v979_v25  ;;  %v1990_v22 = vld [vmem:[%s2976_s4 + $0x110] sm:$0xff]  ;;  %v1991_v23 = vld [vmem:[%s2976_s4 + $0x118] sm:$0xff]  ;;  %v2008_v50 = vld [vmem:[%s2974_s2 + $0x140] sm:$0xff] }
  0x52   : > { %v1077_v17 = vadd.f32 %v1073_v3, %v1000_v33  ;;  %v1078_v18 = vadd.f32 %v1074_v4, %v1001_v41  ;;  %v1079_v19 = vadd.f32 %v1075_v5, %v1002_v42  ;;  %v1080_v20 = vadd.f32 %v1076_v8, %v1003_v43  ;;  %v2000_v33 = vld [vmem:[%s2975_s3 + $0x130] sm:$0xff]  ;;  %v2001_v41 = vld [vmem:[%s2975_s3 + $0x138] sm:$0xff] }
  0x53   : > { %v1090_v24 = vrot.slane %v1032_v57, %v2211_v6  ;;  %v1094_v25 = vrot.slane %v1032_v57, %v2213_v7  ;;  %v1126_v26 = vmul.f32 %v1994_v9, %v1119_v61  ;;  %v1127_v27 = vmul.f32 %v1995_v11, %v1123_v2  ;;  %v2010_v51 = vld [vmem:[%s2974_s2 + $0x150] sm:$0xff] }
  0x54   : > { %v1128_v28 = vmul.f32 %v1996_v16, %v1119_v61  ;;  %v1129_v29 = vmul.f32 %v1997_v15, %v1123_v2  ;;  %v1143_v31 = vrot.slane %v1993_v38, %v2211_v6  ;;  %v1147_v34 = vrot.slane %v1993_v38, %v2213_v7  ;;  %v2003_v61 = vld [vmem:[%s2976_s4 + $0x128] sm:$0xff]  ;;  %v2012_v16 = vld [vmem:[%s2975_s3 + $0x140] sm:$0xff]  ;;  %v2014_v15 = vld [vmem:[%s2975_s3 + $0x150] sm:$0xff] }
  0x55   : > { %v1097_v35 = vmul.f32 %v1988_v1, %v1090_v24  ;;  %v1098_v36 = vmul.f32 %v1989_v21, %v1094_v25  ;;  %v1099_v37 = vmul.f32 %v1990_v22, %v1090_v24  ;;  %v1100_v40 = vmul.f32 %v1991_v23, %v1094_v25  ;;  %v2020_v22 = vld [vmem:[%s2219_s12 + $0x13] ss:$8 sm:$0x3] }
  0x56   : > { %v1130_v42 = vadd.f32 %v1126_v26, %v1053_v10  ;;  %v1131_v43 = vadd.f32 %v1127_v27, %v1054_v12  ;;  %v1132_v44 = vadd.f32 %v1128_v28, %v1055_v13  ;;  %v1133_v38 = vadd.f32 %v1129_v29, %v1056_v14  ;;  %v2009_v10 = vld [vmem:[%s2974_s2 + $0x148] sm:$0xff]  ;;  %v2011_v12 = vld [vmem:[%s2974_s2 + $0x158] sm:$0xff] }
  0x57   : > { %v1101_v56 = vadd.f32 %v1097_v35, %v2589_v39  ;;  %v1102_v57 = vadd.f32 %v1098_v36, %v2591_v45  ;;  %v1103_v58 = vadd.f32 %v1099_v37, %v2593_v46  ;;  %v1104_v60 = vadd.f32 %v1100_v40, %v2595_v48  ;;  %v2004_v39 = vld [vmem:[%s2976_s4 + $0x130] sm:$0xff]  ;;  %v2005_v45 = vld [vmem:[%s2976_s4 + $0x138] sm:$0xff]  ;;  %v2013_v28 = vld [vmem:[%s2975_s3 + $0x148] sm:$0xff] }
  0x58   : > { %v1150_v63 = vmul.f32 %v1998_v30, %v1143_v31  ;;  %v1151_v0 = vmul.f32 %v1999_v32, %v1147_v34  ;;  %v1152_v47 = vmul.f32 %v2000_v33, %v1143_v31  ;;  %v1153_v49 = vmul.f32 %v2001_v41, %v1147_v34  ;;  %v2021_v23 = vld [vmem:[%s2225_s15 + $0x13] ss:$8 sm:$0x3]  ;;  %v2016_v30 = vld [vmem:[%s2976_s4 + $0x140] sm:$0xff]  ;;  %v2017_v36 = vld [vmem:[%s2976_s4 + $0x148] sm:$0xff] }
  0x59   : > { %v1167_v46 = vrot.slane %v1109_v59, %v2211_v6  ;;  %v1171_v48 = vrot.slane %v1109_v59, %v2213_v7  ;;  %v1186_v2 = vadd.f32 %v2007_v55, %v2006_v54  ;;  %v1196_v52 = vrot.slane %v2006_v54, %v2211_v6  ;;  %v2015_v29 = vld [vmem:[%s2975_s3 + $0x158] sm:$0xff]  ;;  %v2018_v37 = vld [vmem:[%s2976_s4 + $0x150] sm:$0xff] }
  0x5a   : > { %v1154_v53 = vadd.f32 %v1150_v63, %v1077_v17  ;;  %v1155_v3 = vadd.f32 %v1151_v0, %v1078_v18  ;;  %v1156_v4 = vadd.f32 %v1152_v47, %v1079_v19  ;;  %v1157_v5 = vadd.f32 %v1153_v49, %v1080_v20  ;;  %v2019_v40 = vld [vmem:[%s2976_s4 + $0x158] sm:$0xff] }
  0x5b   : > { %v1174_v8 = vmul.f32 %v2002_v62, %v1167_v46  ;;  %v1175_v9 = vmul.f32 %v2003_v61, %v1171_v48  ;;  %v1176_v59 = vmul.f32 %v2004_v39, %v1167_v46  ;;  %v1177_v11 = vmul.f32 %v2005_v45, %v1171_v48  ;;  %v2025_v47 = vld [vmem:[%s2974_s2 + $0x178] sm:$0xff] }
  0x5c   : > { %v1200_v13 = vrot.slane %v2006_v54, %v2213_v7  ;;  %v1203_v14 = vmul.f32 %v2008_v50, %v1196_v52  ;;  %v1205_v1 = vmul.f32 %v2010_v51, %v1196_v52  ;;  %v1220_v17 = vrot.slane %v2007_v55, %v2211_v6  ;;  %v2026_v51 = vld [vmem:[%s2975_s3 + $0x160] sm:$0xff]  ;;  %v2027_v52 = vld [vmem:[%s2975_s3 + $0x168] sm:$0xff] }
  0x5d   : > { %v1178_v18 = vadd.f32 %v1174_v8, %v1101_v56  ;;  %v1179_v19 = vadd.f32 %v1175_v9, %v1102_v57  ;;  %v1180_v20 = vadd.f32 %v1176_v59, %v1103_v58  ;;  %v1181_v21 = vadd.f32 %v1177_v11, %v1104_v60  ;;  %v2022_v58 = vld [vmem:[%s2974_s2 + $0x160] sm:$0xff]  ;;  %v2028_v8 = vld [vmem:[%s2975_s3 + $0x170] sm:$0xff]  ;;  %v2029_v9 = vld [vmem:[%s2975_s3 + $0x178] sm:$0xff] }
  0x5e   : > { %v1204_v24 = vmul.f32 %v2009_v10, %v1200_v13  ;;  %v1206_v25 = vmul.f32 %v2011_v12, %v1200_v13  ;;  %v1207_v26 = vadd.f32 %v1203_v14, %v1130_v42  ;;  %v1209_v27 = vadd.f32 %v1205_v1, %v1132_v44  ;;  %v2030_v59 = vld [vmem:[%s2976_s4 + $0x160] sm:$0xff]  ;;  %v2031_v12 = vld [vmem:[%s2976_s4 + $0x168] sm:$0xff]  ;;  %v2032_v13 = vld [vmem:[%s2976_s4 + $0x170] sm:$0xff] }
  0x5f   : > { %v1224_v31 = vrot.slane %v2007_v55, %v2213_v7  ;;  %v1227_v34 = vmul.f32 %v2012_v16, %v1220_v17  ;;  %v1229_v35 = vmul.f32 %v2014_v15, %v1220_v17  ;;  %v1244_v32 = vrot.slane %v1186_v2, %v2211_v6  ;;  %v2033_v14 = vld [vmem:[%s2976_s4 + $0x178] sm:$0xff] }
  0x60   : > { %v1208_v33 = vadd.f32 %v1204_v24, %v1131_v43  ;;  %v1210_v41 = vadd.f32 %v1206_v25, %v1133_v38  ;;  %v1248_v42 = vrot.slane %v1186_v2, %v2213_v7  ;;  %v1263_v44 = vadd.f32 %v2021_v23, %v2020_v22  ;;  %v2023_v43 = vld [vmem:[%s2974_s2 + $0x168] sm:$0xff]  ;;  %v2024_v38 = vld [vmem:[%s2974_s2 + $0x170] sm:$0xff] }
  0x61   : > { %v1228_v54 = vmul.f32 %v2013_v28, %v1224_v31  ;;  %v1230_v55 = vmul.f32 %v2015_v29, %v1224_v31  ;;  %v1231_v56 = vadd.f32 %v1227_v34, %v1154_v53  ;;  %v1233_v57 = vadd.f32 %v1229_v35, %v1156_v4  ;;  %v2034_v24 = vld [vmem:[%s2219_s12 + $0x14] ss:$8 sm:$0x3]  ;;  %v2036_v34 = vld [vmem:[%s2974_s2 + $0x180] sm:$0xff] }
  0x62   : > { %v1251_v60 = vmul.f32 %v2016_v30, %v1244_v32  ;;  %v1252_v62 = vmul.f32 %v2017_v36, %v1248_v42  ;;  %v1253_v63 = vmul.f32 %v2018_v37, %v1244_v32  ;;  %v1254_v0 = vmul.f32 %v2019_v40, %v1248_v42  ;;  %v2035_v31 = vld [vmem:[%s2225_s15 + $0x14] ss:$8 sm:$0x3]  ;;  %v2048_v40 = vld [vmem:[%s2219_s12 + $0x15] ss:$8 sm:$0x3] }
  0x63   : > { %v1232_v49 = vadd.f32 %v1228_v54, %v1155_v3  ;;  %v1234_v61 = vadd.f32 %v1230_v55, %v1157_v5  ;;  %v1273_v39 = vrot.slane %v2020_v22, %v2211_v6  ;;  %v1277_v45 = vrot.slane %v2020_v22, %v2213_v7  ;;  %v2049_v32 = vld [vmem:[%s2225_s15 + $0x15] ss:$8 sm:$0x3] }
  0x64   : > { %v1255_v46 = vadd.f32 %v1251_v60, %v1178_v18  ;;  %v1256_v48 = vadd.f32 %v1252_v62, %v1179_v19  ;;  %v1257_v2 = vadd.f32 %v1253_v63, %v1180_v20  ;;  %v1258_v50 = vadd.f32 %v1254_v0, %v1181_v21  ;;  %v2038_v54 = vld [vmem:[%s2974_s2 + $0x190] sm:$0xff]  ;;  %v2039_v55 = vld [vmem:[%s2974_s2 + $0x198] sm:$0xff]  ;;  %v2041_v62 = vld [vmem:[%s2975_s3 + $0x188] sm:$0xff] }
  0x65   : > { %v1280_v53 = vmul.f32 %v2022_v58, %v1273_v39  ;;  %v1281_v4 = vmul.f32 %v2023_v43, %v1277_v45  ;;  %v1282_v3 = vmul.f32 %v2024_v38, %v1273_v39  ;;  %v1283_v5 = vmul.f32 %v2025_v47, %v1277_v45  ;;  %v2042_v63 = vld [vmem:[%s2975_s3 + $0x190] sm:$0xff]  ;;  %v2043_v0 = vld [vmem:[%s2975_s3 + $0x198] sm:$0xff] }
  0x66   : > { %v1297_v11 = vrot.slane %v2021_v23, %v2211_v6  ;;  %v1301_v10 = vrot.slane %v2021_v23, %v2213_v7  ;;  %v1321_v1 = vrot.slane %v1263_v44, %v2211_v6  ;;  %v1325_v16 = vrot.slane %v1263_v44, %v2213_v7 }
  0x67   : > { %v1284_v15 = vadd.f32 %v1280_v53, %v1207_v26  ;;  %v1285_v17 = vadd.f32 %v1281_v4, %v1208_v33  ;;  %v1286_v18 = vadd.f32 %v1282_v3, %v1209_v27  ;;  %v1287_v19 = vadd.f32 %v1283_v5, %v1210_v41  ;;  %v2037_v26 = vld [vmem:[%s2974_s2 + $0x188] sm:$0xff]  ;;  %v2050_v53 = vld [vmem:[%s2974_s2 + $0x1a0] sm:$0xff] }
  0x68   : > { %v1304_v20 = vmul.f32 %v2026_v51, %v1297_v11  ;;  %v1305_v21 = vmul.f32 %v2027_v52, %v1301_v10  ;;  %v1306_v22 = vmul.f32 %v2028_v8, %v1297_v11  ;;  %v1307_v23 = vmul.f32 %v2029_v9, %v1301_v10  ;;  %v2051_v4 = vld [vmem:[%s2974_s2 + $0x1a8] sm:$0xff]  ;;  %v2052_v11 = vld [vmem:[%s2974_s2 + $0x1b0] sm:$0xff]  ;;  %v2053_v10 = vld [vmem:[%s2974_s2 + $0x1b8] sm:$0xff] }
  0x69   : > { %v1328_v25 = vmul.f32 %v2030_v59, %v1321_v1  ;;  %v1329_v28 = vmul.f32 %v2031_v12, %v1325_v16  ;;  %v1330_v29 = vmul.f32 %v2032_v13, %v1321_v1  ;;  %v1331_v30 = vmul.f32 %v2033_v14, %v1325_v16  ;;  %v2044_v59 = vld [vmem:[%s2976_s4 + $0x180] sm:$0xff]  ;;  %v2045_v16 = vld [vmem:[%s2976_s4 + $0x188] sm:$0xff] }
  0x6a   : > { %v1308_v27 = vadd.f32 %v1304_v20, %v1231_v56  ;;  %v1309_v35 = vadd.f32 %v1305_v21, %v1232_v49  ;;  %v1310_v36 = vadd.f32 %v1306_v22, %v1233_v57  ;;  %v1311_v37 = vadd.f32 %v1307_v23, %v1234_v61  ;;  %v2040_v56 = vld [vmem:[%s2975_s3 + $0x180] sm:$0xff] }
  0x6b   : > { %v2777_v33 = vadd.f32 %v1328_v25, %v1255_v46  ;;  %v2779_v41 = vadd.f32 %v1329_v28, %v1256_v48  ;;  %v2781_v42 = vadd.f32 %v1330_v29, %v1257_v2  ;;  %v2783_v44 = vadd.f32 %v1331_v30, %v1258_v50 }
  0x6c   : > { %v1340_v57 = vadd.f32 %v2035_v31, %v2034_v24  ;;  %v1350_v58 = vrot.slane %v2034_v24, %v2211_v6  ;;  %v1354_v60 = vrot.slane %v2034_v24, %v2213_v7  ;;  %v1374_v43 = vrot.slane %v2035_v31, %v2211_v6  ;;  %v2054_v24 = vld [vmem:[%s2975_s3 + $0x1a0] sm:$0xff] }
  0x6d   : > { %v1378_v38 = vrot.slane %v2035_v31, %v2213_v7  ;;  %v1417_v47 = vadd.f32 %v2049_v32, %v2048_v40  ;;  %v1427_v49 = vrot.slane %v2048_v40, %v2211_v6  ;;  %v1431_v61 = vrot.slane %v2048_v40, %v2213_v7 }
  0x6e   : > { %v1357_v39 = vmul.f32 %v2036_v34, %v1350_v58  ;;  %v1358_v45 = vmul.f32 %v2037_v26, %v1354_v60  ;;  %v1359_v46 = vmul.f32 %v2038_v54, %v1350_v58  ;;  %v1360_v48 = vmul.f32 %v2039_v55, %v1354_v60  ;;  %v2055_v26 = vld [vmem:[%s2975_s3 + $0x1a8] sm:$0xff]  ;;  %v2062_v54 = vld [vmem:[%s2219_s12 + $0x16] ss:$8 sm:$0x3] }
  0x6f   : > { %v1381_v2 = vmul.f32 %v2040_v56, %v1374_v43  ;;  %v1382_v50 = vmul.f32 %v2041_v62, %v1378_v38  ;;  %v1383_v51 = vmul.f32 %v2042_v63, %v1374_v43  ;;  %v1384_v52 = vmul.f32 %v2043_v0, %v1378_v38  ;;  %v2063_v55 = vld [vmem:[%s2225_s15 + $0x16] ss:$8 sm:$0x3]  ;;  %v2058_v62 = vld [vmem:[%s2976_s4 + $0x1a0] sm:$0xff] }
  0x70   : > { %v1361_v3 = vadd.f32 %v1357_v39, %v1284_v15  ;;  %v1362_v5 = vadd.f32 %v1358_v45, %v1285_v17  ;;  %v1363_v8 = vadd.f32 %v1359_v46, %v1286_v18  ;;  %v1364_v9 = vadd.f32 %v1360_v48, %v1287_v19  ;;  %v2046_v15 = vld [vmem:[%s2976_s4 + $0x190] sm:$0xff]  ;;  %v2047_v17 = vld [vmem:[%s2976_s4 + $0x198] sm:$0xff]  ;;  %v2064_v39 = vld [vmem:[%s2974_s2 + $0x1c0] sm:$0xff] }
  0x71   : > { %v1385_v12 = vadd.f32 %v1381_v2, %v1308_v27  ;;  %v1386_v13 = vadd.f32 %v1382_v50, %v1309_v35  ;;  %v1387_v14 = vadd.f32 %v1383_v51, %v1310_v36  ;;  %v1388_v1 = vadd.f32 %v1384_v52, %v1311_v37  ;;  %v2056_v27 = vld [vmem:[%s2975_s3 + $0x1b0] sm:$0xff]  ;;  %v2057_v35 = vld [vmem:[%s2975_s3 + $0x1b8] sm:$0xff] }
  0x72   : > { %v1398_v18 = vrot.slane %v1340_v57, %v2211_v6  ;;  %v1402_v19 = vrot.slane %v1340_v57, %v2213_v7  ;;  %v1434_v20 = vmul.f32 %v2050_v53, %v1427_v49  ;;  %v1435_v21 = vmul.f32 %v2051_v4, %v1431_v61  ;;  %v2066_v45 = vld [vmem:[%s2974_s2 + $0x1d0] sm:$0xff] }
  0x73   : > { %v1436_v22 = vmul.f32 %v2052_v11, %v1427_v49  ;;  %v1437_v23 = vmul.f32 %v2053_v10, %v1431_v61  ;;  %v1451_v25 = vrot.slane %v2049_v32, %v2211_v6  ;;  %v1455_v28 = vrot.slane %v2049_v32, %v2213_v7  ;;  %v2059_v49 = vld [vmem:[%s2976_s4 + $0x1a8] sm:$0xff]  ;;  %v2068_v11 = vld [vmem:[%s2975_s3 + $0x1c0] sm:$0xff]  ;;  %v2070_v10 = vld [vmem:[%s2975_s3 + $0x1d0] sm:$0xff] }
  0x74   : > { %v1405_v29 = vmul.f32 %v2044_v59, %v1398_v18  ;;  %v1406_v30 = vmul.f32 %v2045_v16, %v1402_v19  ;;  %v1407_v31 = vmul.f32 %v2046_v15, %v1398_v18  ;;  %v1408_v34 = vmul.f32 %v2047_v17, %v1402_v19  ;;  %v2076_v15 = vld [vmem:[%s2219_s12 + $0x17] ss:$8 sm:$0x3] }
  0x75   : > { %v1438_v36 = vadd.f32 %v1434_v20, %v1361_v3  ;;  %v1439_v37 = vadd.f32 %v1435_v21, %v1362_v5  ;;  %v1440_v40 = vadd.f32 %v1436_v22, %v1363_v8  ;;  %v1441_v32 = vadd.f32 %v1437_v23, %v1364_v9  ;;  %v2065_v3 = vld [vmem:[%s2974_s2 + $0x1c8] sm:$0xff]  ;;  %v2067_v5 = vld [vmem:[%s2974_s2 + $0x1d8] sm:$0xff] }
  0x76   : > { %v1409_v56 = vadd.f32 %v1405_v29, %v2777_v33  ;;  %v1410_v57 = vadd.f32 %v1406_v30, %v2779_v41  ;;  %v1411_v58 = vadd.f32 %v1407_v31, %v2781_v42  ;;  %v1412_v60 = vadd.f32 %v1408_v34, %v2783_v44  ;;  %v2060_v33 = vld [vmem:[%s2976_s4 + $0x1b0] sm:$0xff]  ;;  %v2061_v41 = vld [vmem:[%s2976_s4 + $0x1b8] sm:$0xff]  ;;  %v2069_v22 = vld [vmem:[%s2975_s3 + $0x1c8] sm:$0xff] }
  0x77   : > { %v1458_v63 = vmul.f32 %v2054_v24, %v1451_v25  ;;  %v1459_v0 = vmul.f32 %v2055_v26, %v1455_v28  ;;  %v1460_v43 = vmul.f32 %v2056_v27, %v1451_v25  ;;  %v1461_v38 = vmul.f32 %v2057_v35, %v1455_v28  ;;  %v2077_v17 = vld [vmem:[%s2225_s15 + $0x17] ss:$8 sm:$0x3]  ;;  %v2072_v24 = vld [vmem:[%s2976_s4 + $0x1c0] sm:$0xff]  ;;  %v2073_v30 = vld [vmem:[%s2976_s4 + $0x1c8] sm:$0xff] }
  0x78   : > { %v1475_v42 = vrot.slane %v1417_v47, %v2211_v6  ;;  %v1479_v44 = vrot.slane %v1417_v47, %v2213_v7  ;;  %v1494_v61 = vadd.f32 %v2063_v55, %v2062_v54  ;;  %v1504_v46 = vrot.slane %v2062_v54, %v2211_v6  ;;  %v2071_v23 = vld [vmem:[%s2975_s3 + $0x1d8] sm:$0xff]  ;;  %v2074_v31 = vld [vmem:[%s2976_s4 + $0x1d0] sm:$0xff] }
  0x79   : > { %v1462_v48 = vadd.f32 %v1458_v63, %v1385_v12  ;;  %v1463_v2 = vadd.f32 %v1459_v0, %v1386_v13  ;;  %v1464_v50 = vadd.f32 %v1460_v43, %v1387_v14  ;;  %v1465_v51 = vadd.f32 %v1461_v38, %v1388_v1  ;;  %v2075_v34 = vld [vmem:[%s2976_s4 + $0x1d8] sm:$0xff] }
  0x7a   : > { %v1482_v52 = vmul.f32 %v2058_v62, %v1475_v42  ;;  %v1483_v53 = vmul.f32 %v2059_v49, %v1479_v44  ;;  %v1484_v47 = vmul.f32 %v2060_v33, %v1475_v42  ;;  %v1485_v4 = vmul.f32 %v2061_v41, %v1479_v44  ;;  %v2081_v43 = vld [vmem:[%s2974_s2 + $0x1f8] sm:$0xff] }
  0x7b   : > { %v1508_v8 = vrot.slane %v2062_v54, %v2213_v7  ;;  %v1511_v9 = vmul.f32 %v2064_v39, %v1504_v46  ;;  %v1513_v59 = vmul.f32 %v2066_v45, %v1504_v46  ;;  %v1528_v12 = vrot.slane %v2063_v55, %v2211_v6  ;;  %v2082_v45 = vld [vmem:[%s2975_s3 + $0x1e0] sm:$0xff]  ;;  %v2083_v46 = vld [vmem:[%s2975_s3 + $0x1e8] sm:$0xff] }
  0x7c   : > { %v1486_v13 = vadd.f32 %v1482_v52, %v1409_v56  ;;  %v1487_v14 = vadd.f32 %v1483_v53, %v1410_v57  ;;  %v1488_v1 = vadd.f32 %v1484_v47, %v1411_v58  ;;  %v1489_v16 = vadd.f32 %v1485_v4, %v1412_v60  ;;  %v2078_v58 = vld [vmem:[%s2974_s2 + $0x1e0] sm:$0xff]  ;;  %v2084_v52 = vld [vmem:[%s2975_s3 + $0x1f0] sm:$0xff]  ;;  %v2085_v53 = vld [vmem:[%s2975_s3 + $0x1f8] sm:$0xff] }
  0x7d   : > { %v1512_v18 = vmul.f32 %v2065_v3, %v1508_v8  ;;  %v1514_v19 = vmul.f32 %v2067_v5, %v1508_v8  ;;  %v1515_v20 = vadd.f32 %v1511_v9, %v1438_v36  ;;  %v1517_v21 = vadd.f32 %v1513_v59, %v1440_v40  ;;  %v2086_v47 = vld [vmem:[%s2976_s4 + $0x1e0] sm:$0xff]  ;;  %v2087_v5 = vld [vmem:[%s2976_s4 + $0x1e8] sm:$0xff]  ;;  %v2088_v8 = vld [vmem:[%s2976_s4 + $0x1f0] sm:$0xff] }
  0x7e   : > { %v1532_v25 = vrot.slane %v2063_v55, %v2213_v7  ;;  %v1535_v28 = vmul.f32 %v2068_v11, %v1528_v12  ;;  %v1537_v29 = vmul.f32 %v2070_v10, %v1528_v12  ;;  %v1552_v26 = vrot.slane %v1494_v61, %v2211_v6  ;;  %v2089_v9 = vld [vmem:[%s2976_s4 + $0x1f8] sm:$0xff] }
  0x7f   : > { %v1516_v27 = vadd.f32 %v1512_v18, %v1439_v37  ;;  %v1518_v35 = vadd.f32 %v1514_v19, %v1441_v32  ;;  %v1556_v36 = vrot.slane %v1494_v61, %v2213_v7  ;;  %v1571_v40 = vadd.f32 %v2077_v17, %v2076_v15  ;;  %v2079_v37 = vld [vmem:[%s2974_s2 + $0x1e8] sm:$0xff]  ;;  %v2080_v32 = vld [vmem:[%s2974_s2 + $0x1f0] sm:$0xff] }
  0x80   : > { %v1536_v54 = vmul.f32 %v2069_v22, %v1532_v25  ;;  %v1538_v55 = vmul.f32 %v2071_v23, %v1532_v25  ;;  %v1539_v56 = vadd.f32 %v1535_v28, %v1462_v48  ;;  %v1541_v57 = vadd.f32 %v1537_v29, %v1464_v50 }
  0x81   : > { %v1559_v60 = vmul.f32 %v2072_v24, %v1552_v26  ;;  %v1560_v62 = vmul.f32 %v2073_v30, %v1556_v36  ;;  %v1561_v63 = vmul.f32 %v2074_v31, %v1552_v26  ;;  %v1562_v0 = vmul.f32 %v2075_v34, %v1556_v36 }
  0x82   : > { %v1540_v38 = vadd.f32 %v1536_v54, %v1463_v2  ;;  %v1542_v49 = vadd.f32 %v1538_v55, %v1465_v51  ;;  %v1581_v33 = vrot.slane %v2076_v15, %v2211_v6  ;;  %v1585_v41 = vrot.slane %v2076_v15, %v2213_v7 }
  0x83   : > { %v1563_v42 = vadd.f32 %v1559_v60, %v1486_v13  ;;  %v1564_v44 = vadd.f32 %v1560_v62, %v1487_v14  ;;  %v1565_v61 = vadd.f32 %v1561_v63, %v1488_v1  ;;  %v1566_v39 = vadd.f32 %v1562_v0, %v1489_v16 }
  0x84   : > { %v1588_v48 = vmul.f32 %v2078_v58, %v1581_v33  ;;  %v1589_v50 = vmul.f32 %v2079_v37, %v1585_v41  ;;  %v1590_v2 = vmul.f32 %v2080_v32, %v1581_v33  ;;  %v1591_v51 = vmul.f32 %v2081_v43, %v1585_v41 }
  0x85   : > { %v1605_v4 = vrot.slane %v2077_v17, %v2211_v6  ;;  %v1609_v3 = vrot.slane %v2077_v17, %v2213_v7  ;;  %v1629_v59 = vrot.slane %v1571_v40, %v2211_v6  ;;  %v1633_v11 = vrot.slane %v1571_v40, %v2213_v7 }
  0x86   : > { %v1592_v10 = vadd.f32 %v1588_v48, %v1515_v20  ;;  %v1593_v12 = vadd.f32 %v1589_v50, %v1516_v27  ;;  %v1594_v13 = vadd.f32 %v1590_v2, %v1517_v21  ;;  %v1595_v14 = vadd.f32 %v1591_v51, %v1518_v35 }
  0x87   : > { %v1612_v1 = vmul.f32 %v2082_v45, %v1605_v4  ;;  %v1613_v16 = vmul.f32 %v2083_v46, %v1609_v3  ;;  %v1614_v15 = vmul.f32 %v2084_v52, %v1605_v4  ;;  %v1615_v17 = vmul.f32 %v2085_v53, %v1609_v3 }
  0x88   : > { %v1636_v18 = vmul.f32 %v2086_v47, %v1629_v59  ;;  %v1637_v19 = vmul.f32 %v2087_v5, %v1633_v11  ;;  %v1638_v22 = vmul.f32 %v2088_v8, %v1629_v59  ;;  %v1639_v23 = vmul.f32 %v2089_v9, %v1633_v11 }
  0x89   : > { %v1616_v24 = vadd.f32 %v1612_v1, %v1539_v56  ;;  %v1617_v25 = vadd.f32 %v1613_v16, %v1540_v38  ;;  %v1618_v28 = vadd.f32 %v1614_v15, %v1541_v57  ;;  %v1619_v6 = vadd.f32 %v1615_v17, %v1542_v49 }
  0x8a   : > { %v1640_v7 = vadd.f32 %v1636_v18, %v1563_v42  ;;  %v1641_v20 = vadd.f32 %v1637_v19, %v1564_v44  ;;  %v1642_v21 = vadd.f32 %v1638_v22, %v1565_v61  ;;  %v1643_v29 = vadd.f32 %v1639_v23, %v1566_v39 }
  0x8b   : > { %v1644_v30 = vsub.f32 %v1592_v10, %v1616_v24  ;;  %v1645_v31 = vsub.f32 %v1593_v12, %v1617_v25  ;;  %v1646_v34 = vsub.f32 %v1594_v13, %v1618_v28  ;;  %v1647_v26 = vsub.f32 %v1595_v14, %v1619_v6 }
  0x8c   : > { %v1652_v27 = vsub.f32 %v1640_v7, %v1592_v10  ;;  %v1653_v35 = vsub.f32 %v1641_v20, %v1593_v12  ;;  %v1654_v36 = vsub.f32 %v1642_v21, %v1594_v13  ;;  %v1655_v40 = vsub.f32 %v1643_v29, %v1595_v14 }
  0x8d   : > { %1648 = vst [vmem:[%s405_s10] sm:$0xff] %v1644_v30  ;;  %1649 = vst [vmem:[%s405_s10 + $0x8] sm:$0xff] %v1645_v31 }
  0x8e   : > { %1650 = vst [vmem:[%s405_s10 + $0x10] sm:$0xff] %v1646_v34  ;;  %1651 = vst [vmem:[%s405_s10 + $0x18] sm:$0xff] %v1647_v26  ;;  %v1656_v54 = vsub.f32 %v1652_v27, %v1616_v24  ;;  %v1657_v55 = vsub.f32 %v1653_v35, %v1617_v25  ;;  %v1658_v56 = vsub.f32 %v1654_v36, %v1618_v28 }
  0x8f   : > { %v1659_v57 = vsub.f32 %v1655_v40, %v1619_v6 }
  0x90   : > { %1660 = vst [vmem:[%s415_s14] sm:$0xff] %v1656_v54  ;;  %1661 = vst [vmem:[%s415_s14 + $0x8] sm:$0xff] %v1657_v55 }
  0x91   : > { %1662 = vst [vmem:[%s415_s14 + $0x10] sm:$0xff] %v1658_v56  ;;  %1663 = vst [vmem:[%s415_s14 + $0x18] sm:$0xff] %v1659_v57 }
  0x92 PF: > { %s17_s23 = sadd.s32 1, %s2142_s23   ;;  %s2979_s21 = smov %s2138_s22 }
  0x93   : > { %p14_p5 = scmp.ge.s32.totalorder %s17_s23, 4   ;;  %s2980_s22 = smov %s2982_s24 }
  0x95   :  { %16 = sbr.rel (!%p14_p5) target bundleno = 2 (0x2), region = 169 }

// kernel: reverse.8
= control target key start
LH: loop header
LB: loop body
LE: loop exit
PB: predicated region body
PF: predicated region fallthrough
CT: control target
= control target key end

     0   :  { %s1160_s0 = inlined_call_operand.vmem [shape: f32[2,16,8,8,6], index: 0, kind: input, shape index: {}]   ;;  %s1161_s1 = inlined_call_operand.vmem [shape: f32[2,16,8,8,6], index: 1, kind: output, shape index: {}]  }
   0x1   :  { %v384_v0 = vld [vmem:[%s1160_s0 + $0x140] sm:$0xff]  ;;  %v406_v12 = vld [vmem:[%s1160_s0 + $0x148] sm:$0xff]  ;;  %v430_v24 = vld [vmem:[%s1160_s0 + $0x150] sm:$0xff] }
   0x2   :  { %v385_v1 = vld [vmem:[%s1160_s0 + $0x2c0] sm:$0xff]  ;;  %4 = vst [vmem:[%s1161_s1] sm:$0xff] %v384_v0  ;;  %v408_v13 = vld [vmem:[%s1160_s0 + $0x2c8] sm:$0xff]  ;;  %407 = vst [vmem:[%s1161_s1 + $0x8] sm:$0xff] %v406_v12 }
   0x3   :  { %v387_v2 = vld [vmem:[%s1160_s0 + $0x100] sm:$0xff]  ;;  %386 = vst [vmem:[%s1161_s1 + $0x180] sm:$0xff] %v385_v1  ;;  %v410_v14 = vld [vmem:[%s1160_s0 + $0x108] sm:$0xff]  ;;  %409 = vst [vmem:[%s1161_s1 + $0x188] sm:$0xff] %v408_v13 }
   0x4   :  { %388 = vst [vmem:[%s1161_s1 + $0x40] sm:$0xff] %v387_v2  ;;  %v389_v3 = vld [vmem:[%s1160_s0 + $0x280] sm:$0xff]  ;;  %411 = vst [vmem:[%s1161_s1 + $0x48] sm:$0xff] %v410_v14  ;;  %v412_v15 = vld [vmem:[%s1160_s0 + $0x288] sm:$0xff] }
   0x5   :  { %v391_v4 = vld [vmem:[%s1160_s0 + $0xc0] sm:$0xff]  ;;  %390 = vst [vmem:[%s1161_s1 + $0x1c0] sm:$0xff] %v389_v3  ;;  %v414_v16 = vld [vmem:[%s1160_s0 + $0xc8] sm:$0xff]  ;;  %413 = vst [vmem:[%s1161_s1 + $0x1c8] sm:$0xff] %v412_v15 }
   0x6   :  { %v393_v5 = vld [vmem:[%s1160_s0 + $0x240] sm:$0xff]  ;;  %392 = vst [vmem:[%s1161_s1 + $0x80] sm:$0xff] %v391_v4  ;;  %v416_v17 = vld [vmem:[%s1160_s0 + $0x248] sm:$0xff]  ;;  %415 = vst [vmem:[%s1161_s1 + $0x88] sm:$0xff] %v414_v16 }
   0x7   :  { %394 = vst [vmem:[%s1161_s1 + $0x200] sm:$0xff] %v393_v5  ;;  %v395_v6 = vld [vmem:[%s1160_s0 + $0x80] sm:$0xff]  ;;  %417 = vst [vmem:[%s1161_s1 + $0x208] sm:$0xff] %v416_v17  ;;  %v418_v18 = vld [vmem:[%s1160_s0 + $0x88] sm:$0xff] }
   0x8   :  { %v397_v7 = vld [vmem:[%s1160_s0 + $0x200] sm:$0xff]  ;;  %396 = vst [vmem:[%s1161_s1 + $0xc0] sm:$0xff] %v395_v6  ;;  %v420_v19 = vld [vmem:[%s1160_s0 + $0x208] sm:$0xff]  ;;  %419 = vst [vmem:[%s1161_s1 + $0xc8] sm:$0xff] %v418_v18 }
   0x9   :  { %v399_v8 = vld [vmem:[%s1160_s0 + $0x40] sm:$0xff]  ;;  %398 = vst [vmem:[%s1161_s1 + $0x240] sm:$0xff] %v397_v7  ;;  %v422_v20 = vld [vmem:[%s1160_s0 + $0x48] sm:$0xff]  ;;  %421 = vst [vmem:[%s1161_s1 + $0x248] sm:$0xff] %v420_v19 }
   0xa   :  { %400 = vst [vmem:[%s1161_s1 + $0x100] sm:$0xff] %v399_v8  ;;  %v401_v9 = vld [vmem:[%s1160_s0 + $0x1c0] sm:$0xff]  ;;  %423 = vst [vmem:[%s1161_s1 + $0x108] sm:$0xff] %v422_v20  ;;  %v424_v21 = vld [vmem:[%s1160_s0 + $0x1c8] sm:$0xff] }
   0xb   :  { %v41_v10 = vld [vmem:[%s1160_s0] sm:$0xff]  ;;  %402 = vst [vmem:[%s1161_s1 + $0x280] sm:$0xff] %v401_v9  ;;  %v426_v22 = vld [vmem:[%s1160_s0 + $0x8] sm:$0xff]  ;;  %425 = vst [vmem:[%s1161_s1 + $0x288] sm:$0xff] %v424_v21 }
   0xc   :  { %v404_v11 = vld [vmem:[%s1160_s0 + $0x180] sm:$0xff]  ;;  %403 = vst [vmem:[%s1161_s1 + $0x140] sm:$0xff] %v41_v10  ;;  %v428_v23 = vld [vmem:[%s1160_s0 + $0x188] sm:$0xff]  ;;  %427 = vst [vmem:[%s1161_s1 + $0x148] sm:$0xff] %v426_v22 }
   0xd   :  { %405 = vst [vmem:[%s1161_s1 + $0x2c0] sm:$0xff] %v404_v11  ;;  %429 = vst [vmem:[%s1161_s1 + $0x2c8] sm:$0xff] %v428_v23  ;;  %v432_v25 = vld [vmem:[%s1160_s0 + $0x2d0] sm:$0xff]  ;;  %v454_v36 = vld [vmem:[%s1160_s0 + $0x158] sm:$0xff] }
   0xe   :  { %v434_v26 = vld [vmem:[%s1160_s0 + $0x110] sm:$0xff]  ;;  %431 = vst [vmem:[%s1161_s1 + $0x10] sm:$0xff] %v430_v24  ;;  %433 = vst [vmem:[%s1161_s1 + $0x190] sm:$0xff] %v432_v25  ;;  %v456_v37 = vld [vmem:[%s1160_s0 + $0x2d8] sm:$0xff] }
   0xf   :  { %435 = vst [vmem:[%s1161_s1 + $0x50] sm:$0xff] %v434_v26  ;;  %v436_v27 = vld [vmem:[%s1160_s0 + $0x290] sm:$0xff]  ;;  %v458_v38 = vld [vmem:[%s1160_s0 + $0x118] sm:$0xff]  ;;  %455 = vst [vmem:[%s1161_s1 + $0x18] sm:$0xff] %v454_v36 }
  0x10   :  { %v438_v28 = vld [vmem:[%s1160_s0 + $0xd0] sm:$0xff]  ;;  %437 = vst [vmem:[%s1161_s1 + $0x1d0] sm:$0xff] %v436_v27  ;;  %457 = vst [vmem:[%s1161_s1 + $0x198] sm:$0xff] %v456_v37  ;;  %v460_v39 = vld [vmem:[%s1160_s0 + $0x298] sm:$0xff] }
  0x11   :  { %v440_v29 = vld [vmem:[%s1160_s0 + $0x250] sm:$0xff]  ;;  %439 = vst [vmem:[%s1161_s1 + $0x90] sm:$0xff] %v438_v28  ;;  %459 = vst [vmem:[%s1161_s1 + $0x58] sm:$0xff] %v458_v38  ;;  %v462_v40 = vld [vmem:[%s1160_s0 + $0xd8] sm:$0xff] }
  0x12   :  { %441 = vst [vmem:[%s1161_s1 + $0x210] sm:$0xff] %v440_v29  ;;  %v442_v30 = vld [vmem:[%s1160_s0 + $0x90] sm:$0xff]  ;;  %v464_v41 = vld [vmem:[%s1160_s0 + $0x258] sm:$0xff]  ;;  %461 = vst [vmem:[%s1161_s1 + $0x1d8] sm:$0xff] %v460_v39 }
  0x13   :  { %v444_v31 = vld [vmem:[%s1160_s0 + $0x210] sm:$0xff]  ;;  %443 = vst [vmem:[%s1161_s1 + $0xd0] sm:$0xff] %v442_v30  ;;  %463 = vst [vmem:[%s1161_s1 + $0x98] sm:$0xff] %v462_v40  ;;  %v466_v42 = vld [vmem:[%s1160_s0 + $0x98] sm:$0xff] }
  0x14   :  { %v446_v32 = vld [vmem:[%s1160_s0 + $0x50] sm:$0xff]  ;;  %445 = vst [vmem:[%s1161_s1 + $0x250] sm:$0xff] %v444_v31  ;;  %465 = vst [vmem:[%s1161_s1 + $0x218] sm:$0xff] %v464_v41  ;;  %v468_v43 = vld [vmem:[%s1160_s0 + $0x218] sm:$0xff] }
  0x15   :  { %447 = vst [vmem:[%s1161_s1 + $0x110] sm:$0xff] %v446_v32  ;;  %v448_v33 = vld [vmem:[%s1160_s0 + $0x1d0] sm:$0xff]  ;;  %v470_v44 = vld [vmem:[%s1160_s0 + $0x58] sm:$0xff]  ;;  %467 = vst [vmem:[%s1161_s1 + $0xd8] sm:$0xff] %v466_v42 }
  0x16   :  { %v450_v34 = vld [vmem:[%s1160_s0 + $0x10] sm:$0xff]  ;;  %449 = vst [vmem:[%s1161_s1 + $0x290] sm:$0xff] %v448_v33  ;;  %469 = vst [vmem:[%s1161_s1 + $0x258] sm:$0xff] %v468_v43  ;;  %v472_v45 = vld [vmem:[%s1160_s0 + $0x1d8] sm:$0xff] }
  0x17   :  { %v452_v35 = vld [vmem:[%s1160_s0 + $0x190] sm:$0xff]  ;;  %451 = vst [vmem:[%s1161_s1 + $0x150] sm:$0xff] %v450_v34  ;;  %471 = vst [vmem:[%s1161_s1 + $0x118] sm:$0xff] %v470_v44  ;;  %v474_v46 = vld [vmem:[%s1160_s0 + $0x18] sm:$0xff] }
  0x18   :  { %453 = vst [vmem:[%s1161_s1 + $0x2d0] sm:$0xff] %v452_v35  ;;  %v476_v47 = vld [vmem:[%s1160_s0 + $0x198] sm:$0xff]  ;;  %473 = vst [vmem:[%s1161_s1 + $0x298] sm:$0xff] %v472_v45  ;;  %v478_v48 = vld [vmem:[%s1160_s0 + $0x160] sm:$0xff] }
  0x19   :  { %475 = vst [vmem:[%s1161_s1 + $0x158] sm:$0xff] %v474_v46  ;;  %477 = vst [vmem:[%s1161_s1 + $0x2d8] sm:$0xff] %v476_v47  ;;  %v480_v49 = vld [vmem:[%s1160_s0 + $0x2e0] sm:$0xff]  ;;  %v502_v60 = vld [vmem:[%s1160_s0 + $0x168] sm:$0xff] }
  0x1a   :  { %v482_v50 = vld [vmem:[%s1160_s0 + $0x120] sm:$0xff]  ;;  %479 = vst [vmem:[%s1161_s1 + $0x20] sm:$0xff] %v478_v48  ;;  %481 = vst [vmem:[%s1161_s1 + $0x1a0] sm:$0xff] %v480_v49  ;;  %v504_v61 = vld [vmem:[%s1160_s0 + $0x2e8] sm:$0xff] }
  0x1b   :  { %483 = vst [vmem:[%s1161_s1 + $0x60] sm:$0xff] %v482_v50  ;;  %v484_v51 = vld [vmem:[%s1160_s0 + $0x2a0] sm:$0xff]  ;;  %v506_v62 = vld [vmem:[%s1160_s0 + $0x128] sm:$0xff]  ;;  %503 = vst [vmem:[%s1161_s1 + $0x28] sm:$0xff] %v502_v60 }
  0x1c   :  { %v486_v52 = vld [vmem:[%s1160_s0 + $0xe0] sm:$0xff]  ;;  %485 = vst [vmem:[%s1161_s1 + $0x1e0] sm:$0xff] %v484_v51  ;;  %505 = vst [vmem:[%s1161_s1 + $0x1a8] sm:$0xff] %v504_v61  ;;  %v508_v63 = vld [vmem:[%s1160_s0 + $0x2a8] sm:$0xff] }
  0x1d   :  { %v488_v53 = vld [vmem:[%s1160_s0 + $0x260] sm:$0xff]  ;;  %487 = vst [vmem:[%s1161_s1 + $0xa0] sm:$0xff] %v486_v52  ;;  %507 = vst [vmem:[%s1161_s1 + $0x68] sm:$0xff] %v506_v62  ;;  %v510_v0 = vld [vmem:[%s1160_s0 + $0xe8] sm:$0xff] }
  0x1e   :  { %489 = vst [vmem:[%s1161_s1 + $0x220] sm:$0xff] %v488_v53  ;;  %v490_v54 = vld [vmem:[%s1160_s0 + $0xa0] sm:$0xff]  ;;  %v512_v1 = vld [vmem:[%s1160_s0 + $0x268] sm:$0xff]  ;;  %509 = vst [vmem:[%s1161_s1 + $0x1e8] sm:$0xff] %v508_v63 }
  0x1f   :  { %v492_v55 = vld [vmem:[%s1160_s0 + $0x220] sm:$0xff]  ;;  %491 = vst [vmem:[%s1161_s1 + $0xe0] sm:$0xff] %v490_v54  ;;  %511 = vst [vmem:[%s1161_s1 + $0xa8] sm:$0xff] %v510_v0  ;;  %v514_v2 = vld [vmem:[%s1160_s0 + $0xa8] sm:$0xff] }
  0x20   :  { %v494_v56 = vld [vmem:[%s1160_s0 + $0x60] sm:$0xff]  ;;  %493 = vst [vmem:[%s1161_s1 + $0x260] sm:$0xff] %v492_v55  ;;  %513 = vst [vmem:[%s1161_s1 + $0x228] sm:$0xff] %v512_v1  ;;  %v516_v3 = vld [vmem:[%s1160_s0 + $0x228] sm:$0xff] }
  0x21   :  { %495 = vst [vmem:[%s1161_s1 + $0x120] sm:$0xff] %v494_v56  ;;  %v496_v57 = vld [vmem:[%s1160_s0 + $0x1e0] sm:$0xff]  ;;  %v518_v4 = vld [vmem:[%s1160_s0 + $0x68] sm:$0xff]  ;;  %515 = vst [vmem:[%s1161_s1 + $0xe8] sm:$0xff] %v514_v2 }
  0x22   :  { %v498_v58 = vld [vmem:[%s1160_s0 + $0x20] sm:$0xff]  ;;  %497 = vst [vmem:[%s1161_s1 + $0x2a0] sm:$0xff] %v496_v57  ;;  %517 = vst [vmem:[%s1161_s1 + $0x268] sm:$0xff] %v516_v3  ;;  %v520_v5 = vld [vmem:[%s1160_s0 + $0x1e8] sm:$0xff] }
  0x23   :  { %v500_v59 = vld [vmem:[%s1160_s0 + $0x1a0] sm:$0xff]  ;;  %499 = vst [vmem:[%s1161_s1 + $0x160] sm:$0xff] %v498_v58  ;;  %519 = vst [vmem:[%s1161_s1 + $0x128] sm:$0xff] %v518_v4  ;;  %v522_v6 = vld [vmem:[%s1160_s0 + $0x28] sm:$0xff] }
  0x24   :  { %501 = vst [vmem:[%s1161_s1 + $0x2e0] sm:$0xff] %v500_v59  ;;  %v524_v7 = vld [vmem:[%s1160_s0 + $0x1a8] sm:$0xff]  ;;  %521 = vst [vmem:[%s1161_s1 + $0x2a8] sm:$0xff] %v520_v5  ;;  %v526_v8 = vld [vmem:[%s1160_s0 + $0x170] sm:$0xff] }
  0x25   :  { %523 = vst [vmem:[%s1161_s1 + $0x168] sm:$0xff] %v522_v6  ;;  %525 = vst [vmem:[%s1161_s1 + $0x2e8] sm:$0xff] %v524_v7  ;;  %v528_v9 = vld [vmem:[%s1160_s0 + $0x2f0] sm:$0xff]  ;;  %v550_v20 = vld [vmem:[%s1160_s0 + $0x178] sm:$0xff] }
  0x26   :  { %v530_v10 = vld [vmem:[%s1160_s0 + $0x130] sm:$0xff]  ;;  %527 = vst [vmem:[%s1161_s1 + $0x30] sm:$0xff] %v526_v8  ;;  %529 = vst [vmem:[%s1161_s1 + $0x1b0] sm:$0xff] %v528_v9  ;;  %v552_v21 = vld [vmem:[%s1160_s0 + $0x2f8] sm:$0xff] }
  0x27   :  { %531 = vst [vmem:[%s1161_s1 + $0x70] sm:$0xff] %v530_v10  ;;  %v532_v11 = vld [vmem:[%s1160_s0 + $0x2b0] sm:$0xff]  ;;  %v554_v22 = vld [vmem:[%s1160_s0 + $0x138] sm:$0xff]  ;;  %551 = vst [vmem:[%s1161_s1 + $0x38] sm:$0xff] %v550_v20 }
  0x28   :  { %v534_v12 = vld [vmem:[%s1160_s0 + $0xf0] sm:$0xff]  ;;  %533 = vst [vmem:[%s1161_s1 + $0x1f0] sm:$0xff] %v532_v11  ;;  %553 = vst [vmem:[%s1161_s1 + $0x1b8] sm:$0xff] %v552_v21  ;;  %v556_v23 = vld [vmem:[%s1160_s0 + $0x2b8] sm:$0xff] }
  0x29   :  { %v536_v13 = vld [vmem:[%s1160_s0 + $0x270] sm:$0xff]  ;;  %535 = vst [vmem:[%s1161_s1 + $0xb0] sm:$0xff] %v534_v12  ;;  %555 = vst [vmem:[%s1161_s1 + $0x78] sm:$0xff] %v554_v22  ;;  %v558_v24 = vld [vmem:[%s1160_s0 + $0xf8] sm:$0xff] }
  0x2a   :  { %537 = vst [vmem:[%s1161_s1 + $0x230] sm:$0xff] %v536_v13  ;;  %v538_v14 = vld [vmem:[%s1160_s0 + $0xb0] sm:$0xff]  ;;  %v560_v25 = vld [vmem:[%s1160_s0 + $0x278] sm:$0xff]  ;;  %557 = vst [vmem:[%s1161_s1 + $0x1f8] sm:$0xff] %v556_v23 }
  0x2b   :  { %v540_v15 = vld [vmem:[%s1160_s0 + $0x230] sm:$0xff]  ;;  %539 = vst [vmem:[%s1161_s1 + $0xf0] sm:$0xff] %v538_v14  ;;  %559 = vst [vmem:[%s1161_s1 + $0xb8] sm:$0xff] %v558_v24  ;;  %v562_v26 = vld [vmem:[%s1160_s0 + $0xb8] sm:$0xff] }
  0x2c   :  { %v542_v16 = vld [vmem:[%s1160_s0 + $0x70] sm:$0xff]  ;;  %541 = vst [vmem:[%s1161_s1 + $0x270] sm:$0xff] %v540_v15  ;;  %561 = vst [vmem:[%s1161_s1 + $0x238] sm:$0xff] %v560_v25  ;;  %v564_v27 = vld [vmem:[%s1160_s0 + $0x238] sm:$0xff] }
  0x2d   :  { %543 = vst [vmem:[%s1161_s1 + $0x130] sm:$0xff] %v542_v16  ;;  %v544_v17 = vld [vmem:[%s1160_s0 + $0x1f0] sm:$0xff]  ;;  %v566_v28 = vld [vmem:[%s1160_s0 + $0x78] sm:$0xff]  ;;  %563 = vst [vmem:[%s1161_s1 + $0xf8] sm:$0xff] %v562_v26 }
  0x2e   :  { %v546_v18 = vld [vmem:[%s1160_s0 + $0x30] sm:$0xff]  ;;  %545 = vst [vmem:[%s1161_s1 + $0x2b0] sm:$0xff] %v544_v17  ;;  %565 = vst [vmem:[%s1161_s1 + $0x278] sm:$0xff] %v564_v27  ;;  %v568_v29 = vld [vmem:[%s1160_s0 + $0x1f8] sm:$0xff] }
  0x2f   :  { %v548_v19 = vld [vmem:[%s1160_s0 + $0x1b0] sm:$0xff]  ;;  %547 = vst [vmem:[%s1161_s1 + $0x170] sm:$0xff] %v546_v18  ;;  %567 = vst [vmem:[%s1161_s1 + $0x138] sm:$0xff] %v566_v28  ;;  %v570_v30 = vld [vmem:[%s1160_s0 + $0x38] sm:$0xff] }
  0x30   :  { %549 = vst [vmem:[%s1161_s1 + $0x2f0] sm:$0xff] %v548_v19  ;;  %v572_v31 = vld [vmem:[%s1160_s0 + $0x1b8] sm:$0xff]  ;;  %569 = vst [vmem:[%s1161_s1 + $0x2b8] sm:$0xff] %v568_v29 }
  0x31   :  { %571 = vst [vmem:[%s1161_s1 + $0x178] sm:$0xff] %v570_v30  ;;  %573 = vst [vmem:[%s1161_s1 + $0x2f8] sm:$0xff] %v572_v31 }

// kernel: _lambda_.12
= control target key start
LH: loop header
LB: loop body
LE: loop exit
PB: predicated region body
PF: predicated region fallthrough
CT: control target
= control target key end

     0   :  { %s1986_s15 = smov 0   ;;  %s1988_s16 = smov 0   ;;  %s2842_s0 = inlined_call_operand.vmem [shape: f32[2,16,896], index: 0, kind: input, shape index: {}, may-alias: {0,4}]   ;;  %s2843_s1 = inlined_call_operand.vmem [shape: f32[2,16,896], index: 1, kind: input, shape index: {}]   ;;  %s2844_s2 = inlined_call_operand.vmem [shape: f32[16,16,1], index: 2, kind: input, shape index: {}]   ;;  %s2845_s3 = inlined_call_operand.vmem [shape: f32[16,1], index: 3, kind: input, shape index: {}]   ;;  %s2846_s4 = inlined_call_operand.vmem [shape: f32[2,16,896], index: 4, kind: output, shape index: {}, may-alias: {0,4}]  }
   0x1   :  { %s1990_s17 = smov 0  }
   0x2 LB: > { %s26_s18 = sadd.s32 1, %s1954_s16  ;;  %p1814_p0 = scmp.ge.s32.totalorder %s1958_s17, 1  ;;  %s1958_s17 = sphi %s1990_s17, %s14_s17   ;;  %s1954_s16 = sphi %s1988_s16, %s3082_s16   ;;  %s1950_s15 = sphi %s1986_s15, %s3081_s15  }
   0x3   : > { %p28_p1 = scmp.ge.s32.totalorder %s26_s18, 2  ;;  %p200_p2 = scmp.lt.s32.totalorder %s1958_s17, 3 }
   0x5   : > { %s3084_s18 = smov (%p28_p1, %s26_s18), 0  ;;  %p201_p3 = pnand %p1814_p0, %p200_p2 }
   0x7   : > { %204 = sbr.rel (%p201_p3) target bundleno = 287 (0x11f), region = 36 }
   0xe   : > { %v1818_v0 = vld [vmem:[%s2844_s2 + $0x10] sm:$0xff]  ;;  %v273_v1 = vld [vmem:[%s2844_s2] sm:$0xff]  ;;  %v1960_v2 = vmov 0   ;;  %v1819_v3 = vld [vmem:[%s2844_s2 + $0x18] sm:$0xff]  ;;  %p244_p4 = scmp.lt.s32.totalorder %s1950_s15, 1  ;;  %v289_v35 = vlaneseq }
   0xf   : > { %1907 = vset.pattern.permute.xlu1 %v1960_v2  ;;  %1906 = vset.pattern.permute.xlu0 %v1960_v2  ;;  %v274_v4 = vld [vmem:[%s2844_s2 + $0x8] sm:$0xff]  ;;  %v1822_v6 = vld [vmem:[%s2844_s2 + $0x20] sm:$0xff]  ;;  %v1827_v7 = vld [vmem:[%s2844_s2 + $0x38] sm:$0xff] }
  0x10   : > { %361 = vperm.xlu1 %1907, %v1818_v0   ;;  %280 = vperm.xlu0 %1906, %v273_v1   ;;  %v1823_v5 = vld [vmem:[%s2844_s2 + $0x28] sm:$0xff]  ;;  %v1826_v8 = vld [vmem:[%s2844_s2 + $0x30] sm:$0xff]  ;;  %v1830_v10 = vld [vmem:[%s2844_s2 + $0x40] sm:$0xff]  ;;  %s3086_s15 = smov (!%p244_p4, %s1950_s15), 1  ;;  %v290_v36 = vshrl.u32 %v289_v35, 7 }
  0x11   : > { %v1831_v9 = vld [vmem:[%s2844_s2 + $0x48] sm:$0xff]  ;;  %v1835_v11 = vld [vmem:[%s2844_s2 + $0x58] sm:$0xff]  ;;  %v1834_v12 = vld [vmem:[%s2844_s2 + $0x50] sm:$0xff]  ;;  %s2110_s21 = smul.u32 112, %s3086_s15 }
  0x12   : > { %v1839_v13 = vld [vmem:[%s2844_s2 + $0x68] sm:$0xff]  ;;  %v1838_v14 = vld [vmem:[%s2844_s2 + $0x60] sm:$0xff]  ;;  %v1843_v15 = vld [vmem:[%s2844_s2 + $0x78] sm:$0xff]  ;;  %v2120_v39 = vsub.s32 0, %v290_v36  ;;  %v2122_v40 = vsub.s32 1, %v290_v36  ;;  %v2126_v43 = vsub.s32 2, %v290_v36 }
  0x13   : > { %v1842_v16 = vld [vmem:[%s2844_s2 + $0x70] sm:$0xff]  ;;  %v1847_v17 = vld [vmem:[%s2844_s2 + $0x88] sm:$0xff]  ;;  %v1846_v18 = vld [vmem:[%s2844_s2 + $0x80] sm:$0xff]  ;;  %s2116_s24 = scalar_lea.vmem %s2842_s0, %s2110_s21  ;;  %v2128_v44 = vsub.s32 3, %v290_v36  ;;  %v2130_v45 = vsub.s32 4, %v290_v36  ;;  %v2134_v49 = vsub.s32 5, %v290_v36  ;;  %s2743_s26 = scalar_lea.vmem %s2843_s1, %s2110_s21 }
  0x14   : > { %366 = vperm.xlu1 %1907, %v1819_v3   ;;  %285 = vperm.xlu0 %1906, %v274_v4   ;;  %v1851_v19 = vld [vmem:[%s2844_s2 + $0x98] sm:$0xff]  ;;  %v1850_v20 = vld [vmem:[%s2844_s2 + $0x90] sm:$0xff]  ;;  %v1855_v21 = vld [vmem:[%s2844_s2 + $0xa8] sm:$0xff]  ;;  %v2136_v50 = vsub.s32 6, %v290_v36  ;;  %s2804_s29 = scalar_lea.vmem %s2846_s4, %s2110_s21 }
  0x15   : > { %v1854_v22 = vld [vmem:[%s2844_s2 + $0xa0] sm:$0xff]  ;;  %v1859_v23 = vld [vmem:[%s2844_s2 + $0xb8] sm:$0xff]  ;;  %v1858_v24 = vld [vmem:[%s2844_s2 + $0xb0] sm:$0xff] }
  0x16   : > { %v1863_v25 = vld [vmem:[%s2844_s2 + $0xc8] sm:$0xff]  ;;  %v1862_v26 = vld [vmem:[%s2844_s2 + $0xc0] sm:$0xff]  ;;  %v1867_v27 = vld [vmem:[%s2844_s2 + $0xd8] sm:$0xff] }
  0x17   : > { %v1866_v28 = vld [vmem:[%s2844_s2 + $0xd0] sm:$0xff]  ;;  %v1871_v29 = vld [vmem:[%s2844_s2 + $0xe8] sm:$0xff]  ;;  %v1870_v30 = vld [vmem:[%s2844_s2 + $0xe0] sm:$0xff] }
  0x18   : > { %447 = vperm.xlu1 %1907, %v1823_v5   ;;  %442 = vperm.xlu0 %1906, %v1822_v6   ;;  %v1875_v31 = vld [vmem:[%s2844_s2 + $0xf8] sm:$0xff]  ;;  %v1874_v32 = vld [vmem:[%s2844_s2 + $0xf0] sm:$0xff]  ;;  %v1568_v33 = vld [vmem:[%s2845_s3 + $0x8] sm:$0xff] }
  0x19   : > { %v1567_v34 = vld [vmem:[%s2845_s3] sm:$0xff] }
  0x1a   : > { %v1820_v37 = vld [vmem:[%s2116_s24 + $0x1] ss:$8 sm:$0xf]  ;;  %v275_v41 = vld [vmem:[%s2116_s24] ss:$8 sm:$0xf] }
  0x1b   : > { %v1821_v38 = vld [vmem:[%s2116_s24 + $0x1] ss:$8 sm:$0xf0]  ;;  %v276_v42 = vld [vmem:[%s2116_s24] ss:$8 sm:$0xf0] }
  0x1c   : > { %528 = vperm.xlu1 %1907, %v1827_v7   ;;  %523 = vperm.xlu0 %1906, %v1826_v8   ;;  %v358_v46 = vor.u32 %v1821_v38, %v1820_v37  ;;  %v1824_v47 = vld [vmem:[%s2116_s24 + $0x2] ss:$8 sm:$0xf]  ;;  %v277_v51 = vor.u32 %v276_v42, %v275_v41  ;;  %v1828_v52 = vld [vmem:[%s2116_s24 + $0x3] ss:$8 sm:$0xf] }
  0x1d   : > { %v1825_v48 = vld [vmem:[%s2116_s24 + $0x2] ss:$8 sm:$0xf0]  ;;  %v1829_v53 = vld [vmem:[%s2116_s24 + $0x3] ss:$8 sm:$0xf0] }
  0x1e   : > { %v2141_v54 = vrot.slane %v358_v46, %v2120_v39  ;;  %v439_v55 = vor.u32 %v1825_v48, %v1824_v47  ;;  %v2144_v56 = vrot.slane %v358_v46, %v2122_v40  ;;  %v2147_v57 = vrot.slane %v358_v46, %v2126_v43  ;;  %v1832_v60 = vld [vmem:[%s2116_s24 + $0x4] ss:$8 sm:$0xf]  ;;  %v1836_v6 = vld [vmem:[%s2116_s24 + $0x5] ss:$8 sm:$0xf] }
  0x1f   : > { %v2150_v58 = vrot.slane %v358_v46, %v2128_v44  ;;  %v2153_v59 = vrot.slane %v358_v46, %v2130_v45  ;;  %v1833_v61 = vld [vmem:[%s2116_s24 + $0x4] ss:$8 sm:$0xf0]  ;;  %v2158_v62 = vrot.slane %v358_v46, %v2134_v49  ;;  %v2161_v63 = vrot.slane %v358_v46, %v2136_v50  ;;  %v1837_v7 = vld [vmem:[%s2116_s24 + $0x5] ss:$8 sm:$0xf0] }
  0x20   : > { %609 = vperm.xlu1 %1907, %v1831_v9   ;;  %604 = vperm.xlu0 %1906, %v1830_v10   ;;  %v2164_v0 = vrot.slane %v277_v51, %v2120_v39  ;;  %v520_v1 = vor.u32 %v1829_v53, %v1828_v52  ;;  %v2167_v2 = vrot.slane %v277_v51, %v2122_v40  ;;  %v1848_v36 = vld [vmem:[%s2116_s24 + $0x38] ss:$8 sm:$0xf]  ;;  %v1852_v53 = vld [vmem:[%s2116_s24 + $0x39] ss:$8 sm:$0xf] }
  0x21   : > { %v2170_v3 = vrot.slane %v277_v51, %v2126_v43  ;;  %v2173_v4 = vrot.slane %v277_v51, %v2128_v44  ;;  %v2176_v5 = vrot.slane %v277_v51, %v2130_v45  ;;  %v2181_v8 = vrot.slane %v277_v51, %v2134_v49  ;;  %v1849_v37 = vld [vmem:[%s2116_s24 + $0x38] ss:$8 sm:$0xf0] }
  0x22   : > { %v2184_v9 = vrot.slane %v277_v51, %v2136_v50  ;;  %v2187_v10 = vrot.slane %v439_v55, %v2120_v39 }
  0x24   : > { %690 = vperm.xlu1 %1907, %v1835_v11   ;;  %685 = vperm.xlu0 %1906, %v1834_v12   ;;  %v601_v11 = vor.u32 %v1833_v61, %v1832_v60  ;;  %v2190_v12 = vrot.slane %v439_v55, %v2122_v40 }
  0x26   : > { %v2245_v35 = vrot.slane %v601_v11, %v2130_v45  ;;  %v2250_v38 = vrot.slane %v601_v11, %v2134_v49  ;;  %v2253_v41 = vrot.slane %v601_v11, %v2136_v50 }
  0x28   : > { %771 = vperm.xlu1 %1907, %v1839_v13   ;;  %766 = vperm.xlu0 %1906, %v1838_v14   ;;  %v2193_v13 = vrot.slane %v439_v55, %v2126_v43  ;;  %v2196_v14 = vrot.slane %v439_v55, %v2128_v44  ;;  %2925 = vst [vmem:[#allocation2_spill] sm:$0xff] %v2245_v35  ;;  %2926 = vst [vmem:[#allocation3_spill] sm:$0xff] %v2250_v38 }
  0x29   : > { %2927 = vst [vmem:[#allocation4_spill] sm:$0xff] %v2253_v41 }
  0x2c   : > { %852 = vperm.xlu1 %1907, %v1843_v15   ;;  %847 = vperm.xlu0 %1906, %v1842_v16   ;;  %v2199_v15 = vrot.slane %v439_v55, %v2130_v45  ;;  %v1840_v16 = vld [vmem:[%s2116_s24 + $0x6] ss:$8 sm:$0xf] }
  0x30   : > { %933 = vperm.xlu1 %1907, %v1847_v17   ;;  %928 = vperm.xlu0 %1906, %v1846_v18   ;;  %v1841_v17 = vld [vmem:[%s2116_s24 + $0x6] ss:$8 sm:$0xf0]  ;;  %v2204_v18 = vrot.slane %v439_v55, %v2134_v49 }
  0x34   : > { %1014 = vperm.xlu1 %1907, %v1851_v19   ;;  %1009 = vperm.xlu0 %1906, %v1850_v20   ;;  %v2207_v19 = vrot.slane %v439_v55, %v2136_v50  ;;  %v2210_v20 = vrot.slane %v520_v1, %v2120_v39  ;;  %v1853_v55 = vld [vmem:[%s2116_s24 + $0x39] ss:$8 sm:$0xf0] }
  0x38   : > { %1095 = vperm.xlu1 %1907, %v1855_v21   ;;  %1090 = vperm.xlu0 %1906, %v1854_v22   ;;  %v682_v21 = vor.u32 %v1837_v7, %v1836_v6  ;;  %v2213_v22 = vrot.slane %v520_v1, %v2122_v40  ;;  %v925_v6 = vor.u32 %v1849_v37, %v1848_v36 }
  0x3a   : > { %v2256_v42 = vrot.slane %v682_v21, %v2120_v39  ;;  %v2259_v47 = vrot.slane %v682_v21, %v2122_v40  ;;  %v2262_v48 = vrot.slane %v682_v21, %v2126_v43  ;;  %v2265_v51 = vrot.slane %v682_v21, %v2128_v44 }
  0x3b   : > { %v2268_v52 = vrot.slane %v682_v21, %v2130_v45  ;;  %v2273_v60 = vrot.slane %v682_v21, %v2134_v49  ;;  %v2276_v61 = vrot.slane %v682_v21, %v2136_v50  ;;  %v1856_v21 = vld [vmem:[%s2116_s24 + $0x3a] ss:$8 sm:$0xf] }
  0x3c   : > { %1176 = vperm.xlu1 %1907, %v1859_v23   ;;  %1171 = vperm.xlu0 %1906, %v1858_v24   ;;  %v2216_v23 = vrot.slane %v520_v1, %v2126_v43  ;;  %v2219_v24 = vrot.slane %v520_v1, %v2128_v44  ;;  %2928 = vst [vmem:[#allocation5_spill] sm:$0xff] %v2256_v42  ;;  %2929 = vst [vmem:[#allocation6_spill] sm:$0xff] %v2259_v47 }
  0x3d   : > { %2930 = vst [vmem:[#allocation7_spill] sm:$0xff] %v2262_v48  ;;  %2931 = vst [vmem:[#allocation8_spill] sm:$0xff] %v2265_v51 }
  0x3e   : > { %2932 = vst [vmem:[#allocation9_spill] sm:$0xff] %v2268_v52  ;;  %2933 = vst [vmem:[#allocation10_spill] sm:$0xff] %v2273_v60 }
  0x3f   : > { %2934 = vst [vmem:[#allocation11_spill] sm:$0xff] %v2276_v61  ;;  %v1873_v61 = vld [vmem:[%s2116_s24 + $0x3e] ss:$8 sm:$0xf0] }
  0x40   : > { %1257 = vperm.xlu1 %1907, %v1863_v25   ;;  %1252 = vperm.xlu0 %1906, %v1862_v26   ;;  %v2222_v25 = vrot.slane %v520_v1, %v2130_v45  ;;  %v1844_v26 = vld [vmem:[%s2116_s24 + $0x7] ss:$8 sm:$0xf] }
  0x44   : > { %1338 = vperm.xlu1 %1907, %v1867_v27   ;;  %1333 = vperm.xlu0 %1906, %v1866_v28   ;;  %v1845_v27 = vld [vmem:[%s2116_s24 + $0x7] ss:$8 sm:$0xf0]  ;;  %v2227_v28 = vrot.slane %v520_v1, %v2134_v49 }
  0x45   : > { %v844_v46 = vor.u32 %v1845_v27, %v1844_v26  ;;  %v1857_v26 = vld [vmem:[%s2116_s24 + $0x3a] ss:$8 sm:$0xf0] }
  0x47   : > { %v2302_v37 = vrot.slane %v844_v46, %v2120_v39 }
  0x48   : > { %1419 = vperm.xlu1 %1907, %v1871_v29   ;;  %1414 = vperm.xlu0 %1906, %v1870_v30   ;;  %v2230_v29 = vrot.slane %v520_v1, %v2136_v50  ;;  %v2233_v30 = vrot.slane %v601_v11, %v2120_v39 }
  0x49   : > { %2942 = vst [vmem:[#allocation19_spill] sm:$0xff] %v2302_v37  ;;  %v2342_v37 = vrot.slane %v925_v6, %v2134_v49 }
  0x4b   : > { %2954 = vst [vmem:[#allocation31_spill] sm:$0xff] %v2342_v37 }
  0x4c   : > { %1500 = vperm.xlu1 %1907, %v1875_v31   ;;  %1495 = vperm.xlu0 %1906, %v1874_v32   ;;  %v763_v31 = vor.u32 %v1841_v17, %v1840_v16  ;;  %v2236_v32 = vrot.slane %v601_v11, %v2122_v40 }
  0x4e   : > { %v2279_v1 = vrot.slane %v763_v31, %v2120_v39  ;;  %v2282_v7 = vrot.slane %v763_v31, %v2122_v40  ;;  %v2288_v16 = vrot.slane %v763_v31, %v2128_v44  ;;  %v2291_v17 = vrot.slane %v763_v31, %v2130_v45 }
  0x4f   : > { %v2296_v27 = vrot.slane %v763_v31, %v2134_v49  ;;  %v2299_v36 = vrot.slane %v763_v31, %v2136_v50 }
  0x50   : > { %1576 = vperm.xlu1 %1907, %v1568_v33   ;;  %1571 = vperm.xlu0 %1906, %v1567_v34   ;;  %v2239_v33 = vrot.slane %v601_v11, %v2126_v43  ;;  %v2242_v34 = vrot.slane %v601_v11, %v2128_v44  ;;  %2935 = vst [vmem:[#allocation12_spill] sm:$0xff] %v2279_v1  ;;  %2936 = vst [vmem:[#allocation13_spill] sm:$0xff] %v2282_v7 }
  0x51   : > { %v2285_v11 = vrot.slane %v763_v31, %v2126_v43  ;;  %2938 = vst [vmem:[#allocation15_spill] sm:$0xff] %v2288_v16  ;;  %2939 = vst [vmem:[#allocation16_spill] sm:$0xff] %v2291_v17  ;;  %v1006_v7 = vor.u32 %v1853_v55, %v1852_v53  ;;  %v2308_v16 = vrot.slane %v844_v46, %v2126_v43  ;;  %v1860_v31 = vld [vmem:[%s2116_s24 + $0x3b] ss:$8 sm:$0xf] }
  0x52   : > { %2940 = vst [vmem:[#allocation17_spill] sm:$0xff] %v2296_v27  ;;  %2941 = vst [vmem:[#allocation18_spill] sm:$0xff] %v2299_v36  ;;  %v2311_v17 = vrot.slane %v844_v46, %v2128_v44  ;;  %v2314_v27 = vrot.slane %v844_v46, %v2130_v45  ;;  %v1861_v36 = vld [vmem:[%s2116_s24 + $0x3b] ss:$8 sm:$0xf0]  ;;  %v2319_v1 = vrot.slane %v844_v46, %v2134_v49 }
  0x53   : > { %2937 = vst [vmem:[#allocation14_spill] sm:$0xff] %v2285_v11  ;;  %v2305_v11 = vrot.slane %v844_v46, %v2122_v40  ;;  %2944 = vst [vmem:[#allocation21_spill] sm:$0xff] %v2308_v16  ;;  %v2322_v53 = vrot.slane %v844_v46, %v2136_v50  ;;  %v2325_v55 = vrot.slane %v925_v6, %v2120_v39  ;;  %v1864_v46 = vld [vmem:[%s2116_s24 + $0x3c] ss:$8 sm:$0xf] }
  0x54   : > { %2945 = vst [vmem:[#allocation22_spill] sm:$0xff] %v2311_v17  ;;  %2946 = vst [vmem:[#allocation23_spill] sm:$0xff] %v2314_v27  ;;  %v2328_v16 = vrot.slane %v925_v6, %v2122_v40  ;;  %v2331_v17 = vrot.slane %v925_v6, %v2126_v43  ;;  %v2334_v27 = vrot.slane %v925_v6, %v2128_v44 }
  0x55   : > { %2943 = vst [vmem:[#allocation20_spill] sm:$0xff] %v2305_v11  ;;  %2947 = vst [vmem:[#allocation24_spill] sm:$0xff] %v2319_v1  ;;  %v1087_v11 = vor.u32 %v1857_v26, %v1856_v21  ;;  %v2337_v1 = vrot.slane %v925_v6, %v2130_v45  ;;  %v2345_v21 = vrot.slane %v925_v6, %v2136_v50  ;;  %v1868_v6 = vld [vmem:[%s2116_s24 + $0x3d] ss:$8 sm:$0xf] }
  0x56   : > { %2948 = vst [vmem:[#allocation25_spill] sm:$0xff] %v2322_v53  ;;  %2949 = vst [vmem:[#allocation26_spill] sm:$0xff] %v2325_v55  ;;  %v1865_v53 = vld [vmem:[%s2116_s24 + $0x3c] ss:$8 sm:$0xf0]  ;;  %v2348_v26 = vrot.slane %v1006_v7, %v2120_v39  ;;  %v2360_v37 = vrot.slane %v1006_v7, %v2130_v45  ;;  %v2365_v55 = vrot.slane %v1006_v7, %v2134_v49 }
  0x57   : > { %2950 = vst [vmem:[#allocation27_spill] sm:$0xff] %v2328_v16  ;;  %2951 = vst [vmem:[#allocation28_spill] sm:$0xff] %v2331_v17  ;;  %v1168_v16 = vor.u32 %v1861_v36, %v1860_v31  ;;  %v2351_v17 = vrot.slane %v1006_v7, %v2122_v40  ;;  %v2368_v36 = vrot.slane %v1006_v7, %v2136_v50 }
  0x58   : > { %2952 = vst [vmem:[#allocation29_spill] sm:$0xff] %v2334_v27  ;;  %2953 = vst [vmem:[#allocation30_spill] sm:$0xff] %v2337_v1  ;;  %v2354_v27 = vrot.slane %v1006_v7, %v2126_v43  ;;  %v2357_v1 = vrot.slane %v1006_v7, %v2128_v44  ;;  %v2371_v31 = vrot.slane %v1087_v11, %v2120_v39 }
  0x59   : > { %2955 = vst [vmem:[#allocation32_spill] sm:$0xff] %v2345_v21  ;;  %2956 = vst [vmem:[#allocation33_spill] sm:$0xff] %v2348_v26  ;;  %v1869_v21 = vld [vmem:[%s2116_s24 + $0x3d] ss:$8 sm:$0xf0]  ;;  %v2383_v26 = vrot.slane %v1087_v11, %v2130_v45  ;;  %v2388_v7 = vrot.slane %v1087_v11, %v2134_v49 }
  0x5a   : > { %2957 = vst [vmem:[#allocation34_spill] sm:$0xff] %v2351_v17  ;;  %2958 = vst [vmem:[#allocation35_spill] sm:$0xff] %v2354_v27  ;;  %v1249_v17 = vor.u32 %v1865_v53, %v1864_v46  ;;  %v2374_v27 = vrot.slane %v1087_v11, %v2122_v40  ;;  %v2394_v53 = vrot.slane %v1168_v16, %v2120_v39 }
  0x5b   : > { %2959 = vst [vmem:[#allocation36_spill] sm:$0xff] %v2357_v1  ;;  %2960 = vst [vmem:[#allocation37_spill] sm:$0xff] %v2360_v37  ;;  %v2377_v1 = vrot.slane %v1087_v11, %v2126_v43  ;;  %v2380_v37 = vrot.slane %v1087_v11, %v2128_v44  ;;  %v1330_v46 = vor.u32 %v1869_v21, %v1868_v6 }
  0x5c   : > { %2961 = vst [vmem:[#allocation38_spill] sm:$0xff] %v2365_v55  ;;  %2962 = vst [vmem:[#allocation39_spill] sm:$0xff] %v2368_v36  ;;  %v1872_v55 = vld [vmem:[%s2116_s24 + $0x3e] ss:$8 sm:$0xf]  ;;  %v2415_v21 = vrot.slane %v1249_v17, %v2120_v39 }
  0x5d   : > { %2963 = vst [vmem:[#allocation40_spill] sm:$0xff] %v2371_v31  ;;  %2964 = vst [vmem:[#allocation41_spill] sm:$0xff] %v2374_v27  ;;  %v2391_v31 = vrot.slane %v1087_v11, %v2136_v50  ;;  %v2409_v11 = vrot.slane %v1168_v16, %v2134_v49  ;;  %v1411_v6 = vor.u32 %v1873_v61, %v1872_v55 }
  0x5e   : > { %2965 = vst [vmem:[#allocation42_spill] sm:$0xff] %v2377_v1  ;;  %2966 = vst [vmem:[#allocation43_spill] sm:$0xff] %v2380_v37  ;;  %v2397_v1 = vrot.slane %v1168_v16, %v2122_v40  ;;  %v2400_v37 = vrot.slane %v1168_v16, %v2126_v43  ;;  %v2436_v61 = vrot.slane %v1330_v46, %v2120_v39 }
  0x5f   : > { %2967 = vst [vmem:[#allocation44_spill] sm:$0xff] %v2383_v26  ;;  %2968 = vst [vmem:[#allocation45_spill] sm:$0xff] %v2388_v7  ;;  %v2403_v26 = vrot.slane %v1168_v16, %v2128_v44  ;;  %v2406_v7 = vrot.slane %v1168_v16, %v2130_v45  ;;  %v2439_v55 = vrot.slane %v1330_v46, %v2122_v40 }
  0x60   : > { %2969 = vst [vmem:[#allocation46_spill] sm:$0xff] %v2391_v31  ;;  %2970 = vst [vmem:[#allocation47_spill] sm:$0xff] %v2394_v53  ;;  %v2412_v53 = vrot.slane %v1168_v16, %v2136_v50  ;;  %v2433_v16 = vrot.slane %v1249_v17, %v2136_v50 }
  0x61   : > { %2971 = vst [vmem:[#allocation48_spill] sm:$0xff] %v2397_v1  ;;  %2972 = vst [vmem:[#allocation49_spill] sm:$0xff] %v2400_v37  ;;  %v2418_v1 = vrot.slane %v1249_v17, %v2122_v40  ;;  %v2421_v37 = vrot.slane %v1249_v17, %v2126_v43 }
  0x62   : > { %2973 = vst [vmem:[#allocation50_spill] sm:$0xff] %v2403_v26  ;;  %2974 = vst [vmem:[#allocation51_spill] sm:$0xff] %v2406_v7  ;;  %v2424_v26 = vrot.slane %v1249_v17, %v2128_v44  ;;  %v2427_v7 = vrot.slane %v1249_v17, %v2130_v45 }
  0x63   : > { %2975 = vst [vmem:[#allocation52_spill] sm:$0xff] %v2409_v11  ;;  %2976 = vst [vmem:[#allocation53_spill] sm:$0xff] %v2412_v53  ;;  %v2430_v11 = vrot.slane %v1249_v17, %v2134_v49  ;;  %v2453_v17 = vrot.slane %v1330_v46, %v2134_v49  ;;  %v2468_v53 = vrot.slane %v1411_v6, %v2128_v44 }
  0x64   : > { %2977 = vst [vmem:[#allocation54_spill] sm:$0xff] %v2415_v21  ;;  %2978 = vst [vmem:[#allocation55_spill] sm:$0xff] %v2418_v1  ;;  %v1876_v1 = vld [vmem:[%s2116_s24 + $0x3f] ss:$8 sm:$0xf]  ;;  %v2444_v21 = vrot.slane %v1330_v46, %v2126_v43 }
  0x65   : > { %2979 = vst [vmem:[#allocation56_spill] sm:$0xff] %v2421_v37  ;;  %2980 = vst [vmem:[#allocation57_spill] sm:$0xff] %v2424_v26  ;;  %v1877_v37 = vld [vmem:[%s2116_s24 + $0x3f] ss:$8 sm:$0xf0]  ;;  %v2447_v26 = vrot.slane %v1330_v46, %v2128_v44 }
  0x66   : > { %2981 = vst [vmem:[#allocation58_spill] sm:$0xff] %v2427_v7  ;;  %2982 = vst [vmem:[#allocation59_spill] sm:$0xff] %v2430_v11  ;;  %v2450_v7 = vrot.slane %v1330_v46, %v2130_v45 }
  0x67   : > { %2983 = vst [vmem:[#allocation60_spill] sm:$0xff] %v2433_v16  ;;  %2984 = vst [vmem:[#allocation61_spill] sm:$0xff] %v2436_v61  ;;  %v2456_v16 = vrot.slane %v1330_v46, %v2136_v50  ;;  %v2459_v61 = vrot.slane %v1411_v6, %v2120_v39  ;;  %v2474_v46 = vrot.slane %v1411_v6, %v2134_v49 }
  0x68   : > { %2985 = vst [vmem:[#allocation62_spill] sm:$0xff] %v2439_v55  ;;  %2986 = vst [vmem:[#allocation63_spill] sm:$0xff] %v2444_v21  ;;  %v2462_v55 = vrot.slane %v1411_v6, %v2122_v40  ;;  %v2465_v21 = vrot.slane %v1411_v6, %v2126_v43 }
  0x69   : > { %2987 = vst [vmem:[#allocation64_spill] sm:$0xff] %v2447_v26  ;;  %2988 = vst [vmem:[#allocation65_spill] sm:$0xff] %v2450_v7  ;;  %v2471_v7 = vrot.slane %v1411_v6, %v2130_v45 }
  0x6a   : > { %2989 = vst [vmem:[#allocation66_spill] sm:$0xff] %v2453_v17  ;;  %2990 = vst [vmem:[#allocation67_spill] sm:$0xff] %v2456_v16  ;;  %v1492_v16 = vor.u32 %v1877_v37, %v1876_v1 }
  0x6b   : > { %2991 = vst [vmem:[#allocation68_spill] sm:$0xff] %v2459_v61  ;;  %2992 = vst [vmem:[#allocation69_spill] sm:$0xff] %v2462_v55 }
  0x6c   : > { %2993 = vst [vmem:[#allocation70_spill] sm:$0xff] %v2465_v21  ;;  %2994 = vst [vmem:[#allocation71_spill] sm:$0xff] %v2468_v53  ;;  %v2480_v21 = vrot.slane %v1411_v6, %v2136_v50  ;;  %v2495_v52 = vrot.slane %v1492_v16, %v2122_v40  ;;  %v2498_v51 = vrot.slane %v1492_v16, %v2126_v43 }
  0x6d   : > { %2995 = vst [vmem:[#allocation72_spill] sm:$0xff] %v2471_v7  ;;  %2996 = vst [vmem:[#allocation73_spill] sm:$0xff] %v2474_v46  ;;  %v2501_v47 = vrot.slane %v1492_v16, %v2128_v44  ;;  %v2504_v42 = vrot.slane %v1492_v16, %v2130_v45  ;;  %v2507_v41 = vrot.slane %v1492_v16, %v2134_v49 }
  0x6e   : > { %2997 = vst [vmem:[#allocation74_spill] sm:$0xff] %v2480_v21  ;;  %v2492_v21 = vrot.slane %v1492_v16, %v2120_v39  ;;  %2999 = vst [vmem:[#allocation76_spill] sm:$0xff] %v2495_v52  ;;  %v2510_v38 = vrot.slane %v1492_v16, %v2136_v50 }
  0x6f   : > { %3000 = vst [vmem:[#allocation77_spill] sm:$0xff] %v2498_v51  ;;  %3001 = vst [vmem:[#allocation78_spill] sm:$0xff] %v2501_v47 }
  0x70   : > { %2998 = vst [vmem:[#allocation75_spill] sm:$0xff] %v2492_v21  ;;  %3002 = vst [vmem:[#allocation79_spill] sm:$0xff] %v2507_v41 }
  0x8f   : > { %v362_v11 = vpop.permute.xlu1 %361  ;;  %v281_v26 = vpop.permute.xlu0 %280 }
  0x90   : > { %v405_v61 = vmul.f32 %v2141_v54, %v362_v11  ;;  %v406_v17 = vmul.f32 %v2144_v56, %v362_v11  ;;  %v407_v55 = vmul.f32 %v2147_v57, %v362_v11  ;;  %v408_v31 = vmul.f32 %v2150_v58, %v362_v11 }
  0x91   : > { %v409_v53 = vmul.f32 %v2153_v59, %v362_v11  ;;  %v410_v27 = vmul.f32 %v2158_v62, %v362_v11  ;;  %v324_v7 = vmul.f32 %v2164_v0, %v281_v26  ;;  %v325_v46 = vmul.f32 %v2167_v2, %v281_v26 }
  0x92   : > { %v326_v1 = vmul.f32 %v2170_v3, %v281_v26  ;;  %v327_v37 = vmul.f32 %v2173_v4, %v281_v26  ;;  %v328_v36 = vmul.f32 %v2176_v5, %v281_v26  ;;  %v329_v60 = vmul.f32 %v2181_v8, %v281_v26 }
  0x93   : > { %v367_v6 = vpop.permute.xlu1 %366  ;;  %v286_v48 = vpop.permute.xlu0 %285  ;;  %v411_v39 = vmul.f32 %v2161_v63, %v362_v11  ;;  %v330_v40 = vmul.f32 %v2184_v9, %v281_v26  ;;  %v419_v52 = vadd.f32 %v405_v61, %v324_v7  ;;  %v420_v43 = vadd.f32 %v406_v17, %v325_v46 }
  0x94   : > { %v421_v51 = vadd.f32 %v407_v55, %v326_v1  ;;  %v422_v21 = vadd.f32 %v408_v31, %v327_v37  ;;  %v423_v35 = vadd.f32 %v409_v53, %v328_v36  ;;  %v424_v44 = vadd.f32 %v410_v27, %v329_v60 }
  0x95   : > { %v412_v47 = vmul.f32 %v2141_v54, %v367_v6  ;;  %v413_v45 = vmul.f32 %v2144_v56, %v367_v6  ;;  %v331_v49 = vmul.f32 %v2164_v0, %v286_v48  ;;  %v332_v41 = vmul.f32 %v2167_v2, %v286_v48 }
  0x96   : > { %v414_v16 = vmul.f32 %v2147_v57, %v367_v6  ;;  %v415_v11 = vmul.f32 %v2150_v58, %v367_v6  ;;  %v333_v26 = vmul.f32 %v2170_v3, %v286_v48  ;;  %v334_v7 = vmul.f32 %v2173_v4, %v286_v48 }
  0x97   : > { %v448_v50 = vpop.permute.xlu1 %447  ;;  %v416_v36 = vmul.f32 %v2153_v59, %v367_v6  ;;  %v417_v60 = vmul.f32 %v2158_v62, %v367_v6  ;;  %v335_v54 = vmul.f32 %v2176_v5, %v286_v48  ;;  %v336_v56 = vmul.f32 %v2181_v8, %v286_v48  ;;  %v443_v59 = vpop.permute.xlu0 %442 }
  0x98   : > { %v425_v0 = vadd.f32 %v411_v39, %v330_v40  ;;  %v418_v2 = vmul.f32 %v2161_v63, %v367_v6  ;;  %v337_v27 = vmul.f32 %v2184_v9, %v286_v48  ;;  %v493_v57 = vmul.f32 %v2187_v10, %v448_v50 }
  0x99   : > { %v426_v58 = vadd.f32 %v412_v47, %v331_v49  ;;  %v427_v31 = vadd.f32 %v413_v45, %v332_v41  ;;  %v494_v3 = vmul.f32 %v2190_v12, %v448_v50  ;;  %v495_v4 = vmul.f32 %v2193_v13, %v448_v50 }
  0x9a   : > { %v428_v53 = vadd.f32 %v414_v16, %v333_v26  ;;  %v429_v62 = vadd.f32 %v415_v11, %v334_v7  ;;  %v496_v5 = vmul.f32 %v2196_v14, %v448_v50  ;;  %v497_v8 = vmul.f32 %v2199_v15, %v448_v50 }
  0x9b   : > { %v430_v61 = vadd.f32 %v416_v36, %v335_v54  ;;  %v431_v55 = vadd.f32 %v417_v60, %v336_v56  ;;  %v498_v63 = vmul.f32 %v2204_v18, %v448_v50  ;;  %v499_v9 = vmul.f32 %v2207_v19, %v448_v50  ;;  %v529_v46 = vpop.permute.xlu1 %528  ;;  %v524_v60 = vpop.permute.xlu0 %523 }
  0x9c   : > { %v432_v48 = vadd.f32 %v418_v2, %v337_v27  ;;  %v507_v47 = vadd.f32 %v493_v57, %v426_v58  ;;  %v486_v41 = vmul.f32 %v2187_v10, %v443_v59  ;;  %v487_v17 = vmul.f32 %v2190_v12, %v443_v59 }
  0x9d   : > { %v508_v1 = vadd.f32 %v494_v3, %v427_v31  ;;  %v509_v37 = vadd.f32 %v495_v4, %v428_v53  ;;  %v488_v6 = vmul.f32 %v2193_v13, %v443_v59  ;;  %v489_v39 = vmul.f32 %v2196_v14, %v443_v59 }
  0x9e   : > { %v510_v40 = vadd.f32 %v496_v5, %v429_v62  ;;  %v511_v45 = vadd.f32 %v497_v8, %v430_v61  ;;  %v490_v49 = vmul.f32 %v2199_v15, %v443_v59  ;;  %v491_v16 = vmul.f32 %v2204_v18, %v443_v59 }
  0x9f   : > { %v512_v50 = vadd.f32 %v498_v63, %v431_v55  ;;  %v513_v11 = vadd.f32 %v499_v9, %v432_v48  ;;  %v492_v26 = vmul.f32 %v2207_v19, %v443_v59  ;;  %v574_v10 = vmul.f32 %v2210_v20, %v529_v46  ;;  %v610_v31 = vpop.permute.xlu1 %609  ;;  %v605_v55 = vpop.permute.xlu0 %604 }
  0xa0   : > { %v500_v12 = vadd.f32 %v486_v41, %v419_v52  ;;  %v501_v7 = vadd.f32 %v487_v17, %v420_v43  ;;  %v575_v36 = vmul.f32 %v2213_v22, %v529_v46  ;;  %v576_v13 = vmul.f32 %v2216_v23, %v529_v46  ;;  %v3004_v41 = vld [vmem:[#allocation3_spill] sm:$0xff] }
  0xa1   : > { %v502_v14 = vadd.f32 %v488_v6, %v421_v51  ;;  %v503_v54 = vadd.f32 %v489_v39, %v422_v21  ;;  %v577_v56 = vmul.f32 %v2219_v24, %v529_v46  ;;  %v578_v15 = vmul.f32 %v2222_v25, %v529_v46 }
  0xa2   : > { %v504_v18 = vadd.f32 %v490_v49, %v423_v35  ;;  %v505_v2 = vadd.f32 %v491_v16, %v424_v44  ;;  %v579_v27 = vmul.f32 %v2227_v28, %v529_v46  ;;  %v580_v19 = vmul.f32 %v2230_v29, %v529_v46 }
  0xa3   : > { %v506_v57 = vadd.f32 %v492_v26, %v425_v0  ;;  %v588_v52 = vadd.f32 %v574_v10, %v507_v47  ;;  %v567_v43 = vmul.f32 %v2210_v20, %v524_v60  ;;  %v568_v58 = vmul.f32 %v2213_v22, %v524_v60 }
  0xa4   : > { %v589_v3 = vadd.f32 %v575_v36, %v508_v1  ;;  %v590_v51 = vadd.f32 %v576_v13, %v509_v37  ;;  %v569_v21 = vmul.f32 %v2216_v23, %v524_v60  ;;  %v570_v4 = vmul.f32 %v2219_v24, %v524_v60 }
  0xa5   : > { %v591_v59 = vadd.f32 %v577_v56, %v510_v40  ;;  %v592_v35 = vadd.f32 %v578_v15, %v511_v45  ;;  %v571_v44 = vmul.f32 %v2222_v25, %v524_v60  ;;  %v572_v53 = vmul.f32 %v2227_v28, %v524_v60  ;;  %v3003_v25 = vld [vmem:[#allocation2_spill] sm:$0xff]  ;;  %v691_v40 = vpop.permute.xlu1 %690  ;;  %v3008_v15 = vld [vmem:[#allocation7_spill] sm:$0xff] }
  0xa6   : > { %v593_v62 = vadd.f32 %v579_v27, %v512_v50  ;;  %v594_v0 = vadd.f32 %v580_v19, %v513_v11  ;;  %v573_v5 = vmul.f32 %v2230_v29, %v524_v60  ;;  %v655_v20 = vmul.f32 %v2233_v30, %v610_v31  ;;  %v3005_v29 = vld [vmem:[#allocation4_spill] sm:$0xff] }
  0xa7   : > { %v581_v22 = vadd.f32 %v567_v43, %v500_v12  ;;  %v582_v8 = vadd.f32 %v568_v58, %v501_v7  ;;  %v656_v61 = vmul.f32 %v2236_v32, %v610_v31  ;;  %v657_v23 = vmul.f32 %v2239_v33, %v610_v31  ;;  %v3009_v27 = vld [vmem:[#allocation8_spill] sm:$0xff] }
  0xa8   : > { %v583_v24 = vadd.f32 %v569_v21, %v502_v14  ;;  %v584_v63 = vadd.f32 %v570_v4, %v503_v54  ;;  %v658_v9 = vmul.f32 %v2242_v34, %v610_v31  ;;  %v659_v48 = vmul.f32 %v3003_v25, %v610_v31  ;;  %v3007_v54 = vld [vmem:[#allocation6_spill] sm:$0xff] }
  0xa9   : > { %v585_v28 = vadd.f32 %v571_v44, %v504_v18  ;;  %v586_v47 = vadd.f32 %v572_v53, %v505_v2  ;;  %v660_v17 = vmul.f32 %v3004_v41, %v610_v31  ;;  %v661_v46 = vmul.f32 %v3005_v29, %v610_v31  ;;  %v686_v18 = vpop.permute.xlu0 %685  ;;  %v3011_v31 = vld [vmem:[#allocation10_spill] sm:$0xff]  ;;  %v772_v53 = vpop.permute.xlu1 %771 }
  0xaa   : > { %v587_v1 = vadd.f32 %v573_v5, %v506_v57  ;;  %v669_v37 = vadd.f32 %v655_v20, %v588_v52  ;;  %v648_v6 = vmul.f32 %v2233_v30, %v605_v55  ;;  %v649_v39 = vmul.f32 %v2236_v32, %v605_v55  ;;  %v3006_v30 = vld [vmem:[#allocation5_spill] sm:$0xff] }
  0xab   : > { %v670_v45 = vadd.f32 %v656_v61, %v589_v3  ;;  %v671_v49 = vadd.f32 %v657_v23, %v590_v51  ;;  %v650_v16 = vmul.f32 %v2239_v33, %v605_v55  ;;  %v651_v50 = vmul.f32 %v2242_v34, %v605_v55  ;;  %v3010_v57 = vld [vmem:[#allocation9_spill] sm:$0xff]  ;;  %v3012_v51 = vld [vmem:[#allocation11_spill] sm:$0xff] }
  0xac   : > { %v672_v11 = vadd.f32 %v658_v9, %v591_v59  ;;  %v673_v26 = vadd.f32 %v659_v48, %v592_v35  ;;  %v652_v10 = vmul.f32 %v3003_v25, %v605_v55  ;;  %v653_v12 = vmul.f32 %v3004_v41, %v605_v55  ;;  %v3013_v9 = vld [vmem:[#allocation12_spill] sm:$0xff] }
  0xad   : > { %v674_v7 = vadd.f32 %v660_v17, %v593_v62  ;;  %v675_v36 = vadd.f32 %v661_v46, %v594_v0  ;;  %v654_v13 = vmul.f32 %v3005_v29, %v605_v55  ;;  %v736_v60 = vmul.f32 %v3006_v30, %v691_v40  ;;  %v3015_v17 = vld [vmem:[#allocation14_spill] sm:$0xff]  ;;  %v767_v46 = vpop.permute.xlu0 %766 }
  0xae   : > { %v662_v32 = vadd.f32 %v648_v6, %v581_v22  ;;  %v663_v14 = vadd.f32 %v649_v39, %v582_v8  ;;  %v737_v56 = vmul.f32 %v3007_v54, %v691_v40  ;;  %v738_v33 = vmul.f32 %v3008_v15, %v691_v40  ;;  %v3016_v6 = vld [vmem:[#allocation15_spill] sm:$0xff] }
  0xaf   : > { %v664_v34 = vadd.f32 %v650_v16, %v583_v24  ;;  %v665_v2 = vadd.f32 %v651_v50, %v584_v63  ;;  %v739_v19 = vmul.f32 %v3009_v27, %v691_v40  ;;  %v740_v52 = vmul.f32 %v3010_v57, %v691_v40  ;;  %v3018_v50 = vld [vmem:[#allocation17_spill] sm:$0xff] }
  0xb0   : > { %v666_v43 = vadd.f32 %v652_v10, %v585_v28  ;;  %v667_v58 = vadd.f32 %v653_v12, %v586_v47  ;;  %v741_v3 = vmul.f32 %v3011_v31, %v691_v40  ;;  %v742_v21 = vmul.f32 %v3012_v51, %v691_v40  ;;  %v3014_v47 = vld [vmem:[#allocation13_spill] sm:$0xff]  ;;  %v3017_v40 = vld [vmem:[#allocation16_spill] sm:$0xff] }
  0xb1   : > { %v668_v4 = vadd.f32 %v654_v13, %v587_v1  ;;  %v750_v59 = vadd.f32 %v736_v60, %v669_v37  ;;  %v729_v35 = vmul.f32 %v3006_v30, %v686_v18  ;;  %v730_v44 = vmul.f32 %v3007_v54, %v686_v18  ;;  %v853_v30 = vpop.permute.xlu1 %852 }
  0xb2   : > { %v751_v62 = vadd.f32 %v737_v56, %v670_v45  ;;  %v752_v0 = vadd.f32 %v738_v33, %v671_v49  ;;  %v731_v5 = vmul.f32 %v3008_v15, %v686_v18  ;;  %v732_v20 = vmul.f32 %v3009_v27, %v686_v18 }
  0xb3   : > { %v753_v22 = vadd.f32 %v739_v19, %v672_v11  ;;  %v754_v8 = vadd.f32 %v740_v52, %v673_v26  ;;  %v733_v61 = vmul.f32 %v3010_v57, %v686_v18  ;;  %v734_v23 = vmul.f32 %v3011_v31, %v686_v18  ;;  %v3019_v26 = vld [vmem:[#allocation18_spill] sm:$0xff]  ;;  %v3020_v19 = vld [vmem:[#allocation19_spill] sm:$0xff] }
  0xb4   : > { %v755_v55 = vadd.f32 %v741_v3, %v674_v7  ;;  %v756_v24 = vadd.f32 %v742_v21, %v675_v36  ;;  %v735_v63 = vmul.f32 %v3012_v51, %v686_v18  ;;  %v817_v25 = vmul.f32 %v3013_v9, %v772_v53  ;;  %v3022_v3 = vld [vmem:[#allocation21_spill] sm:$0xff]  ;;  %v848_v21 = vpop.permute.xlu0 %847 }
  0xb5   : > { %v743_v48 = vadd.f32 %v729_v35, %v662_v32  ;;  %v744_v28 = vadd.f32 %v730_v44, %v663_v14  ;;  %v818_v41 = vmul.f32 %v3014_v47, %v772_v53  ;;  %v819_v29 = vmul.f32 %v3015_v17, %v772_v53  ;;  %v3023_v35 = vld [vmem:[#allocation22_spill] sm:$0xff] }
  0xb6   : > { %v745_v1 = vadd.f32 %v731_v5, %v664_v34  ;;  %v746_v37 = vadd.f32 %v732_v20, %v665_v2  ;;  %v820_v39 = vmul.f32 %v3016_v6, %v772_v53  ;;  %v821_v45 = vmul.f32 %v3017_v40, %v772_v53  ;;  %v3025_v20 = vld [vmem:[#allocation24_spill] sm:$0xff] }
  0xb7   : > { %v747_v49 = vadd.f32 %v733_v61, %v666_v43  ;;  %v748_v16 = vadd.f32 %v734_v23, %v667_v58  ;;  %v822_v11 = vmul.f32 %v3018_v50, %v772_v53  ;;  %v823_v10 = vmul.f32 %v3019_v26, %v772_v53  ;;  %v3021_v58 = vld [vmem:[#allocation20_spill] sm:$0xff]  ;;  %v3024_v53 = vld [vmem:[#allocation23_spill] sm:$0xff] }
  0xb8   : > { %v749_v12 = vadd.f32 %v735_v63, %v668_v4  ;;  %v831_v7 = vadd.f32 %v817_v25, %v750_v59  ;;  %v810_v36 = vmul.f32 %v3013_v9, %v767_v46  ;;  %v811_v13 = vmul.f32 %v3014_v47, %v767_v46  ;;  %v934_v9 = vpop.permute.xlu1 %933 }
  0xb9   : > { %v832_v60 = vadd.f32 %v818_v41, %v751_v62  ;;  %v833_v32 = vadd.f32 %v819_v29, %v752_v0  ;;  %v812_v14 = vmul.f32 %v3015_v17, %v767_v46  ;;  %v813_v54 = vmul.f32 %v3016_v6, %v767_v46 }
  0xba   : > { %v834_v56 = vadd.f32 %v820_v39, %v753_v22  ;;  %v835_v15 = vadd.f32 %v821_v45, %v754_v8  ;;  %v814_v33 = vmul.f32 %v3017_v40, %v767_v46  ;;  %v815_v18 = vmul.f32 %v3018_v50, %v767_v46  ;;  %v3026_v8 = vld [vmem:[#allocation25_spill] sm:$0xff]  ;;  %v3027_v39 = vld [vmem:[#allocation26_spill] sm:$0xff]  ;;  %v3029_v50 = vld [vmem:[#allocation28_spill] sm:$0xff] }
  0xbb   : > { %v836_v34 = vadd.f32 %v822_v11, %v755_v55  ;;  %v837_v2 = vadd.f32 %v823_v10, %v756_v24  ;;  %v816_v27 = vmul.f32 %v3019_v26, %v767_v46  ;;  %v898_v57 = vmul.f32 %v3020_v19, %v853_v30  ;;  %v3030_v26 = vld [vmem:[#allocation29_spill] sm:$0xff] }
  0xbc   : > { %v824_v52 = vadd.f32 %v810_v36, %v743_v48  ;;  %v825_v43 = vadd.f32 %v811_v13, %v744_v28  ;;  %v899_v31 = vmul.f32 %v3021_v58, %v853_v30  ;;  %v900_v51 = vmul.f32 %v3022_v3, %v853_v30 }
  0xbd   : > { %v826_v4 = vadd.f32 %v812_v14, %v745_v1  ;;  %v827_v59 = vadd.f32 %v813_v54, %v746_v37  ;;  %v901_v44 = vmul.f32 %v3023_v35, %v853_v30  ;;  %v902_v62 = vmul.f32 %v3024_v53, %v853_v30  ;;  %v3032_v54 = vld [vmem:[#allocation31_spill] sm:$0xff] }
  0xbe   : > { %v828_v0 = vadd.f32 %v814_v33, %v747_v49  ;;  %v829_v5 = vadd.f32 %v815_v18, %v748_v16  ;;  %v903_v22 = vmul.f32 %v3025_v20, %v853_v30  ;;  %v904_v61 = vmul.f32 %v3026_v8, %v853_v30  ;;  %v3028_v49 = vld [vmem:[#allocation27_spill] sm:$0xff]  ;;  %v3031_v30 = vld [vmem:[#allocation30_spill] sm:$0xff] }
  0xbf   : > { %v830_v23 = vadd.f32 %v816_v27, %v749_v12  ;;  %v912_v55 = vadd.f32 %v898_v57, %v831_v7  ;;  %v913_v24 = vadd.f32 %v899_v31, %v832_v60  ;;  %v891_v63 = vmul.f32 %v3020_v19, %v848_v21  ;;  %v929_v12 = vpop.permute.xlu0 %928  ;;  %v1015_v19 = vpop.permute.xlu1 %1014 }
  0xc0   : > { %v914_v25 = vadd.f32 %v900_v51, %v833_v32  ;;  %v892_v48 = vmul.f32 %v3021_v58, %v848_v21  ;;  %v893_v28 = vmul.f32 %v3022_v3, %v848_v21  ;;  %v894_v47 = vmul.f32 %v3023_v35, %v848_v21 }
  0xc1   : > { %v915_v41 = vadd.f32 %v901_v44, %v834_v56  ;;  %v916_v17 = vadd.f32 %v902_v62, %v835_v15  ;;  %v895_v29 = vmul.f32 %v3024_v53, %v848_v21  ;;  %v896_v46 = vmul.f32 %v3025_v20, %v848_v21  ;;  %v3033_v15 = vld [vmem:[#allocation32_spill] sm:$0xff]  ;;  %v3034_v44 = vld [vmem:[#allocation33_spill] sm:$0xff]  ;;  %v3036_v20 = vld [vmem:[#allocation35_spill] sm:$0xff] }
  0xc2   : > { %v917_v1 = vadd.f32 %v903_v22, %v836_v34  ;;  %v918_v37 = vadd.f32 %v904_v61, %v837_v2  ;;  %v897_v6 = vmul.f32 %v3026_v8, %v848_v21  ;;  %v979_v40 = vmul.f32 %v3027_v39, %v934_v9  ;;  %v3037_v8 = vld [vmem:[#allocation36_spill] sm:$0xff] }
  0xc3   : > { %v905_v45 = vadd.f32 %v891_v63, %v824_v52  ;;  %v980_v16 = vmul.f32 %v3028_v49, %v934_v9  ;;  %v981_v11 = vmul.f32 %v3029_v50, %v934_v9  ;;  %v982_v10 = vmul.f32 %v3030_v26, %v934_v9  ;;  %v3038_v63 = vld [vmem:[#allocation37_spill] sm:$0xff] }
  0xc4   : > { %v906_v7 = vadd.f32 %v892_v48, %v825_v43  ;;  %v907_v36 = vadd.f32 %v893_v28, %v826_v4  ;;  %v908_v13 = vadd.f32 %v894_v47, %v827_v59  ;;  %v983_v60 = vmul.f32 %v3031_v30, %v934_v9 }
  0xc5   : > { %v909_v32 = vadd.f32 %v895_v29, %v828_v0  ;;  %v910_v14 = vadd.f32 %v896_v46, %v829_v5  ;;  %v984_v56 = vmul.f32 %v3032_v54, %v934_v9  ;;  %v985_v33 = vmul.f32 %v3033_v15, %v934_v9  ;;  %v3035_v0 = vld [vmem:[#allocation34_spill] sm:$0xff] }
  0xc6   : > { %v911_v18 = vadd.f32 %v897_v6, %v830_v23  ;;  %v993_v34 = vadd.f32 %v979_v40, %v912_v55  ;;  %v994_v2 = vadd.f32 %v980_v16, %v913_v24  ;;  %v972_v27 = vmul.f32 %v3027_v39, %v929_v12  ;;  %v1010_v23 = vpop.permute.xlu0 %1009  ;;  %v1096_v39 = vpop.permute.xlu1 %1095 }
  0xc7   : > { %v995_v57 = vadd.f32 %v981_v11, %v914_v25  ;;  %v996_v52 = vadd.f32 %v982_v10, %v915_v41  ;;  %v973_v43 = vmul.f32 %v3028_v49, %v929_v12  ;;  %v974_v58 = vmul.f32 %v3029_v50, %v929_v12  ;;  %v3039_v25 = vld [vmem:[#allocation38_spill] sm:$0xff] }
  0xc8   : > { %v997_v31 = vadd.f32 %v983_v60, %v916_v17  ;;  %v975_v3 = vmul.f32 %v3030_v26, %v929_v12  ;;  %v976_v51 = vmul.f32 %v3031_v30, %v929_v12  ;;  %v977_v21 = vmul.f32 %v3032_v54, %v929_v12  ;;  %v3040_v17 = vld [vmem:[#allocation39_spill] sm:$0xff] }
  0xc9   : > { %v998_v4 = vadd.f32 %v984_v56, %v917_v1  ;;  %v999_v59 = vadd.f32 %v985_v33, %v918_v37  ;;  %v978_v35 = vmul.f32 %v3033_v15, %v929_v12  ;;  %v1060_v53 = vmul.f32 %v3034_v44, %v1015_v19  ;;  %v3043_v56 = vld [vmem:[#allocation42_spill] sm:$0xff]  ;;  %v3044_v33 = vld [vmem:[#allocation43_spill] sm:$0xff] }
  0xca   : > { %v986_v62 = vadd.f32 %v972_v27, %v905_v45  ;;  %v1061_v5 = vmul.f32 %v3035_v0, %v1015_v19  ;;  %v1062_v22 = vmul.f32 %v3036_v20, %v1015_v19  ;;  %v1063_v61 = vmul.f32 %v3037_v8, %v1015_v19  ;;  %v1091_v60 = vpop.permute.xlu0 %1090  ;;  %v3045_v27 = vld [vmem:[#allocation44_spill] sm:$0xff] }
  0xcb   : > { %v987_v55 = vadd.f32 %v973_v43, %v906_v7  ;;  %v988_v24 = vadd.f32 %v974_v58, %v907_v36  ;;  %v1064_v9 = vmul.f32 %v3038_v63, %v1015_v19  ;;  %v1065_v48 = vmul.f32 %v3039_v25, %v1015_v19 }
  0xcc   : > { %v989_v28 = vadd.f32 %v975_v3, %v908_v13  ;;  %v990_v47 = vadd.f32 %v976_v51, %v909_v32  ;;  %v991_v41 = vadd.f32 %v977_v21, %v910_v14  ;;  %v1066_v29 = vmul.f32 %v3040_v17, %v1015_v19  ;;  %v3041_v13 = vld [vmem:[#allocation40_spill] sm:$0xff]  ;;  %v3042_v14 = vld [vmem:[#allocation41_spill] sm:$0xff] }
  0xcd   : > { %v992_v46 = vadd.f32 %v978_v35, %v911_v18  ;;  %v1074_v1 = vadd.f32 %v1060_v53, %v993_v34  ;;  %v1075_v37 = vadd.f32 %v1061_v5, %v994_v2  ;;  %v1053_v6 = vmul.f32 %v3034_v44, %v1010_v23  ;;  %v1177_v5 = vpop.permute.xlu1 %1176 }
  0xce   : > { %v1076_v40 = vadd.f32 %v1062_v22, %v995_v57  ;;  %v1077_v45 = vadd.f32 %v1063_v61, %v996_v52  ;;  %v1054_v49 = vmul.f32 %v3035_v0, %v1010_v23  ;;  %v1055_v16 = vmul.f32 %v3036_v20, %v1010_v23  ;;  %v3046_v57 = vld [vmem:[#allocation45_spill] sm:$0xff] }
  0xcf   : > { %v1078_v50 = vadd.f32 %v1064_v9, %v997_v31  ;;  %v1079_v11 = vadd.f32 %v1065_v48, %v998_v4  ;;  %v1056_v26 = vmul.f32 %v3037_v8, %v1010_v23  ;;  %v1057_v10 = vmul.f32 %v3038_v63, %v1010_v23  ;;  %v3047_v31 = vld [vmem:[#allocation46_spill] sm:$0xff]  ;;  %v1172_v9 = vpop.permute.xlu0 %1171 }
  0xd0   : > { %v1080_v12 = vadd.f32 %v1066_v29, %v999_v59  ;;  %v1058_v7 = vmul.f32 %v3039_v25, %v1010_v23  ;;  %v1059_v36 = vmul.f32 %v3040_v17, %v1010_v23  ;;  %v1141_v30 = vmul.f32 %v3041_v13, %v1096_v39  ;;  %v3048_v25 = vld [vmem:[#allocation47_spill] sm:$0xff]  ;;  %v3051_v29 = vld [vmem:[#allocation50_spill] sm:$0xff] }
  0xd1   : > { %v1067_v32 = vadd.f32 %v1053_v6, %v986_v62  ;;  %v1142_v54 = vmul.f32 %v3042_v14, %v1096_v39  ;;  %v1143_v15 = vmul.f32 %v3043_v56, %v1096_v39  ;;  %v1144_v18 = vmul.f32 %v3044_v33, %v1096_v39  ;;  %v3052_v6 = vld [vmem:[#allocation51_spill] sm:$0xff] }
  0xd2   : > { %v1068_v34 = vadd.f32 %v1054_v49, %v987_v55  ;;  %v1069_v2 = vadd.f32 %v1055_v16, %v988_v24  ;;  %v1145_v19 = vmul.f32 %v3045_v27, %v1096_v39  ;;  %v1146_v52 = vmul.f32 %v3046_v57, %v1096_v39 }
  0xd3   : > { %v1070_v43 = vadd.f32 %v1056_v26, %v989_v28  ;;  %v1071_v58 = vadd.f32 %v1057_v10, %v990_v47  ;;  %v1147_v3 = vmul.f32 %v3047_v31, %v1096_v39  ;;  %v1134_v51 = vmul.f32 %v3041_v13, %v1091_v60  ;;  %v3049_v28 = vld [vmem:[#allocation48_spill] sm:$0xff] }
  0xd4   : > { %v1072_v21 = vadd.f32 %v1058_v7, %v991_v41  ;;  %v1073_v4 = vadd.f32 %v1059_v36, %v992_v46  ;;  %v1155_v59 = vadd.f32 %v1141_v30, %v1074_v1  ;;  %v1156_v35 = vadd.f32 %v1142_v54, %v1075_v37  ;;  %v3050_v41 = vld [vmem:[#allocation49_spill] sm:$0xff] }
  0xd5   : > { %v1157_v44 = vadd.f32 %v1143_v15, %v1076_v40  ;;  %v1158_v53 = vadd.f32 %v1144_v18, %v1077_v45  ;;  %v1135_v62 = vmul.f32 %v3042_v14, %v1091_v60  ;;  %v1136_v0 = vmul.f32 %v3043_v56, %v1091_v60  ;;  %v3053_v40 = vld [vmem:[#allocation52_spill] sm:$0xff]  ;;  %v1258_v14 = vpop.permute.xlu1 %1257 }
  0xd6   : > { %v1159_v20 = vadd.f32 %v1145_v19, %v1078_v50  ;;  %v1160_v22 = vadd.f32 %v1146_v52, %v1079_v11  ;;  %v1137_v8 = vmul.f32 %v3044_v33, %v1091_v60  ;;  %v1138_v61 = vmul.f32 %v3045_v27, %v1091_v60  ;;  %v3054_v50 = vld [vmem:[#allocation53_spill] sm:$0xff]  ;;  %v1253_v19 = vpop.permute.xlu0 %1252 }
  0xd7   : > { %v1161_v23 = vadd.f32 %v1147_v3, %v1080_v12  ;;  %v1139_v55 = vmul.f32 %v3046_v57, %v1091_v60  ;;  %v1140_v24 = vmul.f32 %v3047_v31, %v1091_v60  ;;  %v1148_v63 = vadd.f32 %v1134_v51, %v1067_v32  ;;  %v3056_v31 = vld [vmem:[#allocation55_spill] sm:$0xff]  ;;  %v3057_v51 = vld [vmem:[#allocation56_spill] sm:$0xff] }
  0xd8   : > { %v1222_v48 = vmul.f32 %v3048_v25, %v1177_v5  ;;  %v1223_v47 = vmul.f32 %v3049_v28, %v1177_v5  ;;  %v1224_v17 = vmul.f32 %v3050_v41, %v1177_v5  ;;  %v1225_v46 = vmul.f32 %v3051_v29, %v1177_v5 }
  0xd9   : > { %v1149_v1 = vadd.f32 %v1135_v62, %v1068_v34  ;;  %v1150_v37 = vadd.f32 %v1136_v0, %v1069_v2  ;;  %v1226_v39 = vmul.f32 %v3052_v6, %v1177_v5  ;;  %v1227_v45 = vmul.f32 %v3053_v40, %v1177_v5 }
  0xda   : > { %v1151_v49 = vadd.f32 %v1137_v8, %v1070_v43  ;;  %v1152_v16 = vadd.f32 %v1138_v61, %v1071_v58  ;;  %v1228_v11 = vmul.f32 %v3054_v50, %v1177_v5  ;;  %v1215_v26 = vmul.f32 %v3048_v25, %v1172_v9  ;;  %v3055_v43 = vld [vmem:[#allocation54_spill] sm:$0xff] }
  0xdb   : > { %v1153_v10 = vadd.f32 %v1139_v55, %v1072_v21  ;;  %v1154_v12 = vadd.f32 %v1140_v24, %v1073_v4  ;;  %v1216_v7 = vmul.f32 %v3049_v28, %v1172_v9  ;;  %v1217_v36 = vmul.f32 %v3050_v41, %v1172_v9  ;;  %v3058_v4 = vld [vmem:[#allocation57_spill] sm:$0xff] }
  0xdc   : > { %v1236_v13 = vadd.f32 %v1222_v48, %v1155_v59  ;;  %v1237_v30 = vadd.f32 %v1223_v47, %v1156_v35  ;;  %v1238_v60 = vadd.f32 %v1224_v17, %v1157_v44  ;;  %v1239_v32 = vadd.f32 %v1225_v46, %v1158_v53  ;;  %v3059_v35 = vld [vmem:[#allocation58_spill] sm:$0xff]  ;;  %v3060_v53 = vld [vmem:[#allocation59_spill] sm:$0xff] }
  0xdd   : > { %v1240_v54 = vadd.f32 %v1226_v39, %v1159_v20  ;;  %v1241_v56 = vadd.f32 %v1227_v45, %v1160_v22  ;;  %v1218_v15 = vmul.f32 %v3051_v29, %v1172_v9  ;;  %v1219_v33 = vmul.f32 %v3052_v6, %v1172_v9  ;;  %v3061_v20 = vld [vmem:[#allocation60_spill] sm:$0xff]  ;;  %v1334_v39 = vpop.permute.xlu0 %1333 }
  0xde   : > { %v1242_v18 = vadd.f32 %v1228_v11, %v1161_v23  ;;  %v1220_v34 = vmul.f32 %v3053_v40, %v1172_v9  ;;  %v1221_v2 = vmul.f32 %v3054_v50, %v1172_v9  ;;  %v1229_v27 = vadd.f32 %v1215_v26, %v1148_v63  ;;  %v1339_v63 = vpop.permute.xlu1 %1338  ;;  %v3063_v26 = vld [vmem:[#allocation62_spill] sm:$0xff] }
  0xdf   : > { %v1230_v57 = vadd.f32 %v1216_v7, %v1149_v1  ;;  %v1231_v52 = vadd.f32 %v1217_v36, %v1150_v37  ;;  %v1303_v58 = vmul.f32 %v3055_v43, %v1258_v14  ;;  %v1304_v3 = vmul.f32 %v3056_v31, %v1258_v14  ;;  %v3065_v36 = vld [vmem:[#allocation64_spill] sm:$0xff] }
  0xe0   : > { %v1305_v21 = vmul.f32 %v3057_v51, %v1258_v14  ;;  %v1306_v59 = vmul.f32 %v3058_v4, %v1258_v14  ;;  %v1307_v44 = vmul.f32 %v3059_v35, %v1258_v14  ;;  %v1308_v62 = vmul.f32 %v3060_v53, %v1258_v14 }
  0xe1   : > { %v1232_v0 = vadd.f32 %v1218_v15, %v1151_v49  ;;  %v1233_v5 = vadd.f32 %v1219_v33, %v1152_v16  ;;  %v1309_v22 = vmul.f32 %v3061_v20, %v1258_v14  ;;  %v1296_v8 = vmul.f32 %v3055_v43, %v1253_v19  ;;  %v3062_v16 = vld [vmem:[#allocation61_spill] sm:$0xff] }
  0xe2   : > { %v1234_v61 = vadd.f32 %v1220_v34, %v1153_v10  ;;  %v1235_v23 = vadd.f32 %v1221_v2, %v1154_v12  ;;  %v1297_v55 = vmul.f32 %v3056_v31, %v1253_v19  ;;  %v1298_v24 = vmul.f32 %v3057_v51, %v1253_v19  ;;  %v3064_v12 = vld [vmem:[#allocation63_spill] sm:$0xff]  ;;  %v1420_v33 = vpop.permute.xlu1 %1419 }
  0xe3   : > { %v1317_v9 = vadd.f32 %v1303_v58, %v1236_v13  ;;  %v1318_v25 = vadd.f32 %v1304_v3, %v1237_v30  ;;  %v1299_v48 = vmul.f32 %v3058_v4, %v1253_v19  ;;  %v1300_v28 = vmul.f32 %v3059_v35, %v1253_v19  ;;  %v3066_v30 = vld [vmem:[#allocation65_spill] sm:$0xff] }
  0xe4   : > { %v1319_v47 = vadd.f32 %v1305_v21, %v1238_v60  ;;  %v1320_v41 = vadd.f32 %v1306_v59, %v1239_v32  ;;  %v1321_v17 = vadd.f32 %v1307_v44, %v1240_v54  ;;  %v1322_v29 = vadd.f32 %v1308_v62, %v1241_v56  ;;  %v3067_v32 = vld [vmem:[#allocation66_spill] sm:$0xff]  ;;  %v3068_v54 = vld [vmem:[#allocation67_spill] sm:$0xff]  ;;  %v1415_v44 = vpop.permute.xlu0 %1414 }
  0xe5   : > { %v1323_v46 = vadd.f32 %v1309_v22, %v1242_v18  ;;  %v1301_v1 = vmul.f32 %v3060_v53, %v1253_v19  ;;  %v1302_v37 = vmul.f32 %v3061_v20, %v1253_v19  ;;  %v1310_v6 = vadd.f32 %v1296_v8, %v1229_v27 }
  0xe6   : > { %v1311_v40 = vadd.f32 %v1297_v55, %v1230_v57  ;;  %v1312_v45 = vadd.f32 %v1298_v24, %v1231_v52  ;;  %v1313_v49 = vadd.f32 %v1299_v48, %v1232_v0  ;;  %v1384_v50 = vmul.f32 %v3062_v16, %v1339_v63  ;;  %v1501_v24 = vpop.permute.xlu1 %1500 }
  0xe7   : > { %v1314_v11 = vadd.f32 %v1300_v28, %v1233_v5  ;;  %v1385_v10 = vmul.f32 %v3063_v26, %v1339_v63  ;;  %v1386_v7 = vmul.f32 %v3064_v12, %v1339_v63  ;;  %v1387_v13 = vmul.f32 %v3065_v36, %v1339_v63  ;;  %v3069_v5 = vld [vmem:[#allocation68_spill] sm:$0xff] }
  0xe8   : > { %v1388_v60 = vmul.f32 %v3066_v30, %v1339_v63  ;;  %v1389_v14 = vmul.f32 %v3067_v32, %v1339_v63  ;;  %v1390_v56 = vmul.f32 %v3068_v54, %v1339_v63  ;;  %v1377_v15 = vmul.f32 %v3062_v16, %v1334_v39  ;;  %v3071_v63 = vld [vmem:[#allocation70_spill] sm:$0xff]  ;;  %v3073_v28 = vld [vmem:[#allocation72_spill] sm:$0xff] }
  0xe9   : > { %v1315_v18 = vadd.f32 %v1301_v1, %v1234_v61  ;;  %v1316_v34 = vadd.f32 %v1302_v37, %v1235_v23  ;;  %v1378_v2 = vmul.f32 %v3063_v26, %v1334_v39  ;;  %v1379_v27 = vmul.f32 %v3064_v12, %v1334_v39  ;;  %v3070_v23 = vld [vmem:[#allocation69_spill] sm:$0xff]  ;;  %v3079_v12 = vld [vmem:[#allocation78_spill] sm:$0xff] }
  0xea   : > { %v1380_v19 = vmul.f32 %v3065_v36, %v1334_v39  ;;  %v1381_v57 = vmul.f32 %v3066_v30, %v1334_v39  ;;  %v1382_v52 = vmul.f32 %v3067_v32, %v1334_v39  ;;  %v1383_v43 = vmul.f32 %v3068_v54, %v1334_v39  ;;  %v3078_v26 = vld [vmem:[#allocation77_spill] sm:$0xff] }
  0xeb   : > { %v1398_v58 = vadd.f32 %v1384_v50, %v1317_v9  ;;  %v1399_v31 = vadd.f32 %v1385_v10, %v1318_v25  ;;  %v1400_v3 = vadd.f32 %v1386_v7, %v1319_v47  ;;  %v1401_v51 = vadd.f32 %v1387_v13, %v1320_v41  ;;  %v3072_v25 = vld [vmem:[#allocation71_spill] sm:$0xff]  ;;  %v3074_v41 = vld [vmem:[#allocation73_spill] sm:$0xff]  ;;  %v3077_v50 = vld [vmem:[#allocation76_spill] sm:$0xff]  ;;  %v1496_v13 = vpop.permute.xlu0 %1495 }
  0xec   : > { %v1402_v21 = vadd.f32 %v1388_v60, %v1321_v17  ;;  %v1403_v4 = vadd.f32 %v1389_v14, %v1322_v29  ;;  %v1404_v59 = vadd.f32 %v1390_v56, %v1323_v46  ;;  %v2696_v35 = vadd.f32 %v1377_v15, %v1310_v6  ;;  %v3075_v29 = vld [vmem:[#allocation74_spill] sm:$0xff]  ;;  %v3080_v60 = vld [vmem:[#allocation79_spill] sm:$0xff]  ;;  %v1577_v56 = vpop.permute.xlu1 %1576 }
  0xed   : > { %v2698_v53 = vadd.f32 %v1378_v2, %v1311_v40  ;;  %v2700_v62 = vadd.f32 %v1379_v27, %v1312_v45  ;;  %v2702_v0 = vadd.f32 %v1380_v19, %v1313_v49  ;;  %v1465_v20 = vmul.f32 %v3069_v5, %v1420_v33  ;;  %v3076_v49 = vld [vmem:[#allocation75_spill] sm:$0xff] }
  0xee   : > { %v2705_v22 = vadd.f32 %v1381_v57, %v1314_v11  ;;  %v2707_v8 = vadd.f32 %v1382_v52, %v1315_v18  ;;  %v2709_v61 = vadd.f32 %v1383_v43, %v1316_v34  ;;  %v1466_v55 = vmul.f32 %v3070_v23, %v1420_v33 }
  0xef   : > { %v1467_v9 = vmul.f32 %v3071_v63, %v1420_v33  ;;  %v1468_v48 = vmul.f32 %v3072_v25, %v1420_v33  ;;  %v1469_v47 = vmul.f32 %v3073_v28, %v1420_v33  ;;  %v1470_v17 = vmul.f32 %v3074_v41, %v1420_v33 }
  0xf0   : > { %v1471_v46 = vmul.f32 %v3075_v29, %v1420_v33  ;;  %v1458_v1 = vmul.f32 %v3069_v5, %v1415_v44  ;;  %v1459_v37 = vmul.f32 %v3070_v23, %v1415_v44  ;;  %v1460_v6 = vmul.f32 %v3071_v63, %v1415_v44  ;;  %v1602_v23 = vld [vmem:[%s2743_s26 + $0x48] sm:$0xff] }
  0xf1   : > { %v2721_v39 = vmul.f32 %v3072_v25, %v1415_v44  ;;  %v2724_v40 = vmul.f32 %v3073_v28, %v1415_v44  ;;  %v2727_v45 = vmul.f32 %v3074_v41, %v1415_v44  ;;  %v1546_v16 = vmul.f32 %v3076_v49, %v1501_v24  ;;  %v1605_v25 = vld [vmem:[%s2743_s26 + $0x60] sm:$0xff] }
  0xf2   : > { %v1547_v11 = vmul.f32 %v3077_v50, %v1501_v24  ;;  %v1548_v10 = vmul.f32 %v3078_v26, %v1501_v24  ;;  %v1549_v7 = vmul.f32 %v3079_v12, %v1501_v24  ;;  %v1550_v36 = vmul.f32 %v2504_v42, %v1501_v24 }
  0xf3   : > { %v2735_v30 = vmul.f32 %v3075_v29, %v1415_v44  ;;  %v1551_v32 = vmul.f32 %v3080_v60, %v1501_v24  ;;  %v1552_v14 = vmul.f32 %v2510_v38, %v1501_v24  ;;  %v1479_v54 = vadd.f32 %v1465_v20, %v1398_v58  ;;  %v1600_v58 = vld [vmem:[%s2743_s26 + $0x38] sm:$0xff]  ;;  %v1601_v20 = vld [vmem:[%s2743_s26 + $0x40] sm:$0xff] }
  0xf4   : > { %v1480_v15 = vadd.f32 %v1466_v55, %v1399_v31  ;;  %v1481_v33 = vadd.f32 %v1467_v9, %v1400_v3  ;;  %v1482_v18 = vadd.f32 %v1468_v48, %v1401_v51  ;;  %v1483_v34 = vadd.f32 %v1469_v47, %v1402_v21  ;;  %v1603_v55 = vld [vmem:[%s2743_s26 + $0x50] sm:$0xff]  ;;  %v1604_v24 = vld [vmem:[%s2743_s26 + $0x58] sm:$0xff]  ;;  %v1606_v48 = vld [vmem:[%s2743_s26 + $0x68] sm:$0xff] }
  0xf5   : > { %v1539_v2 = vmul.f32 %v3076_v49, %v1496_v13  ;;  %v1484_v27 = vadd.f32 %v1470_v17, %v1403_v4  ;;  %v1485_v19 = vadd.f32 %v1471_v46, %v1404_v59  ;;  %v1560_v57 = vadd.f32 %v1546_v16, %v1479_v54 }
  0xf6   : > { %v1561_v52 = vadd.f32 %v1547_v11, %v1480_v15  ;;  %v1562_v43 = vadd.f32 %v1548_v10, %v1481_v33  ;;  %v1563_v44 = vadd.f32 %v1549_v7, %v1482_v18  ;;  %v1564_v5 = vadd.f32 %v1550_v36, %v1483_v34 }
  0xf7   : > { %v1540_v31 = vmul.f32 %v3077_v50, %v1496_v13  ;;  %v1565_v3 = vadd.f32 %v1551_v32, %v1484_v27  ;;  %v1566_v51 = vadd.f32 %v1552_v14, %v1485_v19  ;;  %v1586_v21 = vadd.f32 %v1577_v56, %v1560_v57  ;;  %v1594_v27 = vld [vmem:[%s2743_s26 + $0x8] sm:$0xff]  ;;  %v1595_v19 = vld [vmem:[%s2743_s26 + $0x10] sm:$0xff] }
  0xf8   : > { %v1587_v63 = vadd.f32 %v1577_v56, %v1561_v52  ;;  %v1588_v4 = vadd.f32 %v1577_v56, %v1562_v43  ;;  %v1589_v59 = vadd.f32 %v1577_v56, %v1563_v44  ;;  %v1590_v9 = vadd.f32 %v1577_v56, %v1564_v5  ;;  %v1597_v43 = vld [vmem:[%s2743_s26 + $0x20] sm:$0xff]  ;;  %v1598_v5 = vld [vmem:[%s2743_s26 + $0x28] sm:$0xff] }
  0xf9   : > { %v1541_v28 = vmul.f32 %v3078_v26, %v1496_v13  ;;  %v1591_v47 = vadd.f32 %v1577_v56, %v1565_v3  ;;  %v1592_v41 = vadd.f32 %v1577_v56, %v1566_v51  ;;  %v1614_v17 = vadd.f32 %v1600_v58, %v1586_v21  ;;  %v1599_v3 = vld [vmem:[%s2743_s26 + $0x30] sm:$0xff] }
  0xfa   : > { %v1615_v29 = vadd.f32 %v1601_v20, %v1587_v63  ;;  %v1616_v46 = vadd.f32 %v1602_v23, %v1588_v4  ;;  %v2755_v49 = vadd.f32 %v1603_v55, %v1589_v59  ;;  %v2757_v16 = vadd.f32 %v1604_v24, %v1590_v9 }
  0xfb   : > { %v1542_v50 = vmul.f32 %v3079_v12, %v1496_v13  ;;  %v2760_v11 = vadd.f32 %v1605_v25, %v1591_v47  ;;  %v2762_v10 = vadd.f32 %v1606_v48, %v1592_v41  ;;  %v1642_v7 = vmul.f32 0.70710677, %v1614_v17 }
  0xfc   : > { %v1543_v36 = vmul.f32 %v2504_v42, %v1496_v13  ;;  %v1544_v26 = vmul.f32 %v3080_v60, %v1496_v13  ;;  %v1545_v32 = vmul.f32 %v2510_v38, %v1496_v13  ;;  %v1472_v14 = vadd.f32 %v1458_v1, %v2696_v35 }
  0xfd   : > { %v1643_v54 = vmul.f32 0.70710677, %v1615_v29  ;;  %v1644_v56 = vmul.f32 0.70710677, %v1616_v46  ;;  %v1473_v15 = vadd.f32 %v1459_v37, %v2698_v53  ;;  %v1474_v33 = vadd.f32 %v1460_v6, %v2700_v62  ;;  %v1572_v53 = vpop.permute.xlu0 %1571 }
  0xfe   : > { %v1645_v12 = vmul.f32 0.70710677, %v2755_v49  ;;  %v1646_v18 = vmul.f32 0.70710677, %v2757_v16  ;;  %v1647_v34 = vmul.f32 0.70710677, %v2760_v11  ;;  %1908 = verf.f32 %v1642_v7 }
  0xff   : > { %v1648_v42 = vmul.f32 0.70710677, %v2762_v10  ;;  %1910 = verf.f32 %v1643_v54  ;;  %v1475_v38 = vadd.f32 %v2721_v39, %v2702_v0  ;;  %v1476_v35 = vadd.f32 %v2724_v40, %v2705_v22  ;;  %v1593_v40 = vld [vmem:[%s2743_s26] sm:$0xff] }
 0x100   : > { %1912 = verf.f32 %v1644_v56  ;;  %v1477_v62 = vadd.f32 %v2727_v45, %v2707_v8  ;;  %v1478_v1 = vadd.f32 %v2735_v30, %v2709_v61  ;;  %v1553_v37 = vadd.f32 %v1539_v2, %v1472_v14  ;;  %v1596_v30 = vld [vmem:[%s2743_s26 + $0x18] sm:$0xff] }
 0x101   : > { %1914 = verf.f32 %v1645_v12  ;;  %v1554_v6 = vadd.f32 %v1540_v31, %v1473_v15  ;;  %v1555_v13 = vadd.f32 %v1541_v28, %v1474_v33  ;;  %v1556_v60 = vadd.f32 %v1542_v50, %v1475_v38 }
 0x102   : > { %1916 = verf.f32 %v1646_v18  ;;  %v1557_v0 = vadd.f32 %v1543_v36, %v1476_v35  ;;  %v1558_v39 = vadd.f32 %v1544_v26, %v1477_v62  ;;  %v1559_v22 = vadd.f32 %v1545_v32, %v1478_v1 }
 0x103   : > { %1918 = verf.f32 %v1647_v34  ;;  %v1579_v8 = vadd.f32 %v1572_v53, %v1553_v37  ;;  %v1580_v45 = vadd.f32 %v1572_v53, %v1554_v6  ;;  %v1581_v61 = vadd.f32 %v1572_v53, %v1555_v13 }
 0x104   : > { %1920 = verf.f32 %v1648_v42  ;;  %v1582_v2 = vadd.f32 %v1572_v53, %v1556_v60  ;;  %v1583_v57 = vadd.f32 %v1572_v53, %v1557_v0  ;;  %v1584_v52 = vadd.f32 %v1572_v53, %v1558_v39 }
 0x105   : > { %v1585_v44 = vadd.f32 %v1572_v53, %v1559_v22  ;;  %v1607_v58 = vadd.f32 %v1593_v40, %v1579_v8  ;;  %v1608_v20 = vadd.f32 %v1594_v27, %v1580_v45  ;;  %v2788_v31 = vadd.f32 %v1595_v19, %v1581_v61 }
 0x106   : > { %v2791_v51 = vadd.f32 %v1596_v30, %v1582_v2  ;;  %v1628_v21 = vmul.f32 0.5, %v1614_v17  ;;  %v2793_v23 = vadd.f32 %v1597_v43, %v1583_v57  ;;  %v1629_v24 = vmul.f32 0.5, %v1615_v29 }
 0x107   : > { %v1630_v63 = vmul.f32 0.5, %v1616_v46  ;;  %v2795_v4 = vadd.f32 %v1598_v5, %v1584_v52  ;;  %v1635_v59 = vmul.f32 0.70710677, %v1607_v58  ;;  %v2797_v48 = vadd.f32 %v1599_v3, %v1585_v44 }
 0x108   : > { %v1909_v55 = vpop.eup %1908  ;;  %v1636_v28 = vmul.f32 0.70710677, %v1608_v20  ;;  %v1637_v47 = vmul.f32 0.70710677, %v2788_v31  ;;  %v1631_v17 = vmul.f32 0.5, %v2755_v49  ;;  %v1632_v7 = vmul.f32 0.5, %v2757_v16 }
 0x109   : > { %v1911_v9 = vpop.eup %1910  ;;  %v1670_v25 = vadd.f32 1.0, %v1909_v55  ;;  %v1638_v46 = vmul.f32 0.70710677, %v2791_v51  ;;  %1922 = verf.f32 %v1635_v59  ;;  %v1639_v32 = vmul.f32 0.70710677, %v2793_v23 }
 0x10a   : > { %v1913_v41 = vpop.eup %1912  ;;  %v1671_v29 = vadd.f32 1.0, %v1911_v9  ;;  %v1640_v15 = vmul.f32 0.70710677, %v2795_v4  ;;  %1924 = verf.f32 %v1636_v28  ;;  %v1641_v18 = vmul.f32 0.70710677, %v2797_v48 }
 0x10b   : > { %v1915_v50 = vpop.eup %1914  ;;  %v1672_v36 = vadd.f32 1.0, %v1913_v41  ;;  %v1684_v26 = vmul.f32 %v1670_v25, %v1628_v21  ;;  %1926 = verf.f32 %v1637_v47  ;;  %v1633_v34 = vmul.f32 0.5, %v2760_v11 }
 0x10c   : > { %v1917_v14 = vpop.eup %1916  ;;  %v1673_v54 = vadd.f32 1.0, %v1915_v50  ;;  %v1685_v56 = vmul.f32 %v1671_v29, %v1629_v24  ;;  %1928 = verf.f32 %v1638_v46  ;;  %v1634_v35 = vmul.f32 0.5, %v2762_v10 }
 0x10d   : > { %v1919_v49 = vpop.eup %1918  ;;  %v1674_v33 = vadd.f32 1.0, %v1917_v14  ;;  %v1686_v12 = vmul.f32 %v1672_v36, %v1630_v63  ;;  %1698 = vst [vmem:[%s2804_s29 + $0x38] sm:$0xff] %v1684_v26  ;;  %1930 = verf.f32 %v1639_v32  ;;  %v1621_v6 = vmul.f32 0.5, %v1607_v58 }
 0x10e   : > { %v1921_v16 = vpop.eup %1920  ;;  %v1675_v42 = vadd.f32 1.0, %v1919_v49  ;;  %v1687_v38 = vmul.f32 %v1673_v54, %v1631_v17  ;;  %1699 = vst [vmem:[%s2804_s29 + $0x40] sm:$0xff] %v1685_v56  ;;  %1932 = verf.f32 %v1640_v15  ;;  %v1622_v39 = vmul.f32 0.5, %v1608_v20 }
 0x10f   : > { %v1676_v53 = vadd.f32 1.0, %v1921_v16  ;;  %v1688_v62 = vmul.f32 %v1674_v33, %v1632_v7  ;;  %1700 = vst [vmem:[%s2804_s29 + $0x48] sm:$0xff] %v1686_v12  ;;  %1934 = verf.f32 %v1641_v18  ;;  %v1623_v27 = vmul.f32 0.5, %v2788_v31 }
 0x110   : > { %v1689_v1 = vmul.f32 %v1675_v42, %v1633_v34  ;;  %1701 = vst [vmem:[%s2804_s29 + $0x50] sm:$0xff] %v1687_v38  ;;  %v1624_v45 = vmul.f32 0.5, %v2791_v51  ;;  %v1625_v57 = vmul.f32 0.5, %v2793_v23  ;;  %v1626_v5 = vmul.f32 0.5, %v2795_v4 }
 0x111   : > { %v1690_v37 = vmul.f32 %v1676_v53, %v1634_v35  ;;  %1702 = vst [vmem:[%s2804_s29 + $0x58] sm:$0xff] %v1688_v62  ;;  %v1627_v31 = vmul.f32 0.5, %v2797_v48 }
 0x112   : > { %1703 = vst [vmem:[%s2804_s29 + $0x60] sm:$0xff] %v1689_v1 }
 0x113   : > { %1704 = vst [vmem:[%s2804_s29 + $0x68] sm:$0xff] %v1690_v37  ;;  %v1923_v11 = vpop.eup %1922 }
 0x114   : > { %v1663_v13 = vadd.f32 1.0, %v1923_v11  ;;  %v1925_v60 = vpop.eup %1924 }
 0x115   : > { %v1927_v0 = vpop.eup %1926  ;;  %v1664_v10 = vadd.f32 1.0, %v1925_v60 }
 0x116   : > { %v1677_v22 = vmul.f32 %v1663_v13, %v1621_v6  ;;  %v1929_v40 = vpop.eup %1928  ;;  %v1665_v19 = vadd.f32 1.0, %v1927_v0 }
 0x117   : > { %v1931_v8 = vpop.eup %1930  ;;  %v1666_v61 = vadd.f32 1.0, %v1929_v40  ;;  %v1678_v30 = vmul.f32 %v1664_v10, %v1622_v39 }
 0x118   : > { %1691 = vst [vmem:[%s2804_s29] sm:$0xff] %v1677_v22  ;;  %v1933_v2 = vpop.eup %1932  ;;  %v1667_v52 = vadd.f32 1.0, %v1931_v8  ;;  %v1679_v43 = vmul.f32 %v1665_v19, %v1623_v27 }
 0x119   : > { %v1935_v44 = vpop.eup %1934  ;;  %v1668_v58 = vadd.f32 1.0, %v1933_v2  ;;  %v1680_v20 = vmul.f32 %v1666_v61, %v1624_v45  ;;  %1692 = vst [vmem:[%s2804_s29 + $0x8] sm:$0xff] %v1678_v30 }
 0x11a   : > { %v1669_v3 = vadd.f32 1.0, %v1935_v44  ;;  %v1681_v51 = vmul.f32 %v1667_v52, %v1625_v57  ;;  %1693 = vst [vmem:[%s2804_s29 + $0x10] sm:$0xff] %v1679_v43 }
 0x11b   : > { %v1682_v21 = vmul.f32 %v1668_v58, %v1626_v5  ;;  %1694 = vst [vmem:[%s2804_s29 + $0x18] sm:$0xff] %v1680_v20 }
 0x11c   : > { %v1683_v55 = vmul.f32 %v1669_v3, %v1627_v31  ;;  %1695 = vst [vmem:[%s2804_s29 + $0x20] sm:$0xff] %v1681_v51 }
 0x11d   : > { %1696 = vst [vmem:[%s2804_s29 + $0x28] sm:$0xff] %v1682_v21 }
 0x11e   : > { %1697 = vst [vmem:[%s2804_s29 + $0x30] sm:$0xff] %v1683_v55 }
 0x11f PF: > { %s14_s17 = sadd.s32 1, %s1958_s17   ;;  %s3081_s15 = smov %s1954_s16 }
 0x120   : > { %p11_p5 = scmp.ge.s32.totalorder %s14_s17, 4   ;;  %s3082_s16 = smov %s3084_s18 }
 0x122   :  { %13 = sbr.rel (!%p11_p5) target bundleno = 2 (0x2), region = 99 }

// kernel: _lambda_.18
= control target key start
LH: loop header
LB: loop body
LE: loop exit
PB: predicated region body
PF: predicated region fallthrough
CT: control target
= control target key end

     0   :  { %s1888_s15 = smov 0   ;;  %s1890_s16 = smov 0   ;;  %s2696_s0 = inlined_call_operand.vmem [shape: f32[2,16,896], index: 0, kind: input, shape index: {}, may-alias: {0,4}]   ;;  %s2697_s1 = inlined_call_operand.vmem [shape: f32[2,16,896], index: 1, kind: input, shape index: {}]   ;;  %s2698_s2 = inlined_call_operand.vmem [shape: f32[16,16,1], index: 2, kind: input, shape index: {}]   ;;  %s2699_s3 = inlined_call_operand.vmem [shape: f32[16,1], index: 3, kind: input, shape index: {}]   ;;  %s2700_s4 = inlined_call_operand.vmem [shape: f32[2,16,896], index: 4, kind: output, shape index: {}, may-alias: {0,4}]  }
   0x1   :  { %s1892_s17 = smov 0  }
   0x2 LB: > { %s26_s18 = sadd.s32 1, %s1856_s16  ;;  %p1744_p0 = scmp.ge.s32.totalorder %s1860_s17, 1  ;;  %s1860_s17 = sphi %s1892_s17, %s14_s17   ;;  %s1856_s16 = sphi %s1890_s16, %s2933_s16   ;;  %s1852_s15 = sphi %s1888_s15, %s2932_s15  }
   0x3   : > { %p28_p1 = scmp.ge.s32.totalorder %s26_s18, 2  ;;  %p200_p2 = scmp.lt.s32.totalorder %s1860_s17, 3 }
   0x5   : > { %s2935_s18 = smov (%p28_p1, %s26_s18), 0  ;;  %p201_p3 = pnand %p1744_p0, %p200_p2 }
   0x7   : > { %204 = sbr.rel (%p201_p3) target bundleno = 265 (0x109), region = 36 }
   0xe   : > { %v1748_v0 = vld [vmem:[%s2698_s2 + $0x10] sm:$0xff]  ;;  %v273_v1 = vld [vmem:[%s2698_s2] sm:$0xff]  ;;  %v1862_v2 = vmov 0   ;;  %v1749_v3 = vld [vmem:[%s2698_s2 + $0x18] sm:$0xff]  ;;  %p244_p4 = scmp.lt.s32.totalorder %s1852_s15, 1  ;;  %v289_v35 = vlaneseq }
   0xf   : > { %1837 = vset.pattern.permute.xlu1 %v1862_v2  ;;  %1836 = vset.pattern.permute.xlu0 %v1862_v2  ;;  %v274_v4 = vld [vmem:[%s2698_s2 + $0x8] sm:$0xff]  ;;  %v1752_v6 = vld [vmem:[%s2698_s2 + $0x20] sm:$0xff]  ;;  %v1757_v7 = vld [vmem:[%s2698_s2 + $0x38] sm:$0xff] }
  0x10   : > { %361 = vperm.xlu1 %1837, %v1748_v0   ;;  %280 = vperm.xlu0 %1836, %v273_v1   ;;  %v1753_v5 = vld [vmem:[%s2698_s2 + $0x28] sm:$0xff]  ;;  %v1756_v8 = vld [vmem:[%s2698_s2 + $0x30] sm:$0xff]  ;;  %v1760_v10 = vld [vmem:[%s2698_s2 + $0x40] sm:$0xff]  ;;  %s2937_s15 = smov (!%p244_p4, %s1852_s15), 1  ;;  %v290_v36 = vshrl.u32 %v289_v35, 7 }
  0x11   : > { %v1761_v9 = vld [vmem:[%s2698_s2 + $0x48] sm:$0xff]  ;;  %v1765_v11 = vld [vmem:[%s2698_s2 + $0x58] sm:$0xff]  ;;  %v1764_v12 = vld [vmem:[%s2698_s2 + $0x50] sm:$0xff]  ;;  %s2012_s21 = smul.u32 112, %s2937_s15 }
  0x12   : > { %v1769_v13 = vld [vmem:[%s2698_s2 + $0x68] sm:$0xff]  ;;  %v1768_v14 = vld [vmem:[%s2698_s2 + $0x60] sm:$0xff]  ;;  %v1773_v15 = vld [vmem:[%s2698_s2 + $0x78] sm:$0xff]  ;;  %v2022_v39 = vsub.s32 0, %v290_v36  ;;  %v2024_v40 = vsub.s32 1, %v290_v36  ;;  %v2026_v41 = vsub.s32 2, %v290_v36 }
  0x13   : > { %v1772_v16 = vld [vmem:[%s2698_s2 + $0x70] sm:$0xff]  ;;  %v1777_v17 = vld [vmem:[%s2698_s2 + $0x88] sm:$0xff]  ;;  %v1776_v18 = vld [vmem:[%s2698_s2 + $0x80] sm:$0xff]  ;;  %s2018_s24 = scalar_lea.vmem %s2696_s0, %s2012_s21  ;;  %v2028_v42 = vsub.s32 3, %v290_v36  ;;  %v2034_v48 = vsub.s32 4, %v290_v36  ;;  %v2036_v49 = vsub.s32 5, %v290_v36  ;;  %s2644_s26 = scalar_lea.vmem %s2697_s1, %s2012_s21 }
  0x14   : > { %366 = vperm.xlu1 %1837, %v1749_v3   ;;  %285 = vperm.xlu0 %1836, %v274_v4   ;;  %v1781_v19 = vld [vmem:[%s2698_s2 + $0x98] sm:$0xff]  ;;  %v1780_v20 = vld [vmem:[%s2698_s2 + $0x90] sm:$0xff]  ;;  %v1785_v21 = vld [vmem:[%s2698_s2 + $0xa8] sm:$0xff]  ;;  %v2038_v50 = vsub.s32 6, %v290_v36  ;;  %s2655_s29 = scalar_lea.vmem %s2700_s4, %s2012_s21 }
  0x15   : > { %v1784_v22 = vld [vmem:[%s2698_s2 + $0xa0] sm:$0xff]  ;;  %v1789_v23 = vld [vmem:[%s2698_s2 + $0xb8] sm:$0xff]  ;;  %v1788_v24 = vld [vmem:[%s2698_s2 + $0xb0] sm:$0xff] }
  0x16   : > { %v1793_v25 = vld [vmem:[%s2698_s2 + $0xc8] sm:$0xff]  ;;  %v1792_v26 = vld [vmem:[%s2698_s2 + $0xc0] sm:$0xff]  ;;  %v1797_v27 = vld [vmem:[%s2698_s2 + $0xd8] sm:$0xff] }
  0x17   : > { %v1796_v28 = vld [vmem:[%s2698_s2 + $0xd0] sm:$0xff]  ;;  %v1801_v29 = vld [vmem:[%s2698_s2 + $0xe8] sm:$0xff]  ;;  %v1800_v30 = vld [vmem:[%s2698_s2 + $0xe0] sm:$0xff] }
  0x18   : > { %447 = vperm.xlu1 %1837, %v1753_v5   ;;  %442 = vperm.xlu0 %1836, %v1752_v6   ;;  %v1805_v31 = vld [vmem:[%s2698_s2 + $0xf8] sm:$0xff]  ;;  %v1804_v32 = vld [vmem:[%s2698_s2 + $0xf0] sm:$0xff]  ;;  %v1568_v33 = vld [vmem:[%s2699_s3 + $0x8] sm:$0xff] }
  0x19   : > { %v1567_v34 = vld [vmem:[%s2699_s3] sm:$0xff] }
  0x1a   : > { %v1750_v37 = vld [vmem:[%s2018_s24 + $0x1] ss:$8 sm:$0xf]  ;;  %v275_v43 = vld [vmem:[%s2018_s24] ss:$8 sm:$0xf] }
  0x1b   : > { %v1751_v38 = vld [vmem:[%s2018_s24 + $0x1] ss:$8 sm:$0xf0]  ;;  %v276_v44 = vld [vmem:[%s2018_s24] ss:$8 sm:$0xf0] }
  0x1c   : > { %528 = vperm.xlu1 %1837, %v1757_v7   ;;  %523 = vperm.xlu0 %1836, %v1756_v8   ;;  %v358_v45 = vor.u32 %v1751_v38, %v1750_v37  ;;  %v1754_v46 = vld [vmem:[%s2018_s24 + $0x2] ss:$8 sm:$0xf]  ;;  %v277_v51 = vor.u32 %v276_v44, %v275_v43  ;;  %v1758_v52 = vld [vmem:[%s2018_s24 + $0x3] ss:$8 sm:$0xf] }
  0x1d   : > { %v1755_v47 = vld [vmem:[%s2018_s24 + $0x2] ss:$8 sm:$0xf0]  ;;  %v1759_v53 = vld [vmem:[%s2018_s24 + $0x3] ss:$8 sm:$0xf0] }
  0x1e   : > { %v439_v54 = vor.u32 %v1755_v47, %v1754_v46  ;;  %v2043_v55 = vrot.slane %v358_v45, %v2022_v39  ;;  %v2046_v56 = vrot.slane %v358_v45, %v2024_v40  ;;  %v2049_v57 = vrot.slane %v358_v45, %v2026_v41  ;;  %v1762_v63 = vld [vmem:[%s2018_s24 + $0x4] ss:$8 sm:$0xf]  ;;  %v1778_v43 = vld [vmem:[%s2018_s24 + $0x38] ss:$8 sm:$0xf] }
  0x1f   : > { %v2052_v58 = vrot.slane %v358_v45, %v2028_v42  ;;  %v2055_v59 = vrot.slane %v358_v45, %v2034_v48  ;;  %v2058_v60 = vrot.slane %v358_v45, %v2036_v49  ;;  %v2061_v61 = vrot.slane %v358_v45, %v2038_v50  ;;  %v1763_v0 = vld [vmem:[%s2018_s24 + $0x4] ss:$8 sm:$0xf0]  ;;  %v1779_v44 = vld [vmem:[%s2018_s24 + $0x38] ss:$8 sm:$0xf0] }
  0x20   : > { %609 = vperm.xlu1 %1837, %v1761_v9   ;;  %604 = vperm.xlu0 %1836, %v1760_v10   ;;  %v520_v62 = vor.u32 %v1759_v53, %v1758_v52  ;;  %v2066_v1 = vrot.slane %v277_v51, %v2022_v39  ;;  %v2069_v2 = vrot.slane %v277_v51, %v2024_v40  ;;  %v1766_v9 = vld [vmem:[%s2018_s24 + $0x5] ss:$8 sm:$0xf] }
  0x21   : > { %v2072_v3 = vrot.slane %v277_v51, %v2026_v41  ;;  %v2075_v4 = vrot.slane %v277_v51, %v2028_v42  ;;  %v2078_v5 = vrot.slane %v277_v51, %v2034_v48  ;;  %v2081_v6 = vrot.slane %v277_v51, %v2036_v49  ;;  %v1767_v10 = vld [vmem:[%s2018_s24 + $0x5] ss:$8 sm:$0xf0] }
  0x22   : > { %v2084_v7 = vrot.slane %v277_v51, %v2038_v50  ;;  %v2087_v8 = vrot.slane %v439_v54, %v2022_v39 }
  0x24   : > { %690 = vperm.xlu1 %1837, %v1765_v11   ;;  %685 = vperm.xlu0 %1836, %v1764_v12   ;;  %v2092_v11 = vrot.slane %v439_v54, %v2024_v40  ;;  %v2095_v12 = vrot.slane %v439_v54, %v2026_v41 }
  0x28   : > { %771 = vperm.xlu1 %1837, %v1769_v13   ;;  %766 = vperm.xlu0 %1836, %v1768_v14   ;;  %v2098_v13 = vrot.slane %v439_v54, %v2028_v42  ;;  %v601_v14 = vor.u32 %v1763_v0, %v1762_v63  ;;  %v1782_v63 = vld [vmem:[%s2018_s24 + $0x39] ss:$8 sm:$0xf] }
  0x29   : > { %v1783_v0 = vld [vmem:[%s2018_s24 + $0x39] ss:$8 sm:$0xf0] }
  0x2a   : > { %v2147_v35 = vrot.slane %v601_v14, %v2034_v48  ;;  %v2150_v36 = vrot.slane %v601_v14, %v2036_v49  ;;  %v2153_v37 = vrot.slane %v601_v14, %v2038_v50 }
  0x2c   : > { %852 = vperm.xlu1 %1837, %v1773_v15   ;;  %847 = vperm.xlu0 %1836, %v1772_v16   ;;  %v1770_v15 = vld [vmem:[%s2018_s24 + $0x6] ss:$8 sm:$0xf]  ;;  %2778 = vst [vmem:[#allocation2_spill] sm:$0xff] %v2153_v37 }
  0x2d   : > { %v1771_v16 = vld [vmem:[%s2018_s24 + $0x6] ss:$8 sm:$0xf0] }
  0x30   : > { %933 = vperm.xlu1 %1837, %v1777_v17   ;;  %928 = vperm.xlu0 %1836, %v1776_v18   ;;  %v2103_v17 = vrot.slane %v439_v54, %v2034_v48  ;;  %v2106_v18 = vrot.slane %v439_v54, %v2036_v49 }
  0x34   : > { %1014 = vperm.xlu1 %1837, %v1781_v19   ;;  %1009 = vperm.xlu0 %1836, %v1780_v20   ;;  %v2109_v19 = vrot.slane %v439_v54, %v2038_v50  ;;  %v2112_v20 = vrot.slane %v520_v62, %v2022_v39 }
  0x38   : > { %1095 = vperm.xlu1 %1837, %v1785_v21   ;;  %1090 = vperm.xlu0 %1836, %v1784_v22   ;;  %v2115_v21 = vrot.slane %v520_v62, %v2024_v40  ;;  %v2118_v22 = vrot.slane %v520_v62, %v2026_v41 }
  0x3c   : > { %1176 = vperm.xlu1 %1837, %v1789_v23   ;;  %1171 = vperm.xlu0 %1836, %v1788_v24   ;;  %v2121_v23 = vrot.slane %v520_v62, %v2028_v42  ;;  %v682_v24 = vor.u32 %v1767_v10, %v1766_v9 }
  0x3e   : > { %v2158_v45 = vrot.slane %v682_v24, %v2022_v39  ;;  %v2161_v46 = vrot.slane %v682_v24, %v2024_v40  ;;  %v2164_v47 = vrot.slane %v682_v24, %v2026_v41  ;;  %v2167_v51 = vrot.slane %v682_v24, %v2028_v42 }
  0x3f   : > { %v2170_v52 = vrot.slane %v682_v24, %v2034_v48  ;;  %v2173_v53 = vrot.slane %v682_v24, %v2036_v49  ;;  %v2176_v54 = vrot.slane %v682_v24, %v2038_v50  ;;  %v1787_v24 = vld [vmem:[%s2018_s24 + $0x3a] ss:$8 sm:$0xf0] }
  0x40   : > { %1257 = vperm.xlu1 %1837, %v1793_v25   ;;  %1252 = vperm.xlu0 %1836, %v1792_v26   ;;  %v1774_v25 = vld [vmem:[%s2018_s24 + $0x7] ss:$8 sm:$0xf]  ;;  %2779 = vst [vmem:[#allocation3_spill] sm:$0xff] %v2158_v45  ;;  %2780 = vst [vmem:[#allocation4_spill] sm:$0xff] %v2161_v46 }
  0x41   : > { %v1775_v26 = vld [vmem:[%s2018_s24 + $0x7] ss:$8 sm:$0xf0]  ;;  %2781 = vst [vmem:[#allocation5_spill] sm:$0xff] %v2164_v47  ;;  %2782 = vst [vmem:[#allocation6_spill] sm:$0xff] %v2167_v51 }
  0x42   : > { %v844_v38 = vor.u32 %v1775_v26, %v1774_v25  ;;  %2783 = vst [vmem:[#allocation7_spill] sm:$0xff] %v2170_v52  ;;  %2784 = vst [vmem:[#allocation8_spill] sm:$0xff] %v2173_v53 }
  0x43   : > { %2785 = vst [vmem:[#allocation9_spill] sm:$0xff] %v2176_v54  ;;  %v1807_v54 = vld [vmem:[%s2018_s24 + $0x3f] ss:$8 sm:$0xf0] }
  0x44   : > { %1338 = vperm.xlu1 %1837, %v1797_v27   ;;  %1333 = vperm.xlu0 %1836, %v1796_v28   ;;  %v2126_v27 = vrot.slane %v520_v62, %v2034_v48  ;;  %v2129_v28 = vrot.slane %v520_v62, %v2036_v49 }
  0x48   : > { %1419 = vperm.xlu1 %1837, %v1801_v29   ;;  %1414 = vperm.xlu0 %1836, %v1800_v30   ;;  %v2132_v29 = vrot.slane %v520_v62, %v2038_v50  ;;  %v763_v30 = vor.u32 %v1771_v16, %v1770_v15  ;;  %v925_v15 = vor.u32 %v1779_v44, %v1778_v43  ;;  %v1786_v16 = vld [vmem:[%s2018_s24 + $0x3a] ss:$8 sm:$0xf] }
  0x49   : > { %v2213_v43 = vrot.slane %v844_v38, %v2028_v42  ;;  %v1006_v44 = vor.u32 %v1783_v0, %v1782_v63 }
  0x4a   : > { %v2179_v62 = vrot.slane %v763_v30, %v2022_v39  ;;  %v2184_v9 = vrot.slane %v763_v30, %v2024_v40  ;;  %v2187_v10 = vrot.slane %v763_v30, %v2026_v41  ;;  %v2195_v25 = vrot.slane %v763_v30, %v2034_v48 }
  0x4b   : > { %v2198_v26 = vrot.slane %v763_v30, %v2036_v49  ;;  %2796 = vst [vmem:[#allocation20_spill] sm:$0xff] %v2213_v43  ;;  %v2230_v43 = vrot.slane %v925_v15, %v2024_v40  ;;  %v2233_v63 = vrot.slane %v925_v15, %v2026_v41  ;;  %v2236_v0 = vrot.slane %v925_v15, %v2028_v42 }
  0x4c   : > { %1500 = vperm.xlu1 %1837, %v1805_v31   ;;  %1495 = vperm.xlu0 %1836, %v1804_v32   ;;  %v2135_v31 = vrot.slane %v601_v14, %v2022_v39  ;;  %v2138_v32 = vrot.slane %v601_v14, %v2024_v40  ;;  %2786 = vst [vmem:[#allocation10_spill] sm:$0xff] %v2179_v62  ;;  %2787 = vst [vmem:[#allocation11_spill] sm:$0xff] %v2184_v9 }
  0x4d   : > { %2788 = vst [vmem:[#allocation12_spill] sm:$0xff] %v2187_v10  ;;  %2790 = vst [vmem:[#allocation14_spill] sm:$0xff] %v2195_v25  ;;  %v2201_v62 = vrot.slane %v763_v30, %v2038_v50  ;;  %v2204_v9 = vrot.slane %v844_v38, %v2022_v39  ;;  %v2207_v10 = vrot.slane %v844_v38, %v2024_v40  ;;  %v1790_v25 = vld [vmem:[%s2018_s24 + $0x3b] ss:$8 sm:$0xf] }
  0x4e   : > { %2791 = vst [vmem:[#allocation15_spill] sm:$0xff] %v2198_v26  ;;  %v1791_v26 = vld [vmem:[%s2018_s24 + $0x3b] ss:$8 sm:$0xf0]  ;;  %2801 = vst [vmem:[#allocation25_spill] sm:$0xff] %v2230_v43 }
  0x4f   : > { %2792 = vst [vmem:[#allocation16_spill] sm:$0xff] %v2201_v62  ;;  %2793 = vst [vmem:[#allocation17_spill] sm:$0xff] %v2204_v9  ;;  %v2221_v62 = vrot.slane %v844_v38, %v2036_v49  ;;  %v2224_v9 = vrot.slane %v844_v38, %v2038_v50  ;;  %v1795_v43 = vld [vmem:[%s2018_s24 + $0x3c] ss:$8 sm:$0xf0] }
  0x50   : > { %1576 = vperm.xlu1 %1837, %v1568_v33   ;;  %1571 = vperm.xlu0 %1836, %v1567_v34   ;;  %v2141_v33 = vrot.slane %v601_v14, %v2026_v41  ;;  %v2144_v34 = vrot.slane %v601_v14, %v2028_v42  ;;  %v2190_v14 = vrot.slane %v763_v30, %v2028_v42 }
  0x51   : > { %2794 = vst [vmem:[#allocation18_spill] sm:$0xff] %v2207_v10  ;;  %v2218_v30 = vrot.slane %v844_v38, %v2034_v48  ;;  %2798 = vst [vmem:[#allocation22_spill] sm:$0xff] %v2221_v62  ;;  %v1087_v10 = vor.u32 %v1787_v24, %v1786_v16  ;;  %v2239_v62 = vrot.slane %v925_v15, %v2034_v48 }
  0x52   : > { %2789 = vst [vmem:[#allocation13_spill] sm:$0xff] %v2190_v14  ;;  %v2210_v14 = vrot.slane %v844_v38, %v2026_v41  ;;  %2799 = vst [vmem:[#allocation23_spill] sm:$0xff] %v2224_v9  ;;  %v2242_v38 = vrot.slane %v925_v15, %v2036_v49  ;;  %v2245_v16 = vrot.slane %v925_v15, %v2038_v50 }
  0x53   : > { %2797 = vst [vmem:[#allocation21_spill] sm:$0xff] %v2218_v30  ;;  %2802 = vst [vmem:[#allocation26_spill] sm:$0xff] %v2233_v63  ;;  %v1168_v24 = vor.u32 %v1791_v26, %v1790_v25  ;;  %v2250_v63 = vrot.slane %v1006_v44, %v2022_v39  ;;  %v2256_v9 = vrot.slane %v1006_v44, %v2026_v41 }
  0x54   : > { %2795 = vst [vmem:[#allocation19_spill] sm:$0xff] %v2210_v14  ;;  %v2227_v14 = vrot.slane %v925_v15, %v2022_v39  ;;  %2803 = vst [vmem:[#allocation27_spill] sm:$0xff] %v2236_v0  ;;  %v2253_v0 = vrot.slane %v1006_v44, %v2024_v40  ;;  %v2262_v15 = vrot.slane %v1006_v44, %v2034_v48 }
  0x55   : > { %2804 = vst [vmem:[#allocation28_spill] sm:$0xff] %v2239_v62  ;;  %2805 = vst [vmem:[#allocation29_spill] sm:$0xff] %v2242_v38  ;;  %v2259_v62 = vrot.slane %v1006_v44, %v2028_v42  ;;  %v2265_v25 = vrot.slane %v1006_v44, %v2036_v49  ;;  %v2268_v26 = vrot.slane %v1006_v44, %v2038_v50  ;;  %v1802_v38 = vld [vmem:[%s2018_s24 + $0x3e] ss:$8 sm:$0xf] }
  0x56   : > { %2800 = vst [vmem:[#allocation24_spill] sm:$0xff] %v2227_v14  ;;  %2806 = vst [vmem:[#allocation30_spill] sm:$0xff] %v2245_v16  ;;  %v1794_v14 = vld [vmem:[%s2018_s24 + $0x3c] ss:$8 sm:$0xf]  ;;  %v2293_v30 = vrot.slane %v1087_v10, %v2038_v50 }
  0x57   : > { %2807 = vst [vmem:[#allocation31_spill] sm:$0xff] %v2250_v63  ;;  %2808 = vst [vmem:[#allocation32_spill] sm:$0xff] %v2253_v0  ;;  %v2271_v63 = vrot.slane %v1087_v10, %v2022_v39  ;;  %v1798_v16 = vld [vmem:[%s2018_s24 + $0x3d] ss:$8 sm:$0xf] }
  0x58   : > { %2809 = vst [vmem:[#allocation33_spill] sm:$0xff] %v2256_v9  ;;  %2810 = vst [vmem:[#allocation34_spill] sm:$0xff] %v2259_v62  ;;  %v1799_v0 = vld [vmem:[%s2018_s24 + $0x3d] ss:$8 sm:$0xf0]  ;;  %v2276_v9 = vrot.slane %v1087_v10, %v2024_v40  ;;  %v2279_v62 = vrot.slane %v1087_v10, %v2026_v41 }
  0x59   : > { %2811 = vst [vmem:[#allocation35_spill] sm:$0xff] %v2262_v15  ;;  %2812 = vst [vmem:[#allocation36_spill] sm:$0xff] %v2265_v25  ;;  %v2282_v15 = vrot.slane %v1087_v10, %v2028_v42  ;;  %v1249_v25 = vor.u32 %v1795_v43, %v1794_v14  ;;  %v1803_v44 = vld [vmem:[%s2018_s24 + $0x3e] ss:$8 sm:$0xf0]  ;;  %v2305_v14 = vrot.slane %v1168_v24, %v2028_v42 }
  0x5a   : > { %2813 = vst [vmem:[#allocation37_spill] sm:$0xff] %v2268_v26  ;;  %2814 = vst [vmem:[#allocation38_spill] sm:$0xff] %v2271_v63  ;;  %v2287_v26 = vrot.slane %v1087_v10, %v2034_v48  ;;  %v2290_v63 = vrot.slane %v1087_v10, %v2036_v49  ;;  %v1330_v43 = vor.u32 %v1799_v0, %v1798_v16 }
  0x5b   : > { %2815 = vst [vmem:[#allocation39_spill] sm:$0xff] %v2276_v9  ;;  %2816 = vst [vmem:[#allocation40_spill] sm:$0xff] %v2279_v62  ;;  %v2296_v9 = vrot.slane %v1168_v24, %v2022_v39  ;;  %v2299_v62 = vrot.slane %v1168_v24, %v2024_v40  ;;  %v2313_v10 = vrot.slane %v1168_v24, %v2036_v49 }
  0x5c   : > { %2817 = vst [vmem:[#allocation41_spill] sm:$0xff] %v2282_v15  ;;  %2818 = vst [vmem:[#allocation42_spill] sm:$0xff] %v2287_v26  ;;  %v2302_v15 = vrot.slane %v1168_v24, %v2026_v41  ;;  %v1806_v26 = vld [vmem:[%s2018_s24 + $0x3f] ss:$8 sm:$0xf]  ;;  %v2325_v0 = vrot.slane %v1249_v25, %v2026_v41  ;;  %v2328_v16 = vrot.slane %v1249_v25, %v2028_v42 }
  0x5d   : > { %2819 = vst [vmem:[#allocation43_spill] sm:$0xff] %v2290_v63  ;;  %2820 = vst [vmem:[#allocation44_spill] sm:$0xff] %v2293_v30  ;;  %v2310_v63 = vrot.slane %v1168_v24, %v2034_v48  ;;  %v1411_v30 = vor.u32 %v1803_v44, %v1802_v38  ;;  %v2337_v38 = vrot.slane %v1249_v25, %v2038_v50 }
  0x5e   : > { %2821 = vst [vmem:[#allocation45_spill] sm:$0xff] %v2296_v9  ;;  %2822 = vst [vmem:[#allocation46_spill] sm:$0xff] %v2299_v62  ;;  %v2316_v9 = vrot.slane %v1168_v24, %v2038_v50  ;;  %v2319_v62 = vrot.slane %v1249_v25, %v2022_v39  ;;  %v1492_v24 = vor.u32 %v1807_v54, %v1806_v26 }
  0x5f   : > { %2823 = vst [vmem:[#allocation47_spill] sm:$0xff] %v2302_v15  ;;  %2824 = vst [vmem:[#allocation48_spill] sm:$0xff] %v2305_v14  ;;  %v2322_v15 = vrot.slane %v1249_v25, %v2024_v40  ;;  %v2340_v44 = vrot.slane %v1330_v43, %v2022_v39  ;;  %v2358_v54 = vrot.slane %v1330_v43, %v2038_v50 }
  0x60   : > { %2825 = vst [vmem:[#allocation49_spill] sm:$0xff] %v2310_v63  ;;  %2826 = vst [vmem:[#allocation50_spill] sm:$0xff] %v2313_v10  ;;  %v2331_v63 = vrot.slane %v1249_v25, %v2034_v48  ;;  %v2334_v10 = vrot.slane %v1249_v25, %v2036_v49  ;;  %v2361_v25 = vrot.slane %v1411_v30, %v2022_v39 }
  0x61   : > { %2827 = vst [vmem:[#allocation51_spill] sm:$0xff] %v2316_v9  ;;  %2828 = vst [vmem:[#allocation52_spill] sm:$0xff] %v2319_v62  ;;  %v2364_v26 = vrot.slane %v1411_v30, %v2024_v40  ;;  %v2414_v9 = vrot.slane %v1492_v24, %v2038_v50 }
  0x62   : > { %2829 = vst [vmem:[#allocation53_spill] sm:$0xff] %v2322_v15  ;;  %2830 = vst [vmem:[#allocation54_spill] sm:$0xff] %v2325_v0  ;;  %v2343_v15 = vrot.slane %v1330_v43, %v2024_v40  ;;  %v2346_v0 = vrot.slane %v1330_v43, %v2026_v41 }
  0x63   : > { %2831 = vst [vmem:[#allocation55_spill] sm:$0xff] %v2328_v16  ;;  %2832 = vst [vmem:[#allocation56_spill] sm:$0xff] %v2331_v63  ;;  %v2349_v16 = vrot.slane %v1330_v43, %v2028_v42  ;;  %v2352_v63 = vrot.slane %v1330_v43, %v2034_v48 }
  0x64   : > { %2833 = vst [vmem:[#allocation57_spill] sm:$0xff] %v2334_v10  ;;  %2834 = vst [vmem:[#allocation58_spill] sm:$0xff] %v2337_v38  ;;  %v2355_v10 = vrot.slane %v1330_v43, %v2036_v49  ;;  %v2379_v43 = vrot.slane %v1411_v30, %v2038_v50 }
  0x65   : > { %2835 = vst [vmem:[#allocation59_spill] sm:$0xff] %v2340_v44  ;;  %2836 = vst [vmem:[#allocation60_spill] sm:$0xff] %v2343_v15  ;;  %v2388_v15 = vrot.slane %v1492_v24, %v2026_v41 }
  0x66   : > { %2837 = vst [vmem:[#allocation61_spill] sm:$0xff] %v2346_v0  ;;  %2838 = vst [vmem:[#allocation62_spill] sm:$0xff] %v2349_v16  ;;  %v2367_v0 = vrot.slane %v1411_v30, %v2026_v41  ;;  %v2370_v16 = vrot.slane %v1411_v30, %v2028_v42 }
  0x67   : > { %2839 = vst [vmem:[#allocation63_spill] sm:$0xff] %v2352_v63  ;;  %2840 = vst [vmem:[#allocation64_spill] sm:$0xff] %v2355_v10  ;;  %v2373_v63 = vrot.slane %v1411_v30, %v2034_v48  ;;  %v2376_v10 = vrot.slane %v1411_v30, %v2036_v49  ;;  %v2397_v30 = vrot.slane %v1492_v24, %v2036_v49 }
  0x68   : > { %2841 = vst [vmem:[#allocation65_spill] sm:$0xff] %v2358_v54  ;;  %2842 = vst [vmem:[#allocation66_spill] sm:$0xff] %v2361_v25  ;;  %v2382_v25 = vrot.slane %v1492_v24, %v2022_v39 }
  0x69   : > { %2843 = vst [vmem:[#allocation67_spill] sm:$0xff] %v2364_v26  ;;  %2844 = vst [vmem:[#allocation68_spill] sm:$0xff] %v2367_v0  ;;  %v2385_v26 = vrot.slane %v1492_v24, %v2024_v40 }
  0x6a   : > { %2845 = vst [vmem:[#allocation69_spill] sm:$0xff] %v2370_v16  ;;  %2846 = vst [vmem:[#allocation70_spill] sm:$0xff] %v2373_v63  ;;  %v2391_v16 = vrot.slane %v1492_v24, %v2028_v42  ;;  %v2394_v63 = vrot.slane %v1492_v24, %v2034_v48 }
  0x6b   : > { %2847 = vst [vmem:[#allocation71_spill] sm:$0xff] %v2376_v10  ;;  %2848 = vst [vmem:[#allocation72_spill] sm:$0xff] %v2379_v43 }
  0x6c   : > { %2849 = vst [vmem:[#allocation73_spill] sm:$0xff] %v2382_v25  ;;  %2850 = vst [vmem:[#allocation74_spill] sm:$0xff] %v2385_v26 }
  0x6d   : > { %2851 = vst [vmem:[#allocation75_spill] sm:$0xff] %v2388_v15  ;;  %2852 = vst [vmem:[#allocation76_spill] sm:$0xff] %v2391_v16 }
  0x6e   : > { %2853 = vst [vmem:[#allocation77_spill] sm:$0xff] %v2394_v63  ;;  %2854 = vst [vmem:[#allocation78_spill] sm:$0xff] %v2397_v30 }
  0x8f   : > { %v362_v54 = vpop.permute.xlu1 %361  ;;  %v281_v0 = vpop.permute.xlu0 %280 }
  0x90   : > { %v405_v39 = vmul.f32 %v2043_v55, %v362_v54  ;;  %v406_v25 = vmul.f32 %v2046_v56, %v362_v54  ;;  %v407_v40 = vmul.f32 %v2049_v57, %v362_v54  ;;  %v408_v26 = vmul.f32 %v2052_v58, %v362_v54 }
  0x91   : > { %v409_v41 = vmul.f32 %v2055_v59, %v362_v54  ;;  %v410_v15 = vmul.f32 %v2058_v60, %v362_v54  ;;  %v411_v42 = vmul.f32 %v2061_v61, %v362_v54  ;;  %v324_v48 = vmul.f32 %v2066_v1, %v281_v0 }
  0x92   : > { %v325_v63 = vmul.f32 %v2069_v2, %v281_v0  ;;  %v326_v49 = vmul.f32 %v2072_v3, %v281_v0  ;;  %v327_v30 = vmul.f32 %v2075_v4, %v281_v0  ;;  %v328_v16 = vmul.f32 %v2078_v5, %v281_v0 }
  0x93   : > { %v329_v43 = vmul.f32 %v2081_v6, %v281_v0  ;;  %v330_v10 = vmul.f32 %v2084_v7, %v281_v0  ;;  %v419_v44 = vadd.f32 %v405_v39, %v324_v48  ;;  %v367_v38 = vpop.permute.xlu1 %366  ;;  %v286_v62 = vpop.permute.xlu0 %285 }
  0x94   : > { %v420_v54 = vadd.f32 %v406_v25, %v325_v63  ;;  %v421_v14 = vadd.f32 %v407_v40, %v326_v49  ;;  %v422_v53 = vadd.f32 %v408_v26, %v327_v30  ;;  %v423_v52 = vadd.f32 %v409_v41, %v328_v16 }
  0x95   : > { %v424_v51 = vadd.f32 %v410_v15, %v329_v43  ;;  %v425_v47 = vadd.f32 %v411_v42, %v330_v10  ;;  %v412_v46 = vmul.f32 %v2043_v55, %v367_v38  ;;  %v413_v45 = vmul.f32 %v2046_v56, %v367_v38 }
  0x96   : > { %v414_v37 = vmul.f32 %v2049_v57, %v367_v38  ;;  %v415_v0 = vmul.f32 %v2052_v58, %v367_v38  ;;  %v416_v39 = vmul.f32 %v2055_v59, %v367_v38  ;;  %v417_v48 = vmul.f32 %v2058_v60, %v367_v38 }
  0x97   : > { %v418_v50 = vmul.f32 %v2061_v61, %v367_v38  ;;  %v331_v63 = vmul.f32 %v2066_v1, %v286_v62  ;;  %v332_v16 = vmul.f32 %v2069_v2, %v286_v62  ;;  %v333_v15 = vmul.f32 %v2072_v3, %v286_v62  ;;  %v448_v10 = vpop.permute.xlu1 %447  ;;  %v443_v38 = vpop.permute.xlu0 %442 }
  0x98   : > { %v334_v55 = vmul.f32 %v2075_v4, %v286_v62  ;;  %v335_v56 = vmul.f32 %v2078_v5, %v286_v62  ;;  %v336_v57 = vmul.f32 %v2081_v6, %v286_v62  ;;  %v337_v58 = vmul.f32 %v2084_v7, %v286_v62 }
  0x99   : > { %v426_v59 = vadd.f32 %v412_v46, %v331_v63  ;;  %v427_v24 = vadd.f32 %v413_v45, %v332_v16  ;;  %v428_v60 = vadd.f32 %v414_v37, %v333_v15  ;;  %v493_v61 = vmul.f32 %v2087_v8, %v448_v10 }
  0x9a   : > { %v429_v1 = vadd.f32 %v415_v0, %v334_v55  ;;  %v430_v25 = vadd.f32 %v416_v39, %v335_v56  ;;  %v431_v2 = vadd.f32 %v417_v48, %v336_v57  ;;  %v432_v26 = vadd.f32 %v418_v50, %v337_v58 }
  0x9b   : > { %v494_v3 = vmul.f32 %v2092_v11, %v448_v10  ;;  %v495_v4 = vmul.f32 %v2095_v12, %v448_v10  ;;  %v496_v5 = vmul.f32 %v2098_v13, %v448_v10  ;;  %v497_v6 = vmul.f32 %v2103_v17, %v448_v10  ;;  %v529_v41 = vpop.permute.xlu1 %528  ;;  %v524_v56 = vpop.permute.xlu0 %523 }
  0x9c   : > { %v498_v7 = vmul.f32 %v2106_v18, %v448_v10  ;;  %v499_v45 = vmul.f32 %v2109_v19, %v448_v10  ;;  %v507_v37 = vadd.f32 %v493_v61, %v426_v59  ;;  %v486_v46 = vmul.f32 %v2087_v8, %v443_v38 }
  0x9d   : > { %v508_v62 = vadd.f32 %v494_v3, %v427_v24  ;;  %v509_v43 = vadd.f32 %v495_v4, %v428_v60  ;;  %v510_v30 = vadd.f32 %v496_v5, %v429_v1  ;;  %v511_v40 = vadd.f32 %v497_v6, %v430_v25 }
  0x9e   : > { %v512_v42 = vadd.f32 %v498_v7, %v431_v2  ;;  %v513_v49 = vadd.f32 %v499_v45, %v432_v26  ;;  %v487_v0 = vmul.f32 %v2092_v11, %v443_v38  ;;  %v488_v39 = vmul.f32 %v2095_v12, %v443_v38 }
  0x9f   : > { %v489_v48 = vmul.f32 %v2098_v13, %v443_v38  ;;  %v490_v50 = vmul.f32 %v2103_v17, %v443_v38  ;;  %v491_v63 = vmul.f32 %v2106_v18, %v443_v38  ;;  %v492_v16 = vmul.f32 %v2109_v19, %v443_v38  ;;  %v605_v7 = vpop.permute.xlu0 %604 }
  0xa0   : > { %v500_v8 = vadd.f32 %v486_v46, %v419_v44  ;;  %v501_v15 = vadd.f32 %v487_v0, %v420_v54  ;;  %v502_v10 = vadd.f32 %v488_v39, %v421_v14  ;;  %v574_v55 = vmul.f32 %v2112_v20, %v529_v41 }
  0xa1   : > { %v503_v57 = vadd.f32 %v489_v48, %v422_v53  ;;  %v504_v58 = vadd.f32 %v490_v50, %v423_v52  ;;  %v505_v59 = vadd.f32 %v491_v63, %v424_v51  ;;  %v506_v11 = vadd.f32 %v492_v16, %v425_v47  ;;  %v610_v47 = vpop.permute.xlu1 %609 }
  0xa2   : > { %v575_v12 = vmul.f32 %v2115_v21, %v529_v41  ;;  %v576_v13 = vmul.f32 %v2118_v22, %v529_v41  ;;  %v577_v17 = vmul.f32 %v2121_v23, %v529_v41  ;;  %v578_v18 = vmul.f32 %v2126_v27, %v529_v41 }
  0xa3   : > { %v579_v19 = vmul.f32 %v2129_v28, %v529_v41  ;;  %v580_v44 = vmul.f32 %v2132_v29, %v529_v41  ;;  %v588_v14 = vadd.f32 %v574_v55, %v507_v37  ;;  %v567_v54 = vmul.f32 %v2112_v20, %v524_v56 }
  0xa4   : > { %v589_v24 = vadd.f32 %v575_v12, %v508_v62  ;;  %v590_v53 = vadd.f32 %v576_v13, %v509_v43  ;;  %v591_v52 = vadd.f32 %v577_v17, %v510_v30  ;;  %v592_v51 = vadd.f32 %v578_v18, %v511_v40  ;;  %v2855_v62 = vld [vmem:[#allocation2_spill] sm:$0xff]  ;;  %v2857_v18 = vld [vmem:[#allocation4_spill] sm:$0xff] }
  0xa5   : > { %v593_v60 = vadd.f32 %v579_v19, %v512_v42  ;;  %v594_v61 = vadd.f32 %v580_v44, %v513_v49  ;;  %v568_v38 = vmul.f32 %v2115_v21, %v524_v56  ;;  %v569_v1 = vmul.f32 %v2118_v22, %v524_v56  ;;  %v691_v39 = vpop.permute.xlu1 %690  ;;  %v2858_v19 = vld [vmem:[#allocation5_spill] sm:$0xff]  ;;  %v2859_v44 = vld [vmem:[#allocation6_spill] sm:$0xff] }
  0xa6   : > { %v570_v25 = vmul.f32 %v2121_v23, %v524_v56  ;;  %v571_v2 = vmul.f32 %v2126_v27, %v524_v56  ;;  %v572_v26 = vmul.f32 %v2129_v28, %v524_v56  ;;  %v573_v3 = vmul.f32 %v2132_v29, %v524_v56 }
  0xa7   : > { %v581_v20 = vadd.f32 %v567_v54, %v500_v8  ;;  %v582_v4 = vadd.f32 %v568_v38, %v501_v15  ;;  %v583_v5 = vadd.f32 %v569_v1, %v502_v10  ;;  %v655_v6 = vmul.f32 %v2135_v31, %v610_v47  ;;  %v2861_v54 = vld [vmem:[#allocation8_spill] sm:$0xff] }
  0xa8   : > { %v584_v45 = vadd.f32 %v570_v25, %v503_v57  ;;  %v585_v37 = vadd.f32 %v571_v2, %v504_v58  ;;  %v586_v46 = vadd.f32 %v572_v26, %v505_v59  ;;  %v587_v21 = vadd.f32 %v573_v3, %v506_v11  ;;  %v2856_v58 = vld [vmem:[#allocation3_spill] sm:$0xff]  ;;  %v686_v11 = vpop.permute.xlu0 %685 }
  0xa9   : > { %v656_v22 = vmul.f32 %v2138_v32, %v610_v47  ;;  %v657_v23 = vmul.f32 %v2141_v33, %v610_v47  ;;  %v658_v27 = vmul.f32 %v2144_v34, %v610_v47  ;;  %v659_v28 = vmul.f32 %v2147_v35, %v610_v47  ;;  %v772_v25 = vpop.permute.xlu1 %771 }
  0xaa   : > { %v660_v29 = vmul.f32 %v2150_v36, %v610_v47  ;;  %v661_v43 = vmul.f32 %v2855_v62, %v610_v47  ;;  %v669_v30 = vadd.f32 %v655_v6, %v588_v14  ;;  %v648_v40 = vmul.f32 %v2135_v31, %v605_v7  ;;  %v2860_v14 = vld [vmem:[#allocation7_spill] sm:$0xff] }
  0xab   : > { %v670_v41 = vadd.f32 %v656_v22, %v589_v24  ;;  %v671_v42 = vadd.f32 %v657_v23, %v590_v53  ;;  %v672_v49 = vadd.f32 %v658_v27, %v591_v52  ;;  %v673_v0 = vadd.f32 %v659_v28, %v592_v51  ;;  %v2862_v53 = vld [vmem:[#allocation9_spill] sm:$0xff] }
  0xac   : > { %v674_v48 = vadd.f32 %v660_v29, %v593_v60  ;;  %v675_v50 = vadd.f32 %v661_v43, %v594_v61  ;;  %v649_v63 = vmul.f32 %v2138_v32, %v605_v7  ;;  %v650_v16 = vmul.f32 %v2141_v33, %v605_v7  ;;  %v767_v23 = vpop.permute.xlu0 %766  ;;  %v2864_v43 = vld [vmem:[#allocation11_spill] sm:$0xff] }
  0xad   : > { %v651_v8 = vmul.f32 %v2144_v34, %v605_v7  ;;  %v652_v15 = vmul.f32 %v2147_v35, %v605_v7  ;;  %v653_v10 = vmul.f32 %v2150_v36, %v605_v7  ;;  %v654_v55 = vmul.f32 %v2855_v62, %v605_v7 }
  0xae   : > { %v662_v31 = vadd.f32 %v648_v40, %v581_v20  ;;  %v663_v56 = vadd.f32 %v649_v63, %v582_v4  ;;  %v664_v57 = vadd.f32 %v650_v16, %v583_v5  ;;  %v736_v59 = vmul.f32 %v2856_v58, %v691_v39  ;;  %v2865_v40 = vld [vmem:[#allocation12_spill] sm:$0xff] }
  0xaf   : > { %v665_v12 = vadd.f32 %v651_v8, %v584_v45  ;;  %v666_v13 = vadd.f32 %v652_v15, %v585_v37  ;;  %v667_v17 = vadd.f32 %v653_v10, %v586_v46  ;;  %v668_v32 = vadd.f32 %v654_v55, %v587_v21  ;;  %v2863_v21 = vld [vmem:[#allocation10_spill] sm:$0xff]  ;;  %v2869_v63 = vld [vmem:[#allocation16_spill] sm:$0xff] }
  0xb0   : > { %v737_v33 = vmul.f32 %v2857_v18, %v691_v39  ;;  %v738_v34 = vmul.f32 %v2858_v19, %v691_v39  ;;  %v739_v35 = vmul.f32 %v2859_v44, %v691_v39  ;;  %v740_v36 = vmul.f32 %v2860_v14, %v691_v39 }
  0xb1   : > { %v741_v24 = vmul.f32 %v2861_v54, %v691_v39  ;;  %v742_v52 = vmul.f32 %v2862_v53, %v691_v39  ;;  %v750_v51 = vadd.f32 %v736_v59, %v669_v30  ;;  %v729_v47 = vmul.f32 %v2856_v58, %v686_v11 }
  0xb2   : > { %v751_v60 = vadd.f32 %v737_v33, %v670_v41  ;;  %v752_v61 = vadd.f32 %v738_v34, %v671_v42  ;;  %v753_v38 = vadd.f32 %v739_v35, %v672_v49  ;;  %v754_v1 = vadd.f32 %v740_v36, %v673_v0  ;;  %v2866_v42 = vld [vmem:[#allocation13_spill] sm:$0xff]  ;;  %v2867_v0 = vld [vmem:[#allocation14_spill] sm:$0xff] }
  0xb3   : > { %v755_v2 = vadd.f32 %v741_v24, %v674_v48  ;;  %v756_v26 = vadd.f32 %v742_v52, %v675_v50  ;;  %v730_v3 = vmul.f32 %v2857_v18, %v686_v11  ;;  %v731_v20 = vmul.f32 %v2858_v19, %v686_v11  ;;  %v2868_v48 = vld [vmem:[#allocation15_spill] sm:$0xff]  ;;  %v2871_v52 = vld [vmem:[#allocation18_spill] sm:$0xff] }
  0xb4   : > { %v732_v4 = vmul.f32 %v2859_v44, %v686_v11  ;;  %v733_v5 = vmul.f32 %v2860_v14, %v686_v11  ;;  %v734_v6 = vmul.f32 %v2861_v54, %v686_v11  ;;  %v735_v7 = vmul.f32 %v2862_v53, %v686_v11  ;;  %v2870_v44 = vld [vmem:[#allocation17_spill] sm:$0xff]  ;;  %v848_v14 = vpop.permute.xlu0 %847 }
  0xb5   : > { %v743_v45 = vadd.f32 %v729_v47, %v662_v31  ;;  %v744_v37 = vadd.f32 %v730_v3, %v663_v56  ;;  %v745_v46 = vadd.f32 %v731_v20, %v664_v57  ;;  %v817_v22 = vmul.f32 %v2863_v21, %v772_v25  ;;  %v853_v57 = vpop.permute.xlu1 %852  ;;  %v2872_v47 = vld [vmem:[#allocation19_spill] sm:$0xff] }
  0xb6   : > { %v746_v27 = vadd.f32 %v732_v4, %v665_v12  ;;  %v747_v28 = vadd.f32 %v733_v5, %v666_v13  ;;  %v748_v29 = vadd.f32 %v734_v6, %v667_v17  ;;  %v749_v62 = vadd.f32 %v735_v7, %v668_v32  ;;  %v2876_v3 = vld [vmem:[#allocation23_spill] sm:$0xff] }
  0xb7   : > { %v818_v30 = vmul.f32 %v2864_v43, %v772_v25  ;;  %v819_v41 = vmul.f32 %v2865_v40, %v772_v25  ;;  %v820_v49 = vmul.f32 %v2866_v42, %v772_v25  ;;  %v821_v39 = vmul.f32 %v2867_v0, %v772_v25 }
  0xb8   : > { %v822_v50 = vmul.f32 %v2868_v48, %v772_v25  ;;  %v823_v16 = vmul.f32 %v2869_v63, %v772_v25  ;;  %v831_v8 = vadd.f32 %v817_v22, %v750_v51  ;;  %v810_v15 = vmul.f32 %v2863_v21, %v767_v23 }
  0xb9   : > { %v832_v10 = vadd.f32 %v818_v30, %v751_v60  ;;  %v833_v55 = vadd.f32 %v819_v41, %v752_v61  ;;  %v834_v31 = vadd.f32 %v820_v49, %v753_v38  ;;  %v835_v56 = vadd.f32 %v821_v39, %v754_v1  ;;  %v2873_v61 = vld [vmem:[#allocation20_spill] sm:$0xff]  ;;  %v2874_v1 = vld [vmem:[#allocation21_spill] sm:$0xff] }
  0xba   : > { %v836_v58 = vadd.f32 %v822_v50, %v755_v2  ;;  %v837_v59 = vadd.f32 %v823_v16, %v756_v26  ;;  %v811_v11 = vmul.f32 %v2864_v43, %v767_v23  ;;  %v812_v12 = vmul.f32 %v2865_v40, %v767_v23  ;;  %v2875_v2 = vld [vmem:[#allocation22_spill] sm:$0xff]  ;;  %v2878_v16 = vld [vmem:[#allocation25_spill] sm:$0xff] }
  0xbb   : > { %v813_v13 = vmul.f32 %v2866_v42, %v767_v23  ;;  %v814_v17 = vmul.f32 %v2867_v0, %v767_v23  ;;  %v815_v32 = vmul.f32 %v2868_v48, %v767_v23  ;;  %v816_v18 = vmul.f32 %v2869_v63, %v767_v23  ;;  %v2877_v42 = vld [vmem:[#allocation24_spill] sm:$0xff]  ;;  %v929_v0 = vpop.permute.xlu0 %928 }
  0xbc   : > { %v824_v33 = vadd.f32 %v810_v15, %v743_v45  ;;  %v825_v19 = vadd.f32 %v811_v11, %v744_v37  ;;  %v826_v34 = vadd.f32 %v812_v12, %v745_v46  ;;  %v898_v35 = vmul.f32 %v2870_v44, %v853_v57  ;;  %v934_v46 = vpop.permute.xlu1 %933  ;;  %v2879_v15 = vld [vmem:[#allocation26_spill] sm:$0xff] }
  0xbd   : > { %v827_v36 = vadd.f32 %v813_v13, %v746_v27  ;;  %v828_v54 = vadd.f32 %v814_v17, %v747_v28  ;;  %v829_v24 = vadd.f32 %v815_v32, %v748_v29  ;;  %v830_v53 = vadd.f32 %v816_v18, %v749_v62  ;;  %v2883_v11 = vld [vmem:[#allocation30_spill] sm:$0xff] }
  0xbe   : > { %v899_v51 = vmul.f32 %v2871_v52, %v853_v57  ;;  %v900_v60 = vmul.f32 %v2872_v47, %v853_v57  ;;  %v901_v38 = vmul.f32 %v2873_v61, %v853_v57  ;;  %v902_v25 = vmul.f32 %v2874_v1, %v853_v57 }
  0xbf   : > { %v903_v26 = vmul.f32 %v2875_v2, %v853_v57  ;;  %v904_v20 = vmul.f32 %v2876_v3, %v853_v57  ;;  %v912_v4 = vadd.f32 %v898_v35, %v831_v8  ;;  %v891_v5 = vmul.f32 %v2870_v44, %v848_v14 }
  0xc0   : > { %v913_v6 = vadd.f32 %v899_v51, %v832_v10  ;;  %v914_v7 = vadd.f32 %v900_v60, %v833_v55  ;;  %v915_v45 = vadd.f32 %v901_v38, %v834_v31  ;;  %v916_v37 = vadd.f32 %v902_v25, %v835_v56  ;;  %v2880_v55 = vld [vmem:[#allocation27_spill] sm:$0xff]  ;;  %v2881_v56 = vld [vmem:[#allocation28_spill] sm:$0xff] }
  0xc1   : > { %v917_v21 = vadd.f32 %v903_v26, %v836_v58  ;;  %v918_v22 = vadd.f32 %v904_v20, %v837_v59  ;;  %v892_v23 = vmul.f32 %v2871_v52, %v848_v14  ;;  %v893_v27 = vmul.f32 %v2872_v47, %v848_v14  ;;  %v2882_v58 = vld [vmem:[#allocation29_spill] sm:$0xff]  ;;  %v2885_v20 = vld [vmem:[#allocation32_spill] sm:$0xff] }
  0xc2   : > { %v894_v28 = vmul.f32 %v2873_v61, %v848_v14  ;;  %v895_v29 = vmul.f32 %v2874_v1, %v848_v14  ;;  %v896_v62 = vmul.f32 %v2875_v2, %v848_v14  ;;  %v897_v43 = vmul.f32 %v2876_v3, %v848_v14  ;;  %v2884_v61 = vld [vmem:[#allocation31_spill] sm:$0xff]  ;;  %v1010_v1 = vpop.permute.xlu0 %1009 }
  0xc3   : > { %v905_v30 = vadd.f32 %v891_v5, %v824_v33  ;;  %v906_v40 = vadd.f32 %v892_v23, %v825_v19  ;;  %v907_v41 = vadd.f32 %v893_v27, %v826_v34  ;;  %v979_v49 = vmul.f32 %v2877_v42, %v934_v46  ;;  %v1015_v34 = vpop.permute.xlu1 %1014  ;;  %v2886_v5 = vld [vmem:[#allocation33_spill] sm:$0xff] }
  0xc4   : > { %v908_v39 = vadd.f32 %v894_v28, %v827_v36  ;;  %v909_v48 = vadd.f32 %v895_v29, %v828_v54  ;;  %v910_v50 = vadd.f32 %v896_v62, %v829_v24  ;;  %v911_v63 = vadd.f32 %v897_v43, %v830_v53  ;;  %v2890_v23 = vld [vmem:[#allocation37_spill] sm:$0xff] }
  0xc5   : > { %v980_v8 = vmul.f32 %v2878_v16, %v934_v46  ;;  %v981_v10 = vmul.f32 %v2879_v15, %v934_v46  ;;  %v982_v31 = vmul.f32 %v2880_v55, %v934_v46  ;;  %v983_v57 = vmul.f32 %v2881_v56, %v934_v46 }
  0xc6   : > { %v984_v59 = vmul.f32 %v2882_v58, %v934_v46  ;;  %v985_v12 = vmul.f32 %v2883_v11, %v934_v46  ;;  %v993_v13 = vadd.f32 %v979_v49, %v912_v4  ;;  %v972_v17 = vmul.f32 %v2877_v42, %v929_v0 }
  0xc7   : > { %v994_v32 = vadd.f32 %v980_v8, %v913_v6  ;;  %v995_v18 = vadd.f32 %v981_v10, %v914_v7  ;;  %v996_v33 = vadd.f32 %v982_v31, %v915_v45  ;;  %v997_v19 = vadd.f32 %v983_v57, %v916_v37  ;;  %v2887_v7 = vld [vmem:[#allocation34_spill] sm:$0xff]  ;;  %v2888_v37 = vld [vmem:[#allocation35_spill] sm:$0xff] }
  0xc8   : > { %v998_v44 = vadd.f32 %v984_v59, %v917_v21  ;;  %v999_v35 = vadd.f32 %v985_v12, %v918_v22  ;;  %v973_v14 = vmul.f32 %v2878_v16, %v929_v0  ;;  %v974_v36 = vmul.f32 %v2879_v15, %v929_v0  ;;  %v2889_v21 = vld [vmem:[#allocation36_spill] sm:$0xff]  ;;  %v2892_v12 = vld [vmem:[#allocation39_spill] sm:$0xff] }
  0xc9   : > { %v975_v54 = vmul.f32 %v2880_v55, %v929_v0  ;;  %v976_v24 = vmul.f32 %v2881_v56, %v929_v0  ;;  %v977_v53 = vmul.f32 %v2882_v58, %v929_v0  ;;  %v978_v52 = vmul.f32 %v2883_v11, %v929_v0  ;;  %v2891_v55 = vld [vmem:[#allocation38_spill] sm:$0xff]  ;;  %v1091_v56 = vpop.permute.xlu0 %1090 }
  0xca   : > { %v986_v51 = vadd.f32 %v972_v17, %v905_v30  ;;  %v987_v47 = vadd.f32 %v973_v14, %v906_v40  ;;  %v988_v60 = vadd.f32 %v974_v36, %v907_v41  ;;  %v1060_v38 = vmul.f32 %v2884_v61, %v1015_v34  ;;  %v1096_v41 = vpop.permute.xlu1 %1095  ;;  %v2893_v17 = vld [vmem:[#allocation40_spill] sm:$0xff] }
  0xcb   : > { %v989_v25 = vadd.f32 %v975_v54, %v908_v39  ;;  %v990_v2 = vadd.f32 %v976_v24, %v909_v48  ;;  %v991_v26 = vadd.f32 %v977_v53, %v910_v50  ;;  %v992_v3 = vadd.f32 %v978_v52, %v911_v63  ;;  %v2897_v14 = vld [vmem:[#allocation44_spill] sm:$0xff] }
  0xcc   : > { %v1061_v4 = vmul.f32 %v2885_v20, %v1015_v34  ;;  %v1062_v6 = vmul.f32 %v2886_v5, %v1015_v34  ;;  %v1063_v45 = vmul.f32 %v2887_v7, %v1015_v34  ;;  %v1064_v46 = vmul.f32 %v2888_v37, %v1015_v34 }
  0xcd   : > { %v1065_v22 = vmul.f32 %v2889_v21, %v1015_v34  ;;  %v1066_v27 = vmul.f32 %v2890_v23, %v1015_v34  ;;  %v1074_v28 = vadd.f32 %v1060_v38, %v993_v13  ;;  %v1053_v29 = vmul.f32 %v2884_v61, %v1010_v1 }
  0xce   : > { %v1075_v62 = vadd.f32 %v1061_v4, %v994_v32  ;;  %v1076_v43 = vadd.f32 %v1062_v6, %v995_v18  ;;  %v1077_v30 = vadd.f32 %v1063_v45, %v996_v33  ;;  %v1078_v40 = vadd.f32 %v1064_v46, %v997_v19  ;;  %v2894_v18 = vld [vmem:[#allocation41_spill] sm:$0xff]  ;;  %v2895_v19 = vld [vmem:[#allocation42_spill] sm:$0xff] }
  0xcf   : > { %v1079_v42 = vadd.f32 %v1065_v22, %v998_v44  ;;  %v1080_v49 = vadd.f32 %v1066_v27, %v999_v35  ;;  %v1054_v0 = vmul.f32 %v2885_v20, %v1010_v1  ;;  %v1055_v39 = vmul.f32 %v2886_v5, %v1010_v1  ;;  %v2896_v44 = vld [vmem:[#allocation43_spill] sm:$0xff]  ;;  %v2899_v27 = vld [vmem:[#allocation46_spill] sm:$0xff] }
  0xd0   : > { %v1056_v48 = vmul.f32 %v2887_v7, %v1010_v1  ;;  %v1057_v50 = vmul.f32 %v2888_v37, %v1010_v1  ;;  %v1058_v63 = vmul.f32 %v2889_v21, %v1010_v1  ;;  %v1059_v16 = vmul.f32 %v2890_v23, %v1010_v1  ;;  %v2898_v7 = vld [vmem:[#allocation45_spill] sm:$0xff]  ;;  %v1172_v37 = vpop.permute.xlu0 %1171 }
  0xd1   : > { %v1067_v8 = vadd.f32 %v1053_v29, %v986_v51  ;;  %v1068_v15 = vadd.f32 %v1054_v0, %v987_v47  ;;  %v1069_v10 = vadd.f32 %v1055_v39, %v988_v60  ;;  %v1141_v31 = vmul.f32 %v2891_v55, %v1096_v41  ;;  %v1177_v60 = vpop.permute.xlu1 %1176  ;;  %v2900_v29 = vld [vmem:[#allocation47_spill] sm:$0xff] }
  0xd2   : > { %v1070_v57 = vadd.f32 %v1056_v48, %v989_v25  ;;  %v1071_v58 = vadd.f32 %v1057_v50, %v990_v2  ;;  %v1072_v59 = vadd.f32 %v1058_v63, %v991_v26  ;;  %v1073_v11 = vadd.f32 %v1059_v16, %v992_v3  ;;  %v2904_v0 = vld [vmem:[#allocation51_spill] sm:$0xff] }
  0xd3   : > { %v1142_v13 = vmul.f32 %v2892_v12, %v1096_v41  ;;  %v1143_v32 = vmul.f32 %v2893_v17, %v1096_v41  ;;  %v1144_v33 = vmul.f32 %v2894_v18, %v1096_v41  ;;  %v1145_v34 = vmul.f32 %v2895_v19, %v1096_v41 }
  0xd4   : > { %v1146_v35 = vmul.f32 %v2896_v44, %v1096_v41  ;;  %v1147_v36 = vmul.f32 %v2897_v14, %v1096_v41  ;;  %v1155_v54 = vadd.f32 %v1141_v31, %v1074_v28  ;;  %v1134_v24 = vmul.f32 %v2891_v55, %v1091_v56 }
  0xd5   : > { %v1156_v53 = vadd.f32 %v1142_v13, %v1075_v62  ;;  %v1157_v52 = vadd.f32 %v1143_v32, %v1076_v43  ;;  %v1158_v51 = vadd.f32 %v1144_v33, %v1077_v30  ;;  %v1159_v47 = vadd.f32 %v1145_v34, %v1078_v40  ;;  %v2901_v43 = vld [vmem:[#allocation48_spill] sm:$0xff]  ;;  %v2902_v40 = vld [vmem:[#allocation49_spill] sm:$0xff] }
  0xd6   : > { %v1160_v61 = vadd.f32 %v1146_v35, %v1079_v42  ;;  %v1161_v38 = vadd.f32 %v1147_v36, %v1080_v49  ;;  %v1135_v1 = vmul.f32 %v2892_v12, %v1091_v56  ;;  %v1136_v25 = vmul.f32 %v2893_v17, %v1091_v56  ;;  %v2903_v42 = vld [vmem:[#allocation50_spill] sm:$0xff]  ;;  %v2906_v36 = vld [vmem:[#allocation53_spill] sm:$0xff] }
  0xd7   : > { %v1137_v2 = vmul.f32 %v2894_v18, %v1091_v56  ;;  %v1138_v26 = vmul.f32 %v2895_v19, %v1091_v56  ;;  %v1139_v3 = vmul.f32 %v2896_v44, %v1091_v56  ;;  %v1140_v20 = vmul.f32 %v2897_v14, %v1091_v56  ;;  %v2905_v18 = vld [vmem:[#allocation52_spill] sm:$0xff]  ;;  %v1253_v19 = vpop.permute.xlu0 %1252 }
  0xd8   : > { %v1148_v4 = vadd.f32 %v1134_v24, %v1067_v8  ;;  %v1149_v5 = vadd.f32 %v1135_v1, %v1068_v15  ;;  %v1150_v6 = vadd.f32 %v1136_v25, %v1069_v10  ;;  %v1222_v45 = vmul.f32 %v2898_v7, %v1177_v60  ;;  %v1258_v10 = vpop.permute.xlu1 %1257  ;;  %v2907_v24 = vld [vmem:[#allocation54_spill] sm:$0xff] }
  0xd9   : > { %v1151_v46 = vadd.f32 %v1137_v2, %v1070_v57  ;;  %v1152_v21 = vadd.f32 %v1138_v26, %v1071_v58  ;;  %v1153_v22 = vadd.f32 %v1139_v3, %v1072_v59  ;;  %v1154_v23 = vadd.f32 %v1140_v20, %v1073_v11  ;;  %v2911_v1 = vld [vmem:[#allocation58_spill] sm:$0xff] }
  0xda   : > { %v1223_v28 = vmul.f32 %v2899_v27, %v1177_v60  ;;  %v1224_v62 = vmul.f32 %v2900_v29, %v1177_v60  ;;  %v1225_v30 = vmul.f32 %v2901_v43, %v1177_v60  ;;  %v1226_v41 = vmul.f32 %v2902_v40, %v1177_v60 }
  0xdb   : > { %v1227_v49 = vmul.f32 %v2903_v42, %v1177_v60  ;;  %v1228_v39 = vmul.f32 %v2904_v0, %v1177_v60  ;;  %v1236_v48 = vadd.f32 %v1222_v45, %v1155_v54  ;;  %v1215_v50 = vmul.f32 %v2898_v7, %v1172_v37 }
  0xdc   : > { %v1237_v63 = vadd.f32 %v1223_v28, %v1156_v53  ;;  %v1238_v16 = vadd.f32 %v1224_v62, %v1157_v52  ;;  %v1239_v8 = vadd.f32 %v1225_v30, %v1158_v51  ;;  %v1240_v15 = vadd.f32 %v1226_v41, %v1159_v47  ;;  %v2908_v52 = vld [vmem:[#allocation55_spill] sm:$0xff]  ;;  %v2909_v47 = vld [vmem:[#allocation56_spill] sm:$0xff]  ;;  %v1334_v28 = vpop.permute.xlu0 %1333 }
  0xdd   : > { %v1241_v55 = vadd.f32 %v1227_v49, %v1160_v61  ;;  %v1242_v31 = vadd.f32 %v1228_v39, %v1161_v38  ;;  %v1216_v56 = vmul.f32 %v2899_v27, %v1172_v37  ;;  %v1217_v57 = vmul.f32 %v2900_v29, %v1172_v37  ;;  %v2910_v61 = vld [vmem:[#allocation57_spill] sm:$0xff]  ;;  %v2912_v30 = vld [vmem:[#allocation59_spill] sm:$0xff]  ;;  %v2913_v39 = vld [vmem:[#allocation60_spill] sm:$0xff] }
  0xde   : > { %v1218_v58 = vmul.f32 %v2901_v43, %v1172_v37  ;;  %v1219_v59 = vmul.f32 %v2902_v40, %v1172_v37  ;;  %v1220_v11 = vmul.f32 %v2903_v42, %v1172_v37  ;;  %v1221_v12 = vmul.f32 %v2904_v0, %v1172_v37 }
  0xdf   : > { %v1229_v13 = vadd.f32 %v1215_v50, %v1148_v4  ;;  %v1230_v17 = vadd.f32 %v1216_v56, %v1149_v5  ;;  %v1231_v32 = vadd.f32 %v1217_v57, %v1150_v6  ;;  %v1303_v33 = vmul.f32 %v2905_v18, %v1258_v10  ;;  %v1339_v6 = vpop.permute.xlu1 %1338  ;;  %v2914_v50 = vld [vmem:[#allocation61_spill] sm:$0xff] }
  0xe0   : > { %v1232_v34 = vadd.f32 %v1218_v58, %v1151_v46  ;;  %v1233_v44 = vadd.f32 %v1219_v59, %v1152_v21  ;;  %v1234_v35 = vadd.f32 %v1220_v11, %v1153_v22  ;;  %v1235_v14 = vadd.f32 %v1221_v12, %v1154_v23  ;;  %v2918_v56 = vld [vmem:[#allocation65_spill] sm:$0xff] }
  0xe1   : > { %v1304_v54 = vmul.f32 %v2906_v36, %v1258_v10  ;;  %v1305_v53 = vmul.f32 %v2907_v24, %v1258_v10  ;;  %v1306_v51 = vmul.f32 %v2908_v52, %v1258_v10  ;;  %v1307_v60 = vmul.f32 %v2909_v47, %v1258_v10 }
  0xe2   : > { %v1308_v38 = vmul.f32 %v2910_v61, %v1258_v10  ;;  %v1309_v25 = vmul.f32 %v2911_v1, %v1258_v10  ;;  %v1317_v2 = vadd.f32 %v1303_v33, %v1236_v48  ;;  %v1296_v26 = vmul.f32 %v2905_v18, %v1253_v19 }
  0xe3   : > { %v1318_v3 = vadd.f32 %v1304_v54, %v1237_v63  ;;  %v1319_v20 = vadd.f32 %v1305_v53, %v1238_v16  ;;  %v1320_v4 = vadd.f32 %v1306_v51, %v1239_v8  ;;  %v1321_v5 = vadd.f32 %v1307_v60, %v1240_v15  ;;  %v2915_v16 = vld [vmem:[#allocation62_spill] sm:$0xff]  ;;  %v2916_v15 = vld [vmem:[#allocation63_spill] sm:$0xff]  ;;  %v1420_v11 = vpop.permute.xlu1 %1419 }
  0xe4   : > { %v1322_v7 = vadd.f32 %v1308_v38, %v1241_v55  ;;  %v1323_v45 = vadd.f32 %v1309_v25, %v1242_v31  ;;  %v1297_v37 = vmul.f32 %v2906_v36, %v1253_v19  ;;  %v1298_v46 = vmul.f32 %v2907_v24, %v1253_v19  ;;  %v2917_v55 = vld [vmem:[#allocation64_spill] sm:$0xff]  ;;  %v2919_v51 = vld [vmem:[#allocation66_spill] sm:$0xff]  ;;  %v2920_v25 = vld [vmem:[#allocation67_spill] sm:$0xff] }
  0xe5   : > { %v1299_v21 = vmul.f32 %v2908_v52, %v1253_v19  ;;  %v1300_v22 = vmul.f32 %v2909_v47, %v1253_v19  ;;  %v1301_v23 = vmul.f32 %v2910_v61, %v1253_v19  ;;  %v1302_v27 = vmul.f32 %v2911_v1, %v1253_v19 }
  0xe6   : > { %v1310_v29 = vadd.f32 %v1296_v26, %v1229_v13  ;;  %v1311_v62 = vadd.f32 %v1297_v37, %v1230_v17  ;;  %v1312_v43 = vadd.f32 %v1298_v46, %v1231_v32  ;;  %v1384_v40 = vmul.f32 %v2912_v30, %v1339_v6  ;;  %v2921_v26 = vld [vmem:[#allocation68_spill] sm:$0xff] }
  0xe7   : > { %v1313_v41 = vadd.f32 %v1299_v21, %v1232_v34  ;;  %v1314_v42 = vadd.f32 %v1300_v22, %v1233_v44  ;;  %v1315_v49 = vadd.f32 %v1301_v23, %v1234_v35  ;;  %v1316_v0 = vadd.f32 %v1302_v27, %v1235_v14  ;;  %v1415_v44 = vpop.permute.xlu0 %1414  ;;  %v2925_v46 = vld [vmem:[#allocation72_spill] sm:$0xff] }
  0xe8   : > { %v1385_v48 = vmul.f32 %v2913_v39, %v1339_v6  ;;  %v1386_v63 = vmul.f32 %v2914_v50, %v1339_v6  ;;  %v1387_v8 = vmul.f32 %v2915_v16, %v1339_v6  ;;  %v1388_v10 = vmul.f32 %v2916_v15, %v1339_v6 }
  0xe9   : > { %v1389_v31 = vmul.f32 %v2917_v55, %v1339_v6  ;;  %v1390_v57 = vmul.f32 %v2918_v56, %v1339_v6  ;;  %v1398_v58 = vadd.f32 %v1384_v40, %v1317_v2  ;;  %v1377_v59 = vmul.f32 %v2912_v30, %v1334_v28  ;;  %v2926_v40 = vld [vmem:[#allocation73_spill] sm:$0xff] }
  0xea   : > { %v1399_v12 = vadd.f32 %v1385_v48, %v1318_v3  ;;  %v1400_v13 = vadd.f32 %v1386_v63, %v1319_v20  ;;  %v1401_v17 = vadd.f32 %v1387_v8, %v1320_v4  ;;  %v1402_v32 = vadd.f32 %v1388_v10, %v1321_v5  ;;  %v2922_v20 = vld [vmem:[#allocation69_spill] sm:$0xff]  ;;  %v2923_v5 = vld [vmem:[#allocation70_spill] sm:$0xff]  ;;  %v2929_v48 = vld [vmem:[#allocation76_spill] sm:$0xff] }
  0xeb   : > { %v1403_v18 = vadd.f32 %v1389_v31, %v1322_v7  ;;  %v1404_v33 = vadd.f32 %v1390_v57, %v1323_v45  ;;  %v1378_v19 = vmul.f32 %v2913_v39, %v1334_v28  ;;  %v1379_v34 = vmul.f32 %v2914_v50, %v1334_v28  ;;  %v1501_v7 = vpop.permute.xlu1 %1500  ;;  %v2924_v45 = vld [vmem:[#allocation71_spill] sm:$0xff]  ;;  %v2930_v63 = vld [vmem:[#allocation77_spill] sm:$0xff]  ;;  %v2931_v8 = vld [vmem:[#allocation78_spill] sm:$0xff] }
  0xec   : > { %v1380_v35 = vmul.f32 %v2915_v16, %v1334_v28  ;;  %v1381_v14 = vmul.f32 %v2916_v15, %v1334_v28  ;;  %v1382_v36 = vmul.f32 %v2917_v55, %v1334_v28  ;;  %v1383_v54 = vmul.f32 %v2918_v56, %v1334_v28 }
  0xed   : > { %v1391_v24 = vadd.f32 %v1377_v59, %v1310_v29  ;;  %v1392_v53 = vadd.f32 %v1378_v19, %v1311_v62  ;;  %v2598_v52 = vadd.f32 %v1379_v34, %v1312_v43  ;;  %v1465_v47 = vmul.f32 %v2919_v51, %v1420_v11  ;;  %v1496_v43 = vpop.permute.xlu0 %1495 }
  0xee   : > { %v2601_v60 = vadd.f32 %v1380_v35, %v1313_v41  ;;  %v2603_v61 = vadd.f32 %v1381_v14, %v1314_v42  ;;  %v2605_v38 = vadd.f32 %v1382_v36, %v1315_v49  ;;  %v2607_v1 = vadd.f32 %v1383_v54, %v1316_v0  ;;  %v2927_v42 = vld [vmem:[#allocation74_spill] sm:$0xff]  ;;  %v2928_v0 = vld [vmem:[#allocation75_spill] sm:$0xff] }
  0xef   : > { %v1466_v2 = vmul.f32 %v2920_v25, %v1420_v11  ;;  %v1467_v3 = vmul.f32 %v2921_v26, %v1420_v11  ;;  %v1468_v4 = vmul.f32 %v2922_v20, %v1420_v11  ;;  %v1469_v6 = vmul.f32 %v2923_v5, %v1420_v11 }
  0xf0   : > { %v1470_v37 = vmul.f32 %v2924_v45, %v1420_v11  ;;  %v1471_v21 = vmul.f32 %v2925_v46, %v1420_v11  ;;  %v1458_v22 = vmul.f32 %v2919_v51, %v1415_v44  ;;  %v1459_v23 = vmul.f32 %v2920_v25, %v1415_v44 }
  0xf1   : > { %v1460_v27 = vmul.f32 %v2921_v26, %v1415_v44  ;;  %v1461_v28 = vmul.f32 %v2922_v20, %v1415_v44  ;;  %v1462_v29 = vmul.f32 %v2923_v5, %v1415_v44  ;;  %v2621_v62 = vmul.f32 %v2924_v45, %v1415_v44 }
  0xf2   : > { %v2624_v30 = vmul.f32 %v2925_v46, %v1415_v44  ;;  %v1546_v41 = vmul.f32 %v2926_v40, %v1501_v7  ;;  %v1547_v49 = vmul.f32 %v2927_v42, %v1501_v7  ;;  %v1548_v39 = vmul.f32 %v2928_v0, %v1501_v7  ;;  %v1577_v44 = vpop.permute.xlu1 %1576  ;;  %v1606_v46 = vld [vmem:[%s2644_s26 + $0x68] sm:$0xff] }
  0xf3   : > { %v1549_v50 = vmul.f32 %v2929_v48, %v1501_v7  ;;  %v1550_v16 = vmul.f32 %v2930_v63, %v1501_v7  ;;  %v1551_v15 = vmul.f32 %v2931_v8, %v1501_v7  ;;  %v1552_v10 = vmul.f32 %v2414_v9, %v1501_v7 }
  0xf4   : > { %v1539_v55 = vmul.f32 %v2926_v40, %v1496_v43  ;;  %v1540_v31 = vmul.f32 %v2927_v42, %v1496_v43  ;;  %v1541_v56 = vmul.f32 %v2928_v0, %v1496_v43  ;;  %v1542_v57 = vmul.f32 %v2929_v48, %v1496_v43 }
  0xf5   : > { %v1543_v59 = vmul.f32 %v2930_v63, %v1496_v43  ;;  %v1544_v11 = vmul.f32 %v2931_v8, %v1496_v43  ;;  %v1545_v19 = vmul.f32 %v2414_v9, %v1496_v43  ;;  %v1479_v34 = vadd.f32 %v1465_v47, %v1398_v58  ;;  %v1600_v58 = vld [vmem:[%s2644_s26 + $0x38] sm:$0xff]  ;;  %v1601_v47 = vld [vmem:[%s2644_s26 + $0x40] sm:$0xff]  ;;  %v1594_v8 = vld [vmem:[%s2644_s26 + $0x8] sm:$0xff] }
  0xf6   : > { %v1480_v35 = vadd.f32 %v1466_v2, %v1399_v12  ;;  %v1481_v14 = vadd.f32 %v1467_v3, %v1400_v13  ;;  %v1482_v36 = vadd.f32 %v1468_v4, %v1401_v17  ;;  %v1483_v54 = vadd.f32 %v1469_v6, %v1402_v32  ;;  %v1602_v17 = vld [vmem:[%s2644_s26 + $0x48] sm:$0xff]  ;;  %v1603_v3 = vld [vmem:[%s2644_s26 + $0x50] sm:$0xff]  ;;  %v1604_v32 = vld [vmem:[%s2644_s26 + $0x58] sm:$0xff] }
  0xf7   : > { %v1484_v51 = vadd.f32 %v1470_v37, %v1403_v18  ;;  %v1485_v25 = vadd.f32 %v1471_v21, %v1404_v33  ;;  %v1560_v9 = vadd.f32 %v1546_v41, %v1479_v34  ;;  %v1472_v26 = vadd.f32 %v1458_v22, %v1391_v24  ;;  %v1605_v37 = vld [vmem:[%s2644_s26 + $0x60] sm:$0xff] }
  0xf8   : > { %v1561_v20 = vadd.f32 %v1547_v49, %v1480_v35  ;;  %v1562_v5 = vadd.f32 %v1548_v39, %v1481_v14  ;;  %v1563_v7 = vadd.f32 %v1549_v50, %v1482_v36  ;;  %v1564_v45 = vadd.f32 %v1550_v16, %v1483_v54  ;;  %v1572_v39 = vpop.permute.xlu0 %1571 }
  0xf9   : > { %v1565_v12 = vadd.f32 %v1551_v15, %v1484_v51  ;;  %v1566_v13 = vadd.f32 %v1552_v10, %v1485_v25  ;;  %v1586_v2 = vadd.f32 %v1577_v44, %v1560_v9  ;;  %v1473_v4 = vadd.f32 %v1459_v23, %v1392_v53 }
  0xfa   : > { %v1587_v18 = vadd.f32 %v1577_v44, %v1561_v20  ;;  %v1588_v33 = vadd.f32 %v1577_v44, %v1562_v5  ;;  %v1589_v24 = vadd.f32 %v1577_v44, %v1563_v7  ;;  %v1590_v6 = vadd.f32 %v1577_v44, %v1564_v45 }
  0xfb   : > { %v1591_v21 = vadd.f32 %v1577_v44, %v1565_v12  ;;  %v1592_v22 = vadd.f32 %v1577_v44, %v1566_v13  ;;  %v1614_v43 = vadd.f32 %v1600_v58, %v1586_v2  ;;  %v1474_v53 = vadd.f32 %v1460_v27, %v2598_v52  ;;  %v1596_v44 = vld [vmem:[%s2644_s26 + $0x18] sm:$0xff] }
  0xfc   : > { %v1615_v23 = vadd.f32 %v1601_v47, %v1587_v18  ;;  %v1616_v40 = vadd.f32 %v1602_v17, %v1588_v33  ;;  %v1617_v41 = vadd.f32 %v1603_v3, %v1589_v24  ;;  %v1618_v42 = vadd.f32 %v1604_v32, %v1590_v6 }
  0xfd   : > { %v1619_v49 = vadd.f32 %v1605_v37, %v1591_v21  ;;  %v1620_v0 = vadd.f32 %v1606_v46, %v1592_v22  ;;  %1628 = vst [vmem:[%s2655_s29 + $0x38] sm:$0xff] %v1614_v43  ;;  %v1475_v48 = vadd.f32 %v1461_v28, %v2601_v60  ;;  %v1476_v50 = vadd.f32 %v1462_v29, %v2603_v61  ;;  %v1593_v29 = vld [vmem:[%s2644_s26] sm:$0xff] }
  0xfe   : > { %1629 = vst [vmem:[%s2655_s29 + $0x40] sm:$0xff] %v1615_v23  ;;  %1630 = vst [vmem:[%s2655_s29 + $0x48] sm:$0xff] %v1616_v40  ;;  %v1477_v52 = vadd.f32 %v2621_v62, %v2605_v38  ;;  %v1478_v27 = vadd.f32 %v2624_v30, %v2607_v1  ;;  %v1553_v63 = vadd.f32 %v1539_v55, %v1472_v26  ;;  %v1595_v62 = vld [vmem:[%s2644_s26 + $0x10] sm:$0xff]  ;;  %v1597_v1 = vld [vmem:[%s2644_s26 + $0x20] sm:$0xff] }
  0xff   : > { %1631 = vst [vmem:[%s2655_s29 + $0x50] sm:$0xff] %v1617_v41  ;;  %1632 = vst [vmem:[%s2655_s29 + $0x58] sm:$0xff] %v1618_v42  ;;  %v1554_v16 = vadd.f32 %v1540_v31, %v1473_v4  ;;  %v1555_v60 = vadd.f32 %v1541_v56, %v1474_v53  ;;  %v1556_v61 = vadd.f32 %v1542_v57, %v1475_v48  ;;  %v1598_v56 = vld [vmem:[%s2644_s26 + $0x28] sm:$0xff]  ;;  %v1599_v57 = vld [vmem:[%s2644_s26 + $0x30] sm:$0xff] }
 0x100   : > { %1633 = vst [vmem:[%s2655_s29 + $0x60] sm:$0xff] %v1619_v49  ;;  %1634 = vst [vmem:[%s2655_s29 + $0x68] sm:$0xff] %v1620_v0  ;;  %v1557_v28 = vadd.f32 %v1543_v59, %v1476_v50  ;;  %v1558_v15 = vadd.f32 %v1544_v11, %v1477_v52  ;;  %v1559_v10 = vadd.f32 %v1545_v19, %v1478_v27 }
 0x101   : > { %v1579_v34 = vadd.f32 %v1572_v39, %v1553_v63  ;;  %v1580_v38 = vadd.f32 %v1572_v39, %v1554_v16  ;;  %v1581_v30 = vadd.f32 %v1572_v39, %v1555_v60  ;;  %v1582_v55 = vadd.f32 %v1572_v39, %v1556_v61 }
 0x102   : > { %v1583_v31 = vadd.f32 %v1572_v39, %v1557_v28  ;;  %v1584_v59 = vadd.f32 %v1572_v39, %v1558_v15  ;;  %v1585_v11 = vadd.f32 %v1572_v39, %v1559_v10 }
 0x103   : > { %v1607_v19 = vadd.f32 %v1593_v29, %v1579_v34  ;;  %v1608_v35 = vadd.f32 %v1594_v8, %v1580_v38  ;;  %v1609_v14 = vadd.f32 %v1595_v62, %v1581_v30  ;;  %v1610_v36 = vadd.f32 %v1596_v44, %v1582_v55 }
 0x104   : > { %v1611_v54 = vadd.f32 %v1597_v1, %v1583_v31  ;;  %v1612_v51 = vadd.f32 %v1598_v56, %v1584_v59  ;;  %v1613_v25 = vadd.f32 %v1599_v57, %v1585_v11 }
 0x105   : > { %1621 = vst [vmem:[%s2655_s29] sm:$0xff] %v1607_v19  ;;  %1622 = vst [vmem:[%s2655_s29 + $0x8] sm:$0xff] %v1608_v35 }
 0x106   : > { %1623 = vst [vmem:[%s2655_s29 + $0x10] sm:$0xff] %v1609_v14  ;;  %1624 = vst [vmem:[%s2655_s29 + $0x18] sm:$0xff] %v1610_v36 }
 0x107   : > { %1625 = vst [vmem:[%s2655_s29 + $0x20] sm:$0xff] %v1611_v54  ;;  %1626 = vst [vmem:[%s2655_s29 + $0x28] sm:$0xff] %v1612_v51 }
 0x108   : > { %1627 = vst [vmem:[%s2655_s29 + $0x30] sm:$0xff] %v1613_v25 }
 0x109 PF: > { %s14_s17 = sadd.s32 1, %s1860_s17   ;;  %s2932_s15 = smov %s1856_s16 }
 0x10a   : > { %p11_p5 = scmp.ge.s32.totalorder %s14_s17, 4   ;;  %s2933_s16 = smov %s2935_s18 }
 0x10c   :  { %13 = sbr.rel (!%p11_p5) target bundleno = 2 (0x2), region = 99 }

// kernel: _lambda_.19
= control target key start
LH: loop header
LB: loop body
LE: loop exit
PB: predicated region body
PF: predicated region fallthrough
CT: control target
= control target key end

     0   :  { %s2673_s18 = smov 0   ;;  %s2675_s19 = smov 0   ;;  %s4026_s0 = inlined_call_operand.vmem [shape: f32[2,16,896], index: 0, kind: input, shape index: {}]   ;;  %s4027_s1 = inlined_call_operand.vmem [shape: f32[128,16], index: 1, kind: input, shape index: {}]   ;;  %s4028_s2 = inlined_call_operand.vmem [shape: f32[128,1], index: 2, kind: input, shape index: {}]   ;;  %s4029_s3 = inlined_call_operand.vmem [shape: f32[2,128], index: 3, kind: input, shape index: {}]   ;;  %s4030_s4 = inlined_call_operand.vmem [shape: f32[2,1], index: 4, kind: input, shape index: {}]   ;;  %s4031_s5 = inlined_call_operand.vmem [shape: f32[2,2,896], index: 5, kind: output, shape index: {}]  }
   0x1   :  { %s2677_s20 = smov 0  }
   0x2 LB: > { %s27_s21 = sadd.s32 1, %s2632_s19  ;;  %p2052_p0 = scmp.ge.s32.totalorder %s2636_s20, 1  ;;  %s2636_s20 = sphi %s2677_s20, %s15_s20   ;;  %s2632_s19 = sphi %s2675_s19, %s4210_s19   ;;  %s2628_s18 = sphi %s2673_s18, %s4209_s18  }
   0x3   : > { %p29_p1 = scmp.ge.s32.totalorder %s27_s21, 2  ;;  %p208_p2 = scmp.lt.s32.totalorder %s2636_s20, 3 }
   0x5   : > { %s4212_s21 = smov (%p29_p1, %s27_s21), 0  ;;  %p209_p3 = pnand %p2052_p0, %p208_p2 }
   0x7   : > { %212 = sbr.rel (%p209_p3) target bundleno = 659 (0x293), region = 40 }
   0xe   : > { %p245_p4 = scmp.lt.s32.totalorder %s2628_s18, 1  ;;  %v4032_v0 = vmov 0.0   ;;  %v2639_v1 = vmov 0   ;;  %v294_v2 = vld [vmem:[%s4028_s2] sm:$0xff]  ;;  %v296_v3 = vld [vmem:[%s4028_s2 + $0x10] sm:$0xff]  ;;  %v295_v7 = vld [vmem:[%s4028_s2 + $0x8] sm:$0xff] }
   0xf   : > { %503 = vmatprep.mubr.f32.mxu0 %v4032_v0  ;;  %575 = vmatprep.mubr.f32.mxu1 %v4032_v0  ;;  %v297_v12 = vld [vmem:[%s4028_s2 + $0x18] sm:$0xff]  ;;  %v2714_v14 = vld [vmem:[%s4027_s1] sm:$0xff]  ;;  %vm390_vm0 = vcmask 130048   ;;  %v2732_v30 = vld [vmem:[%s4027_s1 + $0x8] sm:$0xff]  ;;  %vm2641_vm1 = vmmov 0  }
  0x10   : > { %s4214_s18 = smov (!%p245_p4, %s2628_s18), 1  ;;  %2388 = vset.pattern.permute.xlu0 %v2639_v1  ;;  %2389 = vset.pattern.permute.xlu1 %v2639_v1  ;;  %v2719_v22 = vld [vmem:[%s4027_s1 + $0x60] sm:$0xff]  ;;  %v2737_v31 = vld [vmem:[%s4027_s1 + $0x68] sm:$0xff]  ;;  %v300_v33 = vld [vmem:[%s4028_s2 + $0x30] sm:$0xff] }
  0x11   : > { %s2357_s22 = smul.u32 112, %s4214_s18  ;;  %312 = vperm.xlu0 %2388, %v294_v2   ;;  %322 = vperm.xlu1 %2389, %v296_v3   ;;  %v298_v29 = vld [vmem:[%s4028_s2 + $0x20] sm:$0xff]  ;;  %v299_v32 = vld [vmem:[%s4028_s2 + $0x28] sm:$0xff]  ;;  %v2755_v34 = vld [vmem:[%s4027_s1 + $0x10] sm:$0xff] }
  0x12   : > { %v2760_v35 = vld [vmem:[%s4027_s1 + $0x70] sm:$0xff]  ;;  %v301_v36 = vld [vmem:[%s4028_s2 + $0x38] sm:$0xff]  ;;  %v302_v37 = vld [vmem:[%s4028_s2 + $0x40] sm:$0xff]  ;;  %s2358_s6 = smul.u32 14, %s4214_s18 }
  0x13   : > { %s252_s29 = scalar_lea.vmem %s4026_s0, %s2357_s22  ;;  %v2777_v38 = vld [vmem:[%s4027_s1 + $0x18] sm:$0xff]  ;;  %v303_v40 = vld [vmem:[%s4028_s2 + $0x48] sm:$0xff]  ;;  %v304_v41 = vld [vmem:[%s4028_s2 + $0x50] sm:$0xff] }
  0x14   : > { %v281_v4 = vld [vmem:[%s252_s29 + $0x8] sm:$0xff]  ;;  %v288_v5 = vld [vmem:[%s252_s29 + $0x40] sm:$0xff]  ;;  %v287_v9 = vld [vmem:[%s252_s29 + $0x38] sm:$0xff]  ;;  %s262_s9 = scalar_lea.vmem %s4031_s5, %s2358_s6 }
  0x15   : > { %v280_v6 = vld [vmem:[%s252_s29] sm:$0xff]  ;;  %v2219_v8 = vpack.c.bf16 %v288_v5, %v281_v4  ;;  %v285_v10 = vld [vmem:[%s252_s29 + $0x28] sm:$0xff]  ;;  %v291_v17 = vld [vmem:[%s252_s29 + $0x58] sm:$0xff]  ;;  %317 = vperm.xlu0 %2388, %v295_v7   ;;  %327 = vperm.xlu1 %2389, %v297_v12  }
  0x16   : > { %v292_v11 = vld [vmem:[%s252_s29 + $0x60] sm:$0xff]  ;;  %v2221_v13 = vpack.c.bf16 %v287_v9, %v280_v6  ;;  %v283_v18 = vld [vmem:[%s252_s29 + $0x18] sm:$0xff]  ;;  %v290_v19 = vld [vmem:[%s252_s29 + $0x50] sm:$0xff] }
  0x17   : > { %v2227_v15 = vpack.c.bf16 %v292_v11, %v285_v10  ;;  %v284_v16 = vld [vmem:[%s252_s29 + $0x20] sm:$0xff]  ;;  %2220 = vmatprep.subr.bf16.mxu0 %v2219_v8  ;;  %2355 = vmatprep.subr.bf16.mxu1 %v2219_v8  ;;  %v282_v20 = vld [vmem:[%s252_s29 + $0x10] sm:$0xff]  ;;  %v289_v21 = vld [vmem:[%s252_s29 + $0x48] sm:$0xff]  ;;  %v2223_v24 = vpack.c.bf16 %v290_v19, %v283_v18 }
  0x18   : > { %2222 = vmatpush1.bf16.msra.mxu0 %v2221_v13  ;;  %2356 = vmatpush1.bf16.msra.mxu1 %v2221_v13  ;;  %v2229_v23 = vpack.c.bf16 %v291_v17, %v284_v16  ;;  %v286_v25 = vld [vmem:[%s252_s29 + $0x30] sm:$0xff]  ;;  %v293_v26 = vld [vmem:[%s252_s29 + $0x68] sm:$0xff]  ;;  %v2225_v27 = vpack.c.bf16 %v289_v21, %v282_v20  ;;  %v2782_v39 = vld [vmem:[%s4027_s1 + $0x78] sm:$0xff] }
  0x19   : > { %2228 = vmatprep.subr.bf16.mxu0 %v2227_v15  ;;  %2224 = vmatprep.subr.bf16.mxu1 %v2223_v24  ;;  %v2231_v28 = vpack.c.bf16 %v293_v26, %v286_v25  ;;  %v2799_v42 = vld [vmem:[%s4027_s1 + $0x20] sm:$0xff]  ;;  %v305_v43 = vld [vmem:[%s4028_s2 + $0x58] sm:$0xff]  ;;  %v2816_v45 = vld [vmem:[%s4027_s1 + $0x28] sm:$0xff] }
  0x1a   : > { %332 = vperm.xlu0 %2388, %v298_v29   ;;  %337 = vperm.xlu1 %2389, %v299_v32   ;;  %v306_v44 = vld [vmem:[%s4028_s2 + $0x60] sm:$0xff]  ;;  %v307_v46 = vld [vmem:[%s4028_s2 + $0x68] sm:$0xff]  ;;  %v308_v47 = vld [vmem:[%s4028_s2 + $0x70] sm:$0xff] }
  0x1b   : > { %2055 = vmatmul.mubr.msk.f32.vlgmr.msra.gmra.mrb[0].mxu0 %vm390_vm0, %v2714_v14  ;;  %2067 = vmatmul.mubr.msk.f32.vlgmr.msra.gmra.mrb[0].mxu1 %vm390_vm0, %v2719_v22  ;;  %v2833_v48 = vld [vmem:[%s4027_s1 + $0x30] sm:$0xff]  ;;  %v309_v49 = vld [vmem:[%s4028_s2 + $0x78] sm:$0xff]  ;;  %v1628_v50 = vld [vmem:[%s4030_s4] sm:$0x3] }
  0x1c   : > { %2230 = vmatpush1.bf16.msra.mxu0 %v2229_v23  ;;  %509 = vmatprep.mubr.f32.mxu0 %v4032_v0  ;;  %v2850_v51 = vld [vmem:[%s4027_s1 + $0x38] sm:$0xff]  ;;  %v2861_v52 = vld [vmem:[%s4027_s1 + $0x40] sm:$0xff]  ;;  %v2872_v53 = vld [vmem:[%s4027_s1 + $0x48] sm:$0xff] }
  0x1d   : > { %581 = vmatprep.mubr.f32.mxu1 %v4032_v0  ;;  %2226 = vmatpush1.bf16.msra.mxu1 %v2225_v27  ;;  %v274_v54 = vld [vmem:[%s4027_s1 + $0x50] sm:$0xff]  ;;  %v275_v55 = vld [vmem:[%s4027_s1 + $0x58] sm:$0xff] }
  0x1e   : > { %2232 = vmatprep.subr.bf16.mxu1 %v2231_v28  ;;  %342 = vperm.xlu0 %2388, %v300_v33  }
  0x1f   : > { %2056 = vmatmul.mubr.msk.f32.gmra.mrb[2].mxu0 %vm390_vm0, %v2732_v30  ;;  %2068 = vmatmul.mubr.msk.f32.gmra.mrb[2].mxu1 %vm390_vm0, %v2737_v31 }
  0x20   : > { %515 = vmatprep.mubr.f32.mxu0 %v4032_v0  ;;  %587 = vmatprep.mubr.f32.mxu1 %v4032_v0 }
  0x21   : > { %347 = vperm.xlu1 %2389, %v301_v36  }
  0x22   : > { %352 = vperm.xlu0 %2388, %v302_v37  }
  0x23   : > { %2057 = vmatmul.mubr.msk.f32.gmra.mrb[4].mxu0 %vm390_vm0, %v2755_v34  ;;  %2069 = vmatmul.mubr.msk.f32.gmra.mrb[4].mxu1 %vm390_vm0, %v2760_v35 }
  0x24   : > { %521 = vmatprep.mubr.f32.mxu0 %v4032_v0  ;;  %593 = vmatprep.mubr.f32.mxu1 %v4032_v0 }
  0x25   : > { %357 = vperm.xlu1 %2389, %v303_v40  }
  0x26   : > { %362 = vperm.xlu0 %2388, %v304_v41  }
  0x27   : > { %2058 = vmatmul.mubr.msk.f32.gmra.mrb[6].mxu0 %vm390_vm0, %v2777_v38  ;;  %2070 = vmatmul.mubr.msk.f32.gmra.mrb[6].mxu1 %vm390_vm0, %v2782_v39 }
  0x28   : > { %527 = vmatprep.mubr.f32.mxu0 %v4032_v0  ;;  %664 = vmatprep.mubr.f32.mxu1 %v4032_v0 }
  0x29   : > { %367 = vperm.xlu1 %2389, %v305_v43  }
  0x2a   : > { %372 = vperm.xlu0 %2388, %v306_v44  }
  0x2b   : > { %2059 = vmatmul.mubr.msk.f32.gmra.mrb[8].mxu0 %vm390_vm0, %v2799_v42  ;;  %2071 = vmatmul.mubr.msk.f32.vlgmr.msra.gmra.mrb[8].mxu1 %vm390_vm0, %v2714_v14 }
  0x2c   : > { %533 = vmatprep.mubr.f32.mxu0 %v4032_v0  ;;  %670 = vmatprep.mubr.f32.mxu1 %v4032_v0 }
  0x2d   : > { %2234 = vmatpush3.bf16.msra.mxu1 %v2231_v28  ;;  %377 = vperm.xlu1 %2389, %v307_v46  }
  0x2e   : > { %382 = vperm.xlu0 %2388, %v308_v47  }
  0x2f   : > { %2060 = vmatmul.mubr.msk.f32.gmra.mrb[10].mxu0 %vm390_vm0, %v2816_v45  ;;  %2072 = vmatmul.mubr.msk.f32.gmra.mrb[10].mxu1 %vm390_vm0, %v2732_v30 }
  0x30   : > { %539 = vmatprep.mubr.f32.mxu0 %v4032_v0  ;;  %676 = vmatprep.mubr.f32.mxu1 %v4032_v0 }
  0x31   : > { %387 = vperm.xlu1 %2389, %v309_v49  }
  0x32   : > { %1631 = vperm.xlu0 %2388, %v1628_v50  }
  0x33   : > { %2061 = vmatmul.mubr.msk.f32.gmra.mrb[12].mxu0 %vm390_vm0, %v2833_v48  ;;  %2073 = vmatmul.mubr.msk.f32.gmra.mrb[12].mxu1 %vm390_vm0, %v2755_v34 }
  0x34   : > { %545 = vmatprep.mubr.f32.mxu0 %v4032_v0  ;;  %682 = vmatprep.mubr.f32.mxu1 %v4032_v0 }
  0x37   : > { %2062 = vmatmul.mubr.msk.f32.gmra.mrb[14].mxu0 %vm390_vm0, %v2850_v51  ;;  %2074 = vmatmul.mubr.msk.f32.gmra.mrb[14].mxu1 %vm390_vm0, %v2777_v38 }
  0x38   : > { %551 = vmatprep.mubr.f32.mxu0 %v4032_v0  ;;  %688 = vmatprep.mubr.f32.mxu1 %v4032_v0 }
  0x3b   : > { %2063 = vmatmul.mubr.msk.f32.gmra.mrb[16].mxu0 %vm390_vm0, %v2861_v52  ;;  %2075 = vmatmul.mubr.msk.f32.gmra.mrb[16].mxu1 %vm390_vm0, %v2799_v42 }
  0x3c   : > { %557 = vmatprep.mubr.f32.mxu0 %v4032_v0  ;;  %694 = vmatprep.mubr.f32.mxu1 %v4032_v0 }
  0x3f   : > { %2064 = vmatmul.mubr.msk.f32.gmra.mrb[18].mxu0 %vm390_vm0, %v2872_v53  ;;  %2076 = vmatmul.mubr.msk.f32.gmra.mrb[18].mxu1 %vm390_vm0, %v2816_v45 }
  0x40   : > { %563 = vmatprep.mubr.f32.mxu0 %v4032_v0  ;;  %700 = vmatprep.mubr.f32.mxu1 %v4032_v0 }
  0x43   : > { %2065 = vmatmul.mubr.msk.f32.gmra.mrb[20].mxu0 %vm390_vm0, %v274_v54  ;;  %2077 = vmatmul.mubr.msk.f32.gmra.mrb[20].mxu1 %vm390_vm0, %v2833_v48 }
  0x44   : > { %569 = vmatprep.mubr.f32.mxu0 %v4032_v0  ;;  %706 = vmatprep.mubr.f32.mxu1 %v4032_v0 }
  0x47   : > { %2066 = vmatmul.mubr.msk.f32.gmra.mrb[22].mxu0 %vm390_vm0, %v275_v55  ;;  %2078 = vmatmul.mubr.msk.f32.gmra.mrb[22].mxu1 %vm390_vm0, %v2850_v51 }
  0x48   : > { %712 = vmatprep.mubr.f32.mxu1 %v4032_v0  ;;  %825 = vmatprep.mubr.f32.mxu0 %v4032_v0 }
  0x4b   : > { %2079 = vmatmul.mubr.msk.f32.gmra.mrb[24].mxu1 %vm390_vm0, %v2861_v52  ;;  %2087 = vmatmul.mubr.msk.f32.vlgmr.msra.gmra.mrb[24].mxu0 %vm390_vm0, %v2714_v14 }
  0x4c   : > { %718 = vmatprep.mubr.f32.mxu1 %v4032_v0  ;;  %831 = vmatprep.mubr.f32.mxu0 %v4032_v0 }
  0x4f   : > { %2080 = vmatmul.mubr.msk.f32.gmra.mrb[26].mxu1 %vm390_vm0, %v2872_v53  ;;  %2088 = vmatmul.mubr.msk.f32.gmra.mrb[26].mxu0 %vm390_vm0, %v2732_v30 }
  0x50   : > { %724 = vmatprep.mubr.f32.mxu1 %v4032_v0  ;;  %837 = vmatprep.mubr.f32.mxu0 %v4032_v0 }
  0x53   : > { %2081 = vmatmul.mubr.msk.f32.gmra.mrb[28].mxu1 %vm390_vm0, %v274_v54  ;;  %2089 = vmatmul.mubr.msk.f32.gmra.mrb[28].mxu0 %vm390_vm0, %v2755_v34 }
  0x54   : > { %730 = vmatprep.mubr.f32.mxu1 %v4032_v0  ;;  %843 = vmatprep.mubr.f32.mxu0 %v4032_v0 }
  0x57   : > { %2082 = vmatmul.mubr.msk.f32.gmra.mrb[30].mxu1 %vm390_vm0, %v275_v55  ;;  %2090 = vmatmul.mubr.msk.f32.gmra.mrb[30].mxu0 %vm390_vm0, %v2777_v38 }
  0x58   : > { %736 = vmatprep.mubr.f32.mxu1 %v4032_v0  ;;  %849 = vmatprep.mubr.f32.mxu0 %v4032_v0 }
  0x5b   : > { %2083 = vmatmul.mubr.msk.f32.gmra.mrb[32].mxu1 %vm390_vm0, %v2719_v22  ;;  %2091 = vmatmul.mubr.msk.f32.gmra.mrb[32].mxu0 %vm390_vm0, %v2799_v42 }
  0x5c   : > { %742 = vmatprep.mubr.f32.mxu1 %v4032_v0  ;;  %855 = vmatprep.mubr.f32.mxu0 %v4032_v0 }
  0x5f   : > { %2084 = vmatmul.mubr.msk.f32.gmra.mrb[34].mxu1 %vm390_vm0, %v2737_v31  ;;  %2092 = vmatmul.mubr.msk.f32.gmra.mrb[34].mxu0 %vm390_vm0, %v2816_v45 }
  0x60   : > { %748 = vmatprep.mubr.f32.mxu1 %v4032_v0  ;;  %861 = vmatprep.mubr.f32.mxu0 %v4032_v0 }
  0x63   : > { %2085 = vmatmul.mubr.msk.f32.gmra.mrb[36].mxu1 %vm390_vm0, %v2760_v35  ;;  %2093 = vmatmul.mubr.msk.f32.gmra.mrb[36].mxu0 %vm390_vm0, %v2833_v48 }
  0x64   : > { %754 = vmatprep.mubr.f32.mxu1 %v4032_v0  ;;  %867 = vmatprep.mubr.f32.mxu0 %v4032_v0 }
  0x67   : > { %2086 = vmatmul.mubr.msk.f32.gmra.mrb[38].mxu1 %vm390_vm0, %v2782_v39  ;;  %2094 = vmatmul.mubr.msk.f32.gmra.mrb[38].mxu0 %vm390_vm0, %v2850_v51 }
  0x68   : > { %873 = vmatprep.mubr.f32.mxu0 %v4032_v0  ;;  %2160 = vmatprep.mubr.msk.f32.mxu1 %vm390_vm0, %v2714_v14 }
  0x6b   : > { %2095 = vmatmul.mubr.msk.f32.gmra.mrb[40].mxu0 %vm390_vm0, %v2861_v52  ;;  %2161 = vmatmul.mubr.msk.f32.vlgmr.msra.gmra.mrb[40].mxu1 %vm390_vm0, %v2732_v30 }
  0x6c   : > { %879 = vmatprep.mubr.f32.mxu0 %v4032_v0  ;;  %2163 = vmatprep.mubr.msk.f32.mxu1 %vm390_vm0, %v2755_v34 }
  0x6f   : > { %2096 = vmatmul.mubr.msk.f32.gmra.mrb[42].mxu0 %vm390_vm0, %v2872_v53  ;;  %2164 = vmatmul.mubr.msk.f32.gmra.mrb[42].mxu1 %vm390_vm0, %v2777_v38 }
  0x70   : > { %885 = vmatprep.mubr.f32.mxu0 %v4032_v0  ;;  %2166 = vmatprep.mubr.msk.f32.mxu1 %vm390_vm0, %v2799_v42 }
  0x73   : > { %2097 = vmatmul.mubr.msk.f32.gmra.mrb[44].mxu0 %vm390_vm0, %v274_v54  ;;  %2167 = vmatmul.mubr.msk.f32.gmra.mrb[44].mxu1 %vm390_vm0, %v2816_v45 }
  0x74   : > { %891 = vmatprep.mubr.f32.mxu0 %v4032_v0  ;;  %2169 = vmatprep.mubr.msk.f32.mxu1 %vm390_vm0, %v2833_v48 }
  0x77   : > { %2098 = vmatmul.mubr.msk.f32.gmra.mrb[46].mxu0 %vm390_vm0, %v275_v55  ;;  %2170 = vmatmul.mubr.msk.f32.gmra.mrb[46].mxu1 %vm390_vm0, %v2850_v51 }
  0x78   : > { %897 = vmatprep.mubr.f32.mxu0 %v4032_v0  ;;  %2172 = vmatprep.mubr.msk.f32.mxu1 %vm390_vm0, %v2861_v52 }
  0x7b   : > { %2099 = vmatmul.mubr.msk.f32.gmra.mrb[48].mxu0 %vm390_vm0, %v2719_v22  ;;  %2173 = vmatmul.mubr.msk.f32.gmra.mrb[48].mxu1 %vm390_vm0, %v2872_v53 }
  0x7c   : > { %903 = vmatprep.mubr.f32.mxu0 %v4032_v0  ;;  %2175 = vmatprep.mubr.msk.f32.mxu1 %vm390_vm0, %v274_v54 }
  0x7f   : > { %2100 = vmatmul.mubr.msk.f32.gmra.mrb[50].mxu0 %vm390_vm0, %v2737_v31  ;;  %2176 = vmatmul.mubr.msk.f32.gmra.mrb[50].mxu1 %vm390_vm0, %v275_v55 }
  0x80   : > { %909 = vmatprep.mubr.f32.mxu0 %v4032_v0  ;;  %2178 = vmatprep.mubr.msk.f32.mxu1 %vm390_vm0, %v2719_v22 }
  0x83   : > { %2101 = vmatmul.mubr.msk.f32.gmra.mrb[52].mxu0 %vm390_vm0, %v2760_v35  ;;  %2179 = vmatmul.mubr.msk.f32.gmra.mrb[52].mxu1 %vm390_vm0, %v2737_v31 }
  0x84   : > { %915 = vmatprep.mubr.f32.mxu0 %v4032_v0  ;;  %2181 = vmatprep.mubr.msk.f32.mxu1 %vm390_vm0, %v2760_v35 }
  0x87   : > { %2102 = vmatmul.mubr.msk.f32.gmra.mrb[54].mxu0 %vm390_vm0, %v2782_v39  ;;  %2182 = vmatmul.mubr.msk.f32.gmra.mrb[54].mxu1 %vm390_vm0, %v2782_v39 }
  0x88   : > { %1698 = vmatprep.mubr.f32.mxu1 %v4032_v0  ;;  %1769 = vmatprep.mubr.f32.mxu0 %v4032_v0 }
  0x90   : > { %v2994_v56 = vpop.permute.xlu0 %312  ;;  %v2996_v57 = vpop.permute.xlu1 %322 }
  0x91   : > { %4066 = vst [vmem:[#allocation2_spill] sm:$0xff] %v2994_v56  ;;  %4067 = vst [vmem:[#allocation3_spill] sm:$0xff] %v2996_v57 }
  0x94   : > { %v2998_v58 = vpop.permute.xlu0 %317  ;;  %v3000_v59 = vpop.permute.xlu1 %327 }
  0x95   : > { %4068 = vst [vmem:[#allocation4_spill] sm:$0xff] %v2998_v58  ;;  %4069 = vst [vmem:[#allocation5_spill] sm:$0xff] %v3000_v59 }
  0x99   : > { %v3002_v60 = vpop.permute.xlu0 %332  ;;  %v3004_v61 = vpop.permute.xlu1 %337 }
  0x9a   : > { %4070 = vst [vmem:[#allocation6_spill] sm:$0xff] %v3002_v60  ;;  %4071 = vst [vmem:[#allocation7_spill] sm:$0xff] %v3004_v61 }
  0x9d   : > { %v3006_v62 = vpop.permute.xlu0 %342 }
  0x9e   : > { %4072 = vst [vmem:[#allocation8_spill] sm:$0xff] %v3006_v62 }
  0xa0   : > { %v3008_v63 = vpop.permute.xlu1 %347 }
  0xa1   : > { %4073 = vst [vmem:[#allocation9_spill] sm:$0xff] %v3008_v63  ;;  %v3010_v1 = vpop.permute.xlu0 %352 }
  0xa2   : > { %4074 = vst [vmem:[#allocation10_spill] sm:$0xff] %v3010_v1 }
  0xa4   : > { %v3012_v2 = vpop.permute.xlu1 %357 }
  0xa5   : > { %4075 = vst [vmem:[#allocation11_spill] sm:$0xff] %v3012_v2  ;;  %v3014_v3 = vpop.permute.xlu0 %362 }
  0xa8   : > { %v3016_v4 = vpop.permute.xlu1 %367 }
  0xa9   : > { %v3018_v5 = vpop.permute.xlu0 %372 }
  0xaa   : > { %4076 = vst [vmem:[#allocation12_spill] sm:$0xff] %v3018_v5 }
  0xac   : > { %v3024_v16 = vpop.permute.xlu1 %377 }
  0xad   : > { %4077 = vst [vmem:[#allocation13_spill] sm:$0xff] %v3024_v16  ;;  %v3030_v27 = vpop.permute.xlu0 %382 }
  0xae   : > { %4078 = vst [vmem:[#allocation14_spill] sm:$0xff] %v3030_v27 }
  0xb0   : > { %v3036_v40 = vpop.permute.xlu1 %387 }
  0xb1   : > { %4079 = vst [vmem:[#allocation15_spill] sm:$0xff] %v3036_v40 }
  0xee   : > { %v505_v6 = vpop.f32.mrb[0].mxu0  ;;  %v577_v7 = vpop.f32.mrb[0].mxu1 }
  0xef   : > { %v506_v8 = vadd.f32 %v505_v6, %v2994_v56  ;;  %v578_v9 = vadd.f32 %v577_v7, %v3018_v5  ;;  %v507_v10 = vpop.f32.mrb[1].mxu0  ;;  %v579_v11 = vpop.f32.mrb[1].mxu1 }
  0xf0   : > { %v508_v12 = vadd.f32 %v507_v10, %v2994_v56  ;;  %v580_v13 = vadd.f32 %v579_v11, %v3018_v5 }
  0xf1   : > { %v1179_v14 = vmul.f32 0.70710677, %v506_v8  ;;  %v1263_v15 = vmul.f32 0.70710677, %v578_v9  ;;  %v1067_v41 = vmul.f32 0.5, %v506_v8  ;;  %v3038_v42 = vmul.f32 0.5, %v578_v9 }
  0xf2   : > { %v1180_v17 = vmul.f32 0.70710677, %v508_v12  ;;  %v1264_v18 = vmul.f32 0.70710677, %v580_v13  ;;  %v511_v19 = vpop.f32.mrb[2].mxu0  ;;  %v583_v20 = vpop.f32.mrb[2].mxu1 }
  0xf3   : > { %2390 = verf.f32 %v1179_v14  ;;  %v512_v21 = vadd.f32 %v511_v19, %v2998_v58  ;;  %v584_v22 = vadd.f32 %v583_v20, %v3024_v16  ;;  %v513_v23 = vpop.f32.mrb[3].mxu0  ;;  %v585_v24 = vpop.f32.mrb[3].mxu1  ;;  %v3040_v46 = vmul.f32 0.5, %v508_v12 }
  0xf4   : > { %2392 = verf.f32 %v1263_v15  ;;  %v514_v25 = vadd.f32 %v513_v23, %v2998_v58  ;;  %v586_v26 = vadd.f32 %v585_v24, %v3024_v16  ;;  %v3042_v50 = vmul.f32 0.5, %v580_v13 }
  0xf5   : > { %2394 = verf.f32 %v1180_v17  ;;  %v1186_v28 = vmul.f32 0.70710677, %v512_v21  ;;  %v1270_v31 = vmul.f32 0.70710677, %v584_v22  ;;  %v1074_v55 = vmul.f32 0.5, %v512_v21 }
  0xf6   : > { %v517_v29 = vpop.f32.mrb[4].mxu0  ;;  %v589_v30 = vpop.f32.mrb[4].mxu1  ;;  %2396 = verf.f32 %v1264_v18  ;;  %v1187_v32 = vmul.f32 0.70710677, %v514_v25  ;;  %v1271_v33 = vmul.f32 0.70710677, %v586_v26 }
  0xf7   : > { %2398 = verf.f32 %v1186_v28  ;;  %v518_v34 = vadd.f32 %v517_v29, %v2996_v57  ;;  %v590_v35 = vadd.f32 %v589_v30, %v3030_v27  ;;  %v519_v36 = vpop.f32.mrb[5].mxu0  ;;  %v591_v37 = vpop.f32.mrb[5].mxu1  ;;  %v1158_v8 = vmul.f32 0.5, %v584_v22 }
  0xf8   : > { %2400 = verf.f32 %v1270_v31  ;;  %v520_v38 = vadd.f32 %v519_v36, %v2996_v57  ;;  %v592_v39 = vadd.f32 %v591_v37, %v3030_v27  ;;  %v3048_v15 = vmul.f32 0.5, %v514_v25 }
  0xf9   : > { %2402 = verf.f32 %v1187_v32  ;;  %v1193_v43 = vmul.f32 0.70710677, %v518_v34  ;;  %v1277_v47 = vmul.f32 0.70710677, %v590_v35  ;;  %v3050_v21 = vmul.f32 0.5, %v586_v26 }
  0xfa   : > { %v523_v44 = vpop.f32.mrb[6].mxu0  ;;  %v595_v45 = vpop.f32.mrb[6].mxu1  ;;  %2404 = verf.f32 %v1271_v33  ;;  %v1194_v48 = vmul.f32 0.70710677, %v520_v38  ;;  %v1278_v51 = vmul.f32 0.70710677, %v592_v39 }
  0xfb   : > { %v525_v49 = vpop.f32.mrb[7].mxu0  ;;  %2406 = verf.f32 %v1193_v43  ;;  %v524_v52 = vadd.f32 %v523_v44, %v3000_v59  ;;  %v597_v53 = vpop.f32.mrb[7].mxu1  ;;  %v596_v6 = vadd.f32 %v595_v45, %v3036_v40  ;;  %v3052_v23 = vmul.f32 0.5, %v518_v34 }
  0xfc   : > { %2408 = verf.f32 %v1277_v47  ;;  %v526_v7 = vadd.f32 %v525_v49, %v3000_v59  ;;  %v598_v10 = vadd.f32 %v597_v53, %v3036_v40  ;;  %v3054_v22 = vmul.f32 0.5, %v590_v35 }
  0xfd   : > { %v2391_v54 = vpop.eup %2390  ;;  %2410 = verf.f32 %v1194_v48  ;;  %v1200_v9 = vmul.f32 0.70710677, %v524_v52  ;;  %v1284_v17 = vmul.f32 0.70710677, %v596_v6  ;;  %v3056_v28 = vmul.f32 0.5, %v520_v38 }
  0xfe   : > { %v529_v11 = vpop.f32.mrb[8].mxu0  ;;  %v666_v12 = vpop.f32.mrb[8].mxu1  ;;  %v1403_v14 = vadd.f32 1.0, %v2391_v54  ;;  %2412 = verf.f32 %v1278_v51  ;;  %v3058_v29 = vmul.f32 0.5, %v592_v39  ;;  %v1201_v25 = vmul.f32 0.70710677, %v526_v7 }
  0xff   : > { %v2393_v13 = vpop.eup %2392  ;;  %v531_v18 = vpop.f32.mrb[9].mxu0  ;;  %2414 = verf.f32 %v1200_v9  ;;  %v3060_v32 = vmul.f32 0.5, %v524_v52  ;;  %v1285_v33 = vmul.f32 0.70710677, %v598_v10  ;;  %v530_v26 = vadd.f32 %v529_v11, %v3002_v60 }
 0x100   : > { %v668_v19 = vpop.f32.mrb[9].mxu1  ;;  %v2395_v20 = vpop.eup %2394  ;;  %2416 = verf.f32 %v1284_v17  ;;  %v1487_v31 = vadd.f32 1.0, %v2393_v13  ;;  %v3063_v35 = vmul.f32 %v1403_v14, %v1067_v41  ;;  %v1172_v44 = vmul.f32 0.5, %v596_v6 }
 0x101   : > { %v2397_v24 = vpop.eup %2396  ;;  %v667_v38 = vadd.f32 %v666_v12, %v2994_v56  ;;  %v1404_v48 = vadd.f32 1.0, %v2395_v20  ;;  %2418 = verf.f32 %v1201_v25  ;;  %v1207_v51 = vmul.f32 0.70710677, %v530_v26 }
 0x102   : > { %v2399_v30 = vpop.eup %2398  ;;  %v535_v36 = vpop.f32.mrb[10].mxu0  ;;  %v1488_v53 = vadd.f32 1.0, %v2397_v24  ;;  %2420 = verf.f32 %v1285_v33  ;;  %v3071_v11 = vmul.f32 %v1487_v31, %v3038_v42  ;;  %v3075_v12 = vmul.f32 0.5, %v526_v7 }
 0x103   : > { %v672_v34 = vpop.f32.mrb[10].mxu1  ;;  %v2401_v37 = vpop.eup %2400  ;;  %v1410_v43 = vadd.f32 1.0, %v2399_v30  ;;  %v1181_v9 = vmul.f32 0.70710677, %v667_v38  ;;  %v532_v13 = vadd.f32 %v531_v18, %v3002_v60  ;;  %2422 = verf.f32 %v1207_v51 }
 0x104   : > { %v537_v39 = vpop.f32.mrb[11].mxu0  ;;  %v3066_v45 = vpop.f32.mrb[11].mxu1  ;;  %v1494_v49 = vadd.f32 1.0, %v2401_v37  ;;  %4080 = vst [vmem:[#allocation16_spill] sm:$0xff] %v3071_v11  ;;  %v3089_v7 = vmul.f32 %v1404_v48, %v3040_v46  ;;  %v3093_v31 = vmul.f32 0.5, %v598_v10  ;;  %v3096_v37 = vmul.f32 %v1488_v53, %v3042_v50 }
 0x105   : > { %v2403_v47 = vpop.eup %2402  ;;  %v3068_v54 = vmul.f32 %v1410_v43, %v1074_v55  ;;  %2424 = verf.f32 %v1181_v9  ;;  %v3098_v43 = vmul.f32 0.5, %v530_v26  ;;  %v3101_v0 = vmul.f32 0.5, %v667_v38 }
 0x106   : > { %v2405_v52 = vpop.eup %2404  ;;  %v3073_v6 = vmul.f32 %v1494_v49, %v1158_v8  ;;  %v3078_v14 = vpop.f32.mrb[12].mxu0  ;;  %v1411_v24 = vadd.f32 1.0, %v2403_v47  ;;  %4082 = vst [vmem:[#allocation18_spill] sm:$0xff] %v3096_v37  ;;  %v1208_v47 = vmul.f32 0.70710677, %v532_v13  ;;  %v669_v49 = vadd.f32 %v668_v19, %v2994_v56 }
 0x107   : > { %v2407_v41 = vpop.eup %2406  ;;  %v3080_v17 = vpop.f32.mrb[12].mxu1  ;;  %v536_v46 = vadd.f32 %v535_v36, %v3004_v61  ;;  %v673_v48 = vadd.f32 %v672_v34, %v2998_v58  ;;  %v1495_v26 = vadd.f32 1.0, %v2405_v52 }
 0x108   : > { %4081 = vst [vmem:[#allocation17_spill] sm:$0xff] %v3073_v6  ;;  %v2409_v20 = vpop.eup %2408  ;;  %v1417_v25 = vadd.f32 1.0, %v2407_v41  ;;  %v3084_v30 = vpop.f32.mrb[13].mxu0  ;;  %v3110_v50 = vmul.f32 %v1411_v24, %v3048_v15  ;;  %v1182_v40 = vmul.f32 0.70710677, %v669_v49  ;;  %2426 = verf.f32 %v1208_v47 }
 0x109   : > { %v3086_v42 = vpop.f32.mrb[13].mxu1  ;;  %v2411_v8 = vpop.eup %2410  ;;  %v1501_v41 = vadd.f32 1.0, %v2409_v20  ;;  %v1214_v6 = vmul.f32 0.70710677, %v536_v46  ;;  %v1188_v15 = vmul.f32 0.70710677, %v673_v48 }
 0x10a   : > { %v2413_v33 = vpop.eup %2412  ;;  %v3105_v10 = vpop.f32.mrb[14].mxu0  ;;  %v3113_v53 = vmul.f32 %v1417_v25, %v3052_v23  ;;  %v1418_v36 = vadd.f32 1.0, %v2411_v8  ;;  %2428 = verf.f32 %v1182_v40  ;;  %v538_v25 = vadd.f32 %v537_v39, %v3004_v61 }
 0x10b   : > { %v2415_v51 = vpop.eup %2414  ;;  %v3107_v9 = vpop.f32.mrb[14].mxu1  ;;  %v1502_v55 = vadd.f32 1.0, %v2413_v33  ;;  %v3123_v52 = vmul.f32 %v1501_v41, %v3054_v22  ;;  %2430 = verf.f32 %v1214_v6  ;;  %v675_v22 = vadd.f32 %v3066_v45, %v2998_v58 }
 0x10c   : > { %v2417_v18 = vpop.eup %2416  ;;  %v1424_v19 = vadd.f32 1.0, %v2415_v51  ;;  %v3115_v20 = vpop.f32.mrb[15].mxu0  ;;  %v3144_v39 = vmul.f32 %v1418_v36, %v3056_v28  ;;  %v3148_v41 = vmul.f32 0.5, %v532_v13  ;;  %2432 = verf.f32 %v1188_v15 }
 0x10d   : > { %v3117_v38 = vpop.f32.mrb[15].mxu1  ;;  %v1508_v34 = vadd.f32 1.0, %v2417_v18  ;;  %v2419_v24 = vpop.eup %2418  ;;  %4083 = vst [vmem:[#allocation19_spill] sm:$0xff] %v3123_v52  ;;  %v1215_v45 = vmul.f32 0.70710677, %v538_v25  ;;  %v542_v28 = vadd.f32 %v3078_v14, %v3006_v62  ;;  %v679_v36 = vadd.f32 %v3080_v17, %v2996_v57 }
 0x10e   : > { %v3120_v11 = vmul.f32 %v1424_v19, %v3060_v32  ;;  %v3128_v51 = vpop.f32.mrb[16].mxu0  ;;  %v3130_v8 = vpop.f32.mrb[16].mxu1  ;;  %v3133_v32 = vmul.f32 %v1495_v26, %v3050_v21  ;;  %v3151_v26 = vmul.f32 %v1502_v55, %v3058_v29  ;;  %v1425_v6 = vadd.f32 1.0, %v2419_v24 }
 0x10f   : > { %v3125_v23 = vmul.f32 %v1508_v34, %v1172_v44  ;;  %v2421_v18 = vpop.eup %2420  ;;  %v3139_v44 = vpop.f32.mrb[17].mxu0  ;;  %v3153_v19 = vmul.f32 0.5, %v669_v49  ;;  %v1189_v27 = vmul.f32 0.70710677, %v675_v22  ;;  %v1102_v47 = vmul.f32 0.5, %v536_v46 }
 0x110   : > { %4085 = vst [vmem:[#allocation21_spill] sm:$0xff] %v3133_v32  ;;  %v3141_v40 = vpop.f32.mrb[17].mxu1  ;;  %v2423_v21 = vpop.eup %2422  ;;  %4086 = vst [vmem:[#allocation22_spill] sm:$0xff] %v3151_v26  ;;  %v1509_v33 = vadd.f32 1.0, %v2421_v18  ;;  %2434 = verf.f32 %v1215_v45  ;;  %v544_v29 = vadd.f32 %v3084_v30, %v3006_v62  ;;  %v3167_v55 = vadd.f32 %v3086_v42, %v2996_v57 }
 0x111   : > { %4084 = vst [vmem:[#allocation20_spill] sm:$0xff] %v3125_v23  ;;  %v2425_v34 = vpop.eup %2424  ;;  %v1431_v14 = vadd.f32 1.0, %v2423_v21  ;;  %v1076_v18 = vmul.f32 0.5, %v673_v48  ;;  %2436 = verf.f32 %v1189_v27  ;;  %v1221_v17 = vmul.f32 0.70710677, %v542_v28 }
 0x112   : > { %v3159_v13 = vpop.f32.mrb[18].mxu0  ;;  %v3161_v15 = vpop.f32.mrb[18].mxu1  ;;  %v3174_v52 = vmul.f32 %v1425_v6, %v3075_v12  ;;  %v1405_v46 = vadd.f32 1.0, %v2425_v34  ;;  %v1195_v45 = vmul.f32 0.70710677, %v679_v36  ;;  %v3177_v30 = vmul.f32 %v1509_v33, %v3093_v31 }
 0x113   : > { %v3169_v49 = vpop.f32.mrb[19].mxu0  ;;  %v3171_v24 = vpop.f32.mrb[19].mxu1  ;;  %v1222_v23 = vmul.f32 0.70710677, %v544_v29  ;;  %v3179_v26 = vmul.f32 0.5, %v538_v25  ;;  %2438 = verf.f32 %v1221_v17  ;;  %v2235_v12 = vpack.c.bf16 %v3110_v50, %v3089_v7 }
 0x114   : > { %4087 = vst [vmem:[#allocation23_spill] sm:$0xff] %v3177_v30  ;;  %v1196_v42 = vmul.f32 0.70710677, %v3167_v55  ;;  %v2427_v27 = vpop.eup %2426  ;;  %2440 = verf.f32 %v1195_v45  ;;  %v548_v48 = vadd.f32 %v3105_v10, %v3008_v63  ;;  %v685_v31 = vadd.f32 %v3107_v9, %v3000_v59 }
 0x115   : > { %v2429_v6 = vpop.eup %2428  ;;  %v3197_v34 = vmul.f32 %v1431_v14, %v3098_v43  ;;  %v3199_v17 = vmul.f32 0.5, %v675_v22  ;;  %v550_v45 = vadd.f32 %v3115_v20, %v3008_v63  ;;  %v687_v7 = vadd.f32 %v3117_v38, %v3000_v59  ;;  %2236 = vmatprep.subr.bf16.mxu1 %v2235_v12 }
 0x116   : > { %v3182_v32 = vpop.f32.mrb[20].mxu0  ;;  %v3184_v21 = vpop.f32.mrb[20].mxu1  ;;  %v3206_v50 = vmul.f32 %v1405_v46, %v3101_v0  ;;  %v3208_v9 = vmul.f32 0.5, %v542_v28  ;;  %2442 = verf.f32 %v1222_v23  ;;  %v1228_v30 = vmul.f32 0.70710677, %v548_v48 }
 0x117   : > { %v3192_v25 = vpop.f32.mrb[21].mxu0  ;;  %v3194_v33 = vpop.f32.mrb[21].mxu1  ;;  %v3210_v14 = vmul.f32 0.5, %v679_v36  ;;  %2444 = verf.f32 %v1196_v42  ;;  %v1202_v22 = vmul.f32 0.70710677, %v685_v31  ;;  %v4088_v20 = vpack.c.bf16 %v3068_v54, %v3063_v35 }
 0x118   : > { %v2431_v10 = vpop.eup %2430  ;;  %v1432_v16 = vadd.f32 1.0, %v2427_v27  ;;  %2446 = verf.f32 %v1228_v30  ;;  %v1229_v28 = vmul.f32 0.70710677, %v550_v45  ;;  %v1406_v12 = vadd.f32 1.0, %v2429_v6 }
 0x119   : > { %v2433_v37 = vpop.eup %2432  ;;  %v1438_v43 = vadd.f32 1.0, %v2431_v10  ;;  %2238 = vmatpush1.bf16.msra.mxu1 %v4088_v20  ;;  %2448 = verf.f32 %v1202_v22  ;;  %v1203_v36 = vmul.f32 0.70710677, %v687_v7  ;;  %v554_v54 = vadd.f32 %v3128_v51, %v3010_v1 }
 0x11a   : > { %v3215_v38 = vpop.f32.mrb[22].mxu0  ;;  %v1412_v0 = vadd.f32 1.0, %v2433_v37  ;;  %v3217_v46 = vpop.f32.mrb[22].mxu1  ;;  %2450 = verf.f32 %v1229_v28  ;;  %v691_v37 = vadd.f32 %v3130_v8, %v3002_v60  ;;  %v556_v6 = vadd.f32 %v3139_v44, %v3010_v1 }
 0x11b   : > { %v3219_v23 = vpop.f32.mrb[23].mxu0  ;;  %v3221_v10 = vmul.f32 %v1438_v43, %v1102_v47  ;;  %v3223_v42 = vpop.f32.mrb[23].mxu1  ;;  %v3233_v47 = vmul.f32 0.5, %v544_v29  ;;  %2452 = verf.f32 %v1203_v36  ;;  %v3244_v8 = vmul.f32 0.5, %v3167_v55 }
 0x11c   : > { %v2435_v5 = vpop.eup %2434  ;;  %v3225_v35 = vmul.f32 %v1412_v0, %v1076_v18  ;;  %v1235_v20 = vmul.f32 0.70710677, %v554_v54  ;;  %v3251_v36 = vmul.f32 %v1432_v16, %v3148_v41  ;;  %v1116_v44 = vmul.f32 0.5, %v548_v48 }
 0x11d   : > { %v2437_v30 = vpop.eup %2436  ;;  %v1439_v22 = vadd.f32 1.0, %v2435_v5  ;;  %v1090_v27 = vmul.f32 0.5, %v685_v31  ;;  %v1209_v59 = vmul.f32 0.70710677, %v691_v37  ;;  %v3254_v58 = vmul.f32 %v1406_v12, %v3153_v19 }
 0x11e   : > { %v3237_v43 = vpop.f32.mrb[24].mxu1  ;;  %v3239_v18 = vpop.f32.mrb[24].mxu0  ;;  %v1413_v5 = vadd.f32 1.0, %v2437_v30  ;;  %v3256_v51 = vmul.f32 0.5, %v550_v45  ;;  %2454 = verf.f32 %v1235_v20  ;;  %v2239_v16 = vpack.c.bf16 %v3174_v52, %v3144_v39 }
 0x11f   : > { %4089 = vst [vmem:[#allocation24_spill] sm:$0xff] %v3239_v18  ;;  %v3246_v0 = vpop.f32.mrb[25].mxu1  ;;  %v3248_v29 = vpop.f32.mrb[25].mxu0  ;;  %v1236_v18 = vmul.f32 0.70710677, %v556_v6  ;;  %v3267_v19 = vmul.f32 %v1439_v22, %v3179_v26  ;;  %v3269_v12 = vmul.f32 0.5, %v687_v7  ;;  %v560_v30 = vadd.f32 %v3159_v13, %v3012_v2 }
 0x120   : > { %4090 = vst [vmem:[#allocation25_spill] sm:$0xff] %v3248_v29  ;;  %v2439_v28 = vpop.eup %2438  ;;  %v693_v29 = vadd.f32 %v3141_v40, %v3002_v60  ;;  %v3271_v45 = vmul.f32 0.5, %v554_v54  ;;  %2456 = verf.f32 %v1209_v59  ;;  %2240 = vmatprep.subr.bf16.mxu1 %v2239_v16  ;;  %v3282_v7 = vmul.f32 %v1413_v5, %v3199_v17 }
 0x121   : > { %v2441_v57 = vpop.eup %2440  ;;  %v1445_v55 = vadd.f32 1.0, %v2439_v28  ;;  %v3279_v28 = vmul.f32 0.5, %v691_v37  ;;  %v3284_v54 = vmul.f32 0.5, %v556_v6  ;;  %v1242_v22 = vmul.f32 0.70710677, %v560_v30 }
 0x122   : > { %v3262_v41 = vpop.f32.mrb[26].mxu1  ;;  %v3264_v48 = vpop.f32.mrb[26].mxu0  ;;  %v1419_v39 = vadd.f32 1.0, %v2441_v57  ;;  %v1210_v60 = vmul.f32 0.70710677, %v693_v29  ;;  %v697_v13 = vadd.f32 %v3161_v15, %v3004_v61  ;;  %2458 = verf.f32 %v1236_v18 }
 0x123   : > { %4091 = vst [vmem:[#allocation26_spill] sm:$0xff] %v3264_v48  ;;  %v2443_v31 = vpop.eup %2442  ;;  %v3275_v20 = vpop.f32.mrb[27].mxu1  ;;  %v3292_v37 = vmul.f32 %v1445_v55, %v3208_v9  ;;  %v562_v17 = vadd.f32 %v3169_v49, %v3012_v2  ;;  %2460 = verf.f32 %v1242_v22 }
 0x124   : > { %4092 = vst [vmem:[#allocation27_spill] sm:$0xff] %v3275_v20  ;;  %v3277_v40 = vpop.f32.mrb[27].mxu0  ;;  %v2445_v52 = vpop.eup %2444  ;;  %v1446_v20 = vadd.f32 1.0, %v2443_v31  ;;  %v1216_v48 = vmul.f32 0.70710677, %v697_v13  ;;  %v3305_v55 = vmul.f32 %v1419_v39, %v3210_v14  ;;  %2462 = verf.f32 %v1210_v60 }
 0x125   : > { %4093 = vst [vmem:[#allocation28_spill] sm:$0xff] %v3277_v40  ;;  %v2447_v26 = vpop.eup %2446  ;;  %v4094_v40 = vpack.c.bf16 %v3120_v11, %v3113_v53  ;;  %v1243_v49 = vmul.f32 0.70710677, %v562_v17  ;;  %v699_v31 = vadd.f32 %v3171_v24, %v3004_v61  ;;  %v566_v14 = vadd.f32 %v3182_v32, %v3014_v3 }
 0x126   : > { %v2449_v57 = vpop.eup %2448  ;;  %v1452_v59 = vadd.f32 1.0, %v2447_v26  ;;  %v3296_v5 = vpop.f32.mrb[28].mxu1  ;;  %2464 = verf.f32 %v1216_v48 }
 0x127   : > { %2242 = vmatpush1.bf16.msra.mxu1 %v4094_v40  ;;  %v3298_v6 = vpop.f32.mrb[28].mxu0  ;;  %v2451_v16 = vpop.eup %2450  ;;  %v1426_v15 = vadd.f32 1.0, %v2449_v57  ;;  %v1420_v40 = vadd.f32 1.0, %v2445_v52  ;;  %2466 = verf.f32 %v1243_v49  ;;  %v1217_v24 = vmul.f32 0.70710677, %v699_v31 }
 0x128   : > { %v3300_v11 = vpop.f32.mrb[29].mxu1  ;;  %v3302_v53 = vpop.f32.mrb[29].mxu0  ;;  %v3307_v18 = vmul.f32 %v1452_v59, %v1116_v44  ;;  %v1453_v57 = vadd.f32 1.0, %v2451_v16  ;;  %v1130_v16 = vmul.f32 0.5, %v560_v30  ;;  %v1249_v32 = vmul.f32 0.70710677, %v566_v14 }
 0x129   : > { %4095 = vst [vmem:[#allocation29_spill] sm:$0xff] %v3302_v53  ;;  %v2453_v9 = vpop.eup %2452  ;;  %v3309_v26 = vmul.f32 %v1426_v15, %v1090_v27  ;;  %v3315_v53 = vmul.f32 0.5, %v693_v29  ;;  %v3330_v29 = vmul.f32 %v1446_v20, %v3233_v47  ;;  %v703_v15 = vadd.f32 %v3184_v21, %v3006_v62 }
 0x12a   : > { %v3319_v44 = vpop.f32.mrb[30].mxu1  ;;  %v3321_v60 = vpop.f32.mrb[30].mxu0  ;;  %v1427_v48 = vadd.f32 1.0, %v2453_v9  ;;  %v3335_v22 = vmul.f32 %v1420_v40, %v3244_v8  ;;  %2468 = verf.f32 %v1217_v24  ;;  %v568_v9 = vadd.f32 %v3192_v25, %v3014_v3 }
 0x12b   : > { %v2455_v52 = vpop.eup %2454  ;;  %v3325_v39 = vpop.f32.mrb[31].mxu1  ;;  %v3341_v49 = vadd.f32 %v3194_v33, %v3006_v62  ;;  %v1104_v47 = vmul.f32 0.5, %v697_v13  ;;  %v3343_v20 = vmul.f32 0.5, %v562_v17  ;;  %2470 = verf.f32 %v1249_v32 }
 0x12c   : > { %v3327_v59 = vpop.f32.mrb[31].mxu0  ;;  %v2457_v27 = vpop.eup %2456  ;;  %v1459_v61 = vadd.f32 1.0, %v2455_v52  ;;  %v3350_v8 = vmul.f32 %v1453_v57, %v3256_v51  ;;  %v3353_v40 = vmul.f32 %v1427_v48, %v3269_v12  ;;  %v1223_v25 = vmul.f32 0.70710677, %v703_v15 }
 0x12d   : > { %v1250_v24 = vmul.f32 0.70710677, %v568_v9  ;;  %v2459_v62 = vpop.eup %2458  ;;  %v3357_v52 = vmul.f32 0.5, %v699_v31  ;;  %v3359_v13 = vmul.f32 0.5, %v566_v14  ;;  %v1224_v17 = vmul.f32 0.70710677, %v3341_v49 }
 0x12e   : > { %v3345_v30 = vpop.f32.mrb[32].mxu1  ;;  %v3347_v21 = vpop.f32.mrb[32].mxu0  ;;  %v2243_v32 = vpack.c.bf16 %v3267_v19, %v3251_v36  ;;  %v1433_v57 = vadd.f32 1.0, %v2457_v27  ;;  %2472 = verf.f32 %v1223_v25  ;;  %v2267_v12 = vpack.c.bf16 %v3282_v7, %v3254_v58 }
 0x12f   : > { %4096 = vst [vmem:[#allocation30_spill] sm:$0xff] %v3347_v21  ;;  %v3355_v33 = vpop.f32.mrb[33].mxu1  ;;  %v3364_v21 = vpop.f32.mrb[33].mxu0  ;;  %v572_v48 = vadd.f32 %v3215_v38, %v3016_v4  ;;  %v3371_v14 = vmul.f32 %v1459_v61, %v3271_v45  ;;  %v709_v36 = vadd.f32 %v3217_v46, %v3008_v63  ;;  %v574_v19 = vadd.f32 %v3219_v23, %v3016_v4 }
 0x130   : > { %4097 = vst [vmem:[#allocation31_spill] sm:$0xff] %v3355_v33  ;;  %4098 = vst [vmem:[#allocation32_spill] sm:$0xff] %v3364_v21  ;;  %v2461_v51 = vpop.eup %2460  ;;  %2244 = vmatprep.subr.bf16.mxu1 %v2243_v32  ;;  %v1460_v7 = vadd.f32 1.0, %v2459_v62  ;;  %v3381_v21 = vmul.f32 0.5, %v703_v15  ;;  %2474 = verf.f32 %v1250_v24  ;;  %2268 = vmatprep.subr.bf16.mxu0 %v2267_v12  ;;  %v4099_v38 = vpack.c.bf16 %v3221_v10, %v3197_v34 }
 0x131   : > { %v2463_v31 = vpop.eup %2462  ;;  %v1466_v33 = vadd.f32 1.0, %v2461_v51  ;;  %v1256_v61 = vmul.f32 0.70710677, %v572_v48  ;;  %2476 = verf.f32 %v1224_v17  ;;  %v1230_v51 = vmul.f32 0.70710677, %v709_v36 }
 0x132   : > { %v3377_v27 = vpop.f32.mrb[34].mxu1  ;;  %v3379_v25 = vpop.f32.mrb[34].mxu0  ;;  %2246 = vmatpush1.bf16.msra.mxu1 %v4099_v38  ;;  %v4100_v62 = vpack.c.bf16 %v3225_v35, %v3206_v50  ;;  %v3396_v24 = vmul.f32 %v1433_v57, %v3279_v28  ;;  %v1434_v12 = vadd.f32 1.0, %v2463_v31  ;;  %v1257_v34 = vmul.f32 0.70710677, %v574_v19 }
 0x133   : > { %v2465_v58 = vpop.eup %2464  ;;  %v3386_v45 = vpop.f32.mrb[35].mxu1  ;;  %v3390_v23 = vmul.f32 %v1466_v33, %v1130_v16  ;;  %2478 = verf.f32 %v1256_v61  ;;  %v711_v16 = vadd.f32 %v3223_v42, %v3008_v63  ;;  %v3409_v28 = vmul.f32 %v1460_v7, %v3284_v54 }
 0x134   : > { %v3388_v46 = vpop.f32.mrb[35].mxu0  ;;  %v1440_v32 = vadd.f32 1.0, %v2465_v58  ;;  %2270 = vmatpush1.bf16.msra.mxu0 %v4100_v62  ;;  %v2467_v15 = vpop.eup %2466  ;;  %2480 = verf.f32 %v1230_v51  ;;  %v3411_v17 = vmul.f32 0.5, %v568_v9  ;;  %v715_v57 = vadd.f32 %v3237_v43, %v3010_v1 }
 0x135   : > { %v2469_v35 = vpop.eup %2468  ;;  %v1467_v51 = vadd.f32 1.0, %v2467_v15  ;;  %2482 = verf.f32 %v1257_v34  ;;  %v1231_v54 = vmul.f32 0.70710677, %v711_v16  ;;  %v3424_v9 = vmul.f32 %v1434_v12, %v3315_v53  ;;  %v4106_v53 = vld [vmem:[#allocation25_spill] sm:$0xff] }
 0x136   : > { %v3400_v38 = vmul.f32 %v1440_v32, %v1104_v47  ;;  %v3404_v33 = vpop.f32.mrb[36].mxu1  ;;  %v3406_v50 = vpop.f32.mrb[36].mxu0  ;;  %v4101_v47 = vld [vmem:[#allocation24_spill] sm:$0xff]  ;;  %v3427_v7 = vmul.f32 0.5, %v3341_v49  ;;  %v1144_v43 = vmul.f32 0.5, %v572_v48  ;;  %v717_v63 = vadd.f32 %v3246_v0, %v3010_v1 }
 0x137   : > { %v828_v31 = vadd.f32 %v4101_v47, %v2994_v56  ;;  %v3417_v58 = vpop.f32.mrb[37].mxu1  ;;  %v3419_v61 = vpop.f32.mrb[37].mxu0  ;;  %v1237_v62 = vmul.f32 0.70710677, %v715_v57  ;;  %v1441_v47 = vadd.f32 1.0, %v2469_v35  ;;  %2484 = verf.f32 %v1231_v54 }
 0x138   : > { %4102 = vst [vmem:[#allocation24_spill] sm:$0xff] %v3417_v58  ;;  %4103 = vst [vmem:[#allocation33_spill] sm:$0xff] %v3419_v61  ;;  %v2471_v42 = vpop.eup %2470  ;;  %v830_v12 = vadd.f32 %v4106_v53, %v2994_v56  ;;  %v2247_v49 = vpack.c.bf16 %v3350_v8, %v3330_v29  ;;  %v3444_v54 = vmul.f32 %v1467_v51, %v3343_v20  ;;  %v1118_v0 = vmul.f32 0.5, %v709_v36 }
 0x139   : > { %v1183_v10 = vmul.f32 0.70710677, %v828_v31  ;;  %v2473_v15 = vpop.eup %2472  ;;  %v1473_v34 = vadd.f32 1.0, %v2471_v42  ;;  %2486 = verf.f32 %v1237_v62  ;;  %v3446_v1 = vmul.f32 0.5, %v574_v19 }
 0x13a   : > { %v3431_v61 = vpop.f32.mrb[38].mxu1  ;;  %v3433_v32 = vpop.f32.mrb[38].mxu0  ;;  %v1447_v42 = vadd.f32 1.0, %v2473_v15  ;;  %v3448_v62 = vmul.f32 0.5, %v711_v16  ;;  %v1184_v58 = vmul.f32 0.70710677, %v830_v12  ;;  %2248 = vmatprep.subr.bf16.mxu1 %v2247_v49  ;;  %v2271_v29 = vpack.c.bf16 %v3353_v40, %v3335_v22 }
 0x13b   : > { %4104 = vst [vmem:[#allocation34_spill] sm:$0xff] %v3431_v61  ;;  %4105 = vst [vmem:[#allocation35_spill] sm:$0xff] %v3433_v32  ;;  %v3439_v48 = vpop.f32.mrb[39].mxu1  ;;  %v3441_v35 = vpop.f32.mrb[39].mxu0  ;;  %v1238_v32 = vmul.f32 0.70710677, %v717_v63  ;;  %2488 = verf.f32 %v1183_v10  ;;  %v721_v20 = vadd.f32 %v3262_v41, %v3012_v2  ;;  %v4107_v36 = vpack.c.bf16 %v3307_v18, %v3292_v37 }
 0x13c   : > { %v2475_v61 = vpop.eup %2474  ;;  %v3452_v53 = vmul.f32 0.5, %v715_v57  ;;  %v3454_v56 = vmul.f32 0.5, %v828_v31  ;;  %v3466_v22 = vmul.f32 %v1441_v47, %v3357_v52  ;;  %v3469_v40 = vmul.f32 %v1473_v34, %v3359_v13  ;;  %2272 = vmatprep.subr.bf16.mxu0 %v2271_v29  ;;  %v4109_v10 = vld [vmem:[#allocation4_spill] sm:$0xff]  ;;  %v4110_v57 = vld [vmem:[#allocation26_spill] sm:$0xff]  ;;  %v4111_v41 = vld [vmem:[#allocation27_spill] sm:$0xff] }
 0x13d   : > { %v2477_v8 = vpop.eup %2476  ;;  %2250 = vmatpush1.bf16.msra.mxu1 %v4107_v36  ;;  %v834_v31 = vadd.f32 %v4110_v57, %v4109_v10  ;;  %v723_v15 = vadd.f32 %v4111_v41, %v3012_v2  ;;  %v1474_v36 = vadd.f32 1.0, %v2475_v61  ;;  %2490 = verf.f32 %v1238_v32 }
 0x13e   : > { %v3461_v19 = vpop.f32.mrb[40].mxu0  ;;  %v3463_v16 = vpop.f32.mrb[40].mxu1  ;;  %v1244_v52 = vmul.f32 0.70710677, %v721_v20  ;;  %v4113_v13 = vpack.c.bf16 %v3309_v26, %v3305_v55  ;;  %v3483_v47 = vmul.f32 %v1447_v42, %v3381_v21  ;;  %2492 = verf.f32 %v1184_v58  ;;  %v4116_v55 = vld [vmem:[#allocation28_spill] sm:$0xff] }
 0x13f   : > { %4108 = vst [vmem:[#allocation25_spill] sm:$0xff] %v3463_v16  ;;  %v2479_v51 = vpop.eup %2478  ;;  %v3475_v37 = vpop.f32.mrb[41].mxu0  ;;  %v1190_v29 = vmul.f32 0.70710677, %v834_v31  ;;  %v1448_v41 = vadd.f32 1.0, %v2477_v8  ;;  %v836_v26 = vadd.f32 %v4116_v55, %v4109_v10  ;;  %v727_v21 = vadd.f32 %v3296_v5, %v3014_v3 }
 0x140   : > { %v3477_v18 = vpop.f32.mrb[41].mxu1  ;;  %v2481_v49 = vpop.eup %2480  ;;  %v1480_v16 = vadd.f32 1.0, %v2479_v51  ;;  %2274 = vmatpush1.bf16.msra.mxu0 %v4113_v13  ;;  %2494 = verf.f32 %v1244_v52  ;;  %v1132_v8 = vmul.f32 0.5, %v721_v20  ;;  %v4122_v20 = vld [vmem:[#allocation29_spill] sm:$0xff] }
 0x141   : > { %4112 = vst [vmem:[#allocation4_spill] sm:$0xff] %v3477_v18  ;;  %v1454_v34 = vadd.f32 1.0, %v2481_v49  ;;  %v2483_v57 = vpop.eup %2482  ;;  %v1245_v18 = vmul.f32 0.70710677, %v723_v15  ;;  %2496 = verf.f32 %v1190_v29  ;;  %v3505_v49 = vmul.f32 0.5, %v830_v12 }
 0x142   : > { %v3485_v2 = vmul.f32 %v1480_v16, %v1144_v43  ;;  %v3487_v61 = vpop.f32.mrb[42].mxu0  ;;  %v3489_v32 = vpop.f32.mrb[42].mxu1  ;;  %v3503_v16 = vmul.f32 0.5, %v717_v63  ;;  %v1481_v29 = vadd.f32 1.0, %v2483_v57  ;;  %v1191_v55 = vmul.f32 0.70710677, %v836_v26 }
 0x143   : > { %4114 = vst [vmem:[#allocation26_spill] sm:$0xff] %v3487_v61  ;;  %4115 = vst [vmem:[#allocation27_spill] sm:$0xff] %v3489_v32  ;;  %v3491_v51 = vmul.f32 %v1454_v34, %v1118_v0  ;;  %v3497_v58 = vpop.f32.mrb[43].mxu0  ;;  %v3499_v42 = vpop.f32.mrb[43].mxu1  ;;  %v4119_v0 = vld [vmem:[#allocation3_spill] sm:$0xff]  ;;  %v3510_v34 = vmul.f32 %v1474_v36, %v3411_v17  ;;  %2498 = verf.f32 %v1245_v18  ;;  %v1078_v32 = vmul.f32 0.5, %v834_v31 }
 0x144   : > { %4117 = vst [vmem:[#allocation28_spill] sm:$0xff] %v3497_v58  ;;  %4118 = vst [vmem:[#allocation36_spill] sm:$0xff] %v3499_v42  ;;  %v2485_v43 = vpop.eup %2484  ;;  %v840_v52 = vadd.f32 %v3298_v6, %v4119_v0  ;;  %v3515_v42 = vmul.f32 %v1448_v41, %v3427_v7  ;;  %v1251_v63 = vmul.f32 0.70710677, %v727_v21  ;;  %2500 = verf.f32 %v1191_v55 }
 0x145   : > { %v2487_v13 = vpop.eup %2486  ;;  %v1455_v58 = vadd.f32 1.0, %v2485_v43  ;;  %v729_v7 = vadd.f32 %v3300_v11, %v3014_v3  ;;  %v842_v18 = vadd.f32 %v4122_v20, %v4119_v0  ;;  %v3530_v41 = vmul.f32 %v1481_v29, %v3446_v1 }
 0x146   : > { %v3517_v12 = vpop.f32.mrb[44].mxu0  ;;  %v1197_v6 = vmul.f32 0.70710677, %v840_v52  ;;  %v3519_v61 = vpop.f32.mrb[44].mxu1  ;;  %v1461_v5 = vadd.f32 1.0, %v2487_v13  ;;  %2502 = verf.f32 %v1251_v63  ;;  %v3532_v31 = vmul.f32 0.5, %v723_v15 }
 0x147   : > { %4120 = vst [vmem:[#allocation3_spill] sm:$0xff] %v3519_v61  ;;  %v3521_v17 = vpop.f32.mrb[45].mxu0  ;;  %v2489_v36 = vpop.eup %2488  ;;  %v2251_v43 = vpack.c.bf16 %v3444_v54, %v3409_v28  ;;  %v3536_v13 = vmul.f32 0.5, %v836_v26  ;;  %v3538_v63 = vmul.f32 0.5, %v727_v21  ;;  %v3540_v11 = vmul.f32 0.5, %v840_v52 }
 0x148   : > { %4121 = vst [vmem:[#allocation37_spill] sm:$0xff] %v3521_v17  ;;  %v3527_v57 = vpop.f32.mrb[45].mxu1  ;;  %2504 = verf.f32 %v1197_v6  ;;  %v2491_v55 = vpop.eup %2490  ;;  %v1252_v17 = vmul.f32 0.70710677, %v729_v7  ;;  %v1407_v61 = vadd.f32 1.0, %v2489_v36  ;;  %v2275_v15 = vpack.c.bf16 %v3466_v22, %v3424_v9  ;;  %v4126_v6 = vld [vmem:[#allocation5_spill] sm:$0xff] }
 0x149   : > { %4123 = vst [vmem:[#allocation29_spill] sm:$0xff] %v3527_v57  ;;  %v2493_v57 = vpop.eup %2492  ;;  %v1198_v1 = vmul.f32 0.70710677, %v842_v18  ;;  %2252 = vmatprep.subr.bf16.mxu1 %v2251_v43  ;;  %v733_v28 = vadd.f32 %v3319_v44, %v3016_v4  ;;  %v3553_v52 = vmul.f32 %v1455_v58, %v3448_v62  ;;  %v3556_v29 = vmul.f32 %v1461_v5, %v3452_v53 }
 0x14a   : > { %v3542_v20 = vpop.f32.mrb[46].mxu0  ;;  %v3548_v54 = vpop.f32.mrb[46].mxu1  ;;  %v846_v36 = vadd.f32 %v3321_v60, %v4126_v6  ;;  %v4127_v9 = vpack.c.bf16 %v3390_v23, %v3371_v14  ;;  %v735_v44 = vadd.f32 %v3325_v39, %v3016_v4  ;;  %2506 = verf.f32 %v1252_v17  ;;  %2276 = vmatprep.subr.bf16.mxu0 %v2275_v15 }
 0x14b   : > { %4124 = vst [vmem:[#allocation38_spill] sm:$0xff] %v3548_v54  ;;  %v3550_v26 = vpop.f32.mrb[47].mxu0  ;;  %v2495_v21 = vpop.eup %2494  ;;  %v1258_v62 = vmul.f32 0.70710677, %v733_v28  ;;  %v1408_v53 = vadd.f32 1.0, %v2493_v57  ;;  %2508 = verf.f32 %v1198_v1  ;;  %v4128_v60 = vpack.c.bf16 %v3400_v38, %v3396_v24  ;;  %v4132_v38 = vld [vmem:[#allocation12_spill] sm:$0xff] }
 0x14c   : > { %4125 = vst [vmem:[#allocation39_spill] sm:$0xff] %v3550_v26  ;;  %2254 = vmatpush1.bf16.msra.mxu1 %v4127_v9  ;;  %v3565_v22 = vpop.f32.mrb[47].mxu1  ;;  %v2497_v43 = vpop.eup %2496  ;;  %v1462_v26 = vadd.f32 1.0, %v2491_v55  ;;  %v1468_v54 = vadd.f32 1.0, %v2495_v21  ;;  %v1204_v5 = vmul.f32 0.70710677, %v846_v36  ;;  %v3573_v39 = vmul.f32 %v1407_v61, %v3454_v56 }
 0x14d   : > { %v1414_v58 = vadd.f32 1.0, %v2497_v43  ;;  %2278 = vmatpush1.bf16.msra.mxu0 %v4128_v60  ;;  %2510 = verf.f32 %v1258_v62  ;;  %v1259_v55 = vmul.f32 0.70710677, %v735_v44  ;;  %v2499_v57 = vpop.eup %2498  ;;  %v848_v24 = vadd.f32 %v3327_v59, %v4126_v6  ;;  %v4134_v43 = vld [vmem:[#allocation6_spill] sm:$0xff] }
 0x14e   : > { %v3570_v14 = vpop.f32.mrb[48].mxu0  ;;  %v3575_v23 = vmul.f32 %v1468_v54, %v1132_v8  ;;  %v3577_v17 = vpop.f32.mrb[48].mxu1  ;;  %2512 = verf.f32 %v1204_v5  ;;  %v739_v21 = vadd.f32 %v3345_v30, %v4132_v38  ;;  %v3591_v54 = vmul.f32 0.5, %v729_v7 }
 0x14f   : > { %4129 = vst [vmem:[#allocation5_spill] sm:$0xff] %v3570_v14  ;;  %4130 = vst [vmem:[#allocation40_spill] sm:$0xff] %v3577_v17  ;;  %v3579_v15 = vpop.f32.mrb[49].mxu0  ;;  %v3581_v1 = vmul.f32 %v1414_v58, %v1078_v32  ;;  %v3587_v56 = vpop.f32.mrb[49].mxu1  ;;  %v3593_v9 = vmul.f32 0.5, %v842_v18  ;;  %v4135_v32 = vld [vmem:[#allocation30_spill] sm:$0xff]  ;;  %v3598_v5 = vmul.f32 %v1462_v26, %v3503_v16  ;;  %v3601_v59 = vmul.f32 %v1408_v53, %v3505_v49 }
 0x150   : > { %4131 = vst [vmem:[#allocation41_spill] sm:$0xff] %v3579_v15  ;;  %4133 = vst [vmem:[#allocation12_spill] sm:$0xff] %v3587_v56  ;;  %v2501_v61 = vpop.eup %2500  ;;  %v852_v62 = vadd.f32 %v4135_v32, %v4134_v43  ;;  %v1205_v60 = vmul.f32 0.70710677, %v848_v24  ;;  %v1469_v8 = vadd.f32 1.0, %v2499_v57  ;;  %v1146_v15 = vmul.f32 0.5, %v733_v28 }
 0x151   : > { %v2503_v58 = vpop.eup %2502  ;;  %2514 = verf.f32 %v1259_v55  ;;  %v1265_v32 = vmul.f32 0.70710677, %v739_v21  ;;  %v1092_v16 = vmul.f32 0.5, %v846_v36  ;;  %v3611_v26 = vmul.f32 0.5, %v735_v44 }
 0x152   : > { %v3605_v56 = vpop.f32.mrb[50].mxu0  ;;  %v3607_v7 = vpop.f32.mrb[50].mxu1  ;;  %2516 = verf.f32 %v1205_v60  ;;  %v1211_v49 = vmul.f32 0.70710677, %v852_v62  ;;  %v1415_v30 = vadd.f32 1.0, %v2501_v61  ;;  %v1475_v28 = vadd.f32 1.0, %v2503_v58 }
 0x153   : > { %4136 = vst [vmem:[#allocation6_spill] sm:$0xff] %v3605_v56  ;;  %4137 = vst [vmem:[#allocation30_spill] sm:$0xff] %v3607_v7  ;;  %v2505_v18 = vpop.eup %2504  ;;  %v3609_v17 = vpop.f32.mrb[51].mxu0  ;;  %2518 = verf.f32 %v1265_v32  ;;  %v4140_v56 = vld [vmem:[#allocation31_spill] sm:$0xff]  ;;  %v4141_v7 = vld [vmem:[#allocation32_spill] sm:$0xff]  ;;  %v2279_v36 = vpack.c.bf16 %v3553_v52, %v3515_v42  ;;  %v3628_v32 = vmul.f32 %v1469_v8, %v3532_v31 }
 0x154   : > { %4138 = vst [vmem:[#allocation42_spill] sm:$0xff] %v3609_v17  ;;  %v3613_v53 = vpop.f32.mrb[51].mxu1  ;;  %v741_v14 = vadd.f32 %v4140_v56, %v4132_v38  ;;  %v854_v57 = vadd.f32 %v4141_v7, %v4134_v43  ;;  %v1421_v55 = vadd.f32 1.0, %v2505_v18  ;;  %v2255_v17 = vpack.c.bf16 %v3530_v41, %v3510_v34  ;;  %v2507_v61 = vpop.eup %2506  ;;  %v4145_v42 = vld [vmem:[#allocation13_spill] sm:$0xff]  ;;  %v4146_v52 = vld [vmem:[#allocation7_spill] sm:$0xff] }
 0x155   : > { %4139 = vst [vmem:[#allocation43_spill] sm:$0xff] %v3613_v53  ;;  %v3630_v56 = vmul.f32 0.5, %v848_v24  ;;  %2520 = verf.f32 %v1211_v49  ;;  %v2509_v18 = vpop.eup %2508  ;;  %v3634_v53 = vmul.f32 0.5, %v739_v21  ;;  %2280 = vmatprep.subr.bf16.mxu0 %v2279_v36  ;;  %v745_v41 = vadd.f32 %v3377_v27, %v4145_v42 }
 0x156   : > { %v3623_v44 = vpop.f32.mrb[52].mxu0  ;;  %v3625_v60 = vpop.f32.mrb[52].mxu1  ;;  %v1266_v7 = vmul.f32 0.70710677, %v741_v14  ;;  %v1212_v34 = vmul.f32 0.70710677, %v854_v57  ;;  %2256 = vmatprep.subr.bf16.mxu1 %v2255_v17  ;;  %v3643_v8 = vmul.f32 %v1415_v30, %v3536_v13  ;;  %v4148_v21 = vpack.c.bf16 %v3485_v2, %v3469_v40 }
 0x157   : > { %4142 = vst [vmem:[#allocation31_spill] sm:$0xff] %v3623_v44  ;;  %4143 = vst [vmem:[#allocation32_spill] sm:$0xff] %v3625_v60  ;;  %v3632_v58 = vpop.f32.mrb[53].mxu0  ;;  %v858_v60 = vadd.f32 %v3379_v25, %v4146_v52  ;;  %v3640_v31 = vpop.f32.mrb[53].mxu1  ;;  %v3645_v49 = vmul.f32 0.5, %v852_v62  ;;  %v4149_v17 = vpack.c.bf16 %v3491_v51, %v3483_v47  ;;  %v747_v27 = vadd.f32 %v3386_v45, %v4145_v42  ;;  %v4162_v44 = vld [vmem:[#allocation33_spill] sm:$0xff] }
 0x158   : > { %4144 = vst [vmem:[#allocation44_spill] sm:$0xff] %v3632_v58  ;;  %4147 = vst [vmem:[#allocation13_spill] sm:$0xff] %v3640_v31  ;;  %v2511_v24 = vpop.eup %2510  ;;  %2258 = vmatpush1.bf16.msra.mxu1 %v4148_v21  ;;  %v860_v25 = vadd.f32 %v3388_v46, %v4146_v52  ;;  %v3658_v13 = vmul.f32 %v1475_v28, %v3538_v63  ;;  %v3661_v62 = vmul.f32 %v1421_v55, %v3540_v11  ;;  %v4160_v31 = vld [vmem:[#allocation16_spill] sm:$0xff] }
 0x159   : > { %2282 = vmatpush1.bf16.msra.mxu0 %v4149_v17  ;;  %v2513_v36 = vpop.eup %2512  ;;  %v1482_v30 = vadd.f32 1.0, %v2511_v24  ;;  %2522 = verf.f32 %v1266_v7  ;;  %v1476_v47 = vadd.f32 1.0, %v2507_v61  ;;  %v1272_v21 = vmul.f32 0.70710677, %v745_v41 }
 0x15a   : > { %v3663_v2 = vpop.f32.mrb[54].mxu0  ;;  %v3665_v40 = vpop.f32.mrb[54].mxu1  ;;  %v1428_v51 = vadd.f32 1.0, %v2513_v36  ;;  %v1218_v45 = vmul.f32 0.70710677, %v858_v60  ;;  %v3669_v46 = vmul.f32 0.5, %v741_v14  ;;  %2524 = verf.f32 %v1212_v34 }
 0x15b   : > { %4150 = vst [vmem:[#allocation7_spill] sm:$0xff] %v3663_v2  ;;  %4151 = vst [vmem:[#allocation45_spill] sm:$0xff] %v3665_v40  ;;  %v3667_v17 = vmul.f32 %v1482_v30, %v1146_v15  ;;  %v1273_v63 = vmul.f32 0.70710677, %v747_v27  ;;  %v3671_v28 = vpop.f32.mrb[55].mxu0  ;;  %v3673_v11 = vpop.f32.mrb[55].mxu1  ;;  %2526 = verf.f32 %v1272_v21 }
 0x15c   : > { %4152 = vst [vmem:[#allocation46_spill] sm:$0xff] %v3671_v28  ;;  %4153 = vst [vmem:[#allocation47_spill] sm:$0xff] %v3673_v11  ;;  %v2515_v55 = vpop.eup %2514  ;;  %v1422_v7 = vadd.f32 1.0, %v2509_v18  ;;  %v3675_v24 = vmul.f32 %v1428_v51, %v1092_v16  ;;  %v1219_v40 = vmul.f32 0.70710677, %v860_v25  ;;  %v3679_v15 = vmul.f32 0.5, %v854_v57 }
 0x15d   : > { %v2517_v61 = vpop.eup %2516  ;;  %2528 = verf.f32 %v1218_v45  ;;  %v4154_v14 = vld [vmem:[#allocation18_spill] sm:$0xff]  ;;  %v4155_v34 = vld [vmem:[#allocation21_spill] sm:$0xff]  ;;  %v3684_v28 = vmul.f32 %v1476_v47, %v3591_v54  ;;  %v1483_v21 = vadd.f32 1.0, %v2515_v55  ;;  %v4157_v57 = vld [vmem:[#allocation8_spill] sm:$0xff]  ;;  %v1160_v11 = vmul.f32 0.5, %v745_v41 }
 0x15e   : > { %v2259_v30 = vpack.c.bf16 %v4155_v34, %v4154_v14  ;;  %v2519_v2 = vpop.eup %2518  ;;  %2530 = verf.f32 %v1273_v63  ;;  %v4156_v18 = vld [vmem:[#allocation14_spill] sm:$0xff]  ;;  %v864_v45 = vadd.f32 %v3406_v50, %v4157_v57  ;;  %v4158_v36 = vld [vmem:[#allocation24_spill] sm:$0xff]  ;;  %v3695_v54 = vmul.f32 %v1422_v7, %v3593_v9  ;;  %v4159_v63 = vld [vmem:[#allocation17_spill] sm:$0xff] }
 0x15f   : > { %v751_v51 = vadd.f32 %v3404_v33, %v4156_v18  ;;  %2532 = verf.f32 %v1219_v40  ;;  %v753_v14 = vadd.f32 %v4158_v36, %v4156_v18  ;;  %v2521_v34 = vpop.eup %2520  ;;  %v1429_v47 = vadd.f32 1.0, %v2517_v61  ;;  %v4163_v18 = vld [vmem:[#allocation22_spill] sm:$0xff] }
 0x160   : > { %2260 = vmatprep.subr.bf16.mxu1 %v2259_v30  ;;  %v4161_v58 = vpack.c.bf16 %v4159_v63, %v4160_v31  ;;  %v1489_v33 = vadd.f32 1.0, %v2519_v2  ;;  %v1106_v40 = vmul.f32 0.5, %v858_v60  ;;  %v3700_v55 = vmul.f32 0.5, %v747_v27  ;;  %v4164_v31 = vld [vmem:[#allocation23_spill] sm:$0xff] }
 0x161   : > { %v1279_v16 = vmul.f32 0.70710677, %v751_v51  ;;  %v1225_v30 = vmul.f32 0.70710677, %v864_v45  ;;  %v3702_v50 = vmul.f32 0.5, %v860_v25  ;;  %v866_v9 = vadd.f32 %v4162_v44, %v4157_v57  ;;  %v4168_v63 = vld [vmem:[#allocation35_spill] sm:$0xff] }
 0x162   : > { %2262 = vmatpush1.bf16.msra.mxu1 %v4161_v58  ;;  %v1280_v36 = vmul.f32 0.70710677, %v753_v14  ;;  %v3707_v41 = vmul.f32 %v1483_v21, %v3611_v26  ;;  %v1435_v61 = vadd.f32 1.0, %v2521_v34  ;;  %v2263_v58 = vpack.c.bf16 %v4164_v31, %v4163_v18  ;;  %v4165_v26 = vld [vmem:[#allocation15_spill] sm:$0xff]  ;;  %v4166_v21 = vld [vmem:[#allocation34_spill] sm:$0xff]  ;;  %v4167_v34 = vld [vmem:[#allocation9_spill] sm:$0xff] }
 0x163   : > { %2534 = verf.f32 %v1279_v16  ;;  %v2523_v7 = vpop.eup %2522  ;;  %v2283_v60 = vpack.c.bf16 %v3628_v32, %v3598_v5  ;;  %v3714_v27 = vmul.f32 %v1429_v47, %v3630_v56  ;;  %v3716_v25 = vmul.f32 0.5, %v751_v51  ;;  %v4169_v51 = vld [vmem:[#allocation20_spill] sm:$0xff] }
 0x164   : > { %2536 = verf.f32 %v1225_v30  ;;  %v1226_v2 = vmul.f32 0.70710677, %v866_v9  ;;  %v2525_v16 = vpop.eup %2524  ;;  %v3719_v44 = vmul.f32 %v1489_v33, %v3634_v53  ;;  %2264 = vmatprep.subr.bf16.mxu1 %v2263_v58  ;;  %v757_v18 = vadd.f32 %v4166_v21, %v4165_v26  ;;  %v4170_v30 = vld [vmem:[#allocation19_spill] sm:$0xff] }
 0x165   : > { %2538 = verf.f32 %v1280_v36  ;;  %2284 = vmatprep.subr.bf16.mxu0 %v2283_v60  ;;  %v870_v5 = vadd.f32 %v4168_v63, %v4167_v34  ;;  %v2527_v32 = vpop.eup %2526  ;;  %v1490_v56 = vadd.f32 1.0, %v2523_v7  ;;  %v3725_v47 = vmul.f32 0.5, %v864_v45  ;;  %v3740_v7 = vld [vmem:[%s4029_s3] sm:$0x3] }
 0x166   : > { %v4171_v31 = vpack.c.bf16 %v4169_v51, %v4170_v30  ;;  %v4172_v53 = vpack.c.bf16 %v3575_v23, %v3556_v29  ;;  %v759_v33 = vadd.f32 %v3439_v48, %v4165_v26  ;;  %v872_v36 = vadd.f32 %v3441_v35, %v4167_v34 }
 0x167   : > { %v2529_v45 = vpop.eup %2528  ;;  %v3743_v58 = vmul.f32 %v1435_v61, %v3645_v49  ;;  %v1496_v60 = vadd.f32 1.0, %v2527_v32  ;;  %v3745_v21 = vmul.f32 0.5, %v753_v14  ;;  %v1286_v29 = vmul.f32 0.70710677, %v757_v18 }
 0x168   : > { %2266 = vmatpush1.bf16.msra.mxu1 %v4171_v31  ;;  %2286 = vmatpush1.bf16.msra.mxu0 %v4172_v53  ;;  %v2531_v23 = vpop.eup %2530  ;;  %v1442_v63 = vadd.f32 1.0, %v2529_v45  ;;  %2540 = verf.f32 %v1226_v2  ;;  %v1232_v48 = vmul.f32 0.70710677, %v870_v5  ;;  %v1287_v51 = vmul.f32 0.70710677, %v759_v33 }
 0x169   : > { %v2533_v30 = vpop.eup %2532  ;;  %v1436_v35 = vadd.f32 1.0, %v2525_v16  ;;  %v3747_v31 = vmul.f32 %v1496_v60, %v1160_v11  ;;  %v3749_v53 = vmul.f32 0.5, %v866_v9  ;;  %2542 = verf.f32 %v1286_v29  ;;  %v4175_v29 = vld [vmem:[#allocation25_spill] sm:$0xff] }
 0x16a   : > { %v3753_v49 = vmul.f32 %v1490_v56, %v3669_v46  ;;  %v3755_v14 = vmul.f32 %v1442_v63, %v1106_v40  ;;  %2544 = verf.f32 %v1232_v48  ;;  %v1233_v61 = vmul.f32 0.70710677, %v872_v36  ;;  %v4174_v40 = vld [vmem:[#allocation10_spill] sm:$0xff] }
 0x16b   : > { %1699 = vmatmul.mubr.f32.vlgmr.msra.gmra.mrb[56].mxu1 %v3740_v7  ;;  %v4173_v32 = vmov 0.0   ;;  %v2293_v2 = vpack.c.bf16 %v3747_v31, %v3719_v44  ;;  %v1497_v16 = vadd.f32 1.0, %v2531_v23  ;;  %2546 = verf.f32 %v1287_v51  ;;  %v4189_v44 = vld [vmem:[#allocation38_spill] sm:$0xff] }
 0x16c   : > { %1840 = vmatprep.mubr.f32.mxu1 %v4173_v32  ;;  %v2299_v11 = vpack.c.bf16 %v3643_v8, %v3601_v59  ;;  %v1443_v46 = vadd.f32 1.0, %v2533_v30  ;;  %2548 = verf.f32 %v1233_v61  ;;  %v876_v56 = vadd.f32 %v3461_v19, %v4174_v40  ;;  %v4177_v30 = vld [vmem:[#allocation2_spill] sm:$0xff]  ;;  %v4178_v61 = vld [vmem:[#allocation4_spill] sm:$0xff] }
 0x16d   : > { %v2535_v9 = vpop.eup %2534  ;;  %v3767_v60 = vmul.f32 %v1436_v35, %v3679_v15  ;;  %v994_v23 = vadd.f32 %v4175_v29, %v4109_v10  ;;  %v878_v63 = vadd.f32 %v3475_v37, %v4174_v40  ;;  %v1174_v8 = vmul.f32 0.5, %v757_v18 }
 0x16e   : > { %2300 = vmatprep.subr.bf16.mxu1 %v2299_v11  ;;  %v2537_v59 = vpop.eup %2536  ;;  %v1239_v48 = vmul.f32 0.70710677, %v876_v56  ;;  %v4176_v51 = vpack.c.bf16 %v3581_v1, %v3573_v39  ;;  %v989_v19 = vadd.f32 %v4178_v61, %v4177_v30  ;;  %v2287_v15 = vpack.c.bf16 %v3707_v41, %v3684_v28 }
 0x16f   : > { %v2539_v35 = vpop.eup %2538  ;;  %v1503_v11 = vadd.f32 1.0, %v2535_v9  ;;  %v1120_v45 = vmul.f32 0.5, %v870_v5  ;;  %v3780_v10 = vmul.f32 0.5, %v759_v33  ;;  %v1192_v29 = vmul.f32 0.70710677, %v994_v23 }
 0x170   : > { %2302 = vmatpush1.bf16.msra.mxu1 %v4176_v51  ;;  %v3783_v37 = vmul.f32 %v1497_v16, %v3700_v55  ;;  %v3786_v18 = vmul.f32 %v1443_v46, %v3702_v50  ;;  %v3788_v39 = vmul.f32 0.5, %v872_v36  ;;  %2550 = verf.f32 %v1239_v48  ;;  %2288 = vmatprep.subr.bf16.mxu0 %v2287_v15  ;;  %v4180_v16 = vld [vmem:[#allocation11_spill] sm:$0xff]  ;;  %v4181_v36 = vld [vmem:[#allocation26_spill] sm:$0xff] }
 0x171   : > { %v1449_v1 = vadd.f32 1.0, %v2537_v59  ;;  %v3790_v51 = vmul.f32 0.5, %v876_v56  ;;  %2552 = verf.f32 %v1192_v29  ;;  %v1240_v28 = vmul.f32 0.70710677, %v878_v63  ;;  %v4182_v48 = vld [vmem:[#allocation27_spill] sm:$0xff] }
 0x172   : > { %v4179_v41 = vpack.c.bf16 %v3667_v17, %v3658_v13  ;;  %v2541_v5 = vpop.eup %2540  ;;  %v1504_v33 = vadd.f32 1.0, %v2539_v35  ;;  %v1185_v55 = vmul.f32 0.70710677, %v989_v19  ;;  %v2303_v50 = vpack.c.bf16 %v3714_v27, %v3695_v54  ;;  %v4183_v13 = vld [vmem:[#allocation28_spill] sm:$0xff] }
 0x173   : > { %v882_v9 = vadd.f32 %v4181_v36, %v4180_v16  ;;  %v2543_v46 = vpop.eup %2542  ;;  %v3800_v59 = vmul.f32 %v1503_v11, %v3716_v25  ;;  %v1080_v56 = vmul.f32 0.5, %v994_v23  ;;  %v1004_v30 = vadd.f32 %v4182_v48, %v4126_v6  ;;  %v4184_v54 = vld [vmem:[#allocation36_spill] sm:$0xff] }
 0x174   : > { %2290 = vmatpush1.bf16.msra.mxu0 %v4179_v41  ;;  %v884_v17 = vadd.f32 %v4183_v13, %v4180_v16  ;;  %v2545_v61 = vpop.eup %2544  ;;  %v1510_v15 = vadd.f32 1.0, %v2543_v46  ;;  %2554 = verf.f32 %v1185_v55  ;;  %2304 = vmatprep.subr.bf16.mxu1 %v2303_v50  ;;  %v999_v27 = vadd.f32 %v4184_v54, %v4119_v0  ;;  %v4188_v13 = vld [vmem:[#allocation29_spill] sm:$0xff] }
 0x175   : > { %v1246_v35 = vmul.f32 0.70710677, %v882_v9  ;;  %v2547_v29 = vpop.eup %2546  ;;  %v3809_v41 = vmul.f32 %v1449_v1, %v3725_v47  ;;  %v1456_v25 = vadd.f32 1.0, %v2545_v61  ;;  %2556 = verf.f32 %v1240_v28 }
 0x176   : > { %v1206_v23 = vmul.f32 0.70710677, %v1004_v30  ;;  %v4185_v6 = vpack.c.bf16 %v3675_v24, %v3661_v62  ;;  %v2549_v11 = vpop.eup %2548  ;;  %v3815_v36 = vmul.f32 %v1504_v33, %v3745_v21  ;;  %v3817_v55 = vmul.f32 %v1510_v15, %v1174_v8  ;;  %v4186_v8 = vld [vmem:[#allocation3_spill] sm:$0xff] }
 0x177   : > { %v3819_v50 = vmul.f32 0.5, %v878_v63  ;;  %2558 = verf.f32 %v1246_v35  ;;  %v1450_v0 = vadd.f32 1.0, %v2541_v5  ;;  %v3821_v46 = vmul.f32 %v1456_v25, %v1120_v45 }
 0x178   : > { %2306 = vmatpush1.bf16.msra.mxu1 %v4185_v6  ;;  %v1073_v47 = vmul.f32 0.5, %v989_v19  ;;  %2560 = verf.f32 %v1206_v23  ;;  %v2297_v1 = vpack.c.bf16 %v3817_v55, %v3800_v59  ;;  %v1511_v28 = vadd.f32 1.0, %v2547_v29  ;;  %v4187_v19 = vld [vmem:[#allocation37_spill] sm:$0xff]  ;;  %v4196_v59 = vld [vmem:[#allocation6_spill] sm:$0xff] }
 0x179   : > { %v1247_v62 = vmul.f32 0.70710677, %v884_v17  ;;  %v1199_v24 = vmul.f32 0.70710677, %v999_v27  ;;  %v2313_v21 = vpack.c.bf16 %v3821_v46, %v3809_v41  ;;  %v1457_v33 = vadd.f32 1.0, %v2549_v11 }
 0x17a   : > { %v888_v63 = vadd.f32 %v3517_v12, %v3014_v3  ;;  %v1014_v5 = vadd.f32 %v4186_v8, %v4146_v52  ;;  %v2551_v45 = vpop.eup %2550  ;;  %v890_v48 = vadd.f32 %v4187_v19, %v3014_v3  ;;  %v1009_v61 = vadd.f32 %v4188_v13, %v4134_v43 }
 0x17b   : > { %2562 = verf.f32 %v1199_v24  ;;  %v2291_v15 = vpack.c.bf16 %v3783_v37, %v3753_v49  ;;  %v2553_v35 = vpop.eup %2552  ;;  %v3838_v54 = vmul.f32 %v1450_v0, %v3749_v53  ;;  %v1134_v29 = vmul.f32 0.5, %v882_v9 }
 0x17c   : > { %v1094_v12 = vmul.f32 0.5, %v1004_v30  ;;  %v1253_v25 = vmul.f32 0.70710677, %v888_v63  ;;  %v1416_v23 = vadd.f32 1.0, %v2553_v35  ;;  %v3840_v52 = vmul.f32 0.5, %v884_v17 }
 0x17d   : > { %v1087_v6 = vmul.f32 0.5, %v999_v27  ;;  %v1220_v11 = vmul.f32 0.70710677, %v1014_v5  ;;  %2292 = vmatprep.subr.bf16.mxu0 %v2291_v15  ;;  %v3843_v24 = vmul.f32 %v1511_v28, %v3780_v10  ;;  %v3846_v43 = vmul.f32 %v1457_v33, %v3788_v39 }
 0x17e   : > { %v1463_v49 = vadd.f32 1.0, %v2551_v45  ;;  %2564 = verf.f32 %v1247_v62  ;;  %2294 = vmatpush1.bf16.msra.mxu0 %v2293_v2  ;;  %v2555_v53 = vpop.eup %2554  ;;  %v1254_v37 = vmul.f32 0.70710677, %v890_v48  ;;  %v1213_v9 = vmul.f32 0.70710677, %v1009_v61  ;;  %v4190_v2 = vld [vmem:[#allocation39_spill] sm:$0xff] }
 0x17f   : > { %2566 = verf.f32 %v1220_v11  ;;  %v2307_v30 = vpack.c.bf16 %v3786_v18, %v3767_v60  ;;  %v2557_v17 = vpop.eup %2556  ;;  %v3853_v27 = vmul.f32 %v1416_v23, %v1080_v56  ;;  %v1409_v10 = vadd.f32 1.0, %v2555_v53 }
 0x180   : > { %2568 = verf.f32 %v1253_v25  ;;  %v894_v39 = vadd.f32 %v3542_v20, %v3016_v4  ;;  %v3857_v28 = vmul.f32 0.5, %v888_v63  ;;  %v1024_v31 = vadd.f32 %v4189_v44, %v4167_v34  ;;  %v4192_v25 = vld [vmem:[#allocation5_spill] sm:$0xff] }
 0x181   : > { %v2559_v0 = vpop.eup %2558  ;;  %2570 = verf.f32 %v1213_v9  ;;  %2308 = vmatprep.subr.bf16.mxu1 %v2307_v30  ;;  %v896_v62 = vadd.f32 %v4190_v2, %v3016_v4  ;;  %v3863_v18 = vmul.f32 %v1409_v10, %v1073_v47  ;;  %v4191_v8 = vpack.c.bf16 %v3755_v14, %v3743_v58 }
 0x182   : > { %v2561_v60 = vpop.eup %2560  ;;  %v1470_v56 = vadd.f32 1.0, %v2559_v0  ;;  %v1260_v33 = vmul.f32 0.70710677, %v894_v39  ;;  %v1019_v20 = vadd.f32 %v3565_v22, %v4157_v57  ;;  %v1108_v45 = vmul.f32 0.5, %v1014_v5 }
 0x183   : > { %2310 = vmatpush1.bf16.msra.mxu1 %v4191_v8  ;;  %v1430_v63 = vadd.f32 1.0, %v2561_v60  ;;  %2572 = verf.f32 %v1254_v37  ;;  %v1234_v19 = vmul.f32 0.70710677, %v1024_v31  ;;  %v3871_v34 = vmul.f32 %v1463_v49, %v3790_v51  ;;  %v4194_v49 = vld [vmem:[#allocation41_spill] sm:$0xff] }
 0x184   : > { %v2332_v47 = vpack.c.bf16 %v3853_v27, %v3863_v18  ;;  %v3875_v13 = vmul.f32 %v1470_v56, %v1134_v29  ;;  %2574 = verf.f32 %v1260_v33  ;;  %v1464_v35 = vadd.f32 1.0, %v2557_v17  ;;  %v4193_v29 = vld [vmem:[#allocation40_spill] sm:$0xff] }
 0x185   : > { %v2563_v15 = vpop.eup %2562  ;;  %v3877_v58 = vmul.f32 0.5, %v890_v48  ;;  %2576 = verf.f32 %v1234_v19  ;;  %v1261_v14 = vmul.f32 0.70710677, %v896_v62  ;;  %v3881_v57 = vmul.f32 %v1430_v63, %v1094_v12 }
 0x186   : > { %v2317_v22 = vpack.c.bf16 %v3875_v13, %v3871_v34  ;;  %v1423_v5 = vadd.f32 1.0, %v2563_v15  ;;  %v1227_v51 = vmul.f32 0.70710677, %v1019_v20  ;;  %v900_v23 = vadd.f32 %v4192_v25, %v4132_v38 }
 0x187   : > { %2578 = verf.f32 %v1261_v14  ;;  %v1034_v11 = vadd.f32 %v4193_v29, %v4180_v16  ;;  %v3889_v48 = vadd.f32 %v4194_v49, %v4132_v38  ;;  %v1101_v9 = vmul.f32 0.5, %v1009_v61  ;;  %v4195_v16 = vld [vmem:[#allocation12_spill] sm:$0xff] }
 0x188   : > { %v2565_v53 = vpop.eup %2564  ;;  %v3891_v37 = vmul.f32 %v1423_v5, %v1087_v6  ;;  %2580 = verf.f32 %v1227_v51  ;;  %v2295_v12 = vpack.c.bf16 %v3843_v24, %v3815_v36  ;;  %v3896_v17 = vmul.f32 %v1464_v35, %v3819_v50 }
 0x189   : > { %v2567_v30 = vpop.eup %2566  ;;  %v1148_v27 = vmul.f32 0.5, %v894_v39  ;;  %v1267_v10 = vmul.f32 0.70710677, %v900_v23  ;;  %v3900_v0 = vadd.f32 %v4195_v16, %v4174_v40  ;;  %v1122_v61 = vmul.f32 0.5, %v1024_v31 }
 0x18a   : > { %v2569_v44 = vpop.eup %2568  ;;  %v2335_v6 = vpack.c.bf16 %v3881_v57, %v3891_v37  ;;  %v1444_v2 = vadd.f32 1.0, %v2567_v30  ;;  %v1248_v60 = vmul.f32 0.70710677, %v1034_v11  ;;  %2296 = vmatprep.subr.bf16.mxu0 %v2295_v12  ;;  %v1471_v36 = vadd.f32 1.0, %v2565_v53  ;;  %v4200_v53 = vld [vmem:[#allocation14_spill] sm:$0xff]  ;;  %v4201_v37 = vld [vmem:[#allocation31_spill] sm:$0xff] }
 0x18b   : > { %v2571_v18 = vpop.eup %2570  ;;  %v3904_v24 = vmul.f32 0.5, %v896_v62  ;;  %2582 = verf.f32 %v1267_v10  ;;  %v1268_v50 = vmul.f32 0.70710677, %v3889_v48  ;;  %2298 = vmatpush1.bf16.msra.mxu0 %v2297_v1  ;;  %v1115_v56 = vmul.f32 0.5, %v1019_v20  ;;  %v4197_v1 = vld [vmem:[#allocation30_spill] sm:$0xff] }
 0x18c   : > { %v3910_v40 = vmul.f32 %v1444_v2, %v1108_v45  ;;  %v1437_v39 = vadd.f32 1.0, %v2571_v18  ;;  %2584 = verf.f32 %v1248_v60  ;;  %v2640_v33 = vmov 0.0|0.0   ;;  %v4198_v45 = vld [vmem:[#allocation42_spill] sm:$0xff]  ;;  %v4202_v60 = vld [vmem:[#allocation32_spill] sm:$0xff] }
 0x18d   : > { %2331 = vmatprep.subr.bf16.mxu0 %v2640_v33  ;;  %v2573_v31 = vpop.eup %2572  ;;  %v1477_v8 = vadd.f32 1.0, %v2569_v44  ;;  %2586 = verf.f32 %v1268_v50  ;;  %v1241_v62 = vmul.f32 0.70710677, %v3900_v0  ;;  %v2311_v63 = vpack.c.bf16 %v3846_v43, %v3838_v54  ;;  %v4204_v50 = vld [vmem:[#allocation13_spill] sm:$0xff] }
 0x18e   : > { %v2575_v19 = vpop.eup %2574  ;;  %v1549_v15 = vmul.f32 %v1437_v39, %v1101_v9  ;;  %v906_v55 = vadd.f32 %v4196_v59, %v4145_v42  ;;  %v1044_v20 = vadd.f32 %v4197_v1, %v3016_v4  ;;  %v908_v35 = vadd.f32 %v4198_v45, %v4145_v42  ;;  %1770 = vmatmul.mubr.f32.vlgmr.msra.gmra.mrb[56].mxu0 %v3740_v7  ;;  %v4199_v4 = vld [vmem:[#allocation43_spill] sm:$0xff] }
 0x18f   : > { %v2577_v14 = vpop.eup %2576  ;;  %v1583_v57 = vmul.f32 %v1471_v36, %v3840_v52  ;;  %v1484_v5 = vadd.f32 1.0, %v2575_v19  ;;  %v3924_v51 = vmul.f32 0.5, %v900_v23  ;;  %2588 = verf.f32 %v1241_v62  ;;  %2312 = vmatprep.subr.bf16.mxu1 %v2311_v63  ;;  %2333 = vmatpush3.bf16.msra.mxu0 %v2332_v47  ;;  %v4205_v1 = vld [vmem:[#allocation7_spill] sm:$0xff] }
 0x190   : > { %v2338_v54 = vpack.c.bf16 %v3910_v40, %v1549_v15  ;;  %v1458_v43 = vadd.f32 1.0, %v2577_v14  ;;  %v1274_v25 = vmul.f32 0.70710677, %v906_v55  ;;  %2314 = vmatpush1.bf16.msra.mxu1 %v2313_v21  ;;  %v3932_v29 = vadd.f32 %v4199_v4, %v3014_v3  ;;  %2334 = vmatprep.subr.bf16.mxu0 %v2640_v33 }
 0x191   : > { %v2579_v52 = vpop.eup %2578  ;;  %v3936_v23 = vmul.f32 %v1477_v8, %v3857_v28  ;;  %v3938_v49 = vmul.f32 %v1484_v5, %v1148_v27  ;;  %v1262_v47 = vmul.f32 0.70710677, %v1044_v20  ;;  %v3942_v9 = vadd.f32 %v4201_v37, %v4200_v53  ;;  %2216 = vmatprep.mubr.msk.f32.mxu0 %vm2641_vm1, %v4173_v32 }
 0x192   : > { %v2581_v12 = vpop.eup %2580  ;;  %v1478_v41 = vadd.f32 1.0, %v2573_v31  ;;  %v1136_v46 = vmul.f32 0.5, %v1034_v11  ;;  %2590 = verf.f32 %v1274_v25  ;;  %v1275_v21 = vmul.f32 0.70710677, %v908_v35 }
 0x193   : > { %v2321_v3 = vpack.c.bf16 %v3938_v49, %v3936_v23  ;;  %v1570_v30 = vmul.f32 %v1458_v43, %v1122_v61  ;;  %v1451_v10 = vadd.f32 1.0, %v2581_v12  ;;  %2592 = verf.f32 %v1262_v47  ;;  %2336 = vmatpush3.bf16.msra.mxu0 %v2335_v6  ;;  %v4203_v61 = vld [vmem:[#allocation44_spill] sm:$0xff] }
 0x194   : > { %v1485_v28 = vadd.f32 1.0, %v2579_v52  ;;  %v1156_v27 = vmul.f32 0.5, %v3889_v48  ;;  %2594 = verf.f32 %v1275_v21  ;;  %v1255_v16 = vmul.f32 0.70710677, %v3932_v29  ;;  %2337 = vmatprep.subr.bf16.mxu0 %v2640_v33 }
 0x195   : > { %v2583_v44 = vpop.eup %2582  ;;  %v1563_v2 = vmul.f32 %v1451_v10, %v1115_v56  ;;  %v1281_v11 = vmul.f32 0.70710677, %v3942_v9  ;;  %v3952_v18 = vadd.f32 %v4202_v60, %v4145_v42  ;;  %v3956_v36 = vadd.f32 %v4203_v61, %v4200_v53 }
 0x196   : > { %v2585_v6 = vpop.eup %2584  ;;  %v1129_v48 = vmul.f32 0.5, %v3900_v0  ;;  %2596 = verf.f32 %v1255_v16  ;;  %v3961_v40 = vadd.f32 %v4204_v50, %v4132_v38  ;;  %v2315_v39 = vpack.c.bf16 %v1583_v57, %v3896_v17  ;;  %v4207_v57 = vld [vmem:[#allocation46_spill] sm:$0xff] }
 0x197   : > { %v2587_v56 = vpop.eup %2586  ;;  %v1590_v31 = vmul.f32 %v1478_v41, %v3877_v58  ;;  %v2341_v8 = vpack.c.bf16 %v1570_v30, %v1563_v2  ;;  %v1472_v42 = vadd.f32 1.0, %v2585_v6  ;;  %v1162_v62 = vmul.f32 0.5, %v906_v55  ;;  %2339 = vmatpush3.bf16.msra.mxu0 %v2338_v54  ;;  %v4208_v54 = vld [vmem:[#allocation47_spill] sm:$0xff] }
 0x198   : > { %v1597_v63 = vmul.f32 %v1485_v28, %v3904_v24  ;;  %v1150_v19 = vmul.f32 0.5, %v1044_v20  ;;  %v1163_v15 = vmul.f32 0.5, %v908_v35  ;;  %v1276_v0 = vmul.f32 0.70710677, %v3952_v18  ;;  %2316 = vmatprep.subr.bf16.mxu1 %v2315_v39  ;;  %2340 = vmatprep.subr.bf16.mxu0 %v2640_v33  ;;  %v4206_v35 = vld [vmem:[#allocation45_spill] sm:$0xff] }
 0x199   : > { %v2589_v38 = vpop.eup %2588  ;;  %v1491_v59 = vadd.f32 1.0, %v2583_v44  ;;  %2598 = verf.f32 %v1281_v11  ;;  %v1282_v17 = vmul.f32 0.70710677, %v3956_v36  ;;  %v1269_v58 = vmul.f32 0.70710677, %v3961_v40  ;;  %2318 = vmatpush1.bf16.msra.mxu1 %v2317_v22 }
 0x19a   : > { %v1584_v55 = vmul.f32 %v1472_v42, %v1136_v46  ;;  %v1465_v24 = vadd.f32 1.0, %v2589_v38  ;;  %2600 = verf.f32 %v1276_v0  ;;  %v3975_v20 = vadd.f32 %v4205_v1, %v4165_v26 }
 0x19b   : > { %v1492_v45 = vadd.f32 1.0, %v2587_v56  ;;  %2602 = verf.f32 %v1282_v17  ;;  %v3979_v14 = vadd.f32 %v4206_v35, %v4165_v26  ;;  %v3983_v5 = vadd.f32 %v4207_v57, %v4165_v26  ;;  %2342 = vmatpush3.bf16.msra.mxu0 %v2341_v8 }
 0x19c   : > { %v2591_v34 = vpop.eup %2590  ;;  %v1577_v13 = vmul.f32 %v1465_v24, %v1129_v48  ;;  %2604 = verf.f32 %v1269_v58  ;;  %v1288_v22 = vmul.f32 0.70710677, %v3975_v20  ;;  %v3988_v43 = vadd.f32 %v4208_v54, %v4200_v53  ;;  %2343 = vmatprep.subr.bf16.mxu0 %v2640_v33 }
 0x19d   : > { %v2593_v25 = vpop.eup %2592  ;;  %v1603_v4 = vmul.f32 %v1491_v59, %v3924_v51  ;;  %v1498_v52 = vadd.f32 1.0, %v2591_v34  ;;  %v1143_v47 = vmul.f32 0.5, %v3932_v29  ;;  %v1290_v26 = vmul.f32 0.70710677, %v3979_v14 }
 0x19e   : > { %v2595_v37 = vpop.eup %2594  ;;  %v2344_v12 = vpack.c.bf16 %v1584_v55, %v1577_v13  ;;  %v1486_v41 = vadd.f32 1.0, %v2593_v25  ;;  %2606 = verf.f32 %v1288_v22  ;;  %v1289_v46 = vmul.f32 0.70710677, %v3983_v5 }
 0x19f   : > { %v1604_v21 = vmul.f32 %v1492_v45, %v1156_v27  ;;  %v1610_v30 = vmul.f32 %v1498_v52, %v1162_v62  ;;  %v1499_v53 = vadd.f32 1.0, %v2595_v37  ;;  %2608 = verf.f32 %v1290_v26 }
 0x1a0   : > { %v2597_v10 = vpop.eup %2596  ;;  %v1598_v28 = vmul.f32 %v1486_v41, %v1150_v19  ;;  %2610 = verf.f32 %v1289_v46  ;;  %v1283_v51 = vmul.f32 0.70710677, %v3988_v43  ;;  %v2319_v16 = vpack.c.bf16 %v1597_v63, %v1590_v31  ;;  %2345 = vmatpush3.bf16.msra.mxu0 %v2344_v12 }
 0x1a1   : > { %v2325_v29 = vpack.c.bf16 %v1610_v30, %v1603_v4  ;;  %v1611_v44 = vmul.f32 %v1499_v53, %v1163_v15  ;;  %v1479_v2 = vadd.f32 1.0, %v2597_v10  ;;  %2346 = vmatprep.subr.bf16.mxu0 %v2640_v33  ;;  %v1164_v50 = vmul.f32 0.5, %v3952_v18 }
 0x1a2   : > { %2612 = verf.f32 %v1283_v51  ;;  %2320 = vmatprep.subr.bf16.mxu1 %v2319_v16  ;;  %v1157_v42 = vmul.f32 0.5, %v3961_v40  ;;  %v1169_v49 = vmul.f32 0.5, %v3942_v9  ;;  %v1176_v18 = vmul.f32 0.5, %v3975_v20 }
 0x1a3   : > { %v2599_v27 = vpop.eup %2598  ;;  %v1591_v11 = vmul.f32 %v1479_v2, %v1143_v47  ;;  %2322 = vmatpush1.bf16.msra.mxu1 %v2321_v3  ;;  %v2323_v60 = vpack.c.bf16 %v1611_v44, %v1604_v21  ;;  %v1170_v0 = vmul.f32 0.5, %v3956_v36  ;;  %v1178_v38 = vmul.f32 0.5, %v3979_v14 }
 0x1a4   : > { %v2601_v61 = vpop.eup %2600  ;;  %v1505_v31 = vadd.f32 1.0, %v2599_v27  ;;  %v1177_v59 = vmul.f32 0.5, %v3983_v5  ;;  %v1171_v9 = vmul.f32 0.5, %v3988_v43  ;;  %v1632_v5 = vpop.permute.xlu0 %1631  ;;  %v2642_v52 = vmov 1983009808  }
 0x1a5   : > { %v2603_v6 = vpop.eup %2602  ;;  %v2347_v48 = vpack.c.bf16 %v1598_v28, %v1591_v11  ;;  %v1500_v39 = vadd.f32 1.0, %v2601_v61  ;;  %2324 = vmatprep.subr.bf16.mxu1 %v2323_v60  ;;  %v1927_v47 = vunpack.c.l.s4 %v2642_v52 }
 0x1a6   : > { %v2605_v56 = vpop.eup %2604  ;;  %v1506_v63 = vadd.f32 1.0, %v2603_v6  ;;  %v1617_v17 = vmul.f32 %v1505_v31, %v1169_v49 }
 0x1a7   : > { %v1612_v8 = vmul.f32 %v1500_v39, %v1164_v50  ;;  %v1493_v32 = vadd.f32 1.0, %v2605_v56  ;;  %2326 = vmatpush1.bf16.msra.mxu1 %v2325_v29  ;;  %2348 = vmatpush3.bf16.msra.mxu0 %v2347_v48  ;;  %v1928_v26 = vunpack.c.0.s8 %v1927_v47 }
 0x1a8   : > { %v2607_v62 = vpop.eup %2606  ;;  %2349 = vmatprep.subr.bf16.mxu0 %v2640_v33  ;;  %v1618_v45 = vmul.f32 %v1506_v63, %v1170_v0 }
 0x1a9   : > { %v2609_v23 = vpop.eup %2608  ;;  %v1605_v3 = vmul.f32 %v1493_v32, %v1157_v42  ;;  %v1512_v19 = vadd.f32 1.0, %v2607_v62 }
 0x1aa   : > { %v2611_v15 = vpop.eup %2610  ;;  %v1514_v40 = vadd.f32 1.0, %v2609_v23 }
 0x1ab   : > { %v2350_v58 = vpack.c.bf16 %v1612_v8, %v1605_v3  ;;  %v1624_v55 = vmul.f32 %v1512_v19, %v1176_v18  ;;  %v1513_v24 = vadd.f32 1.0, %v2611_v15 }
 0x1ac   : > { %v2613_v1 = vpop.eup %2612  ;;  %v1626_v57 = vmul.f32 %v1514_v40, %v1178_v38 }
 0x1ad   : > { %v2329_v35 = vpack.c.bf16 %v1624_v55, %v1617_v17  ;;  %v1625_v20 = vmul.f32 %v1513_v24, %v1177_v59  ;;  %v1507_v34 = vadd.f32 1.0, %v2613_v1  ;;  %2351 = vmatpush3.bf16.msra.mxu0 %v2350_v58 }
 0x1ae   : > { %2352 = vmatprep.subr.bf16.mxu0 %v2640_v33  ;;  %v1929_v33 = vlaneseq }
 0x1af   : > { %v1619_v36 = vmul.f32 %v1507_v34, %v1171_v9  ;;  %v2327_v14 = vpack.c.bf16 %v1625_v20, %v1618_v45 }
 0x1b0   : > { %v1930_v37 = vshrl.u32 %v1929_v33, 7 }
 0x1b1   : > { %v2353_v13 = vpack.c.bf16 %v1626_v57, %v1619_v36  ;;  %2328 = vmatprep.subr.bf16.mxu1 %v2327_v14 }
 0x1b2   : > { %2330 = vmatpush1.bf16.msra.mxu1 %v2329_v35  ;;  %v1931_v21 = vsub.s32 %v1928_v26, %v1930_v37 }
 0x1b3   : > { %2354 = vmatpush3.bf16.msra.mxu0 %v2353_v13 }
 0x1b5   : > { %1841 = vmatmul.mubr.f32.vlgmr.msra.gmra.mrb[58].mxu1 %v3740_v7 }
 0x1b6   : > { %2217 = vmatmul.mubr.f32.vlgmr.msra.gmra.mrb[58].mxu0 %v3740_v7 }
 0x23e   : > { %v1700_v22 = vpop.f32.mrb[56].mxu1 }
 0x23f   : > { %v1701_v54 = vadd.f32 %v1700_v22, %v1632_v5  ;;  %v1702_v43 = vpop.f32.mrb[57].mxu1 }
 0x240   : > { %v1703_v25 = vadd.f32 %v1702_v43, %v1632_v5 }
 0x242   : > { %v1924_v4 = vcombine.low %v1701_v54, %v1703_v25 }
 0x244   : > { %v1932_v7 = vrot.slane %v1924_v4, %v1931_v21 }
 0x261   : > { %v1771_v12 = vpop.f32.mrb[56].mxu0 }
 0x262   : > { %v1772_v41 = vadd.f32 %v1771_v12, %v1632_v5  ;;  %v1773_v46 = vpop.f32.mrb[57].mxu0 }
 0x263   : > { %v1774_v30 = vadd.f32 %v1773_v46, %v1632_v5 }
 0x265   : > { %v1925_v53 = vcombine.low %v1772_v41, %v1774_v30 }
 0x267   : > { %v1939_v10 = vrot.slane %v1925_v53, %v1931_v21 }
 0x269   : > { %v1940_v28 = vcombine.low %v1932_v7, %v1939_v10 }
 0x26b   : > { %1959 = vst [vmem:[%s262_s9] sm:$0xff] %v1940_v28 }
 0x288   : > { %v1842_v51 = vpop.f32.mrb[58].mxu1 }
 0x289   : > { %v1843_v16 = vadd.f32 %v1842_v51, %v1632_v5  ;;  %v1913_v29 = vpop.f32.mrb[58].mxu0  ;;  %v1844_v44 = vpop.f32.mrb[59].mxu1 }
 0x28a   : > { %v1914_v2 = vadd.f32 %v1913_v29, %v1632_v5  ;;  %v1845_v27 = vadd.f32 %v1844_v44, %v1632_v5  ;;  %v2218_v11 = vpop.f32.mrb[59].mxu0 }
 0x28c   : > { %v1941_v60 = vcombine.low %v1843_v16, %v1845_v27  ;;  %v1955_v61 = vrot.slane %v1914_v2, %v1931_v21 }
 0x28e   : > { %v1948_v6 = vrot.slane %v1941_v60, %v1931_v21 }
 0x290   : > { %v1956_v48 = vcombine.low %v1948_v6, %v1955_v61 }
 0x292   : > { %1960 = vst [vmem:[%s262_s9 + $0x8] sm:$0x3f] %v1956_v48 }
 0x293 PF: > { %s15_s20 = sadd.s32 1, %s2636_s20   ;;  %s4209_s18 = smov %s2632_s19 }
 0x294   : > { %p12_p5 = scmp.ge.s32.totalorder %s15_s20, 4   ;;  %s4210_s19 = smov %s4212_s21 }
 0x296   :  { %14 = sbr.rel (!%p12_p5) target bundleno = 2 (0x2), region = 70 }

</bundles_post_ra>
